<compile_context>
chip_gen: v6e
topology: v6e:2x2x1
jax: 0.10.0
libtpu: 0.0.40
codegen_flags: <defaults>
</compile_context>

<pallas_src>
import functools
import math

import jax
import jax.numpy as jnp
from jax import lax
from jax.experimental import pallas as pl
from jax.experimental.pallas import tpu as pltpu

EPS = 1e-5
VMEM_LIMIT = 40 * 1024 * 1024        # leaves headroom under v7x's 64 MiB VMEM


# ----------------------------- Pallas kernels ------------------------------

def _conv3x3_bn_stats_kernel(x_ref, w_ref, y_ref, s_ref, ss_ref, *, ho, wo,
                             stride):
    """Direct 3x3 conv (input pre-padded) for one image + fused BN statistics.

    x_ref : (1, Hin, Win, Cin)  bf16   padded NHWC image (one batch element)
    w_ref : (9*Cin, Cout)       bf16   conv weight, (kh, kw, ci)-major rows
    y_ref : (1, Ho*Wo, Cout)    bf16   conv output rows for this image
    s_ref, ss_ref : (1, Cout)   f32    per-channel sum / sum-of-squares,
                                       accumulated across the batch grid axis
    """
    @pl.when(pl.program_id(0) == 0)
    def _():
        s_ref[...] = jnp.zeros_like(s_ref)
        ss_ref[...] = jnp.zeros_like(ss_ref)

    cin = x_ref.shape[-1]
    # In-VMEM im2col: 9 shifted patches concatenated along lanes, then ONE
    # MXU matmul with K = 9*Cin (instead of 9 K=Cin matmuls, each with a full
    # read-modify-write of the f32 accumulator).
    cols = []
    for kh in range(3):
        for kw in range(3):
            if stride == 1:
                patch = x_ref[0, kh:kh + ho, kw:kw + wo, :]
            else:
                # Strided taps without an HBM im2col: slice a contiguous band
                # and drop the unwanted rows/cols with split-reshapes (extra
                # bottom/right pad from the wrapper keeps this in bounds).
                band = x_ref[0, kh:kh + stride * ho, kw:kw + stride * wo, :]
                band = band.reshape(ho, stride, stride * wo, cin)[:, 0]
                patch = band.reshape(ho, wo, stride, cin)[:, :, 0]
            cols.append(patch.reshape(ho * wo, cin))
    col = jnp.concatenate(cols, axis=-1)                 # (Ho*Wo, 9*Cin) VMEM
    acc = jnp.dot(col, w_ref[...], preferred_element_type=jnp.float32)

    y_ref[...] = acc.reshape(y_ref.shape).astype(y_ref.dtype)
    s_ref[...] += jnp.sum(acc, axis=0, keepdims=True)
    ss_ref[...] += jnp.sum(acc * acc, axis=0, keepdims=True)


def _matmul_bn_stats_kernel(x_ref, w_ref, y_ref, s_ref, ss_ref):
    """(tm, K) @ (K, Cout) matmul (1x1 shortcut conv) + fused BN statistics."""
    @pl.when(pl.program_id(0) == 0)
    def _():
        s_ref[...] = jnp.zeros_like(s_ref)
        ss_ref[...] = jnp.zeros_like(ss_ref)

    acc = jnp.dot(x_ref[...], w_ref[...], preferred_element_type=jnp.float32)
    y_ref[...] = acc.astype(y_ref.dtype)
    s_ref[...] += jnp.sum(acc, axis=0, keepdims=True)
    ss_ref[...] += jnp.sum(acc * acc, axis=0, keepdims=True)


def _affine_relu_pad_kernel(y_ref, sc_ref, sh_ref, o_ref, *, ho, wo):
    """bn1 affine + ReLU, written into conv2's zero-padded bf16 input.

    y_ref : (1, Ho*Wo, C) bf16,  sc/sh : (1, C) f32,  o_ref : (1, Ho+2, Wo+2, C).
    """
    c = y_ref.shape[-1]
    val = y_ref[0].astype(jnp.float32) * sc_ref[...] + sh_ref[...]
    val = jnp.maximum(val, 0.0).astype(o_ref.dtype)
    o_ref[...] = jnp.zeros_like(o_ref)                       # zero halo
    o_ref[:, 1:1 + ho, 1:1 + wo, :] = val.reshape(1, ho, wo, c)


def _bn_add_kernel(y_ref, sc_ref, sh_ref, r_ref, o_ref):
    # bn2(conv2(out1)) + identity shortcut (bf16)
    o_ref[...] = (y_ref[...].astype(jnp.float32) * sc_ref[...] + sh_ref[...]
                  + r_ref[...].astype(jnp.float32))


def _bn_add_bn_kernel(y_ref, sc2_ref, sh2_ref, ys_ref, scs_ref, shs_ref, o_ref):
    # bn2(conv2(out1)) + bn_s(conv_s(x))  (downsample shortcut affine folded)
    o_ref[...] = (y_ref[...].astype(jnp.float32) * sc2_ref[...] + sh2_ref[...]
                  + ys_ref[...].astype(jnp.float32) * scs_ref[...] + shs_ref[...])


# ----------------------------- kernel wrappers ------------------------------

def _pick_tm(m):
    for tm in (512, 256, 128, 64, 32, 16, 8):
        if m % tm == 0:
            return tm
    return m                    # single full-extent block (always legal)


def _pack_factor(m, c):
    """Channel-pack factor k so elementwise kernels see a lane-dense
    (m//k, k*c) slab (last dim a multiple of 128 -> unmasked full-width vst)."""
    k = 128 // math.gcd(c, 128)
    return k if (k > 1 and m % k == 0) else 1


def conv3x3_bn_stats(x_pad_bf16, w_hwio_bf16, ho, wo, stride):
    """3x3 conv on a pre-padded NHWC bf16 input; returns (y_bf16, sum, sumsq)."""
    n, hp, wp, cin = x_pad_bf16.shape
    cout = w_hwio_bf16.shape[-1]
    w2d = w_hwio_bf16.reshape(9 * cin, cout)           # (kh, kw, ci)-major rows
    return pl.pallas_call(
        functools.partial(_conv3x3_bn_stats_kernel, ho=ho, wo=wo, stride=stride),
        out_shape=(jax.ShapeDtypeStruct((n, ho * wo, cout), jnp.bfloat16),
                   jax.ShapeDtypeStruct((1, cout), jnp.float32),
                   jax.ShapeDtypeStruct((1, cout), jnp.float32)),
        grid_spec=pltpu.PrefetchScalarGridSpec(
            num_scalar_prefetch=0,
            grid=(n,),
            in_specs=[pl.BlockSpec((1, hp, wp, cin), lambda i: (i, 0, 0, 0)),
                      pl.BlockSpec((9 * cin, cout), lambda i: (0, 0))],
            out_specs=[pl.BlockSpec((1, ho * wo, cout), lambda i: (i, 0, 0)),
                       pl.BlockSpec((1, cout), lambda i: (0, 0)),
                       pl.BlockSpec((1, cout), lambda i: (0, 0))]),
        compiler_params=pltpu.CompilerParams(
            # TODO(synk): per-grid-step partial stats -> "parallel" (v7x megacore)
            dimension_semantics=("arbitrary",),
            vmem_limit_bytes=VMEM_LIMIT),
    )(x_pad_bf16, w2d)


def matmul_bn_stats(x_bf16, w_bf16):
    m, k = x_bf16.shape
    _, c = w_bf16.shape
    tm = _pick_tm(m)
    # TODO(synk): add (tm, tn, tk) tiling for 256/512-channel layers.
    return pl.pallas_call(
        _matmul_bn_stats_kernel,
        out_shape=(jax.ShapeDtypeStruct((m, c), jnp.bfloat16),
                   jax.ShapeDtypeStruct((1, c), jnp.float32),
                   jax.ShapeDtypeStruct((1, c), jnp.float32)),
        grid_spec=pltpu.PrefetchScalarGridSpec(
            num_scalar_prefetch=0,
            grid=(m // tm,),
            in_specs=[pl.BlockSpec((tm, k), lambda i: (i, 0)),
                      pl.BlockSpec((k, c), lambda i: (0, 0))],
            out_specs=[pl.BlockSpec((tm, c), lambda i: (i, 0)),
                       pl.BlockSpec((1, c), lambda i: (0, 0)),
                       pl.BlockSpec((1, c), lambda i: (0, 0))]),
        compiler_params=pltpu.CompilerParams(
            dimension_semantics=("arbitrary",),
            vmem_limit_bytes=VMEM_LIMIT),
    )(x_bf16, w_bf16)


def affine_relu_pad(y, scale, shift, ho, wo):
    """bn1 affine + ReLU; output is the zero-padded bf16 NHWC input of conv2."""
    n, hw, c = y.shape
    return pl.pallas_call(
        functools.partial(_affine_relu_pad_kernel, ho=ho, wo=wo),
        out_shape=jax.ShapeDtypeStruct((n, ho + 2, wo + 2, c), jnp.bfloat16),
        grid_spec=pltpu.PrefetchScalarGridSpec(
            num_scalar_prefetch=0,
            grid=(n,),
            in_specs=[pl.BlockSpec((1, hw, c), lambda i: (i, 0, 0)),
                      pl.BlockSpec((1, c), lambda i: (0, 0)),
                      pl.BlockSpec((1, c), lambda i: (0, 0))],
            out_specs=pl.BlockSpec((1, ho + 2, wo + 2, c),
                                   lambda i: (i, 0, 0, 0))),
        compiler_params=pltpu.CompilerParams(
            dimension_semantics=("parallel",),
            vmem_limit_bytes=VMEM_LIMIT),
    )(y, scale, shift)


def _launch_epilogue(kernel, args, m, c):
    """args: list of (array, is_rowwise).  Row-wise args are (m, c) bf16 slabs;
    the rest are per-channel (1, c) f32 broadcasts.  Everything is channel-
    packed to a lane-dense (m//k, k*c) layout; result is (m, c) f32."""
    k = _pack_factor(m, c)
    mp, cp = m // k, c * k
    tm = _pick_tm(mp)
    operands, specs = [], []
    for a, rowwise in args:
        if rowwise:
            operands.append(a.reshape(mp, cp))
            specs.append(pl.BlockSpec((tm, cp), lambda i: (i, 0)))
        else:
            operands.append(jnp.tile(a.reshape(1, c), (1, k)))
            specs.append(pl.BlockSpec((1, cp), lambda i: (0, 0)))
    out = pl.pallas_call(
        kernel,
        out_shape=jax.ShapeDtypeStruct((mp, cp), jnp.float32),
        grid_spec=pltpu.PrefetchScalarGridSpec(
            num_scalar_prefetch=0,
            grid=(mp // tm,),
            in_specs=specs,
            out_specs=pl.BlockSpec((tm, cp), lambda i: (i, 0))),
        compiler_params=pltpu.CompilerParams(
            dimension_semantics=("parallel",),
            vmem_limit_bytes=VMEM_LIMIT),
    )(*operands)
    return out.reshape(m, c)


# --------------------------------- glue -------------------------------------

def bn_scale_shift(s, ss, m, gamma, beta):
    mean = s / m
    var = jnp.maximum(ss / m - mean * mean, 0.0)   # biased var, clamped >= 0
    scale = gamma.reshape(1, -1).astype(jnp.float32) * lax.rsqrt(var + EPS)
    shift = beta.reshape(1, -1).astype(jnp.float32) - mean * scale
    return scale, shift


def conv_w_to_hwio(w_oihw):
    # (Cout, Cin, kh, kw) -> (kh, kw, Cin, Cout)
    return jnp.transpose(w_oihw, (2, 3, 1, 0))


def basic_block_forward(x_nchw, params, stride=1):
    x = jnp.transpose(x_nchw, (0, 2, 3, 1)).astype(jnp.bfloat16)   # NHWC bf16
    n, h, w, cin = x.shape
    planes = params["conv1_w"].shape[0]

    ho = (h - 1) // stride + 1
    wo = (w - 1) // stride + 1
    m = n * ho * wo

    # conv1 -> bn1 stats fused.  Pad 1 + extra bottom/right rows so the
    # in-kernel strided tap bands stay in bounds when stride > 1.
    pad_b = max(0, stride * ho - h)
    pad_r = max(0, stride * wo - w)
    xp = jnp.pad(x, ((0, 0), (1, 1 + pad_b), (1, 1 + pad_r), (0, 0)))
    w1 = conv_w_to_hwio(params["conv1_w"]).astype(jnp.bfloat16)
    y1, s1, q1 = conv3x3_bn_stats(xp, w1, ho, wo, stride)
    sc1, sh1 = bn_scale_shift(s1, q1, m, params["bn1_g"], params["bn1_b"])

    # bn1 affine + ReLU, written straight into conv2's padded bf16 input.
    o1p = affine_relu_pad(y1, sc1, sh1, ho, wo)       # (n, ho+2, wo+2, planes)

    # conv2 (stride 1) -> bn2 stats fused (affine fused into the residual add).
    w2 = conv_w_to_hwio(params["conv2_w"]).astype(jnp.bfloat16)
    y2, s2, q2 = conv3x3_bn_stats(o1p, w2, ho, wo, 1)
    sc2, sh2 = bn_scale_shift(s2, q2, m, params["bn2_g"], params["bn2_b"])
    y2f = y2.reshape(m, planes)

    if stride != 1 or cin != planes:
        # 1x1 strided conv == channel matmul on the spatially-subsampled input.
        xs = x[:, ::stride, ::stride, :].reshape(m, cin)
        ws = conv_w_to_hwio(params["convs_w"]).reshape(cin, planes)
        ys, ssum, ssq = matmul_bn_stats(xs, ws.astype(jnp.bfloat16))
        scs, shs = bn_scale_shift(ssum, ssq, m, params["bns_g"], params["bns_b"])
        # out = bn2(conv2(out1)) + bn_s(conv_s(x)) -- shortcut affine folded in.
        out = _launch_epilogue(
            _bn_add_bn_kernel,
            [(y2f, True), (sc2, False), (sh2, False),
             (ys, True), (scs, False), (shs, False)], m, planes)
    else:
        res = x.reshape(m, cin)                 # bf16 identity residual
        out = _launch_epilogue(
            _bn_add_kernel,
            [(y2f, True), (sc2, False), (sh2, False), (res, True)], m, planes)

    out = out.reshape(n, ho, wo, planes)
    return jnp.transpose(out, (0, 3, 1, 2))                        # -> NCHW


# ------------------------------ reference -----------------------------------

def reference_forward(x, params, stride=1):
    def conv(x, w, s, p):
        return lax.conv_general_dilated(
            x, w, (s, s), ((p, p), (p, p)),
            dimension_numbers=("NCHW", "OIHW", "NCHW"),
            precision=lax.Precision.HIGHEST)

    def bn(y, g, b):
        mean = jnp.mean(y, axis=(0, 2, 3), keepdims=True)
        var = jnp.mean((y - mean) ** 2, axis=(0, 2, 3), keepdims=True)
        return ((y - mean) / jnp.sqrt(var + EPS)) * g.reshape(1, -1, 1, 1) \
            + b.reshape(1, -1, 1, 1)

    out = jax.nn.relu(bn(conv(x, params["conv1_w"], stride, 1),
                         params["bn1_g"], params["bn1_b"]))
    out = bn(conv(out, params["conv2_w"], 1, 1),
             params["bn2_g"], params["bn2_b"])
    cin, planes = x.shape[1], params["conv1_w"].shape[0]
    if stride != 1 or cin != planes:
        sc = bn(conv(x, params["convs_w"], stride, 0),
                params["bns_g"], params["bns_b"])
    else:
        sc = x
    return out + sc


# --------------------------------- main --------------------------------------

if __name__ == "__main__":
    key = jax.random.PRNGKey(0)
    in_planes, planes, stride = 4, 8, 1          # stride=1, in!=out -> 1x1 shortcut
    N, H, W = 2, 16, 16

    ks = jax.random.split(key, 8)
    params = {
        "conv1_w": 0.1 * jax.random.normal(ks[0], (planes, in_planes, 3, 3), jnp.float32),
        "bn1_g": 1.0 + 0.1 * jax.random.normal(ks[1], (planes,), jnp.float32),
        "bn1_b": 0.1 * jax.random.normal(ks[2], (planes,), jnp.float32),
        "conv2_w": 0.1 * jax.random.normal(ks[3], (planes, planes, 3, 3), jnp.float32),
        "bn2_g": 1.0 + 0.1 * jax.random.normal(ks[4], (planes,), jnp.float32),
        "bn2_b": 0.1 * jax.random.normal(ks[5], (planes,), jnp.float32),
        "convs_w": 0.1 * jax.random.normal(ks[6], (planes, in_planes, 1, 1), jnp.float32),
        "bns_g": jnp.ones((planes,), jnp.float32),
        "bns_b": jnp.zeros((planes,), jnp.float32),
    }

    x = jax.random.normal(jax.random.PRNGKey(1), (N, in_planes, H, W), jnp.float32)

    fwd = jax.jit(functools.partial(basic_block_forward, stride=stride))
    out = jax.block_until_ready(fwd(x, params))

    ref = jax.block_until_ready(reference_forward(x, params, stride=stride))
    assert out.shape == ref.shape, (out.shape, ref.shape)
    max_err = float(jnp.max(jnp.abs(out - ref)))
    # bf16 MXU operands + bf16 storage of intermediates vs. an f32 reference.
    assert jnp.allclose(out, ref, atol=4e-2, rtol=2e-2), max_err

    print("KERNEL_OK")
</pallas_src>

<mosaic_0001>
module attributes {stable_mosaic.version = 11 : i64} {
  func.func @_matmul_bn_stats_kernel(%arg0: i32, %arg1: memref<512x4xbf16, #tpu.memory_space<vmem>>, %arg2: memref<4x8xbf16, #tpu.memory_space<vmem>>, %arg3: memref<512x8xbf16, #tpu.memory_space<vmem>>, %arg4: memref<1x8xf32, #tpu.memory_space<vmem>>, %arg5: memref<1x8xf32, #tpu.memory_space<vmem>>) attributes {dimension_semantics = [#tpu.dimension_semantics<arbitrary>], iteration_bounds = array<i64: 1>, scalar_prefetch = 0 : i64, scratch_operands = 0 : i64, tpu.core_type = #tpu.core_type<tc>, window_params = [{transform_indices = @transform_0, window_bounds = array<i64: 512, 4>}, {pipeline_mode = #tpu.pipeline_mode<synchronous>, transform_indices = @transform_1, window_bounds = array<i64: 4, 8>}, {transform_indices = @transform_2, window_bounds = array<i64: 512, 8>}, {pipeline_mode = #tpu.pipeline_mode<synchronous>, transform_indices = @transform_3, window_bounds = array<i64: 1, 8>}, {pipeline_mode = #tpu.pipeline_mode<synchronous>, transform_indices = @transform_4, window_bounds = array<i64: 1, 8>}]} {
    %c0_i32 = arith.constant 0 : i32
    %0 = arith.cmpi eq, %arg0, %c0_i32 : i32
    %1 = arith.extui %0 : i1 to i32
    %c0_i32_0 = arith.constant 0 : i32
    %2 = arith.cmpi ne, %1, %c0_i32_0 : i32
    scf.if %2 {
      %cst_16 = arith.constant 0.000000e+00 : f32
      %19 = vector.broadcast %cst_16 : f32 to vector<1x8xf32>
      %c0_17 = arith.constant 0 : index
      %c0_18 = arith.constant 0 : index
      %20 = vector.load %arg4[%c0_17, %c0_18] : memref<1x8xf32, #tpu.memory_space<vmem>>, vector<1x8xf32>
      tpu.vector_store %arg4[%c0_17, %c0_18], %19 {strides = array<i32>} : memref<1x8xf32, #tpu.memory_space<vmem>>, vector<1x8xf32>,
      %cst_19 = arith.constant 0.000000e+00 : f32
      %21 = vector.broadcast %cst_19 : f32 to vector<1x8xf32>
      %c0_20 = arith.constant 0 : index
      %c0_21 = arith.constant 0 : index
      %22 = vector.load %arg5[%c0_20, %c0_21] : memref<1x8xf32, #tpu.memory_space<vmem>>, vector<1x8xf32>
      tpu.vector_store %arg5[%c0_20, %c0_21], %21 {strides = array<i32>} : memref<1x8xf32, #tpu.memory_space<vmem>>, vector<1x8xf32>,
    } else {
    }
    %c0 = arith.constant 0 : index
    %c0_1 = arith.constant 0 : index
    %3 = vector.load %arg1[%c0, %c0_1] : memref<512x4xbf16, #tpu.memory_space<vmem>>, vector<512x4xbf16>
    %c0_2 = arith.constant 0 : index
    %c0_3 = arith.constant 0 : index
    %4 = vector.load %arg2[%c0_2, %c0_3] : memref<4x8xbf16, #tpu.memory_space<vmem>>, vector<4x8xbf16>
    %cst = arith.constant dense<0.000000e+00> : vector<512x8xf32>
    %5 = tpu.matmul %3, %4, %cst {dimension_numbers = #tpu.dot_dimension_numbers<[1], [0], [0], [1], [0, 0, 1, 1], [], []>} : vector<512x4xbf16>, vector<4x8xbf16>, vector<512x8xf32> -> vector<512x8xf32>
    %6 = arith.truncf %5 : vector<512x8xf32> to vector<512x8xbf16>
    %c0_4 = arith.constant 0 : index
    %c0_5 = arith.constant 0 : index
    %7 = vector.load %arg3[%c0_4, %c0_5] : memref<512x8xbf16, #tpu.memory_space<vmem>>, vector<512x8xbf16>
    tpu.vector_store %arg3[%c0_4, %c0_5], %6 {strides = array<i32>} : memref<512x8xbf16, #tpu.memory_space<vmem>>, vector<512x8xbf16>,
    %c0_6 = arith.constant 0 : index
    %c0_7 = arith.constant 0 : index
    %8 = vector.load %arg4[%c0_6, %c0_7] : memref<1x8xf32, #tpu.memory_space<vmem>>, vector<1x8xf32>
    %cst_8 = arith.constant dense<0.000000e+00> : vector<8xf32>
    %9 = vector.multi_reduction <add>, %5, %cst_8 [0] : vector<512x8xf32> to vector<8xf32>
    %10 = vector.shape_cast %9 : vector<8xf32> to vector<1x8xf32>
    %11 = arith.addf %8, %10 : vector<1x8xf32>
    %c0_9 = arith.constant 0 : index
    %c0_10 = arith.constant 0 : index
    %12 = vector.load %arg4[%c0_9, %c0_10] : memref<1x8xf32, #tpu.memory_space<vmem>>, vector<1x8xf32>
    tpu.vector_store %arg4[%c0_9, %c0_10], %11 {strides = array<i32>} : memref<1x8xf32, #tpu.memory_space<vmem>>, vector<1x8xf32>,
    %c0_11 = arith.constant 0 : index
    %c0_12 = arith.constant 0 : index
    %13 = vector.load %arg5[%c0_11, %c0_12] : memref<1x8xf32, #tpu.memory_space<vmem>>, vector<1x8xf32>
    %14 = arith.mulf %5, %5 : vector<512x8xf32>
    %cst_13 = arith.constant dense<0.000000e+00> : vector<8xf32>
    %15 = vector.multi_reduction <add>, %14, %cst_13 [0] : vector<512x8xf32> to vector<8xf32>
    %16 = vector.shape_cast %15 : vector<8xf32> to vector<1x8xf32>
    %17 = arith.addf %13, %16 : vector<1x8xf32>
    %c0_14 = arith.constant 0 : index
    %c0_15 = arith.constant 0 : index
    %18 = vector.load %arg5[%c0_14, %c0_15] : memref<1x8xf32, #tpu.memory_space<vmem>>, vector<1x8xf32>
    tpu.vector_store %arg5[%c0_14, %c0_15], %17 {strides = array<i32>} : memref<1x8xf32, #tpu.memory_space<vmem>>, vector<1x8xf32>,
    return
  }
  func.func @transform_0(%arg0: i32) -> (i32, i32) {
    %c0_i32 = arith.constant 0 : i32
    %c0_i32_0 = arith.constant 0 : i32
    return %arg0, %c0_i32 : i32, i32
  }
  func.func @transform_1(%arg0: i32) -> (i32, i32) {
    %c0_i32 = arith.constant 0 : i32
    %c0_i32_0 = arith.constant 0 : i32
    %c0_i32_1 = arith.constant 0 : i32
    return %c0_i32, %c0_i32_0 : i32, i32
  }
  func.func @transform_2(%arg0: i32) -> (i32, i32) {
    %c0_i32 = arith.constant 0 : i32
    %c0_i32_0 = arith.constant 0 : i32
    return %arg0, %c0_i32 : i32, i32
  }
  func.func @transform_3(%arg0: i32) -> (i32, i32) {
    %c0_i32 = arith.constant 0 : i32
    %c0_i32_0 = arith.constant 0 : i32
    %c0_i32_1 = arith.constant 0 : i32
    return %c0_i32, %c0_i32_0 : i32, i32
  }
  func.func @transform_4(%arg0: i32) -> (i32, i32) {
    %c0_i32 = arith.constant 0 : i32
    %c0_i32_0 = arith.constant 0 : i32
    %c0_i32_1 = arith.constant 0 : i32
    return %c0_i32, %c0_i32_0 : i32, i32
  }
}

module attributes {stable_mosaic.version = 11 : i64} {
  func.func @_conv3x3_bn_stats_kernel(%arg0: i32, %arg1: memref<1x18x18x4xbf16, #tpu.memory_space<vmem>>, %arg2: memref<36x8xbf16, #tpu.memory_space<vmem>>, %arg3: memref<1x256x8xbf16, #tpu.memory_space<vmem>>, %arg4: memref<1x8xf32, #tpu.memory_space<vmem>>, %arg5: memref<1x8xf32, #tpu.memory_space<vmem>>) attributes {dimension_semantics = [#tpu.dimension_semantics<arbitrary>], iteration_bounds = array<i64: 2>, scalar_prefetch = 0 : i64, scratch_operands = 0 : i64, tpu.core_type = #tpu.core_type<tc>, window_params = [{transform_indices = @transform_0, window_bounds = array<i64: 1, 18, 18, 4>}, {pipeline_mode = #tpu.pipeline_mode<synchronous>, transform_indices = @transform_1, window_bounds = array<i64: 36, 8>}, {transform_indices = @transform_2, window_bounds = array<i64: 1, 256, 8>}, {pipeline_mode = #tpu.pipeline_mode<synchronous>, transform_indices = @transform_3, window_bounds = array<i64: 1, 8>}, {pipeline_mode = #tpu.pipeline_mode<synchronous>, transform_indices = @transform_4, window_bounds = array<i64: 1, 8>}]} {
    %c0_i32 = arith.constant 0 : i32
    %0 = arith.cmpi eq, %arg0, %c0_i32 : i32
    %1 = arith.extui %0 : i1 to i32
    %c0_i32_0 = arith.constant 0 : i32
    %2 = arith.cmpi ne, %1, %c0_i32_0 : i32
    scf.if %2 {
      %cst_49 = arith.constant 0.000000e+00 : f32
      %47 = vector.broadcast %cst_49 : f32 to vector<1x8xf32>
      %c0_50 = arith.constant 0 : index
      %c0_51 = arith.constant 0 : index
      %48 = vector.load %arg4[%c0_50, %c0_51] : memref<1x8xf32, #tpu.memory_space<vmem>>, vector<1x8xf32>
      tpu.vector_store %arg4[%c0_50, %c0_51], %47 {strides = array<i32>} : memref<1x8xf32, #tpu.memory_space<vmem>>, vector<1x8xf32>,
      %cst_52 = arith.constant 0.000000e+00 : f32
      %49 = vector.broadcast %cst_52 : f32 to vector<1x8xf32>
      %c0_53 = arith.constant 0 : index
      %c0_54 = arith.constant 0 : index
      %50 = vector.load %arg5[%c0_53, %c0_54] : memref<1x8xf32, #tpu.memory_space<vmem>>, vector<1x8xf32>
      tpu.vector_store %arg5[%c0_53, %c0_54], %49 {strides = array<i32>} : memref<1x8xf32, #tpu.memory_space<vmem>>, vector<1x8xf32>,
    } else {
    }
    %c0 = arith.constant 0 : index
    %c0_1 = arith.constant 0 : index
    %c0_2 = arith.constant 0 : index
    %c0_3 = arith.constant 0 : index
    %3 = vector.load %arg1[%c0, %c0_1, %c0_2, %c0_3] : memref<1x18x18x4xbf16, #tpu.memory_space<vmem>>, vector<1x16x16x4xbf16>
    %4 = vector.shape_cast %3 : vector<1x16x16x4xbf16> to vector<16x16x4xbf16>
    %5 = vector.shape_cast %4 : vector<16x16x4xbf16> to vector<256x4xbf16>
    %c0_4 = arith.constant 0 : index
    %c0_5 = arith.constant 0 : index
    %c1 = arith.constant 1 : index
    %c0_6 = arith.constant 0 : index
    %6 = vector.load %arg1[%c0_4, %c0_5, %c1, %c0_6] : memref<1x18x18x4xbf16, #tpu.memory_space<vmem>>, vector<1x16x16x4xbf16>
    %7 = vector.shape_cast %6 : vector<1x16x16x4xbf16> to vector<16x16x4xbf16>
    %8 = vector.shape_cast %7 : vector<16x16x4xbf16> to vector<256x4xbf16>
    %c0_7 = arith.constant 0 : index
    %c0_8 = arith.constant 0 : index
    %c2 = arith.constant 2 : index
    %c0_9 = arith.constant 0 : index
    %9 = vector.load %arg1[%c0_7, %c0_8, %c2, %c0_9] : memref<1x18x18x4xbf16, #tpu.memory_space<vmem>>, vector<1x16x16x4xbf16>
    %10 = vector.shape_cast %9 : vector<1x16x16x4xbf16> to vector<16x16x4xbf16>
    %11 = vector.shape_cast %10 : vector<16x16x4xbf16> to vector<256x4xbf16>
    %c0_10 = arith.constant 0 : index
    %c1_11 = arith.constant 1 : index
    %c0_12 = arith.constant 0 : index
    %c0_13 = arith.constant 0 : index
    %12 = vector.load %arg1[%c0_10, %c1_11, %c0_12, %c0_13] : memref<1x18x18x4xbf16, #tpu.memory_space<vmem>>, vector<1x16x16x4xbf16>
    %13 = vector.shape_cast %12 : vector<1x16x16x4xbf16> to vector<16x16x4xbf16>
    %14 = vector.shape_cast %13 : vector<16x16x4xbf16> to vector<256x4xbf16>
    %c0_14 = arith.constant 0 : index
    %c1_15 = arith.constant 1 : index
    %c1_16 = arith.constant 1 : index
    %c0_17 = arith.constant 0 : index
    %15 = vector.load %arg1[%c0_14, %c1_15, %c1_16, %c0_17] : memref<1x18x18x4xbf16, #tpu.memory_space<vmem>>, vector<1x16x16x4xbf16>
    %16 = vector.shape_cast %15 : vector<1x16x16x4xbf16> to vector<16x16x4xbf16>
    %17 = vector.shape_cast %16 : vector<16x16x4xbf16> to vector<256x4xbf16>
    %c0_18 = arith.constant 0 : index
    %c1_19 = arith.constant 1 : index
    %c2_20 = arith.constant 2 : index
    %c0_21 = arith.constant 0 : index
    %18 = vector.load %arg1[%c0_18, %c1_19, %c2_20, %c0_21] : memref<1x18x18x4xbf16, #tpu.memory_space<vmem>>, vector<1x16x16x4xbf16>
    %19 = vector.shape_cast %18 : vector<1x16x16x4xbf16> to vector<16x16x4xbf16>
    %20 = vector.shape_cast %19 : vector<16x16x4xbf16> to vector<256x4xbf16>
    %c0_22 = arith.constant 0 : index
    %c2_23 = arith.constant 2 : index
    %c0_24 = arith.constant 0 : index
    %c0_25 = arith.constant 0 : index
    %21 = vector.load %arg1[%c0_22, %c2_23, %c0_24, %c0_25] : memref<1x18x18x4xbf16, #tpu.memory_space<vmem>>, vector<1x16x16x4xbf16>
    %22 = vector.shape_cast %21 : vector<1x16x16x4xbf16> to vector<16x16x4xbf16>
    %23 = vector.shape_cast %22 : vector<16x16x4xbf16> to vector<256x4xbf16>
    %c0_26 = arith.constant 0 : index
    %c2_27 = arith.constant 2 : index
    %c1_28 = arith.constant 1 : index
    %c0_29 = arith.constant 0 : index
    %24 = vector.load %arg1[%c0_26, %c2_27, %c1_28, %c0_29] : memref<1x18x18x4xbf16, #tpu.memory_space<vmem>>, vector<1x16x16x4xbf16>
    %25 = vector.shape_cast %24 : vector<1x16x16x4xbf16> to vector<16x16x4xbf16>
    %26 = vector.shape_cast %25 : vector<16x16x4xbf16> to vector<256x4xbf16>
    %c0_30 = arith.constant 0 : index
    %c2_31 = arith.constant 2 : index
    %c2_32 = arith.constant 2 : index
    %c0_33 = arith.constant 0 : index
    %27 = vector.load %arg1[%c0_30, %c2_31, %c2_32, %c0_33] : memref<1x18x18x4xbf16, #tpu.memory_space<vmem>>, vector<1x16x16x4xbf16>
    %28 = vector.shape_cast %27 : vector<1x16x16x4xbf16> to vector<16x16x4xbf16>
    %29 = vector.shape_cast %28 : vector<16x16x4xbf16> to vector<256x4xbf16>
    %30 = tpu.concatenate %5, %8, %11, %14, %17, %20, %23, %26, %29 in 1 : vector<256x4xbf16>, vector<256x4xbf16>, vector<256x4xbf16>, vector<256x4xbf16>, vector<256x4xbf16>, vector<256x4xbf16>, vector<256x4xbf16>, vector<256x4xbf16>, vector<256x4xbf16> -> vector<256x36xbf16>
    %c0_34 = arith.constant 0 : index
    %c0_35 = arith.constant 0 : index
    %31 = vector.load %arg2[%c0_34, %c0_35] : memref<36x8xbf16, #tpu.memory_space<vmem>>, vector<36x8xbf16>
    %cst = arith.constant dense<0.000000e+00> : vector<256x8xf32>
    %32 = tpu.matmul %30, %31, %cst {dimension_numbers = #tpu.dot_dimension_numbers<[1], [0], [0], [1], [0, 0, 1, 1], [], []>} : vector<256x36xbf16>, vector<36x8xbf16>, vector<256x8xf32> -> vector<256x8xf32>
    %33 = vector.shape_cast %32 : vector<256x8xf32> to vector<1x256x8xf32>
    %34 = arith.truncf %33 : vector<1x256x8xf32> to vector<1x256x8xbf16>
    %c0_36 = arith.constant 0 : index
    %c0_37 = arith.constant 0 : index
    %c0_38 = arith.constant 0 : index
    %35 = vector.load %arg3[%c0_36, %c0_37, %c0_38] : memref<1x256x8xbf16, #tpu.memory_space<vmem>>, vector<1x256x8xbf16>
    tpu.vector_store %arg3[%c0_36, %c0_37, %c0_38], %34 {strides = array<i32>} : memref<1x256x8xbf16, #tpu.memory_space<vmem>>, vector<1x256x8xbf16>,
    %c0_39 = arith.constant 0 : index
    %c0_40 = arith.constant 0 : index
    %36 = vector.load %arg4[%c0_39, %c0_40] : memref<1x8xf32, #tpu.memory_space<vmem>>, vector<1x8xf32>
    %cst_41 = arith.constant dense<0.000000e+00> : vector<8xf32>
    %37 = vector.multi_reduction <add>, %32, %cst_41 [0] : vector<256x8xf32> to vector<8xf32>
    %38 = vector.shape_cast %37 : vector<8xf32> to vector<1x8xf32>
    %39 = arith.addf %36, %38 : vector<1x8xf32>
    %c0_42 = arith.constant 0 : index
    %c0_43 = arith.constant 0 : index
    %40 = vector.load %arg4[%c0_42, %c0_43] : memref<1x8xf32, #tpu.memory_space<vmem>>, vector<1x8xf32>
    tpu.vector_store %arg4[%c0_42, %c0_43], %39 {strides = array<i32>} : memref<1x8xf32, #tpu.memory_space<vmem>>, vector<1x8xf32>,
    %c0_44 = arith.constant 0 : index
    %c0_45 = arith.constant 0 : index
    %41 = vector.load %arg5[%c0_44, %c0_45] : memref<1x8xf32, #tpu.memory_space<vmem>>, vector<1x8xf32>
    %42 = arith.mulf %32, %32 : vector<256x8xf32>
    %cst_46 = arith.constant dense<0.000000e+00> : vector<8xf32>
    %43 = vector.multi_reduction <add>, %42, %cst_46 [0] : vector<256x8xf32> to vector<8xf32>
    %44 = vector.shape_cast %43 : vector<8xf32> to vector<1x8xf32>
    %45 = arith.addf %41, %44 : vector<1x8xf32>
    %c0_47 = arith.constant 0 : index
    %c0_48 = arith.constant 0 : index
    %46 = vector.load %arg5[%c0_47, %c0_48] : memref<1x8xf32, #tpu.memory_space<vmem>>, vector<1x8xf32>
    tpu.vector_store %arg5[%c0_47, %c0_48], %45 {strides = array<i32>} : memref<1x8xf32, #tpu.memory_space<vmem>>, vector<1x8xf32>,
    return
  }
  func.func @transform_0(%arg0: i32) -> (i32, i32, i32, i32) {
    %c0_i32 = arith.constant 0 : i32
    %c0_i32_0 = arith.constant 0 : i32
    %c0_i32_1 = arith.constant 0 : i32
    %c0_i32_2 = arith.constant 0 : i32
    return %arg0, %c0_i32, %c0_i32_0, %c0_i32_1 : i32, i32, i32, i32
  }
  func.func @transform_1(%arg0: i32) -> (i32, i32) {
    %c0_i32 = arith.constant 0 : i32
    %c0_i32_0 = arith.constant 0 : i32
    %c0_i32_1 = arith.constant 0 : i32
    return %c0_i32, %c0_i32_0 : i32, i32
  }
  func.func @transform_2(%arg0: i32) -> (i32, i32, i32) {
    %c0_i32 = arith.constant 0 : i32
    %c0_i32_0 = arith.constant 0 : i32
    %c0_i32_1 = arith.constant 0 : i32
    return %arg0, %c0_i32, %c0_i32_0 : i32, i32, i32
  }
  func.func @transform_3(%arg0: i32) -> (i32, i32) {
    %c0_i32 = arith.constant 0 : i32
    %c0_i32_0 = arith.constant 0 : i32
    %c0_i32_1 = arith.constant 0 : i32
    return %c0_i32, %c0_i32_0 : i32, i32
  }
  func.func @transform_4(%arg0: i32) -> (i32, i32) {
    %c0_i32 = arith.constant 0 : i32
    %c0_i32_0 = arith.constant 0 : i32
    %c0_i32_1 = arith.constant 0 : i32
    return %c0_i32, %c0_i32_0 : i32, i32
  }
}

module attributes {stable_mosaic.version = 11 : i64} {
  func.func @_affine_relu_pad_kernel(%arg0: i32, %arg1: memref<1x256x8xbf16, #tpu.memory_space<vmem>>, %arg2: memref<1x8xf32, #tpu.memory_space<vmem>>, %arg3: memref<1x8xf32, #tpu.memory_space<vmem>>, %arg4: memref<1x18x18x8xbf16, #tpu.memory_space<vmem>>) attributes {dimension_semantics = [#tpu.dimension_semantics<parallel>], iteration_bounds = array<i64: 2>, scalar_prefetch = 0 : i64, scratch_operands = 0 : i64, tpu.core_type = #tpu.core_type<tc>, window_params = [{transform_indices = @transform_0, window_bounds = array<i64: 1, 256, 8>}, {pipeline_mode = #tpu.pipeline_mode<synchronous>, transform_indices = @transform_1, window_bounds = array<i64: 1, 8>}, {pipeline_mode = #tpu.pipeline_mode<synchronous>, transform_indices = @transform_2, window_bounds = array<i64: 1, 8>}, {transform_indices = @transform_3, window_bounds = array<i64: 1, 18, 18, 8>}]} {
    %c0 = arith.constant 0 : index
    %c0_0 = arith.constant 0 : index
    %c0_1 = arith.constant 0 : index
    %0 = vector.load %arg1[%c0, %c0_0, %c0_1] : memref<1x256x8xbf16, #tpu.memory_space<vmem>>, vector<1x256x8xbf16>
    %1 = vector.shape_cast %0 : vector<1x256x8xbf16> to vector<256x8xbf16>
    %2 = arith.extf %1 : vector<256x8xbf16> to vector<256x8xf32>
    %c0_2 = arith.constant 0 : index
    %c0_3 = arith.constant 0 : index
    %3 = vector.load %arg2[%c0_2, %c0_3] : memref<1x8xf32, #tpu.memory_space<vmem>>, vector<1x8xf32>
    %4 = vector.broadcast %3 : vector<1x8xf32> to vector<256x8xf32>
    %5 = arith.mulf %2, %4 : vector<256x8xf32>
    %c0_4 = arith.constant 0 : index
    %c0_5 = arith.constant 0 : index
    %6 = vector.load %arg3[%c0_4, %c0_5] : memref<1x8xf32, #tpu.memory_space<vmem>>, vector<1x8xf32>
    %7 = vector.broadcast %6 : vector<1x8xf32> to vector<256x8xf32>
    %8 = arith.addf %5, %7 : vector<256x8xf32>
    %cst = arith.constant 0.000000e+00 : f32
    %9 = vector.broadcast %cst : f32 to vector<256x8xf32>
    %10 = arith.maximumf %8, %9 : vector<256x8xf32>
    %11 = arith.truncf %10 : vector<256x8xf32> to vector<256x8xbf16>
    %cst_6 = arith.constant 0.000000e+00 : bf16
    %12 = vector.broadcast %cst_6 : bf16 to vector<1x18x18x8xbf16>
    %c0_7 = arith.constant 0 : index
    %c0_8 = arith.constant 0 : index
    %c0_9 = arith.constant 0 : index
    %c0_10 = arith.constant 0 : index
    %13 = vector.load %arg4[%c0_7, %c0_8, %c0_9, %c0_10] : memref<1x18x18x8xbf16, #tpu.memory_space<vmem>>, vector<1x18x18x8xbf16>
    tpu.vector_store %arg4[%c0_7, %c0_8, %c0_9, %c0_10], %12 {strides = array<i32>} : memref<1x18x18x8xbf16, #tpu.memory_space<vmem>>, vector<1x18x18x8xbf16>,
    %14 = vector.shape_cast %11 : vector<256x8xbf16> to vector<1x16x16x8xbf16>
    %c0_11 = arith.constant 0 : index
    %c1 = arith.constant 1 : index
    %c1_12 = arith.constant 1 : index
    %c0_13 = arith.constant 0 : index
    %15 = vector.load %arg4[%c0_11, %c1, %c1_12, %c0_13] : memref<1x18x18x8xbf16, #tpu.memory_space<vmem>>, vector<1x16x16x8xbf16>
    tpu.vector_store %arg4[%c0_11, %c1, %c1_12, %c0_13], %14 {strides = array<i32>} : memref<1x18x18x8xbf16, #tpu.memory_space<vmem>>, vector<1x16x16x8xbf16>,
    return
  }
  func.func @transform_0(%arg0: i32) -> (i32, i32, i32) {
    %c0_i32 = arith.constant 0 : i32
    %c0_i32_0 = arith.constant 0 : i32
    %c0_i32_1 = arith.constant 0 : i32
    return %arg0, %c0_i32, %c0_i32_0 : i32, i32, i32
  }
  func.func @transform_1(%arg0: i32) -> (i32, i32) {
    %c0_i32 = arith.constant 0 : i32
    %c0_i32_0 = arith.constant 0 : i32
    %c0_i32_1 = arith.constant 0 : i32
    return %c0_i32, %c0_i32_0 : i32, i32
  }
  func.func @transform_2(%arg0: i32) -> (i32, i32) {
    %c0_i32 = arith.constant 0 : i32
    %c0_i32_0 = arith.constant 0 : i32
    %c0_i32_1 = arith.constant 0 : i32
    return %c0_i32, %c0_i32_0 : i32, i32
  }
  func.func @transform_3(%arg0: i32) -> (i32, i32, i32, i32) {
    %c0_i32 = arith.constant 0 : i32
    %c0_i32_0 = arith.constant 0 : i32
    %c0_i32_1 = arith.constant 0 : i32
    %c0_i32_2 = arith.constant 0 : i32
    return %arg0, %c0_i32, %c0_i32_0, %c0_i32_1 : i32, i32, i32, i32
  }
}

module attributes {stable_mosaic.version = 11 : i64} {
  func.func @_conv3x3_bn_stats_kernel(%arg0: i32, %arg1: memref<1x18x18x8xbf16, #tpu.memory_space<vmem>>, %arg2: memref<72x8xbf16, #tpu.memory_space<vmem>>, %arg3: memref<1x256x8xbf16, #tpu.memory_space<vmem>>, %arg4: memref<1x8xf32, #tpu.memory_space<vmem>>, %arg5: memref<1x8xf32, #tpu.memory_space<vmem>>) attributes {dimension_semantics = [#tpu.dimension_semantics<arbitrary>], iteration_bounds = array<i64: 2>, scalar_prefetch = 0 : i64, scratch_operands = 0 : i64, tpu.core_type = #tpu.core_type<tc>, window_params = [{transform_indices = @transform_0, window_bounds = array<i64: 1, 18, 18, 8>}, {pipeline_mode = #tpu.pipeline_mode<synchronous>, transform_indices = @transform_1, window_bounds = array<i64: 72, 8>}, {transform_indices = @transform_2, window_bounds = array<i64: 1, 256, 8>}, {pipeline_mode = #tpu.pipeline_mode<synchronous>, transform_indices = @transform_3, window_bounds = array<i64: 1, 8>}, {pipeline_mode = #tpu.pipeline_mode<synchronous>, transform_indices = @transform_4, window_bounds = array<i64: 1, 8>}]} {
    %c0_i32 = arith.constant 0 : i32
    %0 = arith.cmpi eq, %arg0, %c0_i32 : i32
    %1 = arith.extui %0 : i1 to i32
    %c0_i32_0 = arith.constant 0 : i32
    %2 = arith.cmpi ne, %1, %c0_i32_0 : i32
    scf.if %2 {
      %cst_49 = arith.constant 0.000000e+00 : f32
      %47 = vector.broadcast %cst_49 : f32 to vector<1x8xf32>
      %c0_50 = arith.constant 0 : index
      %c0_51 = arith.constant 0 : index
      %48 = vector.load %arg4[%c0_50, %c0_51] : memref<1x8xf32, #tpu.memory_space<vmem>>, vector<1x8xf32>
      tpu.vector_store %arg4[%c0_50, %c0_51], %47 {strides = array<i32>} : memref<1x8xf32, #tpu.memory_space<vmem>>, vector<1x8xf32>,
      %cst_52 = arith.constant 0.000000e+00 : f32
      %49 = vector.broadcast %cst_52 : f32 to vector<1x8xf32>
      %c0_53 = arith.constant 0 : index
      %c0_54 = arith.constant 0 : index
      %50 = vector.load %arg5[%c0_53, %c0_54] : memref<1x8xf32, #tpu.memory_space<vmem>>, vector<1x8xf32>
      tpu.vector_store %arg5[%c0_53, %c0_54], %49 {strides = array<i32>} : memref<1x8xf32, #tpu.memory_space<vmem>>, vector<1x8xf32>,
    } else {
    }
    %c0 = arith.constant 0 : index
    %c0_1 = arith.constant 0 : index
    %c0_2 = arith.constant 0 : index
    %c0_3 = arith.constant 0 : index
    %3 = vector.load %arg1[%c0, %c0_1, %c0_2, %c0_3] : memref<1x18x18x8xbf16, #tpu.memory_space<vmem>>, vector<1x16x16x8xbf16>
    %4 = vector.shape_cast %3 : vector<1x16x16x8xbf16> to vector<16x16x8xbf16>
    %5 = vector.shape_cast %4 : vector<16x16x8xbf16> to vector<256x8xbf16>
    %c0_4 = arith.constant 0 : index
    %c0_5 = arith.constant 0 : index
    %c1 = arith.constant 1 : index
    %c0_6 = arith.constant 0 : index
    %6 = vector.load %arg1[%c0_4, %c0_5, %c1, %c0_6] : memref<1x18x18x8xbf16, #tpu.memory_space<vmem>>, vector<1x16x16x8xbf16>
    %7 = vector.shape_cast %6 : vector<1x16x16x8xbf16> to vector<16x16x8xbf16>
    %8 = vector.shape_cast %7 : vector<16x16x8xbf16> to vector<256x8xbf16>
    %c0_7 = arith.constant 0 : index
    %c0_8 = arith.constant 0 : index
    %c2 = arith.constant 2 : index
    %c0_9 = arith.constant 0 : index
    %9 = vector.load %arg1[%c0_7, %c0_8, %c2, %c0_9] : memref<1x18x18x8xbf16, #tpu.memory_space<vmem>>, vector<1x16x16x8xbf16>
    %10 = vector.shape_cast %9 : vector<1x16x16x8xbf16> to vector<16x16x8xbf16>
    %11 = vector.shape_cast %10 : vector<16x16x8xbf16> to vector<256x8xbf16>
    %c0_10 = arith.constant 0 : index
    %c1_11 = arith.constant 1 : index
    %c0_12 = arith.constant 0 : index
    %c0_13 = arith.constant 0 : index
    %12 = vector.load %arg1[%c0_10, %c1_11, %c0_12, %c0_13] : memref<1x18x18x8xbf16, #tpu.memory_space<vmem>>, vector<1x16x16x8xbf16>
    %13 = vector.shape_cast %12 : vector<1x16x16x8xbf16> to vector<16x16x8xbf16>
    %14 = vector.shape_cast %13 : vector<16x16x8xbf16> to vector<256x8xbf16>
    %c0_14 = arith.constant 0 : index
    %c1_15 = arith.constant 1 : index
    %c1_16 = arith.constant 1 : index
    %c0_17 = arith.constant 0 : index
    %15 = vector.load %arg1[%c0_14, %c1_15, %c1_16, %c0_17] : memref<1x18x18x8xbf16, #tpu.memory_space<vmem>>, vector<1x16x16x8xbf16>
    %16 = vector.shape_cast %15 : vector<1x16x16x8xbf16> to vector<16x16x8xbf16>
    %17 = vector.shape_cast %16 : vector<16x16x8xbf16> to vector<256x8xbf16>
    %c0_18 = arith.constant 0 : index
    %c1_19 = arith.constant 1 : index
    %c2_20 = arith.constant 2 : index
    %c0_21 = arith.constant 0 : index
    %18 = vector.load %arg1[%c0_18, %c1_19, %c2_20, %c0_21] : memref<1x18x18x8xbf16, #tpu.memory_space<vmem>>, vector<1x16x16x8xbf16>
    %19 = vector.shape_cast %18 : vector<1x16x16x8xbf16> to vector<16x16x8xbf16>
    %20 = vector.shape_cast %19 : vector<16x16x8xbf16> to vector<256x8xbf16>
    %c0_22 = arith.constant 0 : index
    %c2_23 = arith.constant 2 : index
    %c0_24 = arith.constant 0 : index
    %c0_25 = arith.constant 0 : index
    %21 = vector.load %arg1[%c0_22, %c2_23, %c0_24, %c0_25] : memref<1x18x18x8xbf16, #tpu.memory_space<vmem>>, vector<1x16x16x8xbf16>
    %22 = vector.shape_cast %21 : vector<1x16x16x8xbf16> to vector<16x16x8xbf16>
    %23 = vector.shape_cast %22 : vector<16x16x8xbf16> to vector<256x8xbf16>
    %c0_26 = arith.constant 0 : index
    %c2_27 = arith.constant 2 : index
    %c1_28 = arith.constant 1 : index
    %c0_29 = arith.constant 0 : index
    %24 = vector.load %arg1[%c0_26, %c2_27, %c1_28, %c0_29] : memref<1x18x18x8xbf16, #tpu.memory_space<vmem>>, vector<1x16x16x8xbf16>
    %25 = vector.shape_cast %24 : vector<1x16x16x8xbf16> to vector<16x16x8xbf16>
    %26 = vector.shape_cast %25 : vector<16x16x8xbf16> to vector<256x8xbf16>
    %c0_30 = arith.constant 0 : index
    %c2_31 = arith.constant 2 : index
    %c2_32 = arith.constant 2 : index
    %c0_33 = arith.constant 0 : index
    %27 = vector.load %arg1[%c0_30, %c2_31, %c2_32, %c0_33] : memref<1x18x18x8xbf16, #tpu.memory_space<vmem>>, vector<1x16x16x8xbf16>
    %28 = vector.shape_cast %27 : vector<1x16x16x8xbf16> to vector<16x16x8xbf16>
    %29 = vector.shape_cast %28 : vector<16x16x8xbf16> to vector<256x8xbf16>
    %30 = tpu.concatenate %5, %8, %11, %14, %17, %20, %23, %26, %29 in 1 : vector<256x8xbf16>, vector<256x8xbf16>, vector<256x8xbf16>, vector<256x8xbf16>, vector<256x8xbf16>, vector<256x8xbf16>, vector<256x8xbf16>, vector<256x8xbf16>, vector<256x8xbf16> -> vector<256x72xbf16>
    %c0_34 = arith.constant 0 : index
    %c0_35 = arith.constant 0 : index
    %31 = vector.load %arg2[%c0_34, %c0_35] : memref<72x8xbf16, #tpu.memory_space<vmem>>, vector<72x8xbf16>
    %cst = arith.constant dense<0.000000e+00> : vector<256x8xf32>
    %32 = tpu.matmul %30, %31, %cst {dimension_numbers = #tpu.dot_dimension_numbers<[1], [0], [0], [1], [0, 0, 1, 1], [], []>} : vector<256x72xbf16>, vector<72x8xbf16>, vector<256x8xf32> -> vector<256x8xf32>
    %33 = vector.shape_cast %32 : vector<256x8xf32> to vector<1x256x8xf32>
    %34 = arith.truncf %33 : vector<1x256x8xf32> to vector<1x256x8xbf16>
    %c0_36 = arith.constant 0 : index
    %c0_37 = arith.constant 0 : index
    %c0_38 = arith.constant 0 : index
    %35 = vector.load %arg3[%c0_36, %c0_37, %c0_38] : memref<1x256x8xbf16, #tpu.memory_space<vmem>>, vector<1x256x8xbf16>
    tpu.vector_store %arg3[%c0_36, %c0_37, %c0_38], %34 {strides = array<i32>} : memref<1x256x8xbf16, #tpu.memory_space<vmem>>, vector<1x256x8xbf16>,
    %c0_39 = arith.constant 0 : index
    %c0_40 = arith.constant 0 : index
    %36 = vector.load %arg4[%c0_39, %c0_40] : memref<1x8xf32, #tpu.memory_space<vmem>>, vector<1x8xf32>
    %cst_41 = arith.constant dense<0.000000e+00> : vector<8xf32>
    %37 = vector.multi_reduction <add>, %32, %cst_41 [0] : vector<256x8xf32> to vector<8xf32>
    %38 = vector.shape_cast %37 : vector<8xf32> to vector<1x8xf32>
    %39 = arith.addf %36, %38 : vector<1x8xf32>
    %c0_42 = arith.constant 0 : index
    %c0_43 = arith.constant 0 : index
    %40 = vector.load %arg4[%c0_42, %c0_43] : memref<1x8xf32, #tpu.memory_space<vmem>>, vector<1x8xf32>
    tpu.vector_store %arg4[%c0_42, %c0_43], %39 {strides = array<i32>} : memref<1x8xf32, #tpu.memory_space<vmem>>, vector<1x8xf32>,
    %c0_44 = arith.constant 0 : index
    %c0_45 = arith.constant 0 : index
    %41 = vector.load %arg5[%c0_44, %c0_45] : memref<1x8xf32, #tpu.memory_space<vmem>>, vector<1x8xf32>
    %42 = arith.mulf %32, %32 : vector<256x8xf32>
    %cst_46 = arith.constant dense<0.000000e+00> : vector<8xf32>
    %43 = vector.multi_reduction <add>, %42, %cst_46 [0] : vector<256x8xf32> to vector<8xf32>
    %44 = vector.shape_cast %43 : vector<8xf32> to vector<1x8xf32>
    %45 = arith.addf %41, %44 : vector<1x8xf32>
    %c0_47 = arith.constant 0 : index
    %c0_48 = arith.constant 0 : index
    %46 = vector.load %arg5[%c0_47, %c0_48] : memref<1x8xf32, #tpu.memory_space<vmem>>, vector<1x8xf32>
    tpu.vector_store %arg5[%c0_47, %c0_48], %45 {strides = array<i32>} : memref<1x8xf32, #tpu.memory_space<vmem>>, vector<1x8xf32>,
    return
  }
  func.func @transform_0(%arg0: i32) -> (i32, i32, i32, i32) {
    %c0_i32 = arith.constant 0 : i32
    %c0_i32_0 = arith.constant 0 : i32
    %c0_i32_1 = arith.constant 0 : i32
    %c0_i32_2 = arith.constant 0 : i32
    return %arg0, %c0_i32, %c0_i32_0, %c0_i32_1 : i32, i32, i32, i32
  }
  func.func @transform_1(%arg0: i32) -> (i32, i32) {
    %c0_i32 = arith.constant 0 : i32
    %c0_i32_0 = arith.constant 0 : i32
    %c0_i32_1 = arith.constant 0 : i32
    return %c0_i32, %c0_i32_0 : i32, i32
  }
  func.func @transform_2(%arg0: i32) -> (i32, i32, i32) {
    %c0_i32 = arith.constant 0 : i32
    %c0_i32_0 = arith.constant 0 : i32
    %c0_i32_1 = arith.constant 0 : i32
    return %arg0, %c0_i32, %c0_i32_0 : i32, i32, i32
  }
  func.func @transform_3(%arg0: i32) -> (i32, i32) {
    %c0_i32 = arith.constant 0 : i32
    %c0_i32_0 = arith.constant 0 : i32
    %c0_i32_1 = arith.constant 0 : i32
    return %c0_i32, %c0_i32_0 : i32, i32
  }
  func.func @transform_4(%arg0: i32) -> (i32, i32) {
    %c0_i32 = arith.constant 0 : i32
    %c0_i32_0 = arith.constant 0 : i32
    %c0_i32_1 = arith.constant 0 : i32
    return %c0_i32, %c0_i32_0 : i32, i32
  }
}

module attributes {stable_mosaic.version = 11 : i64} {
  func.func @_bn_add_bn_kernel(%arg0: i32, %arg1: memref<32x128xbf16, #tpu.memory_space<vmem>>, %arg2: memref<1x128xf32, #tpu.memory_space<vmem>>, %arg3: memref<1x128xf32, #tpu.memory_space<vmem>>, %arg4: memref<32x128xbf16, #tpu.memory_space<vmem>>, %arg5: memref<1x128xf32, #tpu.memory_space<vmem>>, %arg6: memref<1x128xf32, #tpu.memory_space<vmem>>, %arg7: memref<32x128xf32, #tpu.memory_space<vmem>>) attributes {dimension_semantics = [#tpu.dimension_semantics<parallel>], iteration_bounds = array<i64: 1>, scalar_prefetch = 0 : i64, scratch_operands = 0 : i64, tpu.core_type = #tpu.core_type<tc>, window_params = [{transform_indices = @transform_0, window_bounds = array<i64: 32, 128>}, {pipeline_mode = #tpu.pipeline_mode<synchronous>, transform_indices = @transform_1, window_bounds = array<i64: 1, 128>}, {pipeline_mode = #tpu.pipeline_mode<synchronous>, transform_indices = @transform_2, window_bounds = array<i64: 1, 128>}, {transform_indices = @transform_3, window_bounds = array<i64: 32, 128>}, {pipeline_mode = #tpu.pipeline_mode<synchronous>, transform_indices = @transform_4, window_bounds = array<i64: 1, 128>}, {pipeline_mode = #tpu.pipeline_mode<synchronous>, transform_indices = @transform_5, window_bounds = array<i64: 1, 128>}, {transform_indices = @transform_6, window_bounds = array<i64: 32, 128>}]} {
    %c0 = arith.constant 0 : index
    %c0_0 = arith.constant 0 : index
    %0 = vector.load %arg1[%c0, %c0_0] : memref<32x128xbf16, #tpu.memory_space<vmem>>, vector<32x128xbf16>
    %1 = arith.extf %0 : vector<32x128xbf16> to vector<32x128xf32>
    %c0_1 = arith.constant 0 : index
    %c0_2 = arith.constant 0 : index
    %2 = vector.load %arg2[%c0_1, %c0_2] : memref<1x128xf32, #tpu.memory_space<vmem>>, vector<1x128xf32>
    %3 = vector.broadcast %2 : vector<1x128xf32> to vector<32x128xf32>
    %4 = arith.mulf %1, %3 : vector<32x128xf32>
    %c0_3 = arith.constant 0 : index
    %c0_4 = arith.constant 0 : index
    %5 = vector.load %arg3[%c0_3, %c0_4] : memref<1x128xf32, #tpu.memory_space<vmem>>, vector<1x128xf32>
    %6 = vector.broadcast %5 : vector<1x128xf32> to vector<32x128xf32>
    %7 = arith.addf %4, %6 : vector<32x128xf32>
    %c0_5 = arith.constant 0 : index
    %c0_6 = arith.constant 0 : index
    %8 = vector.load %arg4[%c0_5, %c0_6] : memref<32x128xbf16, #tpu.memory_space<vmem>>, vector<32x128xbf16>
    %9 = arith.extf %8 : vector<32x128xbf16> to vector<32x128xf32>
    %c0_7 = arith.constant 0 : index
    %c0_8 = arith.constant 0 : index
    %10 = vector.load %arg5[%c0_7, %c0_8] : memref<1x128xf32, #tpu.memory_space<vmem>>, vector<1x128xf32>
    %11 = vector.broadcast %10 : vector<1x128xf32> to vector<32x128xf32>
    %12 = arith.mulf %9, %11 : vector<32x128xf32>
    %13 = arith.addf %7, %12 : vector<32x128xf32>
    %c0_9 = arith.constant 0 : index
    %c0_10 = arith.constant 0 : index
    %14 = vector.load %arg6[%c0_9, %c0_10] : memref<1x128xf32, #tpu.memory_space<vmem>>, vector<1x128xf32>
    %15 = vector.broadcast %14 : vector<1x128xf32> to vector<32x128xf32>
    %16 = arith.addf %13, %15 : vector<32x128xf32>
    %c0_11 = arith.constant 0 : index
    %c0_12 = arith.constant 0 : index
    %17 = vector.load %arg7[%c0_11, %c0_12] : memref<32x128xf32, #tpu.memory_space<vmem>>, vector<32x128xf32>
    tpu.vector_store %arg7[%c0_11, %c0_12], %16 {strides = array<i32>} : memref<32x128xf32, #tpu.memory_space<vmem>>, vector<32x128xf32>,
    return
  }
  func.func @transform_0(%arg0: i32) -> (i32, i32) {
    %c0_i32 = arith.constant 0 : i32
    %c0_i32_0 = arith.constant 0 : i32
    return %arg0, %c0_i32 : i32, i32
  }
  func.func @transform_1(%arg0: i32) -> (i32, i32) {
    %c0_i32 = arith.constant 0 : i32
    %c0_i32_0 = arith.constant 0 : i32
    %c0_i32_1 = arith.constant 0 : i32
    return %c0_i32, %c0_i32_0 : i32, i32
  }
  func.func @transform_2(%arg0: i32) -> (i32, i32) {
    %c0_i32 = arith.constant 0 : i32
    %c0_i32_0 = arith.constant 0 : i32
    %c0_i32_1 = arith.constant 0 : i32
    return %c0_i32, %c0_i32_0 : i32, i32
  }
  func.func @transform_3(%arg0: i32) -> (i32, i32) {
    %c0_i32 = arith.constant 0 : i32
    %c0_i32_0 = arith.constant 0 : i32
    return %arg0, %c0_i32 : i32, i32
  }
  func.func @transform_4(%arg0: i32) -> (i32, i32) {
    %c0_i32 = arith.constant 0 : i32
    %c0_i32_0 = arith.constant 0 : i32
    %c0_i32_1 = arith.constant 0 : i32
    return %c0_i32, %c0_i32_0 : i32, i32
  }
  func.func @transform_5(%arg0: i32) -> (i32, i32) {
    %c0_i32 = arith.constant 0 : i32
    %c0_i32_0 = arith.constant 0 : i32
    %c0_i32_1 = arith.constant 0 : i32
    return %c0_i32, %c0_i32_0 : i32, i32
  }
  func.func @transform_6(%arg0: i32) -> (i32, i32) {
    %c0_i32 = arith.constant 0 : i32
    %c0_i32_0 = arith.constant 0 : i32
    return %arg0, %c0_i32 : i32, i32
  }
}

</mosaic_0001>

<bundles_post_ra>
// kernel: basic_block_forward.8
= control target key start
LH: loop header
LB: loop body
LE: loop exit
PB: predicated region body
PF: predicated region fallthrough
CT: control target
= control target key end

     0   :  { %vm344_vm0 = vcmask 1041408   ;;  %vm247_vm1 = vcmask 31744   ;;  %vm893_vm2 = vcmask 60416   ;;  %vm19_vm3 = vcmask 57344   ;;  %s2423_s1 = inlined_call_operand.vmem [shape: bf16[4,8], index: 1, kind: input, shape index: {}]   ;;  %s2424_s0 = inlined_call_operand.vmem [shape: bf16[512,4], index: 0, kind: input, shape index: {}]   ;;  %s2425_s2 = inlined_call_operand.vmem [shape: bf16[512,8], index: 2, kind: output, shape index: {0}]   ;;  %s2426_s3 = inlined_call_operand.vmem [shape: f32[1,8], index: 3, kind: output, shape index: {1}]   ;;  %s2427_s4 = inlined_call_operand.vmem [shape: f32[1,8], index: 4, kind: output, shape index: {2}]  }
   0x1   :  { %v86_v0 = vld [vmem:[%s2423_s1] sm:$0x3]  ;;  %v1605_v3 = vld [vmem:[%s2424_s0 + $0x8] sm:$0xff]   ;;  %v1606_v4 = vld [vmem:[%s2424_s0 + $0x10] sm:$0xff]   ;;  %v1636_v36 = vmov 0.0   ;;  %vm959_vm4 = vcmask 64512  }
   0x2   :  { %1601 = vmatprep.subr.msk.bf16.mxu0 %vm344_vm0, %v86_v0  ;;  %v346_v1 = vsel %vm344_vm0, %v86_v0, 0  ;;  %v1604_v2 = vld [vmem:[%s2424_s0] sm:$0xff]   ;;  %1602 = vmatprep.subr.msk.bf16.mxu1 %vm344_vm0, %v86_v0  ;;  %v1607_v5 = vld [vmem:[%s2424_s0 + $0x18] sm:$0xff]   ;;  %v1609_v7 = vld [vmem:[%s2424_s0 + $0x28] sm:$0xff]   ;;  %20 = vst.msk [vmem:[%s2426_s3] sm:$0x1] %vm19_vm3, %v1636_v36 }
   0x3   :  { %1534 = vmatpush3.bf16.msra.mxu0 %v346_v1  ;;  %1600 = vmatpush3.bf16.msra.mxu1 %v346_v1  ;;  %v1608_v6 = vld [vmem:[%s2424_s0 + $0x20] sm:$0xff]   ;;  %v1610_v8 = vld [vmem:[%s2424_s0 + $0x30] sm:$0xff]   ;;  %v1621_v10 = vld [vmem:[%s2424_s0 + $0x88] sm:$0xff]   ;;  %21 = vst.msk [vmem:[%s2427_s4] sm:$0x1] %vm19_vm3, %v1636_v36 }
   0x4   :  { %1535 = vmatprep.mubr.msk.bf16.mxu0 %vm247_vm1, %v1604_v2  ;;  %v1620_v9 = vld [vmem:[%s2424_s0 + $0x80] sm:$0xff]   ;;  %v1622_v11 = vld [vmem:[%s2424_s0 + $0x90] sm:$0xff]   ;;  %v1611_v12 = vld [vmem:[%s2424_s0 + $0x38] sm:$0xff]  }
   0x5   :  { %1567 = vmatprep.mubr.msk.bf16.mxu1 %vm247_vm1, %v1620_v9  ;;  %v1623_v13 = vld [vmem:[%s2424_s0 + $0x98] sm:$0xff]   ;;  %v1624_v14 = vld [vmem:[%s2424_s0 + $0xa0] sm:$0xff]   ;;  %v1625_v16 = vld [vmem:[%s2424_s0 + $0xa8] sm:$0xff]  }
   0x6   :  { %1536 = vmatmul.mubr.msk.bf16.vlgmr.msra.gmra.mxu0 %vm247_vm1, %v1605_v3  ;;  %1568 = vmatmul.mubr.msk.bf16.vlgmr.msra.gmra.mxu1 %vm247_vm1, %v1621_v10  ;;  %v1612_v15 = vld [vmem:[%s2424_s0 + $0x40] sm:$0xff]   ;;  %v1613_v17 = vld [vmem:[%s2424_s0 + $0x48] sm:$0xff]   ;;  %v1626_v18 = vld [vmem:[%s2424_s0 + $0xb0] sm:$0xff]  }
   0x7   :  { %1539 = vmatprep.mubr.msk.bf16.mxu0 %vm247_vm1, %v1606_v4  ;;  %1571 = vmatprep.mubr.msk.bf16.mxu1 %vm247_vm1, %v1622_v11  ;;  %v1614_v19 = vld [vmem:[%s2424_s0 + $0x50] sm:$0xff]   ;;  %v1627_v20 = vld [vmem:[%s2424_s0 + $0xb8] sm:$0xff]   ;;  %v1628_v22 = vld [vmem:[%s2424_s0 + $0xc0] sm:$0xff]  }
   0x8   :  { %v1615_v21 = vld [vmem:[%s2424_s0 + $0x58] sm:$0xff]   ;;  %v1616_v23 = vld [vmem:[%s2424_s0 + $0x60] sm:$0xff]   ;;  %v1629_v24 = vld [vmem:[%s2424_s0 + $0xc8] sm:$0xff]  }
   0x9   :  { %v1617_v25 = vld [vmem:[%s2424_s0 + $0x68] sm:$0xff]   ;;  %v1630_v26 = vld [vmem:[%s2424_s0 + $0xd0] sm:$0xff]   ;;  %v1631_v28 = vld [vmem:[%s2424_s0 + $0xd8] sm:$0xff]  }
   0xa   :  { %v1618_v27 = vld [vmem:[%s2424_s0 + $0x70] sm:$0xff]   ;;  %v1619_v29 = vld [vmem:[%s2424_s0 + $0x78] sm:$0xff]   ;;  %v1632_v30 = vld [vmem:[%s2424_s0 + $0xe0] sm:$0xff]  }
   0xb   :  { %v1633_v31 = vld [vmem:[%s2424_s0 + $0xe8] sm:$0xff]   ;;  %v1634_v32 = vld [vmem:[%s2424_s0 + $0xf0] sm:$0xff]   ;;  %v1635_v33 = vld [vmem:[%s2424_s0 + $0xf8] sm:$0xff]  }
   0xe   :  { %1540 = vmatmul.mubr.msk.bf16.gmra.mxu0 %vm247_vm1, %v1607_v5  ;;  %1572 = vmatmul.mubr.msk.bf16.gmra.mxu1 %vm247_vm1, %v1623_v13 }
   0xf   :  { %1543 = vmatprep.mubr.msk.bf16.mxu0 %vm247_vm1, %v1608_v6  ;;  %1575 = vmatprep.mubr.msk.bf16.mxu1 %vm247_vm1, %v1624_v14 }
  0x16   :  { %1544 = vmatmul.mubr.msk.bf16.gmra.mxu0 %vm247_vm1, %v1609_v7  ;;  %1576 = vmatmul.mubr.msk.bf16.gmra.mxu1 %vm247_vm1, %v1625_v16 }
  0x17   :  { %1547 = vmatprep.mubr.msk.bf16.mxu0 %vm247_vm1, %v1610_v8  ;;  %1579 = vmatprep.mubr.msk.bf16.mxu1 %vm247_vm1, %v1626_v18 }
  0x1e   :  { %1548 = vmatmul.mubr.msk.bf16.gmra.mxu0 %vm247_vm1, %v1611_v12  ;;  %1580 = vmatmul.mubr.msk.bf16.gmra.mxu1 %vm247_vm1, %v1627_v20 }
  0x1f   :  { %1551 = vmatprep.mubr.msk.bf16.mxu0 %vm247_vm1, %v1612_v15  ;;  %1583 = vmatprep.mubr.msk.bf16.mxu1 %vm247_vm1, %v1628_v22 }
  0x26   :  { %1552 = vmatmul.mubr.msk.bf16.gmra.mxu0 %vm247_vm1, %v1613_v17  ;;  %1584 = vmatmul.mubr.msk.bf16.gmra.mxu1 %vm247_vm1, %v1629_v24 }
  0x27   :  { %1555 = vmatprep.mubr.msk.bf16.mxu0 %vm247_vm1, %v1614_v19  ;;  %1587 = vmatprep.mubr.msk.bf16.mxu1 %vm247_vm1, %v1630_v26 }
  0x2e   :  { %1556 = vmatmul.mubr.msk.bf16.gmra.mxu0 %vm247_vm1, %v1615_v21  ;;  %1588 = vmatmul.mubr.msk.bf16.gmra.mxu1 %vm247_vm1, %v1631_v28 }
  0x2f   :  { %1559 = vmatprep.mubr.msk.bf16.mxu0 %vm247_vm1, %v1616_v23  ;;  %1591 = vmatprep.mubr.msk.bf16.mxu1 %vm247_vm1, %v1632_v30 }
  0x36   :  { %1560 = vmatmul.mubr.msk.bf16.gmra.mxu0 %vm247_vm1, %v1617_v25  ;;  %1592 = vmatmul.mubr.msk.bf16.gmra.mxu1 %vm247_vm1, %v1633_v31 }
  0x37   :  { %1563 = vmatprep.mubr.msk.bf16.mxu0 %vm247_vm1, %v1618_v27  ;;  %1595 = vmatprep.mubr.msk.bf16.mxu1 %vm247_vm1, %v1634_v32 }
  0x3e   :  { %1564 = vmatmul.mubr.msk.bf16.gmra.mxu0 %vm247_vm1, %v1619_v29  ;;  %1596 = vmatmul.mubr.msk.bf16.gmra.mxu1 %vm247_vm1, %v1635_v33 }
  0xc6   :  { %v1537_v34 = vpop.f32.mrf.mxu0  ;;  %v1840_v12 = vpop.f32.mrf.mxu1 }
  0xc7   :  { %v1438_v35 = vpack.c.bf16 %v1537_v34, %v1537_v34  ;;  %v1099_v42 = vmul.f32 %v1537_v34, %v1537_v34  ;;  %v963_v48 = vsel %vm959_vm4, %v1537_v34, 0.0  ;;  %v1470_v16 = vpack.c.bf16 %v1840_v12, %v1840_v12 }
  0xc8   :  { %v382_v37 = vpop.f32.mrf.mxu0  ;;  %v1850_v21 = vpop.f32.mrf.mxu1 }
  0xc9   :  { %896 = vst.msk [vmem:[%s2425_s2 + $0x8] sm:$0xf] %vm893_vm2, %v1438_v35  ;;  %v1436_v38 = vpack.c.bf16 %v382_v37, %v382_v37  ;;  %v1097_v40 = vmul.f32 %v382_v37, %v382_v37  ;;  %v960_v44 = vsel %vm959_vm4, %v382_v37, 0.0  ;;  %v1164_v58 = vsel %vm959_vm4, %v1099_v42, 0.0  ;;  %928 = vst.msk [vmem:[%s2425_s2 + $0x88] sm:$0xf] %vm893_vm2, %v1470_v16 }
  0xca   :  { %v1538_v39 = vpop.f32.mrf.mxu0  ;;  %v1468_v25 = vpack.c.bf16 %v1850_v21, %v1850_v21  ;;  %v1864_v30 = vpop.f32.mrf.mxu1 }
  0xcb   :  { %894 = vst.msk [vmem:[%s2425_s2] sm:$0xf] %vm893_vm2, %v1436_v38  ;;  %v1439_v41 = vpack.c.bf16 %v1538_v39, %v1538_v39  ;;  %v1161_v51 = vsel %vm959_vm4, %v1097_v40, 0.0  ;;  %v1100_v52 = vmul.f32 %v1538_v39, %v1538_v39  ;;  %v965_v59 = vsel %vm959_vm4, %v1538_v39, 0.0 }
  0xcc   :  { %v385_v43 = vpop.f32.mrf.mxu0  ;;  %926 = vst.msk [vmem:[%s2425_s2 + $0x80] sm:$0xf] %vm893_vm2, %v1468_v25  ;;  %v1876_v37 = vpop.f32.mrf.mxu1  ;;  %v1471_v42 = vpack.c.bf16 %v1864_v30, %v1864_v30 }
  0xcd   :  { %897 = vst.msk [vmem:[%s2425_s2 + $0xc] sm:$0xf] %vm893_vm2, %v1439_v41  ;;  %v1437_v45 = vpack.c.bf16 %v385_v43, %v385_v43  ;;  %v961_v46 = vsel %vm959_vm4, %v385_v43, 0.0  ;;  %v1098_v47 = vmul.f32 %v385_v43, %v385_v43  ;;  %v1166_v1 = vsel %vm959_vm4, %v1100_v52, 0.0 }
  0xce   :  { %v962_v49 = vadd.f32 %v961_v46, %v960_v44  ;;  %v1541_v50 = vpop.f32.mrf.mxu0  ;;  %929 = vst.msk [vmem:[%s2425_s2 + $0x8c] sm:$0xf] %vm893_vm2, %v1471_v42 }
  0xcf   :  { %895 = vst.msk [vmem:[%s2425_s2 + $0x4] sm:$0xf] %vm893_vm2, %v1437_v45  ;;  %v1162_v53 = vsel %vm959_vm4, %v1098_v47, 0.0  ;;  %v1442_v54 = vpack.c.bf16 %v1541_v50, %v1541_v50  ;;  %v1103_v4 = vmul.f32 %v1541_v50, %v1541_v50  ;;  %v971_v17 = vsel %vm959_vm4, %v1541_v50, 0.0  ;;  %v1886_v47 = vpop.f32.mrf.mxu1 }
  0xd0   :  { %v964_v55 = vadd.f32 %v963_v48, %v962_v49  ;;  %v1163_v56 = vadd.f32 %v1162_v53, %v1161_v51  ;;  %v398_v57 = vpop.f32.mrf.mxu0 }
  0xd1   :  { %900 = vst.msk [vmem:[%s2425_s2 + $0x18] sm:$0xf] %vm893_vm2, %v1442_v54  ;;  %v1440_v60 = vpack.c.bf16 %v398_v57, %v398_v57  ;;  %v1101_v61 = vmul.f32 %v398_v57, %v398_v57  ;;  %v967_v2 = vsel %vm959_vm4, %v398_v57, 0.0  ;;  %v1172_v26 = vsel %vm959_vm4, %v1103_v4, 0.0 }
  0xd2   :  { %v1165_v62 = vadd.f32 %v1164_v58, %v1163_v56  ;;  %v966_v63 = vadd.f32 %v965_v59, %v964_v55  ;;  %v1542_v0 = vpop.f32.mrf.mxu0  ;;  %v1898_v55 = vpop.f32.mrf.mxu1  ;;  %v1469_v59 = vpack.c.bf16 %v1876_v37, %v1876_v37 }
  0xd3   :  { %898 = vst.msk [vmem:[%s2425_s2 + $0x10] sm:$0xf] %vm893_vm2, %v1440_v60  ;;  %v1443_v3 = vpack.c.bf16 %v1542_v0, %v1542_v0  ;;  %v1168_v8 = vsel %vm959_vm4, %v1101_v61, 0.0  ;;  %v1104_v18 = vmul.f32 %v1542_v0, %v1542_v0  ;;  %v973_v27 = vsel %vm959_vm4, %v1542_v0, 0.0 }
  0xd4   :  { %v968_v5 = vadd.f32 %v967_v2, %v966_v63  ;;  %v1167_v6 = vadd.f32 %v1166_v1, %v1165_v62  ;;  %v401_v7 = vpop.f32.mrf.mxu0  ;;  %v1908_v0 = vpop.f32.mrf.mxu1  ;;  %927 = vst.msk [vmem:[%s2425_s2 + $0x84] sm:$0xf] %vm893_vm2, %v1469_v59 }
  0xd5   :  { %901 = vst.msk [vmem:[%s2425_s2 + $0x1c] sm:$0xf] %vm893_vm2, %v1443_v3  ;;  %v1441_v9 = vpack.c.bf16 %v401_v7, %v401_v7  ;;  %v969_v10 = vsel %vm959_vm4, %v401_v7, 0.0  ;;  %v1102_v11 = vmul.f32 %v401_v7, %v401_v7  ;;  %v1174_v34 = vsel %vm959_vm4, %v1104_v18, 0.0 }
  0xd6   :  { %v1169_v13 = vadd.f32 %v1168_v8, %v1167_v6  ;;  %v970_v14 = vadd.f32 %v969_v10, %v968_v5  ;;  %v1545_v15 = vpop.f32.mrf.mxu0  ;;  %v1920_v7 = vpop.f32.mrf.mxu1 }
  0xd7   :  { %899 = vst.msk [vmem:[%s2425_s2 + $0x14] sm:$0xf] %vm893_vm2, %v1441_v9  ;;  %v1170_v19 = vsel %vm959_vm4, %v1102_v11, 0.0  ;;  %v1446_v20 = vpack.c.bf16 %v1545_v15, %v1545_v15  ;;  %v1107_v38 = vmul.f32 %v1545_v15, %v1545_v15  ;;  %v979_v51 = vsel %vm959_vm4, %v1545_v15, 0.0 }
  0xd8   :  { %v972_v22 = vadd.f32 %v971_v17, %v970_v14  ;;  %v1171_v23 = vadd.f32 %v1170_v19, %v1169_v13  ;;  %v414_v24 = vpop.f32.mrf.mxu0  ;;  %v1474_v13 = vpack.c.bf16 %v1886_v47, %v1886_v47  ;;  %v1930_v18 = vpop.f32.mrf.mxu1 }
  0xd9   :  { %904 = vst.msk [vmem:[%s2425_s2 + $0x28] sm:$0xf] %vm893_vm2, %v1446_v20  ;;  %v1444_v28 = vpack.c.bf16 %v414_v24, %v414_v24  ;;  %v1105_v29 = vmul.f32 %v414_v24, %v414_v24  ;;  %v975_v35 = vsel %vm959_vm4, %v414_v24, 0.0  ;;  %v1180_v60 = vsel %vm959_vm4, %v1107_v38, 0.0 }
  0xda   :  { %v1173_v31 = vadd.f32 %v1172_v26, %v1171_v23  ;;  %v974_v32 = vadd.f32 %v973_v27, %v972_v22  ;;  %v1546_v33 = vpop.f32.mrf.mxu0  ;;  %932 = vst.msk [vmem:[%s2425_s2 + $0x98] sm:$0xf] %vm893_vm2, %v1474_v13  ;;  %v1942_v27 = vpop.f32.mrf.mxu1 }
  0xdb   :  { %902 = vst.msk [vmem:[%s2425_s2 + $0x20] sm:$0xf] %vm893_vm2, %v1444_v28  ;;  %v1447_v36 = vpack.c.bf16 %v1546_v33, %v1546_v33  ;;  %v1176_v43 = vsel %vm959_vm4, %v1105_v29, 0.0  ;;  %v1108_v52 = vmul.f32 %v1546_v33, %v1546_v33  ;;  %v981_v61 = vsel %vm959_vm4, %v1546_v33, 0.0 }
  0xdc   :  { %v976_v39 = vadd.f32 %v975_v35, %v974_v32  ;;  %v1175_v40 = vadd.f32 %v1174_v34, %v1173_v31  ;;  %v417_v41 = vpop.f32.mrf.mxu0  ;;  %v1472_v32 = vpack.c.bf16 %v1898_v55, %v1898_v55  ;;  %v1952_v38 = vpop.f32.mrf.mxu1 }
  0xdd   :  { %905 = vst.msk [vmem:[%s2425_s2 + $0x2c] sm:$0xf] %vm893_vm2, %v1447_v36  ;;  %v1445_v44 = vpack.c.bf16 %v417_v41, %v417_v41  ;;  %v977_v45 = vsel %vm959_vm4, %v417_v41, 0.0  ;;  %v1106_v46 = vmul.f32 %v417_v41, %v417_v41  ;;  %v1182_v4 = vsel %vm959_vm4, %v1108_v52, 0.0 }
  0xde   :  { %v1177_v48 = vadd.f32 %v1176_v43, %v1175_v40  ;;  %v978_v49 = vadd.f32 %v977_v45, %v976_v39  ;;  %v1549_v50 = vpop.f32.mrf.mxu0  ;;  %930 = vst.msk [vmem:[%s2425_s2 + $0x90] sm:$0xf] %vm893_vm2, %v1472_v32  ;;  %v1964_v45 = vpop.f32.mrf.mxu1 }
  0xdf   :  { %903 = vst.msk [vmem:[%s2425_s2 + $0x24] sm:$0xf] %vm893_vm2, %v1445_v44  ;;  %v1178_v53 = vsel %vm959_vm4, %v1106_v46, 0.0  ;;  %v1450_v54 = vpack.c.bf16 %v1549_v50, %v1549_v50  ;;  %v1111_v8 = vmul.f32 %v1549_v50, %v1549_v50  ;;  %v987_v23 = vsel %vm959_vm4, %v1549_v50, 0.0 }
  0xe0   :  { %v980_v56 = vadd.f32 %v979_v51, %v978_v49  ;;  %v1179_v57 = vadd.f32 %v1178_v53, %v1177_v48  ;;  %v430_v58 = vpop.f32.mrf.mxu0  ;;  %v1475_v51 = vpack.c.bf16 %v1908_v0, %v1908_v0 }
  0xe1   :  { %908 = vst.msk [vmem:[%s2425_s2 + $0x38] sm:$0xf] %vm893_vm2, %v1450_v54  ;;  %v1448_v62 = vpack.c.bf16 %v430_v58, %v430_v58  ;;  %v1109_v63 = vmul.f32 %v430_v58, %v430_v58  ;;  %v983_v5 = vsel %vm959_vm4, %v430_v58, 0.0  ;;  %v1188_v33 = vsel %vm959_vm4, %v1111_v8, 0.0 }
  0xe2   :  { %v1181_v1 = vadd.f32 %v1180_v60, %v1179_v57  ;;  %v982_v2 = vadd.f32 %v981_v61, %v980_v56  ;;  %v1550_v3 = vpop.f32.mrf.mxu0  ;;  %v1974_v57 = vpop.f32.mrf.mxu1  ;;  %933 = vst.msk [vmem:[%s2425_s2 + $0x9c] sm:$0xf] %vm893_vm2, %v1475_v51 }
  0xe3   :  { %906 = vst.msk [vmem:[%s2425_s2 + $0x30] sm:$0xf] %vm893_vm2, %v1448_v62  ;;  %v1451_v6 = vpack.c.bf16 %v1550_v3, %v1550_v3  ;;  %v1184_v14 = vsel %vm959_vm4, %v1109_v63, 0.0  ;;  %v1112_v24 = vmul.f32 %v1550_v3, %v1550_v3  ;;  %v989_v34 = vsel %vm959_vm4, %v1550_v3, 0.0 }
  0xe4   :  { %v984_v9 = vadd.f32 %v983_v5, %v982_v2  ;;  %v1183_v10 = vadd.f32 %v1182_v4, %v1181_v1  ;;  %v433_v11 = vpop.f32.mrf.mxu0  ;;  %v1986_v2 = vpop.f32.mrf.mxu1 }
  0xe5   :  { %909 = vst.msk [vmem:[%s2425_s2 + $0x3c] sm:$0xf] %vm893_vm2, %v1451_v6  ;;  %v1449_v15 = vpack.c.bf16 %v433_v11, %v433_v11  ;;  %v985_v16 = vsel %vm959_vm4, %v433_v11, 0.0  ;;  %v1110_v17 = vmul.f32 %v433_v11, %v433_v11  ;;  %v1190_v42 = vsel %vm959_vm4, %v1112_v24, 0.0 }
  0xe6   :  { %v1185_v19 = vadd.f32 %v1184_v14, %v1183_v10  ;;  %v986_v20 = vadd.f32 %v985_v16, %v984_v9  ;;  %v1553_v22 = vpop.f32.mrf.mxu0  ;;  %v1473_v6 = vpack.c.bf16 %v1920_v7, %v1920_v7  ;;  %v1996_v13 = vpop.f32.mrf.mxu1 }
  0xe7   :  { %907 = vst.msk [vmem:[%s2425_s2 + $0x34] sm:$0xf] %vm893_vm2, %v1449_v15  ;;  %v1186_v25 = vsel %vm959_vm4, %v1110_v17, 0.0  ;;  %v1454_v26 = vpack.c.bf16 %v1553_v22, %v1553_v22  ;;  %v1115_v46 = vmul.f32 %v1553_v22, %v1553_v22  ;;  %v995_v61 = vsel %vm959_vm4, %v1553_v22, 0.0 }
  0xe8   :  { %v988_v28 = vadd.f32 %v987_v23, %v986_v20  ;;  %v1187_v29 = vadd.f32 %v1186_v25, %v1185_v19  ;;  %v446_v31 = vpop.f32.mrf.mxu0  ;;  %931 = vst.msk [vmem:[%s2425_s2 + $0x94] sm:$0xf] %vm893_vm2, %v1473_v6  ;;  %v2008_v22 = vpop.f32.mrf.mxu1 }
  0xe9   :  { %912 = vst.msk [vmem:[%s2425_s2 + $0x48] sm:$0xf] %vm893_vm2, %v1454_v26  ;;  %v1452_v35 = vpack.c.bf16 %v446_v31, %v446_v31  ;;  %v1113_v36 = vmul.f32 %v446_v31, %v446_v31  ;;  %v991_v43 = vsel %vm959_vm4, %v446_v31, 0.0  ;;  %v1196_v8 = vsel %vm959_vm4, %v1115_v46, 0.0 }
  0xea   :  { %v1189_v39 = vadd.f32 %v1188_v33, %v1187_v29  ;;  %v990_v40 = vadd.f32 %v989_v34, %v988_v28  ;;  %v1554_v41 = vpop.f32.mrf.mxu0  ;;  %v1478_v28 = vpack.c.bf16 %v1930_v18, %v1930_v18  ;;  %v2018_v34 = vpop.f32.mrf.mxu1 }
  0xeb   :  { %910 = vst.msk [vmem:[%s2425_s2 + $0x40] sm:$0xf] %vm893_vm2, %v1452_v35  ;;  %v1455_v44 = vpack.c.bf16 %v1554_v41, %v1554_v41  ;;  %v1192_v52 = vsel %vm959_vm4, %v1113_v36, 0.0  ;;  %v1116_v62 = vmul.f32 %v1554_v41, %v1554_v41  ;;  %v997_v9 = vsel %vm959_vm4, %v1554_v41, 0.0 }
  0xec   :  { %v992_v48 = vadd.f32 %v991_v43, %v990_v40  ;;  %v1191_v49 = vadd.f32 %v1190_v42, %v1189_v39  ;;  %v449_v50 = vpop.f32.mrf.mxu0  ;;  %936 = vst.msk [vmem:[%s2425_s2 + $0xa8] sm:$0xf] %vm893_vm2, %v1478_v28 }
  0xed   :  { %913 = vst.msk [vmem:[%s2425_s2 + $0x4c] sm:$0xf] %vm893_vm2, %v1455_v44  ;;  %v1453_v53 = vpack.c.bf16 %v449_v50, %v449_v50  ;;  %v993_v54 = vsel %vm959_vm4, %v449_v50, 0.0  ;;  %v1114_v56 = vmul.f32 %v449_v50, %v449_v50  ;;  %v1198_v17 = vsel %vm959_vm4, %v1116_v62, 0.0  ;;  %v2030_v44 = vpop.f32.mrf.mxu1 }
  0xee   :  { %v1193_v58 = vadd.f32 %v1192_v52, %v1191_v49  ;;  %v994_v59 = vadd.f32 %v993_v54, %v992_v48  ;;  %v1557_v60 = vpop.f32.mrf.mxu0  ;;  %v1476_v50 = vpack.c.bf16 %v1942_v27, %v1942_v27 }
  0xef   :  { %911 = vst.msk [vmem:[%s2425_s2 + $0x44] sm:$0xf] %vm893_vm2, %v1453_v53  ;;  %v1194_v63 = vsel %vm959_vm4, %v1114_v56, 0.0  ;;  %v1458_v1 = vpack.c.bf16 %v1557_v60, %v1557_v60  ;;  %v1119_v23 = vmul.f32 %v1557_v60, %v1557_v60  ;;  %v1003_v40 = vsel %vm959_vm4, %v1557_v60, 0.0  ;;  %v2040_v56 = vpop.f32.mrf.mxu1 }
  0xf0   :  { %v996_v3 = vadd.f32 %v995_v61, %v994_v59  ;;  %v1195_v4 = vadd.f32 %v1194_v63, %v1193_v58  ;;  %v462_v5 = vpop.f32.mrf.mxu0  ;;  %934 = vst.msk [vmem:[%s2425_s2 + $0xa0] sm:$0xf] %vm893_vm2, %v1476_v50 }
  0xf1   :  { %916 = vst.msk [vmem:[%s2425_s2 + $0x58] sm:$0xf] %vm893_vm2, %v1458_v1  ;;  %v1456_v10 = vpack.c.bf16 %v462_v5, %v462_v5  ;;  %v1117_v11 = vmul.f32 %v462_v5, %v462_v5  ;;  %v999_v19 = vsel %vm959_vm4, %v462_v5, 0.0  ;;  %v1204_v51 = vsel %vm959_vm4, %v1119_v23, 0.0  ;;  %v2052_v1 = vpop.f32.mrf.mxu1 }
  0xf2   :  { %v1197_v14 = vadd.f32 %v1196_v8, %v1195_v4  ;;  %v998_v15 = vadd.f32 %v997_v9, %v996_v3  ;;  %v1558_v16 = vpop.f32.mrf.mxu0  ;;  %v1479_v8 = vpack.c.bf16 %v1952_v38, %v1952_v38 }
  0xf3   :  { %914 = vst.msk [vmem:[%s2425_s2 + $0x50] sm:$0xf] %vm893_vm2, %v1456_v10  ;;  %v1459_v20 = vpack.c.bf16 %v1558_v16, %v1558_v16  ;;  %v1200_v29 = vsel %vm959_vm4, %v1117_v11, 0.0  ;;  %v1120_v41 = vmul.f32 %v1558_v16, %v1558_v16  ;;  %v1005_v52 = vsel %vm959_vm4, %v1558_v16, 0.0 }
  0xf4   :  { %v1000_v24 = vadd.f32 %v999_v19, %v998_v15  ;;  %v1199_v25 = vadd.f32 %v1198_v17, %v1197_v14  ;;  %v465_v26 = vpop.f32.mrf.mxu0  ;;  %v2062_v15 = vpop.f32.mrf.mxu1  ;;  %937 = vst.msk [vmem:[%s2425_s2 + $0xac] sm:$0xf] %vm893_vm2, %v1479_v8 }
  0xf5   :  { %917 = vst.msk [vmem:[%s2425_s2 + $0x5c] sm:$0xf] %vm893_vm2, %v1459_v20  ;;  %v1457_v31 = vpack.c.bf16 %v465_v26, %v465_v26  ;;  %v1001_v32 = vsel %vm959_vm4, %v465_v26, 0.0  ;;  %v1118_v33 = vmul.f32 %v465_v26, %v465_v26  ;;  %v1206_v61 = vsel %vm959_vm4, %v1120_v41, 0.0 }
  0xf6   :  { %v1201_v35 = vadd.f32 %v1200_v29, %v1199_v25  ;;  %v1002_v36 = vadd.f32 %v1001_v32, %v1000_v24  ;;  %v1561_v39 = vpop.f32.mrf.mxu0  ;;  %v2074_v26 = vpop.f32.mrf.mxu1  ;;  %v1477_v32 = vpack.c.bf16 %v1964_v45, %v1964_v45 }
  0xf7   :  { %915 = vst.msk [vmem:[%s2425_s2 + $0x54] sm:$0xf] %vm893_vm2, %v1457_v31  ;;  %v1202_v42 = vsel %vm959_vm4, %v1118_v33, 0.0  ;;  %v1462_v43 = vpack.c.bf16 %v1561_v39, %v1561_v39  ;;  %v1123_v3 = vmul.f32 %v1561_v39, %v1561_v39  ;;  %v1011_v20 = vsel %vm959_vm4, %v1561_v39, 0.0 }
  0xf8   :  { %v1004_v46 = vadd.f32 %v1003_v40, %v1002_v36  ;;  %v1203_v48 = vadd.f32 %v1202_v42, %v1201_v35  ;;  %v478_v49 = vpop.f32.mrf.mxu0  ;;  %v2084_v40 = vpop.f32.mrf.mxu1  ;;  %935 = vst.msk [vmem:[%s2425_s2 + $0xa4] sm:$0xf] %vm893_vm2, %v1477_v32  ;;  %v1130_v32 = vmul.f32 %v1876_v37, %v1876_v37 }
  0xf9   :  { %920 = vst.msk [vmem:[%s2425_s2 + $0x68] sm:$0xf] %vm893_vm2, %v1462_v43  ;;  %v1460_v53 = vpack.c.bf16 %v478_v49, %v478_v49  ;;  %v1121_v54 = vmul.f32 %v478_v49, %v478_v49  ;;  %v1007_v62 = vsel %vm959_vm4, %v478_v49, 0.0  ;;  %v1212_v33 = vsel %vm959_vm4, %v1123_v3, 0.0 }
  0xfa   :  { %v1205_v58 = vadd.f32 %v1204_v51, %v1203_v48  ;;  %v1006_v59 = vadd.f32 %v1005_v52, %v1004_v46  ;;  %v1562_v60 = vpop.f32.mrf.mxu0  ;;  %v2096_v50 = vpop.f32.mrf.mxu1 }
  0xfb   :  { %918 = vst.msk [vmem:[%s2425_s2 + $0x60] sm:$0xf] %vm893_vm2, %v1460_v53  ;;  %v1463_v63 = vpack.c.bf16 %v1562_v60, %v1562_v60  ;;  %v1208_v9 = vsel %vm959_vm4, %v1121_v54, 0.0  ;;  %v1124_v23 = vmul.f32 %v1562_v60, %v1562_v60  ;;  %v1013_v35 = vsel %vm959_vm4, %v1562_v60, 0.0 }
  0xfc   :  { %v1008_v4 = vadd.f32 %v1007_v62, %v1006_v59  ;;  %v1207_v5 = vadd.f32 %v1206_v61, %v1205_v58  ;;  %v481_v6 = vpop.f32.mrf.mxu0  ;;  %v1482_v58 = vpack.c.bf16 %v1974_v57, %v1974_v57 }
  0xfd   :  { %921 = vst.msk [vmem:[%s2425_s2 + $0x6c] sm:$0xf] %vm893_vm2, %v1463_v63  ;;  %v1461_v10 = vpack.c.bf16 %v481_v6, %v481_v6  ;;  %v1009_v11 = vsel %vm959_vm4, %v481_v6, 0.0  ;;  %v1122_v14 = vmul.f32 %v481_v6, %v481_v6  ;;  %v1214_v46 = vsel %vm959_vm4, %v1124_v23, 0.0  ;;  %v2106_v63 = vpop.f32.mrf.mxu1 }
  0xfe   :  { %v1209_v16 = vadd.f32 %v1208_v9, %v1207_v5  ;;  %v1010_v17 = vadd.f32 %v1009_v11, %v1008_v4  ;;  %v1565_v19 = vpop.f32.mrf.mxu0  ;;  %940 = vst.msk [vmem:[%s2425_s2 + $0xb8] sm:$0xf] %vm893_vm2, %v1482_v58  ;;  %v1480_v9 = vpack.c.bf16 %v1986_v2, %v1986_v2  ;;  %v1481_v23 = vpack.c.bf16 %v2008_v22, %v2008_v22 }
  0xff   :  { %919 = vst.msk [vmem:[%s2425_s2 + $0x64] sm:$0xf] %vm893_vm2, %v1461_v10  ;;  %v1210_v24 = vsel %vm959_vm4, %v1122_v14, 0.0  ;;  %v1466_v25 = vpack.c.bf16 %v1565_v19, %v1565_v19  ;;  %v1127_v51 = vmul.f32 %v1565_v19, %v1565_v19  ;;  %v1019_v5 = vsel %vm959_vm4, %v1565_v19, 0.0  ;;  %v2120_v10 = vpop.f32.mrf.mxu1 }
 0x100   :  { %v1012_v28 = vadd.f32 %v1011_v20, %v1010_v17  ;;  %v1211_v29 = vadd.f32 %v1210_v24, %v1209_v16  ;;  %v494_v31 = vpop.f32.mrf.mxu0  ;;  %v1483_v16 = vpack.c.bf16 %v1996_v13, %v1996_v13  ;;  %v1129_v20 = vmul.f32 %v1850_v21, %v1850_v21  ;;  %938 = vst.msk [vmem:[%s2425_s2 + $0xb0] sm:$0xf] %vm893_vm2, %v1480_v9 }
 0x101   :  { %924 = vst.msk [vmem:[%s2425_s2 + $0x78] sm:$0xf] %vm893_vm2, %v1466_v25  ;;  %v1464_v36 = vpack.c.bf16 %v494_v31, %v494_v31  ;;  %v1125_v39 = vmul.f32 %v494_v31, %v494_v31  ;;  %v1015_v48 = vsel %vm959_vm4, %v494_v31, 0.0  ;;  %v1220_v17 = vsel %vm959_vm4, %v1127_v51, 0.0  ;;  %v2134_v24 = vpop.f32.mrf.mxu1  ;;  %939 = vst.msk [vmem:[%s2425_s2 + $0xb4] sm:$0xf] %vm893_vm2, %v1481_v23 }
 0x102   :  { %v1213_v41 = vadd.f32 %v1212_v33, %v1211_v29  ;;  %v1014_v42 = vadd.f32 %v1013_v35, %v1012_v28  ;;  %v1566_v43 = vpop.f32.mrf.mxu0  ;;  %941 = vst.msk [vmem:[%s2425_s2 + $0xbc] sm:$0xf] %vm893_vm2, %v1483_v16  ;;  %v1023_v31 = vsel %vm959_vm4, %v1850_v21, 0.0  ;;  %v1486_v33 = vpack.c.bf16 %v2018_v34, %v2018_v34 }
 0x103   :  { %922 = vst.msk [vmem:[%s2425_s2 + $0x70] sm:$0xf] %vm893_vm2, %v1464_v36  ;;  %v1467_v49 = vpack.c.bf16 %v1566_v43, %v1566_v43  ;;  %v1216_v59 = vsel %vm959_vm4, %v1125_v39, 0.0  ;;  %v1128_v6 = vmul.f32 %v1566_v43, %v1566_v43  ;;  %v1021_v19 = vsel %vm959_vm4, %v1566_v43, 0.0 }
 0x104   :  { %v1016_v52 = vadd.f32 %v1015_v48, %v1014_v42  ;;  %v1215_v53 = vadd.f32 %v1214_v46, %v1213_v41  ;;  %v497_v54 = vpop.f32.mrf.mxu0  ;;  %v1484_v39 = vpack.c.bf16 %v2030_v44, %v2030_v44  ;;  %v2153_v41 = vpop.f32.mrf.mxu1  ;;  %v1131_v21 = vmul.f32 %v1840_v12, %v1840_v12  ;;  %944 = vst.msk [vmem:[%s2425_s2 + $0xc8] sm:$0xf] %vm893_vm2, %v1486_v33 }
 0x105   :  { %925 = vst.msk [vmem:[%s2425_s2 + $0x7c] sm:$0xf] %vm893_vm2, %v1467_v49  ;;  %v1465_v60 = vpack.c.bf16 %v497_v54, %v497_v54  ;;  %v1017_v61 = vsel %vm959_vm4, %v497_v54, 0.0  ;;  %v1126_v62 = vmul.f32 %v497_v54, %v497_v54  ;;  %v1222_v29 = vsel %vm959_vm4, %v1128_v6, 0.0 }
 0x106   :  { %v1217_v3 = vadd.f32 %v1216_v59, %v1215_v53  ;;  %v1018_v4 = vadd.f32 %v1017_v61, %v1016_v52  ;;  %v1224_v42 = vsel %vm959_vm4, %v1129_v20, 0.0  ;;  %v1025_v43 = vsel %vm959_vm4, %v1876_v37, 0.0  ;;  %942 = vst.msk [vmem:[%s2425_s2 + $0xc0] sm:$0xf] %vm893_vm2, %v1484_v39 }
 0x107   :  { %923 = vst.msk [vmem:[%s2425_s2 + $0x74] sm:$0xf] %vm893_vm2, %v1465_v60  ;;  %v1218_v8 = vsel %vm959_vm4, %v1126_v62, 0.0  ;;  %v1487_v46 = vpack.c.bf16 %v2040_v56, %v2040_v56  ;;  %v1027_v51 = vsel %vm959_vm4, %v1840_v12, 0.0  ;;  %v1132_v37 = vmul.f32 %v1864_v30, %v1864_v30  ;;  %v2183_v60 = vpop.f32.mrf.mxu1 }
 0x108   :  { %v1020_v11 = vadd.f32 %v1019_v5, %v1018_v4  ;;  %v1219_v14 = vadd.f32 %v1218_v8, %v1217_v3  ;;  %v1226_v52 = vsel %vm959_vm4, %v1130_v32, 0.0  ;;  %v1485_v53 = vpack.c.bf16 %v2052_v1, %v2052_v1 }
 0x109   :  { %945 = vst.msk [vmem:[%s2425_s2 + $0xcc] sm:$0xf] %vm893_vm2, %v1487_v46  ;;  %v1490_v59 = vpack.c.bf16 %v2062_v15, %v2062_v15  ;;  %v1228_v12 = vsel %vm959_vm4, %v1131_v21, 0.0  ;;  %v1029_v61 = vsel %vm959_vm4, %v1864_v30, 0.0  ;;  %v1133_v62 = vmul.f32 %v1898_v55, %v1898_v55 }
 0x10a   :  { %v1022_v25 = vadd.f32 %v1021_v19, %v1020_v11  ;;  %v1221_v28 = vadd.f32 %v1220_v17, %v1219_v14  ;;  %943 = vst.msk [vmem:[%s2425_s2 + $0xc4] sm:$0xf] %vm893_vm2, %v1485_v53  ;;  %v1488_v3 = vpack.c.bf16 %v2074_v26, %v2074_v26  ;;  %v1230_v30 = vsel %vm959_vm4, %v1132_v37, 0.0  ;;  %v2213_v17 = vpop.f32.mrf.mxu1 }
 0x10b   :  { %948 = vst.msk [vmem:[%s2425_s2 + $0xd8] sm:$0xf] %vm893_vm2, %v1490_v59  ;;  %v1031_v6 = vsel %vm959_vm4, %v1898_v55, 0.0  ;;  %v1134_v8 = vmul.f32 %v1920_v7, %v1920_v7  ;;  %v1491_v9 = vpack.c.bf16 %v2084_v40, %v2084_v40  ;;  %v1489_v16 = vpack.c.bf16 %v2096_v50, %v2096_v50 }
 0x10c   :  { %v1223_v35 = vadd.f32 %v1222_v29, %v1221_v28  ;;  %v1024_v36 = vadd.f32 %v1023_v31, %v1022_v25  ;;  %946 = vst.msk [vmem:[%s2425_s2 + $0xd0] sm:$0xf] %vm893_vm2, %v1488_v3  ;;  %v1135_v55 = vmul.f32 %v1886_v47, %v1886_v47  ;;  %v1232_v19 = vsel %vm959_vm4, %v1133_v62, 0.0  ;;  %v2243_v39 = vpop.f32.mrf.mxu1 }
 0x10d   :  { %v1033_v20 = vsel %vm959_vm4, %v1920_v7, 0.0  ;;  %949 = vst.msk [vmem:[%s2425_s2 + $0xdc] sm:$0xf] %vm893_vm2, %v1491_v9  ;;  %v1494_v23 = vpack.c.bf16 %v2106_v63, %v2106_v63  ;;  %947 = vst.msk [vmem:[%s2425_s2 + $0xd4] sm:$0xf] %vm893_vm2, %v1489_v16  ;;  %v1035_v29 = vsel %vm959_vm4, %v1886_v47, 0.0  ;;  %v1136_v7 = vmul.f32 %v1908_v0, %v1908_v0 }
 0x10e   :  { %v1026_v48 = vadd.f32 %v1025_v43, %v1024_v36  ;;  %v1225_v49 = vadd.f32 %v1224_v42, %v1223_v35  ;;  %v1234_v31 = vsel %vm959_vm4, %v1134_v8, 0.0  ;;  %v1492_v32 = vpack.c.bf16 %v2120_v10, %v2120_v10 }
 0x10f   :  { %952 = vst.msk [vmem:[%s2425_s2 + $0xe8] sm:$0xf] %vm893_vm2, %v1494_v23  ;;  %v1495_v36 = vpack.c.bf16 %v2134_v24, %v2134_v24  ;;  %v1236_v47 = vsel %vm959_vm4, %v1135_v55, 0.0  ;;  %v1037_v21 = vsel %vm959_vm4, %v1908_v0, 0.0  ;;  %v1137_v42 = vmul.f32 %v1942_v27, %v1942_v27 }
 0x110   :  { %v1028_v54 = vadd.f32 %v1027_v51, %v1026_v48  ;;  %v1227_v58 = vadd.f32 %v1226_v52, %v1225_v49  ;;  %950 = vst.msk [vmem:[%s2425_s2 + $0xe0] sm:$0xf] %vm893_vm2, %v1492_v32  ;;  %v1493_v43 = vpack.c.bf16 %v2153_v41, %v2153_v41  ;;  %v1238_v0 = vsel %vm959_vm4, %v1136_v7, 0.0 }
 0x111   :  { %953 = vst.msk [vmem:[%s2425_s2 + $0xec] sm:$0xf] %vm893_vm2, %v1495_v36  ;;  %v1039_v49 = vsel %vm959_vm4, %v1942_v27, 0.0  ;;  %v1138_v51 = vmul.f32 %v1964_v45, %v1964_v45  ;;  %v1498_v37 = vpack.c.bf16 %v2183_v60, %v2183_v60  ;;  %v1139_v27 = vmul.f32 %v1930_v18, %v1930_v18 }
 0x112   :  { %v1229_v4 = vadd.f32 %v1228_v12, %v1227_v58  ;;  %v1030_v5 = vadd.f32 %v1029_v61, %v1028_v54  ;;  %951 = vst.msk [vmem:[%s2425_s2 + $0xe4] sm:$0xf] %vm893_vm2, %v1493_v43  ;;  %v1496_v54 = vpack.c.bf16 %v2213_v17, %v2213_v17  ;;  %v2273_v58 = vpop.f32.mrf.mxu1  ;;  %v1240_v59 = vsel %vm959_vm4, %v1137_v42, 0.0 }
 0x113   :  { %v1041_v12 = vsel %vm959_vm4, %v1964_v45, 0.0  ;;  %956 = vst.msk [vmem:[%s2425_s2 + $0xf8] sm:$0xf] %vm893_vm2, %v1498_v37  ;;  %v1499_v61 = vpack.c.bf16 %v2243_v39, %v2243_v39  ;;  %v1140_v45 = vmul.f32 %v1952_v38, %v1952_v38  ;;  %v1244_v9 = vsel %vm959_vm4, %v1139_v27, 0.0 }
 0x114   :  { %v1032_v11 = vadd.f32 %v1031_v6, %v1030_v5  ;;  %v1231_v14 = vadd.f32 %v1230_v30, %v1229_v4  ;;  %954 = vst.msk [vmem:[%s2425_s2 + $0xf0] sm:$0xf] %vm893_vm2, %v1496_v54  ;;  %v1043_v4 = vsel %vm959_vm4, %v1930_v18, 0.0  ;;  %v1242_v5 = vsel %vm959_vm4, %v1138_v51, 0.0 }
 0x115   :  { %957 = vst.msk [vmem:[%s2425_s2 + $0xfc] sm:$0xf] %vm893_vm2, %v1499_v61  ;;  %v1497_v30 = vpack.c.bf16 %v2273_v58, %v2273_v58  ;;  %v1045_v18 = vsel %vm959_vm4, %v1952_v38, 0.0  ;;  %v1246_v55 = vsel %vm959_vm4, %v1140_v45, 0.0  ;;  %v1051_v32 = vsel %vm959_vm4, %v1974_v57, 0.0 }
 0x116   :  { %v1233_v25 = vadd.f32 %v1232_v19, %v1231_v14  ;;  %v1034_v28 = vadd.f32 %v1033_v20, %v1032_v11  ;;  %v1141_v11 = vmul.f32 %v1986_v2, %v1986_v2  ;;  %v1047_v19 = vsel %vm959_vm4, %v1986_v2, 0.0 }
 0x117   :  { %955 = vst.msk [vmem:[%s2425_s2 + $0xf4] sm:$0xf] %vm893_vm2, %v1497_v30  ;;  %v1142_v20 = vmul.f32 %v2008_v22, %v2008_v22  ;;  %v1144_v2 = vmul.f32 %v1996_v13, %v1996_v13  ;;  %v1147_v51 = vmul.f32 %v2018_v34, %v2018_v34  ;;  %v1057_v37 = vsel %vm959_vm4, %v2052_v1, 0.0 }
 0x118   :  { %v1036_v33 = vadd.f32 %v1035_v29, %v1034_v28  ;;  %v1235_v35 = vadd.f32 %v1234_v31, %v1233_v25  ;;  %v1143_v25 = vmul.f32 %v1974_v57, %v1974_v57  ;;  %v1248_v28 = vsel %vm959_vm4, %v1141_v11, 0.0 }
 0x119   :  { %v1049_v29 = vsel %vm959_vm4, %v2008_v22, 0.0  ;;  %v1145_v22 = vmul.f32 %v2030_v44, %v2030_v44  ;;  %v1055_v57 = vsel %vm959_vm4, %v2030_v44, 0.0  ;;  %v1059_v54 = vsel %vm959_vm4, %v2018_v34, 0.0 }
 0x11a   :  { %v1237_v46 = vadd.f32 %v1236_v47, %v1235_v35  ;;  %v1038_v48 = vadd.f32 %v1037_v21, %v1036_v33  ;;  %v1250_v33 = vsel %vm959_vm4, %v1142_v20, 0.0  ;;  %v1252_v47 = vsel %vm959_vm4, %v1143_v25, 0.0 }
 0x11b   :  { %v1053_v21 = vsel %vm959_vm4, %v1996_v13, 0.0  ;;  %v1256_v13 = vsel %vm959_vm4, %v1145_v22, 0.0  ;;  %v1148_v44 = vmul.f32 %v2040_v56, %v2040_v56  ;;  %v1260_v61 = vsel %vm959_vm4, %v1147_v51, 0.0 }
 0x11c   :  { %v1040_v52 = vadd.f32 %v1039_v49, %v1038_v48  ;;  %v1239_v53 = vadd.f32 %v1238_v0, %v1237_v46  ;;  %v1254_v46 = vsel %vm959_vm4, %v1144_v2, 0.0  ;;  %v1146_v48 = vmul.f32 %v2052_v1, %v2052_v1 }
 0x11d   :  { %v1149_v1 = vmul.f32 %v2074_v26, %v2074_v26  ;;  %v1262_v45 = vsel %vm959_vm4, %v1148_v44, 0.0  ;;  %v1063_v34 = vsel %vm959_vm4, %v2074_v26, 0.0  ;;  %v1152_v26 = vmul.f32 %v2084_v40, %v2084_v40 }
 0x11e   :  { %v1241_v62 = vadd.f32 %v1240_v59, %v1239_v53  ;;  %v1042_v3 = vadd.f32 %v1041_v12, %v1040_v52  ;;  %v1258_v27 = vsel %vm959_vm4, %v1146_v48, 0.0  ;;  %v1073_v2 = vsel %vm959_vm4, %v2153_v41, 0.0 }
 0x120   :  { %v1044_v6 = vadd.f32 %v1043_v4, %v1042_v3  ;;  %v1243_v8 = vadd.f32 %v1242_v5, %v1241_v62  ;;  %v1061_v62 = vsel %vm959_vm4, %v2040_v56, 0.0  ;;  %v1150_v5 = vmul.f32 %v2096_v50, %v2096_v50 }
 0x121   :  { %v1264_v56 = vsel %vm959_vm4, %v1149_v1, 0.0 }
 0x122   :  { %v1245_v14 = vadd.f32 %v1244_v9, %v1243_v8  ;;  %v1046_v16 = vadd.f32 %v1045_v18, %v1044_v6  ;;  %v1151_v8 = vmul.f32 %v2062_v15, %v2062_v15  ;;  %v1065_v9 = vsel %vm959_vm4, %v2096_v50, 0.0 }
 0x123   :  { %v1153_v50 = vmul.f32 %v2120_v10, %v2120_v10 }
 0x124   :  { %v1048_v23 = vadd.f32 %v1047_v19, %v1046_v16  ;;  %v1247_v38 = vadd.f32 %v1246_v55, %v1245_v14  ;;  %v1067_v14 = vsel %vm959_vm4, %v2062_v15, 0.0  ;;  %v1266_v16 = vsel %vm959_vm4, %v1150_v5, 0.0 }
 0x125   :  { %v1268_v20 = vsel %vm959_vm4, %v1151_v8, 0.0  ;;  %v1071_v15 = vsel %vm959_vm4, %v2120_v10, 0.0  ;;  %v1156_v10 = vmul.f32 %v2134_v24, %v2134_v24 }
 0x126   :  { %v1249_v7 = vadd.f32 %v1248_v28, %v1247_v38  ;;  %v1050_v31 = vadd.f32 %v1049_v29, %v1048_v23  ;;  %v1069_v23 = vsel %vm959_vm4, %v2084_v40, 0.0  ;;  %v1270_v28 = vsel %vm959_vm4, %v1152_v26, 0.0 }
 0x127   :  { %v1154_v29 = vmul.f32 %v2153_v41, %v2153_v41  ;;  %v1272_v40 = vsel %vm959_vm4, %v1153_v50, 0.0  ;;  %v1157_v41 = vmul.f32 %v2213_v17, %v2213_v17  ;;  %v1278_v48 = vsel %vm959_vm4, %v1156_v10, 0.0 }
 0x128   :  { %v1052_v35 = vadd.f32 %v1051_v32, %v1050_v31  ;;  %v1251_v36 = vadd.f32 %v1250_v33, %v1249_v7  ;;  %v1155_v32 = vmul.f32 %v2106_v63, %v2106_v63 }
 0x12a   :  { %v1253_v42 = vadd.f32 %v1252_v47, %v1251_v36  ;;  %v1054_v43 = vadd.f32 %v1053_v21, %v1052_v35  ;;  %v1075_v36 = vsel %vm959_vm4, %v2106_v63, 0.0  ;;  %v1274_v47 = vsel %vm959_vm4, %v1154_v29, 0.0 }
 0x12b   :  { %v1079_v63 = vsel %vm959_vm4, %v2213_v17, 0.0  ;;  %v1160_v17 = vmul.f32 %v2243_v39, %v2243_v39 }
 0x12c   :  { %v1056_v0 = vadd.f32 %v1055_v57, %v1054_v43  ;;  %v1255_v49 = vadd.f32 %v1254_v46, %v1253_v42  ;;  %v1276_v42 = vsel %vm959_vm4, %v1155_v32, 0.0  ;;  %v1077_v43 = vsel %vm959_vm4, %v2134_v24, 0.0 }
 0x12d   :  { %v1280_v24 = vsel %vm959_vm4, %v1157_v41, 0.0 }
 0x12e   :  { %v1257_v52 = vadd.f32 %v1256_v13, %v1255_v49  ;;  %v1058_v53 = vadd.f32 %v1057_v37, %v1056_v0  ;;  %v1158_v0 = vmul.f32 %v2273_v58, %v2273_v58  ;;  %v1159_v13 = vmul.f32 %v2183_v60, %v2183_v60 }
 0x12f   :  { %v1081_v37 = vsel %vm959_vm4, %v2273_v58, 0.0  ;;  %v1286_v58 = vsel %vm959_vm4, %v1160_v17, 0.0 }
 0x130   :  { %v1060_v59 = vadd.f32 %v1059_v54, %v1058_v53  ;;  %v1259_v12 = vadd.f32 %v1258_v27, %v1257_v52  ;;  %v1083_v54 = vsel %vm959_vm4, %v2183_v60, 0.0  ;;  %v1282_v44 = vsel %vm959_vm4, %v1158_v0, 0.0 }
 0x132   :  { %v1261_v3 = vadd.f32 %v1260_v61, %v1259_v12  ;;  %v1062_v4 = vadd.f32 %v1061_v62, %v1060_v59  ;;  %v1284_v12 = vsel %vm959_vm4, %v1159_v13, 0.0  ;;  %v1085_v61 = vsel %vm959_vm4, %v2243_v39, 0.0 }
 0x134   :  { %v1064_v30 = vadd.f32 %v1063_v34, %v1062_v4  ;;  %v1263_v6 = vadd.f32 %v1262_v45, %v1261_v3 }
 0x136   :  { %v1265_v18 = vadd.f32 %v1264_v56, %v1263_v6  ;;  %v1066_v11 = vadd.f32 %v1065_v9, %v1064_v30  ;;  %v958_v9 = vld [vmem:[%s2426_s3] sm:$0x1] }
 0x138   :  { %v1068_v55 = vadd.f32 %v1067_v14, %v1066_v11  ;;  %v1267_v19 = vadd.f32 %v1266_v16, %v1265_v18  ;;  %v1096_v11 = vld [vmem:[%s2427_s4] sm:$0x1] }
 0x13a   :  { %v1269_v38 = vadd.f32 %v1268_v20, %v1267_v19  ;;  %v1070_v25 = vadd.f32 %v1069_v23, %v1068_v55 }
 0x13c   :  { %v1072_v7 = vadd.f32 %v1071_v15, %v1070_v25  ;;  %v1271_v31 = vadd.f32 %v1270_v28, %v1269_v38 }
 0x13e   :  { %v1273_v33 = vadd.f32 %v1272_v40, %v1271_v31  ;;  %v1074_v35 = vadd.f32 %v1073_v2, %v1072_v7 }
 0x140   :  { %v1076_v21 = vadd.f32 %v1075_v36, %v1074_v35  ;;  %v1275_v22 = vadd.f32 %v1274_v47, %v1273_v33 }
 0x142   :  { %v1277_v46 = vadd.f32 %v1276_v42, %v1275_v22  ;;  %v1078_v57 = vadd.f32 %v1077_v43, %v1076_v21 }
 0x144   :  { %v1080_v49 = vadd.f32 %v1079_v63, %v1078_v57  ;;  %v1279_v51 = vadd.f32 %v1278_v48, %v1277_v46 }
 0x146   :  { %v1281_v52 = vadd.f32 %v1280_v24, %v1279_v51  ;;  %v1082_v53 = vadd.f32 %v1081_v37, %v1080_v49 }
 0x148   :  { %v1084_v27 = vadd.f32 %v1083_v54, %v1082_v53  ;;  %v1283_v59 = vadd.f32 %v1282_v44, %v1281_v52 }
 0x14a   :  { %v1086_v62 = vadd.f32 %v1085_v61, %v1084_v27  ;;  %v1285_v1 = vadd.f32 %v1284_v12, %v1283_v59 }
 0x14c   :  { %v1087_v3 = vrot.slane %v1086_v62, 4  ;;  %v1287_v4 = vadd.f32 %v1286_v58, %v1285_v1 }
 0x14e   :  { %v1088_v45 = vadd.f32 %v1087_v3, %v1086_v62  ;;  %v1288_v60 = vrot.slane %v1287_v4, 4 }
 0x150   :  { %v1089_v34 = vrot.slane %v1088_v45, 2  ;;  %v1289_v5 = vadd.f32 %v1288_v60, %v1287_v4 }
 0x152   :  { %v1090_v30 = vadd.f32 %v1089_v34, %v1088_v45  ;;  %v1290_v6 = vrot.slane %v1289_v5, 2 }
 0x154   :  { %v1091_v8 = vrot.slane %v1090_v30, 1  ;;  %v1291_v56 = vadd.f32 %v1290_v6, %v1289_v5 }
 0x156   :  { %v1092_v18 = vadd.f32 %v1091_v8, %v1090_v30  ;;  %v1292_v39 = vrot.slane %v1291_v56, 1 }
 0x158   :  { %v1093_v14 = vadd.f32 %v1092_v18, %v958_v9  ;;  %v1293_v26 = vadd.f32 %v1292_v39, %v1291_v56 }
 0x15a   :  { %1095 = vst.msk [vmem:[%s2426_s3] sm:$0x1] %vm19_vm3, %v1093_v14  ;;  %v1294_v16 = vadd.f32 %v1293_v26, %v1096_v11 }
 0x15c   :  { %1295 = vst.msk [vmem:[%s2427_s4] sm:$0x1] %vm19_vm3, %v1294_v16 }

// kernel: basic_block_forward.6
= control target key start
LH: loop header
LB: loop body
LE: loop exit
PB: predicated region body
PF: predicated region fallthrough
CT: control target
= control target key end

     0   :  { %s1269_s12 = smov 0   ;;  %s1730_s0 = inlined_call_operand.vmem [shape: bf16[2,256,8], index: 0, kind: input, shape index: {}]   ;;  %s1731_s1 = inlined_call_operand.vmem [shape: f32[1,8], index: 1, kind: input, shape index: {}]   ;;  %s1732_s2 = inlined_call_operand.vmem [shape: f32[1,8], index: 2, kind: input, shape index: {}]   ;;  %s1733_s3 = inlined_call_operand.vmem [shape: bf16[2,18,18,8], index: 3, kind: output, shape index: {}]  }
   0x1 LB: > { %s994_s13 = sadd.s32 4294967295, %s1246_s12   ;;  %p998_p0 = scmp.ge.s32.totalorder %s1246_s12, 1  ;;  %s1246_s12 = sphi %s1269_s12, %s13_s12  }
   0x2   : > { %p137_p1 = scmp.lt.s32.totalorder %s1246_s12, 3 }
   0x4   : > { %p138_p2 = pnand %p998_p0, %p137_p1 }
   0x5   : > { %p161_p3 = scmp.lt.s32.totalorder (!%p138_p2), %s994_s13, 1 }
   0x6   : > { %141 = sbr.rel (%p138_p2) target bundleno = 120 (0x78), region = 32 }
   0xb   : > { %s1741_s13 = smov (!%p161_p3, %s994_s13), 1  ;;  %vm362_vm0 = vcmask 60416   ;;  %vm365_vm1 = vcmask 57344   ;;  %v1285_v0 = vld [vmem:[%s1731_s1] ss:$0 sm:$0xff]  ;;  %v1248_v4 = vmov 0  }
   0xc   : > { %s1230_s14 = smul.u32 216, %s1741_s13  ;;  %s1118_s15 = sshll.u32 %s1741_s13, 7  ;;  %vm823_vm2 = vsmask.f32 7938  ;;  %v1417_v10 = vld [vmem:[%s1732_s2] ss:$0 sm:$0xff] }
   0xd   : > { %s1280_s18 = scalar_lea.vmem %s1730_s0, %s1118_s15  ;;  %vm498_vm3 = vsmask.f32 256  ;;  %vm499_vm4 = vsmask.f32 4368  ;;  %vm1449_vm5 = vmand %vm362_vm0, %vm823_vm2 }
   0xe   : > { %s1290_s23 = scalar_lea.vmem %s1733_s3, %s1230_s14  ;;  %v1293_v1 = vld [vmem:[%s1280_s18] sm:$0xff]   ;;  %v1296_v2 = vld [vmem:[%s1280_s18 + $0x8] sm:$0xff]   ;;  %v1299_v3 = vld [vmem:[%s1280_s18 + $0x10] sm:$0xff]  }
   0xf   : > { %367 = vst.msk [vmem:[%s1290_s23 + $0xc] sm:$0xf] %vm362_vm0, %v1248_v4  ;;  %363 = vst.msk [vmem:[%s1290_s23] sm:$0xf] %vm362_vm0, %v1248_v4  ;;  %v1153_v5 = vunpack.c.l.bf16 %v1293_v1  ;;  %v1154_v6 = vunpack.c.h.bf16 %v1293_v1  ;;  %v1157_v7 = vunpack.c.l.bf16 %v1296_v2  ;;  %v1158_v8 = vunpack.c.h.bf16 %v1296_v2  ;;  %v1217_v9 = vld [vmem:[%s1280_s18 + $0x18] sm:$0xff]   ;;  %v1434_v27 = vld [vmem:[%s1280_s18 + $0x20] sm:$0xff]  }
  0x10   : > { %364 = vst.msk [vmem:[%s1290_s23 + $0x4] sm:$0xf] %vm362_vm0, %v1248_v4  ;;  %368 = vst.msk [vmem:[%s1290_s23 + $0x10] sm:$0xf] %vm362_vm0, %v1248_v4  ;;  %v1161_v11 = vunpack.c.l.bf16 %v1299_v3  ;;  %v1162_v12 = vunpack.c.h.bf16 %v1299_v3  ;;  %v1165_v13 = vunpack.c.l.bf16 %v1217_v9  ;;  %v1166_v14 = vunpack.c.h.bf16 %v1217_v9  ;;  %v1437_v28 = vld [vmem:[%s1280_s18 + $0x28] sm:$0xff]  }
  0x11   : > { %370 = vst.msk [vmem:[%s1290_s23 + $0x18] sm:$0xf] %vm362_vm0, %v1248_v4  ;;  %371 = vst.msk [vmem:[%s1290_s23 + $0x1c] sm:$0xf] %vm362_vm0, %v1248_v4  ;;  %v243_v15 = vmul.f32 %v1153_v5, %v1285_v0  ;;  %v244_v16 = vmul.f32 %v1154_v6, %v1285_v0  ;;  %v245_v17 = vmul.f32 %v1157_v7, %v1285_v0  ;;  %v1169_v37 = vunpack.c.l.bf16 %v1434_v27 }
  0x12   : > { %373 = vst.msk [vmem:[%s1290_s23 + $0x24] sm:$0xf] %vm362_vm0, %v1248_v4  ;;  %374 = vst.msk [vmem:[%s1290_s23 + $0x28] sm:$0xf] %vm362_vm0, %v1248_v4  ;;  %v246_v18 = vmul.f32 %v1158_v8, %v1285_v0  ;;  %v247_v19 = vmul.f32 %v1161_v11, %v1285_v0  ;;  %v248_v20 = vmul.f32 %v1162_v12, %v1285_v0  ;;  %v1170_v38 = vunpack.c.h.bf16 %v1434_v27 }
  0x13   : > { %376 = vst.msk [vmem:[%s1290_s23 + $0x30] sm:$0xf] %vm362_vm0, %v1248_v4  ;;  %377 = vst.msk [vmem:[%s1290_s23 + $0x34] sm:$0xf] %vm362_vm0, %v1248_v4  ;;  %v249_v21 = vmul.f32 %v1165_v13, %v1285_v0  ;;  %v250_v22 = vmul.f32 %v1166_v14, %v1285_v0  ;;  %v282_v23 = vadd.f32 %v1417_v10, %v243_v15  ;;  %v1173_v39 = vunpack.c.l.bf16 %v1437_v28 }
  0x14   : > { %379 = vst.msk [vmem:[%s1290_s23 + $0x3c] sm:$0xf] %vm362_vm0, %v1248_v4  ;;  %380 = vst.msk [vmem:[%s1290_s23 + $0x40] sm:$0xf] %vm362_vm0, %v1248_v4  ;;  %v283_v24 = vadd.f32 %v1417_v10, %v244_v16  ;;  %v284_v25 = vadd.f32 %v1417_v10, %v245_v17  ;;  %v285_v26 = vadd.f32 %v1417_v10, %v246_v18  ;;  %v1174_v40 = vunpack.c.h.bf16 %v1437_v28 }
  0x15   : > { %382 = vst.msk [vmem:[%s1290_s23 + $0x48] sm:$0xf] %vm362_vm0, %v1248_v4  ;;  %383 = vst.msk [vmem:[%s1290_s23 + $0x4c] sm:$0xf] %vm362_vm0, %v1248_v4  ;;  %v286_v29 = vadd.f32 %v1417_v10, %v247_v19  ;;  %v287_v30 = vadd.f32 %v1417_v10, %v248_v20  ;;  %v288_v31 = vadd.f32 %v1417_v10, %v249_v21  ;;  %v314_v33 = vmax.f32 %v282_v23, 0.0 }
  0x16   : > { %385 = vst.msk [vmem:[%s1290_s23 + $0x54] sm:$0xf] %vm362_vm0, %v1248_v4  ;;  %386 = vst.msk [vmem:[%s1290_s23 + $0x58] sm:$0xf] %vm362_vm0, %v1248_v4  ;;  %v289_v32 = vadd.f32 %v1417_v10, %v250_v22  ;;  %v315_v34 = vmax.f32 %v283_v24, 0.0  ;;  %v316_v35 = vmax.f32 %v284_v25, 0.0 }
  0x17   : > { %388 = vst.msk [vmem:[%s1290_s23 + $0x60] sm:$0xf] %vm362_vm0, %v1248_v4  ;;  %389 = vst.msk [vmem:[%s1290_s23 + $0x64] sm:$0xf] %vm362_vm0, %v1248_v4  ;;  %v317_v36 = vmax.f32 %v285_v26, 0.0  ;;  %v1119_v41 = vpack.c.bf16 %v314_v33, %v314_v33  ;;  %v318_v45 = vmax.f32 %v286_v29, 0.0 }
  0x18   : > { %391 = vst.msk [vmem:[%s1290_s23 + $0x6c] sm:$0xf] %vm362_vm0, %v1248_v4  ;;  %392 = vst.msk [vmem:[%s1290_s23 + $0x70] sm:$0xf] %vm362_vm0, %v1248_v4  ;;  %v1120_v42 = vpack.c.bf16 %v315_v34, %v315_v34  ;;  %v1121_v43 = vpack.c.bf16 %v316_v35, %v316_v35  ;;  %v319_v46 = vmax.f32 %v287_v30, 0.0  ;;  %v320_v47 = vmax.f32 %v288_v31, 0.0 }
  0x19   : > { %394 = vst.msk [vmem:[%s1290_s23 + $0x78] sm:$0xf] %vm362_vm0, %v1248_v4  ;;  %395 = vst.msk [vmem:[%s1290_s23 + $0x7c] sm:$0xf] %vm362_vm0, %v1248_v4  ;;  %v1122_v44 = vpack.c.bf16 %v317_v36, %v317_v36  ;;  %v321_v48 = vmax.f32 %v289_v32, 0.0  ;;  %v502_v49 = vshrl.u32 %v1119_v41, 16  ;;  %v1123_v61 = vpack.c.bf16 %v318_v45, %v318_v45 }
  0x1a   : > { %397 = vst.msk [vmem:[%s1290_s23 + $0x84] sm:$0xf] %vm362_vm0, %v1248_v4  ;;  %398 = vst.msk [vmem:[%s1290_s23 + $0x88] sm:$0xf] %vm362_vm0, %v1248_v4  ;;  %v505_v50 = vshll.u32 %v1119_v41, 16  ;;  %v510_v51 = vshrl.u32 %v1120_v42, 16  ;;  %v1124_v62 = vpack.c.bf16 %v319_v46, %v319_v46  ;;  %v1125_v5 = vpack.c.bf16 %v320_v47, %v320_v47 }
  0x1b   : > { %400 = vst.msk [vmem:[%s1290_s23 + $0x90] sm:$0xf] %vm362_vm0, %v1248_v4  ;;  %401 = vst.msk [vmem:[%s1290_s23 + $0x94] sm:$0xf] %vm362_vm0, %v1248_v4  ;;  %v513_v52 = vshll.u32 %v1120_v42, 16  ;;  %v519_v54 = vshrl.u32 %v1121_v43, 16  ;;  %v1126_v6 = vpack.c.bf16 %v321_v48, %v321_v48  ;;  %v251_v36 = vmul.f32 %v1169_v37, %v1285_v0 }
  0x1c   : > { %403 = vst.msk [vmem:[%s1290_s23 + $0x9c] sm:$0xf] %vm362_vm0, %v1248_v4  ;;  %404 = vst.msk [vmem:[%s1290_s23 + $0xa0] sm:$0xf] %vm362_vm0, %v1248_v4  ;;  %v522_v55 = vshll.u32 %v1121_v43, 16  ;;  %v527_v56 = vshrl.u32 %v1122_v44, 16 }
  0x1d   : > { %406 = vst.msk [vmem:[%s1290_s23 + $0xa8] sm:$0xf] %vm362_vm0, %v1248_v4  ;;  %407 = vst.msk [vmem:[%s1290_s23 + $0xac] sm:$0xf] %vm362_vm0, %v1248_v4  ;;  %v530_v57 = vshll.u32 %v1122_v44, 16  ;;  %v504_v58 = vrot.slane %v502_v49, 7  ;;  %v290_v48 = vadd.f32 %v1417_v10, %v251_v36  ;;  %v252_v49 = vmul.f32 %v1170_v38, %v1285_v0 }
  0x1e   : > { %409 = vst.msk [vmem:[%s1290_s23 + $0xb4] sm:$0xf] %vm362_vm0, %v1248_v4  ;;  %410 = vst.msk [vmem:[%s1290_s23 + $0xb8] sm:$0xf] %vm362_vm0, %v1248_v4  ;;  %v512_v60 = vrot.slane %v510_v51, 7  ;;  %v521_v3 = vrot.slane %v519_v54, 7 }
  0x1f   : > { %412 = vst.msk [vmem:[%s1290_s23 + $0xc0] sm:$0xf] %vm362_vm0, %v1248_v4  ;;  %413 = vst.msk [vmem:[%s1290_s23 + $0xc4] sm:$0xf] %vm362_vm0, %v1248_v4  ;;  %v1036_v63 = vld [vmem:[%s1290_s23 + $0xc] sm:$0xf]  ;;  %v507_v7 = vor.u32 %v505_v50, %v504_v58  ;;  %v253_v50 = vmul.f32 %v1173_v39, %v1285_v0 }
  0x20   : > { %415 = vst.msk [vmem:[%s1290_s23 + $0xcc] sm:$0xf] %vm362_vm0, %v1248_v4  ;;  %416 = vst.msk [vmem:[%s1290_s23 + $0xd0] sm:$0xf] %vm362_vm0, %v1248_v4  ;;  %v508_v8 = vrot.slane %v504_v58, 4  ;;  %v515_v9 = vor.u32 %v513_v52, %v512_v60  ;;  %v517_v11 = vrot.slane %v512_v60, 4  ;;  %v524_v14 = vor.u32 %v522_v55, %v521_v3 }
  0x21   : > { %369 = vst.msk [vmem:[%s1290_s23 + $0x14] sm:$0x1] %vm365_vm1, %v1248_v4  ;;  %366 = vst.msk [vmem:[%s1290_s23 + $0x8] sm:$0x1] %vm365_vm1, %v1248_v4  ;;  %v1041_v12 = vld [vmem:[%s1290_s23 + $0x18] sm:$0xf]  ;;  %v826_v18 = vsel %vm1449_vm5, %v507_v7, %v1036_v63  ;;  %v254_v7 = vmul.f32 %v1174_v40, %v1285_v0 }
  0x22   : > { %372 = vst.msk [vmem:[%s1290_s23 + $0x20] sm:$0x1] %vm365_vm1, %v1248_v4  ;;  %375 = vst.msk [vmem:[%s1290_s23 + $0x2c] sm:$0x1] %vm365_vm1, %v1248_v4  ;;  %v525_v15 = vrot.slane %v521_v3, 4  ;;  %v536_v21 = vshrl.u32 %v1123_v61, 16  ;;  %v835_v22 = vsel %vm1449_vm5, %v524_v14, %v1041_v12 }
  0x23   : > { %378 = vst.msk [vmem:[%s1290_s23 + $0x38] sm:$0x1] %vm365_vm1, %v1248_v4  ;;  %381 = vst.msk [vmem:[%s1290_s23 + $0x44] sm:$0x1] %vm365_vm1, %v1248_v4  ;;  %v539_v25 = vshll.u32 %v1123_v61, 16  ;;  %v544_v29 = vshrl.u32 %v1124_v62, 16 }
  0x24   : > { %384 = vst.msk [vmem:[%s1290_s23 + $0x50] sm:$0x1] %vm365_vm1, %v1248_v4  ;;  %387 = vst.msk [vmem:[%s1290_s23 + $0x5c] sm:$0x1] %vm365_vm1, %v1248_v4  ;;  %v538_v26 = vrot.slane %v536_v21, 7  ;;  %v547_v30 = vshll.u32 %v1124_v62, 16  ;;  %v291_v62 = vadd.f32 %v1417_v10, %v252_v49 }
  0x25   : > { %390 = vst.msk [vmem:[%s1290_s23 + $0x68] sm:$0x1] %vm365_vm1, %v1248_v4  ;;  %393 = vst.msk [vmem:[%s1290_s23 + $0x74] sm:$0x1] %vm365_vm1, %v1248_v4  ;;  %v553_v31 = vshrl.u32 %v1125_v5, 16  ;;  %v556_v33 = vshll.u32 %v1125_v5, 16  ;;  %v292_v5 = vadd.f32 %v1417_v10, %v253_v50 }
  0x26   : > { %396 = vst.msk [vmem:[%s1290_s23 + $0x80] sm:$0x1] %vm365_vm1, %v1248_v4  ;;  %399 = vst.msk [vmem:[%s1290_s23 + $0x8c] sm:$0x1] %vm365_vm1, %v1248_v4  ;;  %v1046_v32 = vld [vmem:[%s1290_s23 + $0x24] sm:$0xf]  ;;  %v541_v41 = vor.u32 %v539_v25, %v538_v26 }
  0x27   : > { %402 = vst.msk [vmem:[%s1290_s23 + $0x98] sm:$0x1] %vm365_vm1, %v1248_v4  ;;  %405 = vst.msk [vmem:[%s1290_s23 + $0xa4] sm:$0x1] %vm365_vm1, %v1248_v4  ;;  %v561_v34 = vshrl.u32 %v1126_v6, 16  ;;  %v564_v35 = vshll.u32 %v1126_v6, 16 }
  0x28   : > { %408 = vst.msk [vmem:[%s1290_s23 + $0xb0] sm:$0x1] %vm365_vm1, %v1248_v4  ;;  %411 = vst.msk [vmem:[%s1290_s23 + $0xbc] sm:$0x1] %vm365_vm1, %v1248_v4  ;;  %v1039_v2 = vld [vmem:[%s1290_s23 + $0x14] sm:$0x1]  ;;  %v842_v37 = vsel %vm1449_vm5, %v541_v41, %v1046_v32 }
  0x29   : > { %414 = vst.msk [vmem:[%s1290_s23 + $0xc8] sm:$0x1] %vm365_vm1, %v1248_v4  ;;  %417 = vst.msk [vmem:[%s1290_s23 + $0xd4] sm:$0x1] %vm365_vm1, %v1248_v4  ;;  %v529_v4 = vrot.slane %v527_v56, 7  ;;  %v542_v42 = vrot.slane %v538_v26, 4 }
  0x2a   : > { %vm1455_vm6 = vmor %vm498_vm3, %vm499_vm4  ;;  %v1044_v13 = vld [vmem:[%s1290_s23 + $0x20] sm:$0x1]  ;;  %1037 = vst [vmem:[%s1290_s23 + $0xc] sm:$0xf] %v826_v18  ;;  %v546_v43 = vrot.slane %v544_v29, 7  ;;  %v555_v44 = vrot.slane %v553_v31, 7 }
  0x2b   : > { %vm1462_vm7 = vmand %vm365_vm1, %vm498_vm3  ;;  %v532_v16 = vor.u32 %v530_v57, %v529_v4  ;;  %v534_v17 = vrot.slane %v529_v4, 4  ;;  %v516_v19 = vsel %vm1455_vm6, %v508_v8, %v515_v9  ;;  %1042 = vst [vmem:[%s1290_s23 + $0x18] sm:$0xf] %v835_v22  ;;  %v1049_v45 = vld [vmem:[%s1290_s23 + $0x2c] sm:$0x1]  ;;  %v563_v47 = vrot.slane %v561_v34, 7 }
  0x2c   : > { %v832_v20 = vsel %vm1462_vm7, %v517_v11, %v1039_v2  ;;  %1038 = vst.msk [vmem:[%s1290_s23 + $0x10] sm:$0xf] %vm362_vm0, %v516_v19  ;;  %v1051_v46 = vld [vmem:[%s1290_s23 + $0x30] sm:$0xf]  ;;  %v549_v51 = vor.u32 %v547_v30, %v546_v43  ;;  %v551_v52 = vrot.slane %v546_v43, 4  ;;  %v558_v54 = vor.u32 %v556_v33, %v555_v44  ;;  %v1221_v63 = vld [vmem:[%s1280_s18 + $0x38] sm:$0xff]  }
  0x2d   : > { %1040 = vst [vmem:[%s1290_s23 + $0x14] sm:$0x1] %v832_v20  ;;  %v533_v23 = vsel %vm1455_vm6, %v525_v15, %v532_v16  ;;  %v839_v24 = vsel %vm1462_vm7, %v534_v17, %v1044_v13  ;;  %v1054_v55 = vld [vmem:[%s1290_s23 + $0x38] sm:$0x1]  ;;  %1047 = vst [vmem:[%s1290_s23 + $0x24] sm:$0xf] %v842_v37  ;;  %v566_v57 = vor.u32 %v564_v35, %v563_v47  ;;  %v1181_v14 = vunpack.c.l.bf16 %v1221_v63 }
  0x2e   : > { %1043 = vst.msk [vmem:[%s1290_s23 + $0x1c] sm:$0xf] %vm362_vm0, %v533_v23  ;;  %1045 = vst [vmem:[%s1290_s23 + $0x20] sm:$0x1] %v839_v24  ;;  %v559_v56 = vrot.slane %v555_v44, 4  ;;  %v568_v27 = vrot.slane %v563_v47, 4  ;;  %v550_v39 = vsel %vm1455_vm6, %v542_v42, %v549_v51  ;;  %v846_v60 = vsel %vm1462_vm7, %v551_v52, %v1049_v45 }
  0x2f   : > { %v322_v38 = vmax.f32 %v290_v48, 0.0  ;;  %v1220_v58 = vld [vmem:[%s1280_s18 + $0x30] sm:$0xff]   ;;  %v849_v61 = vsel %vm1449_vm5, %v558_v54, %v1051_v46  ;;  %1048 = vst.msk [vmem:[%s1290_s23 + $0x28] sm:$0xf] %vm362_vm0, %v550_v39  ;;  %1050 = vst [vmem:[%s1290_s23 + $0x2c] sm:$0x1] %v846_v60  ;;  %v293_v16 = vadd.f32 %v1417_v10, %v254_v7  ;;  %v257_v21 = vmul.f32 %v1181_v14, %v1285_v0 }
  0x30   : > { %1052 = vst [vmem:[%s1290_s23 + $0x30] sm:$0xf] %v849_v61  ;;  %v567_v2 = vsel %vm1455_vm6, %v559_v56, %v566_v57  ;;  %v853_v3 = vsel %vm1462_vm7, %v568_v27, %v1054_v55  ;;  %v323_v6 = vmax.f32 %v291_v62, 0.0  ;;  %v1177_v8 = vunpack.c.l.bf16 %v1220_v58  ;;  %v1056_v40 = vld [vmem:[%s1290_s23 + $0x3c] sm:$0xf]  ;;  %v1222_v27 = vld [vmem:[%s1280_s18 + $0x40] sm:$0xff]  }
  0x31   : > { %v1127_v4 = vpack.c.bf16 %v322_v38, %v322_v38  ;;  %1053 = vst.msk [vmem:[%s1290_s23 + $0x34] sm:$0xf] %vm362_vm0, %v567_v2  ;;  %1055 = vst [vmem:[%s1290_s23 + $0x38] sm:$0x1] %v853_v3  ;;  %v1178_v9 = vunpack.c.h.bf16 %v1220_v58  ;;  %v324_v13 = vmax.f32 %v292_v5, 0.0  ;;  %v1182_v28 = vunpack.c.h.bf16 %v1221_v63 }
  0x32   : > { %v1128_v15 = vpack.c.bf16 %v323_v6, %v323_v6  ;;  %v255_v17 = vmul.f32 %v1177_v8, %v1285_v0  ;;  %v325_v24 = vmax.f32 %v293_v16, 0.0  ;;  %v1059_v41 = vld [vmem:[%s1290_s23 + $0x44] sm:$0x1]  ;;  %v296_v43 = vadd.f32 %v1417_v10, %v257_v21  ;;  %v1061_v47 = vld [vmem:[%s1290_s23 + $0x48] sm:$0xf] }
  0x33   : > { %v570_v11 = vshrl.u32 %v1127_v4, 16  ;;  %v573_v12 = vshll.u32 %v1127_v4, 16  ;;  %v256_v18 = vmul.f32 %v1178_v9, %v1285_v0  ;;  %v1129_v20 = vpack.c.bf16 %v324_v13, %v324_v13  ;;  %v1064_v58 = vld [vmem:[%s1290_s23 + $0x50] sm:$0x1]  ;;  %v1223_v8 = vld [vmem:[%s1280_s18 + $0x48] sm:$0xff]  }
  0x34   : > { %v578_v22 = vshrl.u32 %v1128_v15, 16  ;;  %v581_v23 = vshll.u32 %v1128_v15, 16  ;;  %v294_v25 = vadd.f32 %v1417_v10, %v255_v17  ;;  %v1130_v33 = vpack.c.bf16 %v325_v24, %v325_v24 }
  0x35   : > { %v572_v19 = vrot.slane %v570_v11, 7  ;;  %v587_v30 = vshrl.u32 %v1129_v20, 16  ;;  %v590_v31 = vshll.u32 %v1129_v20, 16  ;;  %v295_v35 = vadd.f32 %v1417_v10, %v256_v18 }
  0x36   : > { %v580_v32 = vrot.slane %v578_v22, 7  ;;  %v326_v34 = vmax.f32 %v294_v25, 0.0  ;;  %v258_v44 = vmul.f32 %v1182_v28, %v1285_v0  ;;  %v595_v48 = vshrl.u32 %v1130_v33, 16  ;;  %v1071_v25 = vld [vmem:[%s1290_s23 + $0x60] sm:$0xf] }
  0x37   : > { %v575_v26 = vor.u32 %v573_v12, %v572_v19  ;;  %v576_v29 = vrot.slane %v572_v19, 4  ;;  %v589_v42 = vrot.slane %v587_v30, 7  ;;  %v598_v49 = vshll.u32 %v1130_v33, 16  ;;  %v1066_v12 = vld [vmem:[%s1290_s23 + $0x54] sm:$0xf] }
  0x38   : > { %v583_v45 = vor.u32 %v581_v23, %v580_v32  ;;  %v585_v46 = vrot.slane %v580_v32, 4  ;;  %v1131_v51 = vpack.c.bf16 %v326_v34, %v326_v34  ;;  %v327_v52 = vmax.f32 %v295_v35, 0.0  ;;  %v1069_v19 = vld [vmem:[%s1290_s23 + $0x5c] sm:$0x1]  ;;  %v1224_v33 = vld [vmem:[%s1280_s18 + $0x50] sm:$0xff]  }
  0x39   : > { %v856_v36 = vsel %vm1449_vm5, %v575_v26, %v1056_v40  ;;  %v592_v50 = vor.u32 %v590_v31, %v589_v42  ;;  %v593_v37 = vrot.slane %v589_v42, 4  ;;  %v597_v56 = vrot.slane %v595_v48, 7  ;;  %v1580_v42 = vld [vmem:[%s1280_s18 + $0x58] sm:$0xff]  }
  0x3a   : > { %1057 = vst [vmem:[%s1290_s23 + $0x3c] sm:$0xf] %v856_v36  ;;  %v584_v54 = vsel %vm1455_vm6, %v576_v29, %v583_v45  ;;  %v860_v55 = vsel %vm1462_vm7, %v585_v46, %v1059_v41  ;;  %v328_v57 = vmax.f32 %v296_v43, 0.0  ;;  %v604_v39 = vshrl.u32 %v1131_v51, 16 }
  0x3b   : > { %1058 = vst.msk [vmem:[%s1290_s23 + $0x40] sm:$0xf] %vm362_vm0, %v584_v54  ;;  %1060 = vst [vmem:[%s1290_s23 + $0x44] sm:$0x1] %v860_v55  ;;  %v863_v38 = vsel %vm1449_vm5, %v592_v50, %v1061_v47  ;;  %v607_v60 = vshll.u32 %v1131_v51, 16  ;;  %v1132_v61 = vpack.c.bf16 %v327_v52, %v327_v52  ;;  %v600_v62 = vor.u32 %v598_v49, %v597_v56 }
  0x3c   : > { %1062 = vst [vmem:[%s1290_s23 + $0x48] sm:$0xf] %v863_v38  ;;  %v602_v63 = vrot.slane %v597_v56, 4  ;;  %v1133_v2 = vpack.c.bf16 %v328_v57, %v328_v57  ;;  %v297_v3 = vadd.f32 %v1417_v10, %v258_v44  ;;  %v606_v4 = vrot.slane %v604_v39, 7 }
  0x3d   : > { %v612_v5 = vshrl.u32 %v1132_v61, 16  ;;  %v615_v6 = vshll.u32 %v1132_v61, 16  ;;  %v1185_v7 = vunpack.c.l.bf16 %v1222_v27  ;;  %v601_v9 = vsel %vm1455_vm6, %v593_v37, %v600_v62  ;;  %v1074_v37 = vld [vmem:[%s1290_s23 + $0x68] sm:$0x1] }
  0x3e   : > { %v867_v11 = vsel %vm1462_vm7, %v602_v63, %v1064_v58  ;;  %v621_v13 = vshrl.u32 %v1133_v2, 16  ;;  %v624_v14 = vshll.u32 %v1133_v2, 16  ;;  %1063 = vst.msk [vmem:[%s1290_s23 + $0x4c] sm:$0xf] %vm362_vm0, %v601_v9  ;;  %v609_v15 = vor.u32 %v607_v60, %v606_v4 }
  0x3f   : > { %1065 = vst [vmem:[%s1290_s23 + $0x50] sm:$0x1] %v867_v11  ;;  %v610_v16 = vrot.slane %v606_v4, 4  ;;  %v614_v17 = vrot.slane %v612_v5, 7  ;;  %v329_v18 = vmax.f32 %v297_v3, 0.0  ;;  %v259_v21 = vmul.f32 %v1185_v7, %v1285_v0 }
  0x40   : > { %v623_v20 = vrot.slane %v621_v13, 7  ;;  %v1186_v28 = vunpack.c.h.bf16 %v1222_v27  ;;  %v1189_v40 = vunpack.c.l.bf16 %v1223_v8  ;;  %v870_v22 = vsel %vm1449_vm5, %v609_v15, %v1066_v12 }
  0x41   : > { %v617_v23 = vor.u32 %v615_v6, %v614_v17  ;;  %v619_v24 = vrot.slane %v614_v17, 4  ;;  %v1134_v26 = vpack.c.bf16 %v329_v18, %v329_v18  ;;  %1067 = vst [vmem:[%s1290_s23 + $0x54] sm:$0xf] %v870_v22  ;;  %v298_v31 = vadd.f32 %v1417_v10, %v259_v21  ;;  %v1079_v18 = vld [vmem:[%s1290_s23 + $0x74] sm:$0x1] }
  0x42   : > { %v626_v29 = vor.u32 %v624_v14, %v623_v20  ;;  %v627_v30 = vrot.slane %v623_v20, 4  ;;  %v260_v32 = vmul.f32 %v1186_v28, %v1285_v0  ;;  %v261_v46 = vmul.f32 %v1189_v40, %v1285_v0 }
  0x43   : > { %v618_v34 = vsel %vm1455_vm6, %v610_v16, %v617_v23  ;;  %v874_v35 = vsel %vm1462_vm7, %v619_v24, %v1069_v19  ;;  %v629_v36 = vshrl.u32 %v1134_v26, 16  ;;  %v632_v41 = vshll.u32 %v1134_v26, 16  ;;  %v1081_v26 = vld [vmem:[%s1290_s23 + $0x78] sm:$0xf] }
  0x44   : > { %1068 = vst.msk [vmem:[%s1290_s23 + $0x58] sm:$0xf] %vm362_vm0, %v618_v34  ;;  %1070 = vst [vmem:[%s1290_s23 + $0x5c] sm:$0x1] %v874_v35  ;;  %v877_v43 = vsel %vm1449_vm5, %v626_v29, %v1071_v25  ;;  %v330_v44 = vmax.f32 %v298_v31, 0.0  ;;  %v299_v45 = vadd.f32 %v1417_v10, %v260_v32  ;;  %v1190_v48 = vunpack.c.h.bf16 %v1223_v8  ;;  %v1226_v25 = vld [vmem:[%s1280_s18 + $0x60] sm:$0xff]  }
  0x45   : > { %1072 = vst [vmem:[%s1290_s23 + $0x60] sm:$0xf] %v877_v43  ;;  %v631_v47 = vrot.slane %v629_v36, 7  ;;  %v1193_v49 = vunpack.c.l.bf16 %v1224_v33  ;;  %v1194_v50 = vunpack.c.h.bf16 %v1224_v33  ;;  %v300_v54 = vadd.f32 %v1417_v10, %v261_v46  ;;  %v1076_v8 = vld [vmem:[%s1290_s23 + $0x6c] sm:$0xf] }
  0x46   : > { %v1135_v51 = vpack.c.bf16 %v330_v44, %v330_v44  ;;  %v331_v52 = vmax.f32 %v299_v45, 0.0  ;;  %v1197_v55 = vunpack.c.l.bf16 %v1580_v42  ;;  %v262_v27 = vmul.f32 %v1190_v48, %v1285_v0  ;;  %v1086_v48 = vld [vmem:[%s1290_s23 + $0x84] sm:$0xf] }
  0x47   : > { %v634_v56 = vor.u32 %v632_v41, %v631_v47  ;;  %v636_v57 = vrot.slane %v631_v47, 4  ;;  %v263_v38 = vmul.f32 %v1193_v49, %v1285_v0  ;;  %v332_v61 = vmax.f32 %v300_v54, 0.0  ;;  %v1084_v47 = vld [vmem:[%s1290_s23 + $0x80] sm:$0x1] }
  0x48   : > { %v638_v58 = vshrl.u32 %v1135_v51, 16  ;;  %v641_v39 = vshll.u32 %v1135_v51, 16  ;;  %v1136_v60 = vpack.c.bf16 %v331_v52, %v331_v52  ;;  %v301_v2 = vadd.f32 %v1417_v10, %v262_v27 }
  0x49   : > { %v635_v62 = vsel %vm1455_vm6, %v627_v30, %v634_v56  ;;  %v881_v63 = vsel %vm1462_vm7, %v636_v57, %v1074_v37  ;;  %v302_v3 = vadd.f32 %v1417_v10, %v263_v38  ;;  %v1137_v7 = vpack.c.bf16 %v332_v61, %v332_v61 }
  0x4a   : > { %1073 = vst.msk [vmem:[%s1290_s23 + $0x64] sm:$0xf] %vm362_vm0, %v635_v62  ;;  %1075 = vst [vmem:[%s1290_s23 + $0x68] sm:$0x1] %v881_v63  ;;  %v640_v4 = vrot.slane %v638_v58, 7  ;;  %v646_v5 = vshrl.u32 %v1136_v60, 16  ;;  %v264_v12 = vmul.f32 %v1194_v50, %v1285_v0  ;;  %v265_v13 = vmul.f32 %v1197_v55, %v1285_v0 }
  0x4b   : > { %v649_v6 = vshll.u32 %v1136_v60, 16  ;;  %v333_v9 = vmax.f32 %v301_v2, 0.0  ;;  %v334_v11 = vmax.f32 %v302_v3, 0.0  ;;  %v655_v17 = vshrl.u32 %v1137_v7, 16  ;;  %v1227_v58 = vld [vmem:[%s1280_s18 + $0x68] sm:$0xff]  }
  0x4c   : > { %v643_v14 = vor.u32 %v641_v39, %v640_v4  ;;  %v644_v15 = vrot.slane %v640_v4, 4  ;;  %v648_v16 = vrot.slane %v646_v5, 7  ;;  %v658_v19 = vshll.u32 %v1137_v7, 16 }
  0x4d   : > { %v1138_v20 = vpack.c.bf16 %v333_v9, %v333_v9  ;;  %v1139_v21 = vpack.c.bf16 %v334_v11, %v334_v11  ;;  %v303_v28 = vadd.f32 %v1417_v10, %v264_v12  ;;  %v657_v24 = vrot.slane %v655_v17, 7 }
  0x4e   : > { %v884_v40 = vsel %vm1449_vm5, %v643_v14, %v1076_v8  ;;  %v651_v22 = vor.u32 %v649_v6, %v648_v16  ;;  %v653_v23 = vrot.slane %v648_v16, 4  ;;  %v304_v45 = vadd.f32 %v1417_v10, %v265_v13  ;;  %v1089_v8 = vld [vmem:[%s1290_s23 + $0x8c] sm:$0x1] }
  0x4f   : > { %1077 = vst [vmem:[%s1290_s23 + $0x6c] sm:$0xf] %v884_v40  ;;  %v663_v29 = vshrl.u32 %v1138_v20, 16  ;;  %v666_v30 = vshll.u32 %v1138_v20, 16  ;;  %v672_v31 = vshrl.u32 %v1139_v21, 16  ;;  %v675_v32 = vshll.u32 %v1139_v21, 16 }
  0x50   : > { %v652_v33 = vsel %vm1455_vm6, %v644_v15, %v651_v22  ;;  %v888_v34 = vsel %vm1462_vm7, %v653_v23, %v1079_v18  ;;  %v660_v35 = vor.u32 %v658_v19, %v657_v24  ;;  %v661_v36 = vrot.slane %v657_v24, 4  ;;  %v1091_v22 = vld [vmem:[%s1290_s23 + $0x90] sm:$0xf] }
  0x51   : > { %1078 = vst.msk [vmem:[%s1290_s23 + $0x70] sm:$0xf] %vm362_vm0, %v652_v33  ;;  %1080 = vst [vmem:[%s1290_s23 + $0x74] sm:$0x1] %v888_v34  ;;  %v665_v41 = vrot.slane %v663_v29, 7  ;;  %v674_v43 = vrot.slane %v672_v31, 7  ;;  %v1198_v49 = vunpack.c.h.bf16 %v1580_v42  ;;  %v1201_v50 = vunpack.c.l.bf16 %v1226_v25 }
  0x52   : > { %v335_v44 = vmax.f32 %v303_v28, 0.0  ;;  %v891_v46 = vsel %vm1449_vm5, %v660_v35, %v1081_v26  ;;  %v1202_v37 = vunpack.c.h.bf16 %v1226_v25  ;;  %v336_v57 = vmax.f32 %v304_v45, 0.0  ;;  %v1228_v25 = vld [vmem:[%s1280_s18 + $0x70] sm:$0xff]   ;;  %v1094_v45 = vld [vmem:[%s1290_s23 + $0x98] sm:$0x1] }
  0x53   : > { %1082 = vst [vmem:[%s1290_s23 + $0x78] sm:$0xf] %v891_v46  ;;  %v668_v51 = vor.u32 %v666_v30, %v665_v41  ;;  %v670_v52 = vrot.slane %v665_v41, 4  ;;  %v677_v54 = vor.u32 %v675_v32, %v674_v43  ;;  %v678_v56 = vrot.slane %v674_v43, 4 }
  0x54   : > { %v1140_v55 = vpack.c.bf16 %v335_v44, %v335_v44  ;;  %v266_v27 = vmul.f32 %v1198_v49, %v1285_v0  ;;  %v267_v38 = vmul.f32 %v1201_v50, %v1285_v0  ;;  %v1141_v63 = vpack.c.bf16 %v336_v57, %v336_v57 }
  0x55   : > { %v669_v42 = vsel %vm1455_vm6, %v661_v36, %v668_v51  ;;  %v895_v39 = vsel %vm1462_vm7, %v670_v52, %v1084_v47  ;;  %v898_v60 = vsel %vm1449_vm5, %v677_v54, %v1086_v48  ;;  %v268_v5 = vmul.f32 %v1202_v37, %v1285_v0  ;;  %v1096_v51 = vld [vmem:[%s1290_s23 + $0x9c] sm:$0xf] }
  0x56   : > { %v680_v61 = vshrl.u32 %v1140_v55, 16  ;;  %1083 = vst.msk [vmem:[%s1290_s23 + $0x7c] sm:$0xf] %vm362_vm0, %v669_v42  ;;  %1085 = vst [vmem:[%s1290_s23 + $0x80] sm:$0x1] %v895_v39  ;;  %v683_v62 = vshll.u32 %v1140_v55, 16  ;;  %v305_v2 = vadd.f32 %v1417_v10, %v266_v27  ;;  %v306_v3 = vadd.f32 %v1417_v10, %v267_v38 }
  0x57   : > { %1087 = vst [vmem:[%s1290_s23 + $0x84] sm:$0xf] %v898_v60  ;;  %v1205_v6 = vunpack.c.l.bf16 %v1227_v58  ;;  %v1206_v7 = vunpack.c.h.bf16 %v1227_v58  ;;  %v689_v9 = vshrl.u32 %v1141_v63, 16  ;;  %v692_v11 = vshll.u32 %v1141_v63, 16  ;;  %v1099_v42 = vld [vmem:[%s1290_s23 + $0xa4] sm:$0x1] }
  0x58   : > { %v682_v4 = vrot.slane %v680_v61, 7  ;;  %v337_v12 = vmax.f32 %v305_v2, 0.0  ;;  %v338_v13 = vmax.f32 %v306_v3, 0.0  ;;  %v307_v16 = vadd.f32 %v1417_v10, %v268_v5  ;;  %v1229_v3 = vld [vmem:[%s1280_s18 + $0x78] sm:$0xff]  }
  0x59   : > { %v269_v17 = vmul.f32 %v1205_v6, %v1285_v0  ;;  %v691_v18 = vrot.slane %v689_v9, 7  ;;  %v270_v21 = vmul.f32 %v1206_v7, %v1285_v0  ;;  %v1209_v44 = vunpack.c.l.bf16 %v1228_v25 }
  0x5a   : > { %v685_v14 = vor.u32 %v683_v62, %v682_v4  ;;  %v687_v15 = vrot.slane %v682_v4, 4  ;;  %v1142_v19 = vpack.c.bf16 %v337_v12, %v337_v12  ;;  %v1143_v20 = vpack.c.bf16 %v338_v13, %v338_v13  ;;  %v1101_v4 = vld [vmem:[%s1290_s23 + $0xa8] sm:$0xf] }
  0x5b   : > { %v339_v23 = vmax.f32 %v307_v16, 0.0  ;;  %v308_v24 = vadd.f32 %v1417_v10, %v269_v17  ;;  %v694_v26 = vor.u32 %v692_v11, %v691_v18  ;;  %v695_v29 = vrot.slane %v691_v18, 4 }
  0x5c   : > { %v686_v28 = vsel %vm1455_vm6, %v678_v56, %v685_v14  ;;  %v902_v40 = vsel %vm1462_vm7, %v687_v15, %v1089_v8  ;;  %v697_v30 = vshrl.u32 %v1142_v19, 16  ;;  %v700_v31 = vshll.u32 %v1142_v19, 16  ;;  %v1104_v19 = vld [vmem:[%s1290_s23 + $0xb0] sm:$0x1] }
  0x5d   : > { %1088 = vst.msk [vmem:[%s1290_s23 + $0x88] sm:$0xf] %vm362_vm0, %v686_v28  ;;  %1090 = vst [vmem:[%s1290_s23 + $0x8c] sm:$0x1] %v902_v40  ;;  %v706_v32 = vshrl.u32 %v1143_v20, 16  ;;  %v709_v33 = vshll.u32 %v1143_v20, 16  ;;  %v1144_v34 = vpack.c.bf16 %v339_v23, %v339_v23  ;;  %v905_v36 = vsel %vm1449_vm5, %v694_v26, %v1091_v22 }
  0x5e   : > { %v340_v35 = vmax.f32 %v308_v24, 0.0  ;;  %v699_v41 = vrot.slane %v697_v30, 7  ;;  %v309_v43 = vadd.f32 %v1417_v10, %v270_v21  ;;  %1092 = vst [vmem:[%s1290_s23 + $0x90] sm:$0xf] %v905_v36  ;;  %v271_v54 = vmul.f32 %v1209_v44, %v1285_v0 }
  0x5f   : > { %v708_v46 = vrot.slane %v706_v32, 7  ;;  %v714_v47 = vshrl.u32 %v1144_v34, 16  ;;  %v717_v48 = vshll.u32 %v1144_v34, 16  ;;  %v1210_v8 = vunpack.c.h.bf16 %v1228_v25 }
  0x60   : > { %v1145_v49 = vpack.c.bf16 %v340_v35, %v340_v35  ;;  %v702_v50 = vor.u32 %v700_v31, %v699_v41  ;;  %v704_v37 = vrot.slane %v699_v41, 4  ;;  %v341_v52 = vmax.f32 %v309_v43, 0.0  ;;  %v1106_v35 = vld [vmem:[%s1290_s23 + $0xb4] sm:$0xf] }
  0x61   : > { %v711_v55 = vor.u32 %v709_v33, %v708_v46  ;;  %v712_v56 = vrot.slane %v708_v46, 4  ;;  %v716_v57 = vrot.slane %v714_v47, 7  ;;  %v310_v7 = vadd.f32 %v1417_v10, %v271_v54 }
  0x62   : > { %v723_v27 = vshrl.u32 %v1145_v49, 16  ;;  %v703_v38 = vsel %vm1455_vm6, %v695_v29, %v702_v50  ;;  %v909_v58 = vsel %vm1462_vm7, %v704_v37, %v1094_v45  ;;  %v726_v39 = vshll.u32 %v1145_v49, 16 }
  0x63   : > { %v1146_v60 = vpack.c.bf16 %v341_v52, %v341_v52  ;;  %1093 = vst.msk [vmem:[%s1290_s23 + $0x94] sm:$0xf] %vm362_vm0, %v703_v38  ;;  %1095 = vst [vmem:[%s1290_s23 + $0x98] sm:$0x1] %v909_v58  ;;  %v912_v61 = vsel %vm1449_vm5, %v711_v55, %v1096_v51  ;;  %v719_v62 = vor.u32 %v717_v48, %v716_v57  ;;  %v721_v63 = vrot.slane %v716_v57, 4 }
  0x64   : > { %v725_v2 = vrot.slane %v723_v27, 7  ;;  %1097 = vst [vmem:[%s1290_s23 + $0x9c] sm:$0xf] %v912_v61  ;;  %v342_v15 = vmax.f32 %v310_v7, 0.0  ;;  %v272_v16 = vmul.f32 %v1210_v8, %v1285_v0  ;;  %v1213_v17 = vunpack.c.l.bf16 %v1229_v3  ;;  %v1109_v52 = vld [vmem:[%s1290_s23 + $0xbc] sm:$0x1] }
  0x65   : > { %v731_v5 = vshrl.u32 %v1146_v60, 16  ;;  %v734_v6 = vshll.u32 %v1146_v60, 16  ;;  %v720_v9 = vsel %vm1455_vm6, %v712_v56, %v719_v62  ;;  %v916_v11 = vsel %vm1462_vm7, %v721_v63, %v1099_v42  ;;  %v1111_v38 = vld [vmem:[%s1290_s23 + $0xc0] sm:$0xf]  ;;  %v1114_v61 = vld [vmem:[%s1290_s23 + $0xc8] sm:$0x1] }
  0x66   : > { %v728_v12 = vor.u32 %v726_v39, %v725_v2  ;;  %v729_v13 = vrot.slane %v725_v2, 4  ;;  %1098 = vst.msk [vmem:[%s1290_s23 + $0xa0] sm:$0xf] %vm362_vm0, %v720_v9  ;;  %1100 = vst [vmem:[%s1290_s23 + $0xa4] sm:$0x1] %v916_v11  ;;  %v1214_v20 = vunpack.c.h.bf16 %v1229_v3  ;;  %v1147_v40 = vpack.c.bf16 %v342_v15, %v342_v15 }
  0x67   : > { %v733_v14 = vrot.slane %v731_v5, 7  ;;  %v311_v22 = vadd.f32 %v1417_v10, %v272_v16  ;;  %v273_v23 = vmul.f32 %v1213_v17, %v1285_v0 }
  0x68   : > { %v919_v18 = vsel %vm1449_vm5, %v728_v12, %v1101_v4  ;;  %v274_v24 = vmul.f32 %v1214_v20, %v1285_v0  ;;  %v740_v29 = vshrl.u32 %v1147_v40, 16  ;;  %v743_v30 = vshll.u32 %v1147_v40, 16 }
  0x69   : > { %1102 = vst [vmem:[%s1290_s23 + $0xa8] sm:$0xf] %v919_v18  ;;  %v736_v21 = vor.u32 %v734_v6, %v733_v14  ;;  %v738_v28 = vrot.slane %v733_v14, 4  ;;  %v343_v31 = vmax.f32 %v311_v22, 0.0  ;;  %v312_v32 = vadd.f32 %v1417_v10, %v273_v23 }
  0x6a   : > { %v313_v33 = vadd.f32 %v1417_v10, %v274_v24  ;;  %v742_v34 = vrot.slane %v740_v29, 7 }
  0x6b   : > { %v737_v25 = vsel %vm1455_vm6, %v729_v13, %v736_v21  ;;  %v923_v26 = vsel %vm1462_vm7, %v738_v28, %v1104_v19  ;;  %v1148_v0 = vpack.c.bf16 %v343_v31, %v343_v31  ;;  %v344_v36 = vmax.f32 %v312_v32, 0.0 }
  0x6c   : > { %1103 = vst.msk [vmem:[%s1290_s23 + $0xac] sm:$0xf] %vm362_vm0, %v737_v25  ;;  %1105 = vst [vmem:[%s1290_s23 + $0xb0] sm:$0x1] %v923_v26  ;;  %v345_v41 = vmax.f32 %v313_v33, 0.0  ;;  %v745_v43 = vor.u32 %v743_v30, %v742_v34  ;;  %v746_v49 = vrot.slane %v742_v34, 4 }
  0x6d   : > { %v748_v44 = vshrl.u32 %v1148_v0, 16  ;;  %v751_v45 = vshll.u32 %v1148_v0, 16  ;;  %v1149_v46 = vpack.c.bf16 %v344_v36, %v344_v36 }
  0x6e   : > { %v1150_v47 = vpack.c.bf16 %v345_v41, %v345_v41  ;;  %v926_v48 = vsel %vm1449_vm5, %v745_v43, %v1106_v35 }
  0x6f   : > { %1107 = vst [vmem:[%s1290_s23 + $0xb4] sm:$0xf] %v926_v48  ;;  %v750_v50 = vrot.slane %v748_v44, 7  ;;  %v757_v10 = vshrl.u32 %v1149_v46, 16  ;;  %v760_v37 = vshll.u32 %v1149_v46, 16 }
  0x70   : > { %v765_v51 = vshrl.u32 %v1150_v47, 16  ;;  %v768_v54 = vshll.u32 %v1150_v47, 16 }
  0x71   : > { %v753_v55 = vor.u32 %v751_v45, %v750_v50  ;;  %v755_v56 = vrot.slane %v750_v50, 4  ;;  %v759_v57 = vrot.slane %v757_v10, 7 }
  0x72   : > { %v767_v27 = vrot.slane %v765_v51, 7 }
  0x73   : > { %v754_v58 = vsel %vm1455_vm6, %v746_v49, %v753_v55  ;;  %v930_v42 = vsel %vm1462_vm7, %v755_v56, %v1109_v52  ;;  %v762_v39 = vor.u32 %v760_v37, %v759_v57  ;;  %v763_v60 = vrot.slane %v759_v57, 4 }
  0x74   : > { %1108 = vst.msk [vmem:[%s1290_s23 + $0xb8] sm:$0xf] %vm362_vm0, %v754_v58  ;;  %1110 = vst [vmem:[%s1290_s23 + $0xbc] sm:$0x1] %v930_v42  ;;  %v770_v62 = vor.u32 %v768_v54, %v767_v27  ;;  %v772_v63 = vrot.slane %v767_v27, 4 }
  0x75   : > { %v933_v2 = vsel %vm1449_vm5, %v762_v39, %v1111_v38 }
  0x76   : > { %1112 = vst [vmem:[%s1290_s23 + $0xc0] sm:$0xf] %v933_v2  ;;  %v771_v3 = vsel %vm1455_vm6, %v763_v60, %v770_v62  ;;  %v937_v4 = vsel %vm1462_vm7, %v772_v63, %v1114_v61 }
  0x77   : > { %1113 = vst.msk [vmem:[%s1290_s23 + $0xc4] sm:$0xf] %vm362_vm0, %v771_v3  ;;  %1115 = vst [vmem:[%s1290_s23 + $0xc8] sm:$0x1] %v937_v4 }
  0x78 PF: > { %s13_s12 = sadd.s32 1, %s1246_s12  }
  0x79   : > { %p10_p4 = scmp.ge.s32.totalorder %s13_s12, 4  }
  0x7b   :  { %12 = sbr.rel (!%p10_p4) target bundleno = 1 (0x1), region = 63 }

// kernel: basic_block_forward.9
= control target key start
LH: loop header
LB: loop body
LE: loop exit
PB: predicated region body
PF: predicated region fallthrough
CT: control target
= control target key end

     0   :  { %s188_s0 = inlined_call_operand.vmem [shape: bf16[32,128], index: 0, kind: input, shape index: {}]   ;;  %s189_s1 = inlined_call_operand.vmem [shape: f32[1,128], index: 1, kind: input, shape index: {}]   ;;  %s190_s2 = inlined_call_operand.vmem [shape: f32[1,128], index: 2, kind: input, shape index: {}]   ;;  %s191_s3 = inlined_call_operand.vmem [shape: bf16[32,128], index: 3, kind: input, shape index: {}]   ;;  %s192_s4 = inlined_call_operand.vmem [shape: f32[1,128], index: 4, kind: input, shape index: {}]   ;;  %s193_s5 = inlined_call_operand.vmem [shape: f32[1,128], index: 5, kind: input, shape index: {}]   ;;  %s194_s6 = inlined_call_operand.vmem [shape: f32[32,128], index: 6, kind: output, shape index: {}]  }
   0x1   :  { %v100_v0 = vld [vmem:[%s188_s0] sm:$0xff]   ;;  %v115_v9 = vld [vmem:[%s188_s0 + $0x8] sm:$0xff]  }
   0x2   :  { %v95_v1 = vld [vmem:[%s189_s1] ss:$0 sm:$0xff]  ;;  %v101_v2 = vunpack.c.l.bf16 %v100_v0  ;;  %v102_v5 = vunpack.c.h.bf16 %v100_v0  ;;  %v116_v10 = vld [vmem:[%s191_s3 + $0x8] sm:$0xff]   ;;  %v105_v13 = vunpack.c.l.bf16 %v115_v9  ;;  %v106_v17 = vunpack.c.h.bf16 %v115_v9 }
   0x3   :  { %v108_v3 = vld [vmem:[%s191_s3] sm:$0xff]   ;;  %v113_v14 = vunpack.c.l.bf16 %v116_v10  ;;  %v114_v18 = vunpack.c.h.bf16 %v116_v10 }
   0x4   :  { %v97_v4 = vld [vmem:[%s192_s4] ss:$0 sm:$0xff]  ;;  %v109_v7 = vunpack.c.l.bf16 %v108_v3  ;;  %v110_v8 = vunpack.c.h.bf16 %v108_v3  ;;  %v38_v11 = vmul.f32 %v101_v2, %v95_v1  ;;  %v39_v12 = vmul.f32 %v102_v5, %v95_v1 }
   0x5   :  { %v96_v6 = vld [vmem:[%s190_s2] ss:$0 sm:$0xff]  ;;  %v40_v21 = vmul.f32 %v105_v13, %v95_v1  ;;  %v70_v22 = vmul.f32 %v113_v14, %v97_v4  ;;  %v41_v24 = vmul.f32 %v106_v17, %v95_v1  ;;  %v71_v25 = vmul.f32 %v114_v18, %v97_v4 }
   0x6   :  { %v68_v15 = vmul.f32 %v109_v7, %v97_v4  ;;  %v69_v16 = vmul.f32 %v110_v8, %v97_v4  ;;  %v49_v19 = vadd.f32 %v96_v6, %v38_v11  ;;  %v50_v20 = vadd.f32 %v96_v6, %v39_v12  ;;  %v98_v23 = vld [vmem:[%s193_s5] ss:$0 sm:$0xff] }
   0x7   :  { %v51_v28 = vadd.f32 %v96_v6, %v40_v21  ;;  %v52_v29 = vadd.f32 %v96_v6, %v41_v24 }
   0x8   :  { %v72_v26 = vadd.f32 %v68_v15, %v49_v19  ;;  %v73_v27 = vadd.f32 %v69_v16, %v50_v20 }
   0x9   :  { %v74_v32 = vadd.f32 %v70_v22, %v51_v28  ;;  %v75_v33 = vadd.f32 %v71_v25, %v52_v29 }
   0xa   :  { %v83_v30 = vadd.f32 %v98_v23, %v72_v26  ;;  %v84_v31 = vadd.f32 %v98_v23, %v73_v27 }
   0xb   :  { %v85_v34 = vadd.f32 %v98_v23, %v74_v32  ;;  %v86_v35 = vadd.f32 %v98_v23, %v75_v33 }
   0xc   :  { %87 = vst [vmem:[%s194_s6] sm:$0xff] %v83_v30  ;;  %88 = vst [vmem:[%s194_s6 + $0x8] sm:$0xff] %v84_v31 }
   0xd   :  { %89 = vst [vmem:[%s194_s6 + $0x10] sm:$0xff] %v85_v34  ;;  %90 = vst [vmem:[%s194_s6 + $0x18] sm:$0xff] %v86_v35 }

// kernel: basic_block_forward.5
= control target key start
LH: loop header
LB: loop body
LE: loop exit
PB: predicated region body
PF: predicated region fallthrough
CT: control target
= control target key end

     0   :  { %s4291_s15 = smov 0   ;;  %s6105_s0 = inlined_call_operand.vmem [shape: bf16[2,18,18,4], index: 0, kind: input, shape index: {}]   ;;  %s6106_s1 = inlined_call_operand.vmem [shape: bf16[36,8], index: 1, kind: input, shape index: {}]   ;;  %s6107_s2 = inlined_call_operand.vmem [shape: bf16[2,256,8], index: 2, kind: output, shape index: {0}]   ;;  %s6108_s3 = inlined_call_operand.vmem [shape: f32[1,8], index: 3, kind: output, shape index: {1}]   ;;  %s6109_s4 = inlined_call_operand.vmem [shape: f32[1,8], index: 4, kind: output, shape index: {2}]  }
   0x1 LB: > { %s3672_s16 = sadd.s32 4294967295, %s4255_s15   ;;  %p3676_p0 = scmp.ge.s32.totalorder %s4255_s15, 1  ;;  %s4255_s15 = sphi %s4291_s15, %s15_s15  }
   0x2   : > { %p157_p1 = scmp.lt.s32.totalorder %s4255_s15, 3 }
   0x4   : > { %p158_p2 = pnand %p3676_p0, %p157_p1 }
   0x5   : > { %p183_p3 = scmp.lt.s32.totalorder (!%p158_p2), %s3672_s16, 1  ;;  %p3680_p4 = scmp.ne.s32.totalorder (!%p158_p2), %s3672_s16, 0 }
   0x6   : > { %161 = sbr.rel (%p158_p2) target bundleno = 688 (0x2b0), region = 28 }
   0xb   : > { %s184_s17 = scalar_select %p183_p3, %s3672_s16, 1 }
   0xc   : > { %197 = sbr.rel (%p3680_p4) target bundleno = 19 (0x13), region = 32 }
   0xd   : > { %s4152_s18 = smul.u32 216, %s184_s17  ;;  %s4054_s19 = sshll.u32 %s184_s17, 7 }
   0xe   : > { %s4302_s22 = scalar_lea.vmem %s6107_s2, %s4054_s19 }
   0xf   : > { %s4307_s25 = scalar_lea.vmem %s6105_s0, %s4152_s18 }
  0x11   : > { %vm198_vm0 = vcmask 57344   ;;  %v4257_v0 = vmov 0.0  }
  0x12   : > { %199 = vst.msk [vmem:[%s6108_s3] sm:$0x1] %vm198_vm0, %v4257_v0  ;;  %200 = vst.msk [vmem:[%s6109_s4] sm:$0x1] %vm198_vm0, %v4257_v0 }
  0x13 PF: > { %v3699_v1 = vld [vmem:[%s4307_s25 + $0x18] sm:$0xf]  ;;  %v4317_v2 = vld [vmem:[%s4307_s25 + $0x1c] sm:$0xf]  ;;  %vm700_vm1 = vcmask 1042432   ;;  %vm701_vm2 = vcmask 1046532  }
  0x14   : > { %v898_v3 = vshll.u32 %v4317_v2, 16  ;;  %v902_v4 = vshrl.u32 %v4317_v2, 16  ;;  %v3906_v5 = vcombine.low %v3699_v1, %v4317_v2  ;;  %v889_v6 = vshrl.u32 %v3699_v1, 16  ;;  %v3697_v7 = vld [vmem:[%s4307_s25 + $0xc] sm:$0xf]  ;;  %s4258_s30 = smov 12   ;;  %vm4339_vm3 = vmor %vm700_vm1, %vm701_vm2 }
  0x15   : > { %v892_v8 = vshll.u32 %v3699_v1, 16  ;;  %v4324_v9 = vld [vmem:[%s4307_s25 + $0x10] sm:$0xf]  ;;  %v865_v10 = vshrl.u32 %v3697_v7, 16  ;;  %v868_v11 = vshll.u32 %v3697_v7, 16  ;;  %s4259_s5 = smov 8  }
  0x16   : > { %v4326_v12 = vrot.slane %v902_v4, 4  ;;  %2323 = vrot.lane.b32.xlu1 %v3906_v5, %s4258_s30  ;;  %v891_v13 = vrot.slane %v889_v6, 4  ;;  %v874_v14 = vshll.u32 %v4324_v9, 16  ;;  %v878_v15 = vshrl.u32 %v4324_v9, 16  ;;  %v202_v16 = vld [vmem:[%s4307_s25 + $0x4] sm:$0xf] }
  0x17   : > { %v894_v17 = vrot.slane %v892_v8, 5  ;;  %v3905_v18 = vcombine.low %v3697_v7, %v4324_v9  ;;  %v867_v19 = vrot.slane %v865_v10, 4  ;;  %v870_v20 = vrot.slane %v868_v11, 5  ;;  %v233_v21 = vld [vmem:[%s4307_s25 + $0x8] sm:$0x1]  ;;  %s4260_s6 = smov 16  }
  0x18   : > { %v4334_v22 = vrot.slane %v878_v15, 4  ;;  %v636_v23 = vld [vmem:[%s4307_s25] sm:$0xe]  ;;  %v705_v25 = vrot.slane %v202_v16, 5  ;;  %v708_v26 = vrot.slane %v233_v21, 5  ;;  %v262_v27 = vshll.u32 %v202_v16, 16 }
  0x19   : > { %v895_v28 = vor.u32 %v894_v17, %v891_v13  ;;  %2321 = vrot.lane.b32.xlu0 %v3905_v18, %s4258_s30  ;;  %v871_v29 = vor.u32 %v870_v20, %v867_v19  ;;  %v3681_v30 = vrot.slane %v636_v23, 9  ;;  %v204_v31 = vld [vmem:[%s4307_s25 + $0x10] sm:$0xf]  ;;  %v234_v32 = vld [vmem:[%s4307_s25 + $0x14] sm:$0x1]  ;;  %v266_v33 = vshrl.u32 %v202_v16, 16 }
  0x1a   : > { %v707_v34 = vrot.slane %v705_v25, 4  ;;  %v637_v35 = vld [vmem:[%s4307_s25 + $0xc] sm:$0xe]  ;;  %v712_v36 = vrot.slane %v204_v31, 5  ;;  %v715_v37 = vrot.slane %v234_v32, 5  ;;  %v264_v38 = vrot.slane %v262_v27, 5 }
  0x1b   : > { %v896_v39 = vrot.slane %v895_v28, 4  ;;  %v4347_v40 = vrot.slane %v871_v29, 4  ;;  %v706_v41 = vsel %vm4339_vm3, %v3681_v30, %v705_v25  ;;  %v3682_v42 = vrot.slane %v637_v35, 9  ;;  %v201_v43 = vld [vmem:[%s4307_s25] sm:$0xf]  ;;  %s4261_s7 = smov 4  }
  0x1c   : > { %v709_v44 = vsel %vm4339_vm3, %v707_v34, %v708_v26  ;;  %v714_v45 = vrot.slane %v712_v36, 4  ;;  %vm249_vm4 = vsmask.f32 3328  ;;  %vm250_vm5 = vsmask.f32 7440  ;;  %s4262_s8 = smov 20  }
  0x1d   : > { %v3889_v46 = vcombine.low %v706_v41, %v709_v44  ;;  %v713_v47 = vsel %vm4339_vm3, %v3682_v42, %v712_v36  ;;  %v253_v48 = vshrl.u32 %v201_v43, 16  ;;  %v256_v49 = vshll.u32 %v201_v43, 16  ;;  %v4357_v50 = vld [vmem:[%s4307_s25 + $0x20] sm:$0x1]  ;;  %v203_v55 = vld [vmem:[%s4307_s25 + $0xc] sm:$0xf]  ;;  %vm4364_vm6 = vmor %vm249_vm4, %vm250_vm5 }
  0x1e   : > { %v716_v51 = vsel %vm4339_vm3, %v714_v45, %v715_v37  ;;  %v268_v52 = vrot.slane %v266_v33, 4  ;;  %v272_v53 = vshll.u32 %v233_v21, 16  ;;  %v900_v54 = vrot.slane %v898_v3, 5  ;;  %v3746_v17 = vld [vmem:[%s4307_s25 + $0x18] sm:$0xe]  ;;  %s4263_s9 = smov 24  }
  0x1f   : > { %2225 = vrot.lane.b32.xlu1 %v3889_v46, %s4259_s5  ;;  %v3890_v56 = vcombine.low %v713_v47, %v716_v51  ;;  %v255_v58 = vrot.slane %v253_v48, 4  ;;  %v258_v59 = vrot.slane %v256_v49, 5  ;;  %v908_v60 = vshll.u32 %v4357_v50, 16  ;;  %v3729_v21 = vld [vmem:[%s4307_s25 + $0x14] sm:$0x1]  ;;  %s4264_s10 = smov 28  }
  0x20   : > { %v269_v61 = vor.u32 %v268_v52, %v264_v38  ;;  %v274_v62 = vrot.slane %v272_v53, 5  ;;  %v901_v63 = vsel %vm4364_vm6, %v896_v39, %v900_v54  ;;  %v905_v0 = vor.u32 %v4326_v12, %v900_v54  ;;  %v3779_v28 = vld [vmem:[%s4307_s25 + $0x24] sm:$0xf]  ;;  %v3745_v45 = vld [vmem:[%s4307_s25 + $0xc] sm:$0xe]  ;;  %s4265_s11 = smov 32  }
  0x21   : > { %v259_v1 = vor.u32 %v258_v59, %v255_v58  ;;  %v910_v3 = vrot.slane %v908_v60, 5  ;;  %v277_v4 = vshrl.u32 %v203_v55, 16  ;;  %v280_v5 = vshll.u32 %v203_v55, 16  ;;  %v4411_v58 = vld [vmem:[%s4307_s25 + $0x18] sm:$0xf] }
  0x22   : > { %v270_v6 = vrot.slane %v269_v61, 4  ;;  %v906_v7 = vrot.slane %v905_v0, 4  ;;  %v286_v8 = vshll.u32 %v204_v31, 16  ;;  %v290_v10 = vshrl.u32 %v204_v31, 16 }
  0x23   : > { %2227 = vrot.lane.b32.xlu1 %v3890_v56, %s4259_s5  ;;  %v260_v11 = vrot.slane %v259_v1, 4  ;;  %v279_v13 = vrot.slane %v277_v4, 4  ;;  %v282_v15 = vrot.slane %v280_v5, 5  ;;  %v296_v16 = vshll.u32 %v234_v32, 16 }
  0x24   : > { %v275_v12 = vsel %vm4364_vm6, %v270_v6, %v274_v62  ;;  %v911_v18 = vsel %vm4364_vm6, %v906_v7, %v910_v3  ;;  %v288_v19 = vrot.slane %v286_v8, 5  ;;  %v292_v20 = vrot.slane %v290_v10, 4  ;;  %v205_v8 = vld [vmem:[%s4307_s25 + $0x18] sm:$0xf] }
  0x25   : > { %v265_v23 = vsel %vm4364_vm6, %v260_v11, %v264_v38  ;;  %v3922_v25 = vcombine.low %v901_v63, %v911_v18  ;;  %v283_v26 = vor.u32 %v282_v15, %v279_v13  ;;  %v298_v27 = vrot.slane %v296_v16, 5  ;;  %v4419_v63 = vld [vmem:[%s4307_s25 + $0x1c] sm:$0xf] }
  0x26   : > { %v3873_v29 = vcombine.low %v265_v23, %v275_v12  ;;  %v293_v30 = vor.u32 %v292_v20, %v288_v19  ;;  %v3762_v31 = vrot.slane %v3746_v17, 9  ;;  %v1321_v32 = vrot.slane %v4317_v2, 5  ;;  %v4391_v2 = vld [vmem:[%s4307_s25 + $0x28] sm:$0xf]  ;;  %v4433_v16 = vld [vmem:[%s4307_s25 + $0x1c] sm:$0xf] }
  0x27   : > { %2403 = vrot.lane.b32.xlu1 %v3922_v25, %s4260_s6  ;;  %v284_v33 = vrot.slane %v283_v26, 4  ;;  %v1324_v34 = vrot.slane %v4357_v50, 5  ;;  %v876_v35 = vrot.slane %v874_v14, 5  ;;  %v884_v36 = vshll.u32 %v3729_v21, 16  ;;  %v4436_v17 = vld [vmem:[%s4307_s25 + $0x20] sm:$0x1] }
  0x28   : > { %2145 = vrot.lane.b32.xlu0 %v3873_v29, %s4261_s7  ;;  %v294_v37 = vrot.slane %v293_v30, 4  ;;  %v1322_v38 = vsel %vm4339_vm3, %v3762_v31, %v1321_v32  ;;  %v1323_v39 = vrot.slane %v1321_v32, 4  ;;  %v1498_v41 = vshrl.u32 %v3779_v28, 16  ;;  %v4446_v31 = vld [vmem:[%s4307_s25 + $0x20] sm:$0x1] }
  0x29   : > { %v289_v42 = vsel %vm4364_vm6, %v284_v33, %v288_v19  ;;  %v877_v14 = vsel %vm4364_vm6, %v4347_v40, %v876_v35  ;;  %v881_v43 = vor.u32 %v4334_v22, %v876_v35  ;;  %v886_v44 = vrot.slane %v884_v36, 5  ;;  %v4406_v40 = vld [vmem:[%s4307_s25 + $0x2c] sm:$0x1]  ;;  %v207_v36 = vld [vmem:[%s4307_s25 + $0x24] sm:$0xf] }
  0x2a   : > { %v299_v46 = vsel %vm4364_vm6, %v294_v37, %v298_v27  ;;  %v1325_v47 = vsel %vm4339_vm3, %v1323_v39, %v1324_v34  ;;  %v1500_v48 = vrot.slane %v1498_v41, 4  ;;  %v1501_v49 = vshll.u32 %v3779_v28, 16 }
  0x2b   : > { %v3874_v50 = vcombine.low %v289_v42, %v299_v46  ;;  %v3938_v51 = vcombine.low %v1322_v38, %v1325_v47  ;;  %v882_v52 = vrot.slane %v881_v43, 4  ;;  %v1511_v53 = vshrl.u32 %v4391_v2, 16  ;;  %v208_v42 = vld [vmem:[%s4307_s25 + $0x28] sm:$0xf] }
  0x2c   : > { %v1503_v22 = vrot.slane %v1501_v49, 5  ;;  %v3954_v54 = vcombine.low %v3779_v28, %v4391_v2  ;;  %v3761_v55 = vrot.slane %v3745_v45, 9  ;;  %v1314_v56 = vrot.slane %v4324_v9, 5  ;;  %v236_v49 = vld [vmem:[%s4307_s25 + $0x2c] sm:$0x1] }
  0x2d   : > { %2147 = vrot.lane.b32.xlu0 %v3874_v50, %s4261_s7  ;;  %2483 = vrot.lane.b32.xlu1 %v3938_v51, %s4262_s8  ;;  %v887_v59 = vsel %vm4364_vm6, %v882_v52, %v886_v44  ;;  %v1317_v60 = vrot.slane %v3729_v21, 5  ;;  %v1507_v61 = vshll.u32 %v4391_v2, 16  ;;  %v1513_v62 = vrot.slane %v1511_v53, 4 }
  0x2e   : > { %v3921_v9 = vcombine.low %v877_v14, %v887_v59  ;;  %v1315_v0 = vsel %vm4339_vm3, %v3761_v55, %v1314_v56  ;;  %v1316_v1 = vrot.slane %v1314_v56, 4  ;;  %v1504_v3 = vor.u32 %v1503_v22, %v1500_v48 }
  0x2f   : > { %v1509_v4 = vrot.slane %v1507_v61, 5  ;;  %v1517_v5 = vshll.u32 %v4406_v40, 16  ;;  %v1474_v6 = vshrl.u32 %v4411_v58, 16  ;;  %v1477_v7 = vshll.u32 %v4411_v58, 16 }
  0x30   : > { %v1318_v10 = vsel %vm4339_vm3, %v1316_v1, %v1317_v60  ;;  %v1505_v11 = vrot.slane %v1504_v3, 4  ;;  %v1487_v13 = vshrl.u32 %v4419_v63, 16  ;;  %v3953_v15 = vcombine.low %v4411_v58, %v4419_v63 }
  0x31   : > { %2401 = vrot.lane.b32.xlu0 %v3921_v9, %s4260_s6  ;;  %2579 = vrot.lane.b32.xlu1 %v3954_v54, %s4263_s9  ;;  %v3937_v12 = vcombine.low %v1315_v0, %v1318_v10  ;;  %v1514_v18 = vor.u32 %v1513_v62, %v1509_v4  ;;  %v1519_v19 = vrot.slane %v1517_v5, 5  ;;  %v1476_v20 = vrot.slane %v1474_v6, 4  ;;  %v3825_v54 = vld [vmem:[%s4307_s25 + $0x18] sm:$0xe]  ;;  %v639_v0 = vld [vmem:[%s4307_s25 + $0x24] sm:$0xe] }
  0x32   : > { %v1510_v21 = vsel %vm4364_vm6, %v1505_v11, %v1509_v4  ;;  %v1479_v23 = vrot.slane %v1477_v7, 5  ;;  %v301_v25 = vshrl.u32 %v205_v8, 16  ;;  %v304_v26 = vshll.u32 %v205_v8, 16  ;;  %v3826_v11 = vld [vmem:[%s4307_s25 + $0x24] sm:$0xe] }
  0x33   : > { %v1515_v27 = vrot.slane %v1514_v18, 4  ;;  %v310_v28 = vshll.u32 %v4433_v16, 16  ;;  %v314_v29 = vshrl.u32 %v4433_v16, 16  ;;  %v320_v30 = vshll.u32 %v4436_v17, 16 }
  0x34   : > { %v303_v32 = vrot.slane %v301_v25, 4  ;;  %v306_v33 = vrot.slane %v304_v26, 5  ;;  %v1480_v34 = vor.u32 %v1479_v23, %v1476_v20  ;;  %v1483_v35 = vshll.u32 %v4419_v63, 16  ;;  %v4475_v25 = vld [vmem:[%s4307_s25 + $0x30] sm:$0xf] }
  0x35   : > { %2481 = vrot.lane.b32.xlu0 %v3937_v12, %s4262_s8  ;;  %v1520_v37 = vsel %vm4364_vm6, %v1515_v27, %v1519_v19  ;;  %v312_v38 = vrot.slane %v310_v28, 5  ;;  %v316_v39 = vrot.slane %v314_v29, 4  ;;  %v322_v41 = vrot.slane %v320_v30, 5 }
  0x36   : > { %v3970_v14 = vcombine.low %v1510_v21, %v1520_v37  ;;  %v307_v43 = vor.u32 %v306_v33, %v303_v32  ;;  %v1481_v44 = vrot.slane %v1480_v34, 4  ;;  %v1485_v45 = vrot.slane %v1483_v35, 5 }
  0x37   : > { %v317_v46 = vor.u32 %v316_v39, %v312_v38  ;;  %v1489_v47 = vrot.slane %v1487_v13, 4  ;;  %v1493_v48 = vshll.u32 %v4446_v31, 16  ;;  %v325_v50 = vshrl.u32 %v207_v36, 16 }
  0x38   : > { %2659 = vrot.lane.b32.xlu1 %v3970_v14, %s4264_s10  ;;  %v308_v51 = vrot.slane %v307_v43, 4  ;;  %v1486_v52 = vsel %vm4364_vm6, %v1481_v44, %v1485_v45  ;;  %v328_v53 = vshll.u32 %v207_v36, 16  ;;  %v334_v22 = vshll.u32 %v208_v42, 16  ;;  %v3704_v36 = vld [vmem:[%s4307_s25 + $0x34] sm:$0xf] }
  0x39   : > { %2577 = vrot.lane.b32.xlu0 %v3953_v15, %s4263_s9  ;;  %v318_v55 = vrot.slane %v317_v46, 4  ;;  %v1490_v56 = vor.u32 %v1489_v47, %v1485_v45  ;;  %v1495_v58 = vrot.slane %v1493_v48, 5  ;;  %v327_v59 = vrot.slane %v325_v50, 4  ;;  %v3732_v45 = vld [vmem:[%s4307_s25 + $0x38] sm:$0x1] }
  0x3a   : > { %v313_v60 = vsel %vm4364_vm6, %v308_v51, %v312_v38  ;;  %v330_v61 = vrot.slane %v328_v53, 5  ;;  %v336_v62 = vrot.slane %v334_v22, 5  ;;  %v338_v9 = vshrl.u32 %v208_v42, 16  ;;  %v3701_v50 = vld [vmem:[%s4307_s25 + $0x24] sm:$0xf] }
  0x3b   : > { %v323_v1 = vsel %vm4364_vm6, %v318_v55, %v322_v41  ;;  %v1491_v3 = vrot.slane %v1490_v56, 4  ;;  %v344_v4 = vshll.u32 %v236_v49, 16  ;;  %v3841_v5 = vrot.slane %v3825_v54, 9  ;;  %v4505_v54 = vld [vmem:[%s4307_s25 + $0x28] sm:$0xf] }
  0x3c   : > { %v3875_v6 = vcombine.low %v313_v60, %v323_v1  ;;  %v331_v7 = vor.u32 %v330_v61, %v327_v59  ;;  %v340_v8 = vrot.slane %v338_v9, 4  ;;  %v1923_v10 = vrot.slane %v4419_v63, 5 }
  0x3d   : > { %v1496_v13 = vsel %vm4364_vm6, %v1491_v3, %v1495_v58  ;;  %v346_v15 = vrot.slane %v344_v4, 5  ;;  %v1926_v12 = vrot.slane %v4446_v31, 5  ;;  %v3684_v18 = vrot.slane %v639_v0, 9  ;;  %v3748_v0 = vld [vmem:[%s4307_s25 + $0x30] sm:$0xe] }
  0x3e   : > { %2149 = vrot.lane.b32.xlu1 %v3875_v6, %s4261_s7  ;;  %v3969_v19 = vcombine.low %v1486_v52, %v1496_v13  ;;  %v332_v20 = vrot.slane %v331_v7, 4  ;;  %v341_v21 = vor.u32 %v340_v8, %v336_v62  ;;  %v1924_v23 = vsel %vm4339_vm3, %v3841_v5, %v1923_v10  ;;  %v3731_v8 = vld [vmem:[%s4307_s25 + $0x2c] sm:$0x1] }
  0x3f   : > { %v1925_v63 = vrot.slane %v1923_v10, 4  ;;  %v726_v26 = vrot.slane %v208_v42, 5  ;;  %v729_v27 = vrot.slane %v236_v49, 5  ;;  %v3842_v28 = vrot.slane %v3826_v11, 9 }
  0x40   : > { %2657 = vrot.lane.b32.xlu0 %v3969_v19, %s4264_s10  ;;  %v337_v29 = vsel %vm4364_vm6, %v332_v20, %v336_v62  ;;  %v342_v30 = vrot.slane %v341_v21, 4  ;;  %v1930_v31 = vrot.slane %v4391_v2, 5  ;;  %v1933_v32 = vrot.slane %v4406_v40, 5  ;;  %v638_v40 = vld [vmem:[%s4307_s25 + $0x18] sm:$0xe] }
  0x41   : > { %v1927_v33 = vsel %vm4339_vm3, %v1925_v63, %v1926_v12  ;;  %v727_v34 = vsel %vm4339_vm3, %v3684_v18, %v726_v26  ;;  %v728_v35 = vrot.slane %v726_v26, 4  ;;  %v937_v37 = vshrl.u32 %v4475_v25, 16  ;;  %v4519_v12 = vld [vmem:[%s4307_s25 + $0x3c] sm:$0xf] }
  0x42   : > { %v347_v38 = vsel %vm4364_vm6, %v342_v30, %v346_v15  ;;  %v3985_v39 = vcombine.low %v1924_v23, %v1927_v33  ;;  %v1931_v2 = vsel %vm4339_vm3, %v3842_v28, %v1930_v31  ;;  %v1932_v41 = vrot.slane %v1930_v31, 4  ;;  %v4529_v30 = vld [vmem:[%s4307_s25 + $0x40] sm:$0xf] }
  0x43   : > { %v3876_v42 = vcombine.low %v337_v29, %v347_v38  ;;  %v730_v14 = vsel %vm4339_vm3, %v728_v35, %v729_v27  ;;  %v939_v43 = vrot.slane %v937_v37, 4  ;;  %v940_v44 = vshll.u32 %v4475_v25, 16 }
  0x44   : > { %2737 = vrot.lane.b32.xlu0 %v3985_v39, %s4265_s11  ;;  %v3892_v46 = vcombine.low %v727_v34, %v730_v14  ;;  %v1934_v47 = vsel %vm4339_vm3, %v1932_v41, %v1933_v32  ;;  %v950_v48 = vshrl.u32 %v3704_v36, 16  ;;  %v3908_v49 = vcombine.low %v4475_v25, %v3704_v36 }
  0x45   : > { %2151 = vrot.lane.b32.xlu1 %v3876_v42, %s4261_s7  ;;  %v3986_v51 = vcombine.low %v1931_v2, %v1934_v47  ;;  %v942_v52 = vrot.slane %v940_v44, 5  ;;  %v3683_v53 = vrot.slane %v638_v40, 9  ;;  %v719_v22 = vrot.slane %v4433_v16, 5 }
  0x46   : > { %v722_v55 = vrot.slane %v4436_v17, 5  ;;  %v946_v56 = vshll.u32 %v3704_v36, 16  ;;  %v952_v58 = vrot.slane %v950_v48, 4  ;;  %v956_v59 = vshll.u32 %v3732_v45, 16  ;;  %v4550_v48 = vld [vmem:[%s4307_s25 + $0x30] sm:$0xf] }
  0x47   : > { %v720_v60 = vsel %vm4339_vm3, %v3683_v53, %v719_v22  ;;  %v721_v61 = vrot.slane %v719_v22, 4  ;;  %v943_v62 = vor.u32 %v942_v52, %v939_v43  ;;  %v913_v9 = vshrl.u32 %v3701_v50, 16  ;;  %v4543_v43 = vld [vmem:[%s4307_s25 + $0x44] sm:$0x1]  ;;  %v4554_v53 = vld [vmem:[%s4307_s25 + $0x34] sm:$0xf] }
  0x48   : > { %2739 = vrot.lane.b32.xlu0 %v3986_v51, %s4265_s11  ;;  %v948_v1 = vrot.slane %v946_v56, 5  ;;  %v958_v16 = vrot.slane %v956_v59, 5  ;;  %v916_v3 = vshll.u32 %v3701_v50, 16  ;;  %v926_v4 = vshrl.u32 %v4505_v54, 16 }
  0x49   : > { %2231 = vrot.lane.b32.xlu1 %v3892_v46, %s4259_s5  ;;  %v723_v17 = vsel %vm4339_vm3, %v721_v61, %v722_v55  ;;  %v944_v5 = vrot.slane %v943_v62, 4  ;;  %v915_v6 = vrot.slane %v913_v9, 4  ;;  %v3907_v7 = vcombine.low %v3701_v50, %v4505_v54  ;;  %v4564_v9 = vld [vmem:[%s4307_s25 + $0x34] sm:$0xf] }
  0x4a   : > { %v3891_v10 = vcombine.low %v720_v60, %v723_v17  ;;  %v953_v11 = vor.u32 %v952_v58, %v948_v1  ;;  %v918_v13 = vrot.slane %v916_v3, 5  ;;  %v3764_v15 = vrot.slane %v3748_v0, 9  ;;  %v209_v58 = vld [vmem:[%s4307_s25 + $0x30] sm:$0xf] }
  0x4b   : > { %v949_v18 = vsel %vm4364_vm6, %v944_v5, %v948_v1  ;;  %v1335_v19 = vrot.slane %v3704_v36, 5  ;;  %v1338_v20 = vrot.slane %v3732_v45, 5  ;;  %v922_v21 = vshll.u32 %v4505_v54, 16  ;;  %v3747_v36 = vld [vmem:[%s4307_s25 + $0x24] sm:$0xe] }
  0x4c   : > { %2229 = vrot.lane.b32.xlu0 %v3891_v10, %s4259_s5  ;;  %v954_v23 = vrot.slane %v953_v11, 4  ;;  %v919_v25 = vor.u32 %v918_v13, %v915_v6  ;;  %v928_v63 = vrot.slane %v926_v4, 4  ;;  %v932_v26 = vshll.u32 %v3731_v8, 16  ;;  %v4572_v4 = vld [vmem:[%s4307_s25 + $0x38] sm:$0x1] }
  0x4d   : > { %2327 = vrot.lane.b32.xlu1 %v3908_v49, %s4258_s30  ;;  %v1336_v27 = vsel %vm4339_vm3, %v3764_v15, %v1335_v19  ;;  %v1337_v28 = vrot.slane %v1335_v19, 4  ;;  %v924_v29 = vrot.slane %v922_v21, 5  ;;  %v1546_v31 = vshrl.u32 %v4519_v12, 16 }
  0x4e   : > { %v959_v32 = vsel %vm4364_vm6, %v954_v23, %v958_v16  ;;  %v920_v33 = vrot.slane %v919_v25, 4  ;;  %v934_v34 = vrot.slane %v932_v26, 5  ;;  %v1549_v35 = vshll.u32 %v4519_v12, 16  ;;  %v211_v26 = vld [vmem:[%s4307_s25 + $0x3c] sm:$0xf] }
  0x4f   : > { %v3924_v37 = vcombine.low %v949_v18, %v959_v32  ;;  %v1339_v38 = vsel %vm4339_vm3, %v1337_v28, %v1338_v20  ;;  %v929_v39 = vor.u32 %v928_v63, %v924_v29  ;;  %v1548_v2 = vrot.slane %v1546_v31, 4  ;;  %v4583_v20 = vld [vmem:[%s4307_s25 + $0x38] sm:$0x1]  ;;  %v212_v32 = vld [vmem:[%s4307_s25 + $0x40] sm:$0xf] }
  0x50   : > { %2325 = vrot.lane.b32.xlu0 %v3907_v7, %s4258_s30  ;;  %v3940_v41 = vcombine.low %v1336_v27, %v1339_v38  ;;  %v925_v40 = vsel %vm4364_vm6, %v920_v33, %v924_v29  ;;  %v1551_v42 = vrot.slane %v1549_v35, 5  ;;  %v1559_v14 = vshrl.u32 %v4529_v30, 16 }
  0x51   : > { %2407 = vrot.lane.b32.xlu1 %v3924_v37, %s4260_s6  ;;  %v930_v44 = vrot.slane %v929_v39, 4  ;;  %v3956_v45 = vcombine.low %v4519_v12, %v4529_v30  ;;  %v3763_v46 = vrot.slane %v3747_v36, 9  ;;  %v1328_v47 = vrot.slane %v4505_v54, 5 }
  0x52   : > { %v1331_v49 = vrot.slane %v3731_v8, 5  ;;  %v1552_v50 = vor.u32 %v1551_v42, %v1548_v2  ;;  %v1555_v51 = vshll.u32 %v4529_v30, 16  ;;  %v1561_v52 = vrot.slane %v1559_v14, 4  ;;  %v238_v2 = vld [vmem:[%s4307_s25 + $0x44] sm:$0x1] }
  0x53   : > { %v935_v22 = vsel %vm4364_vm6, %v930_v44, %v934_v34  ;;  %v1329_v55 = vsel %vm4339_vm3, %v3763_v46, %v1328_v47  ;;  %v1330_v56 = vrot.slane %v1328_v47, 4  ;;  %v1565_v54 = vshll.u32 %v4543_v43, 16 }
  0x54   : > { %v3923_v59 = vcombine.low %v925_v40, %v935_v22  ;;  %v1553_v60 = vrot.slane %v1552_v50, 4  ;;  %v1557_v61 = vrot.slane %v1555_v51, 5  ;;  %v1522_v62 = vshrl.u32 %v4550_v48, 16 }
  0x55   : > { %2487 = vrot.lane.b32.xlu1 %v3940_v41, %s4262_s8  ;;  %v1332_v0 = vsel %vm4339_vm3, %v1330_v56, %v1331_v49  ;;  %v1567_v1 = vrot.slane %v1565_v54, 5  ;;  %v1525_v16 = vshll.u32 %v4550_v48, 16  ;;  %v1535_v3 = vshrl.u32 %v4554_v53, 16 }
  0x56   : > { %2405 = vrot.lane.b32.xlu0 %v3923_v59, %s4260_s6  ;;  %v3939_v17 = vcombine.low %v1329_v55, %v1332_v0  ;;  %v1558_v5 = vsel %vm4364_vm6, %v1553_v60, %v1557_v61  ;;  %v1562_v6 = vor.u32 %v1561_v52, %v1557_v61  ;;  %v1524_v7 = vrot.slane %v1522_v62, 4  ;;  %v641_v55 = vld [vmem:[%s4307_s25 + $0x3c] sm:$0xe] }
  0x57   : > { %v1527_v8 = vrot.slane %v1525_v16, 5  ;;  %v3955_v10 = vcombine.low %v4550_v48, %v4554_v53  ;;  %v349_v11 = vshrl.u32 %v209_v58, 16  ;;  %v352_v13 = vshll.u32 %v209_v58, 16 }
  0x58   : > { %v1563_v15 = vrot.slane %v1562_v6, 4  ;;  %v358_v12 = vshll.u32 %v4564_v9, 16  ;;  %v362_v18 = vshrl.u32 %v4564_v9, 16  ;;  %v368_v19 = vshll.u32 %v4572_v4, 16 }
  0x59   : > { %2583 = vrot.lane.b32.xlu1 %v3956_v45, %s4263_s9  ;;  %v351_v21 = vrot.slane %v349_v11, 4  ;;  %v354_v23 = vrot.slane %v352_v13, 5  ;;  %v1528_v25 = vor.u32 %v1527_v8, %v1524_v7  ;;  %v1531_v63 = vshll.u32 %v4554_v53, 16  ;;  %v3827_v45 = vld [vmem:[%s4307_s25 + $0x30] sm:$0xe] }
  0x5a   : > { %2485 = vrot.lane.b32.xlu0 %v3939_v17, %s4262_s8  ;;  %v1568_v27 = vsel %vm4364_vm6, %v1563_v15, %v1567_v1  ;;  %v360_v28 = vrot.slane %v358_v12, 5  ;;  %v364_v29 = vrot.slane %v362_v18, 4  ;;  %v370_v31 = vrot.slane %v368_v19, 5  ;;  %v3828_v1 = vld [vmem:[%s4307_s25 + $0x3c] sm:$0xe] }
  0x5b   : > { %v3972_v33 = vcombine.low %v1558_v5, %v1568_v27  ;;  %v355_v34 = vor.u32 %v354_v23, %v351_v21  ;;  %v1529_v35 = vrot.slane %v1528_v25, 4  ;;  %v1533_v36 = vrot.slane %v1531_v63, 5  ;;  %v4613_v11 = vld [vmem:[%s4307_s25 + $0x48] sm:$0xf] }
  0x5c   : > { %v365_v37 = vor.u32 %v364_v29, %v360_v28  ;;  %v1537_v38 = vrot.slane %v1535_v3, 4  ;;  %v1541_v39 = vshll.u32 %v4583_v20, 16  ;;  %v373_v41 = vshrl.u32 %v211_v26, 16 }
  0x5d   : > { %2663 = vrot.lane.b32.xlu1 %v3972_v33, %s4264_s10  ;;  %v356_v40 = vrot.slane %v355_v34, 4  ;;  %v1534_v42 = vsel %vm4364_vm6, %v1529_v35, %v1533_v36  ;;  %v376_v14 = vshll.u32 %v211_v26, 16  ;;  %v382_v44 = vshll.u32 %v212_v32, 16  ;;  %v3708_v26 = vld [vmem:[%s4307_s25 + $0x4c] sm:$0xf] }
  0x5e   : > { %2581 = vrot.lane.b32.xlu0 %v3955_v10, %s4263_s9  ;;  %v366_v46 = vrot.slane %v365_v37, 4  ;;  %v1538_v47 = vor.u32 %v1537_v38, %v1533_v36  ;;  %v1543_v48 = vrot.slane %v1541_v39, 5  ;;  %v375_v49 = vrot.slane %v373_v41, 4  ;;  %v3734_v36 = vld [vmem:[%s4307_s25 + $0x50] sm:$0x1] }
  0x5f   : > { %v361_v50 = vsel %vm4364_vm6, %v356_v40, %v360_v28  ;;  %v378_v51 = vrot.slane %v376_v14, 5  ;;  %v384_v52 = vrot.slane %v382_v44, 5  ;;  %v386_v22 = vshrl.u32 %v212_v32, 16  ;;  %v3705_v41 = vld [vmem:[%s4307_s25 + $0x3c] sm:$0xf] }
  0x60   : > { %v371_v56 = vsel %vm4364_vm6, %v366_v46, %v370_v31  ;;  %v1539_v54 = vrot.slane %v1538_v47, 4  ;;  %v392_v58 = vshll.u32 %v238_v2, 16  ;;  %v3843_v59 = vrot.slane %v3827_v45, 9  ;;  %v4643_v45 = vld [vmem:[%s4307_s25 + $0x40] sm:$0xf] }
  0x61   : > { %v3877_v60 = vcombine.low %v361_v50, %v371_v56  ;;  %v379_v61 = vor.u32 %v378_v51, %v375_v49  ;;  %v388_v62 = vrot.slane %v386_v22, 4  ;;  %v1937_v0 = vrot.slane %v4554_v53, 5 }
  0x62   : > { %v1544_v16 = vsel %vm4364_vm6, %v1539_v54, %v1543_v48  ;;  %v394_v3 = vrot.slane %v392_v58, 5  ;;  %v1940_v17 = vrot.slane %v4583_v20, 5  ;;  %v3686_v5 = vrot.slane %v641_v55, 9  ;;  %v3750_v55 = vld [vmem:[%s4307_s25 + $0x48] sm:$0xe] }
  0x63   : > { %2153 = vrot.lane.b32.xlu1 %v3877_v60, %s4261_s7  ;;  %v3971_v6 = vcombine.low %v1534_v42, %v1544_v16  ;;  %v380_v7 = vrot.slane %v379_v61, 4  ;;  %v389_v8 = vor.u32 %v388_v62, %v384_v52  ;;  %v1938_v10 = vsel %vm4339_vm3, %v3843_v59, %v1937_v0  ;;  %v3733_v62 = vld [vmem:[%s4307_s25 + $0x44] sm:$0x1] }
  0x64   : > { %v1939_v53 = vrot.slane %v1937_v0, 4  ;;  %v740_v13 = vrot.slane %v212_v32, 5  ;;  %v743_v15 = vrot.slane %v238_v2, 5  ;;  %v3844_v12 = vrot.slane %v3828_v1, 9 }
  0x65   : > { %2661 = vrot.lane.b32.xlu0 %v3971_v6, %s4264_s10  ;;  %v385_v18 = vsel %vm4364_vm6, %v380_v7, %v384_v52  ;;  %v390_v19 = vrot.slane %v389_v8, 4  ;;  %v1944_v20 = vrot.slane %v4529_v30, 5  ;;  %v1947_v21 = vrot.slane %v4543_v43, 5  ;;  %v640_v43 = vld [vmem:[%s4307_s25 + $0x30] sm:$0xe] }
  0x66   : > { %v1941_v23 = vsel %vm4339_vm3, %v1939_v53, %v1940_v17  ;;  %v741_v25 = vsel %vm4339_vm3, %v3686_v5, %v740_v13  ;;  %v742_v63 = vrot.slane %v740_v13, 4  ;;  %v985_v27 = vshrl.u32 %v4613_v11, 16  ;;  %v4657_v17 = vld [vmem:[%s4307_s25 + $0x54] sm:$0xf] }
  0x67   : > { %v395_v28 = vsel %vm4364_vm6, %v390_v19, %v394_v3  ;;  %v3987_v29 = vcombine.low %v1938_v10, %v1941_v23  ;;  %v1945_v30 = vsel %vm4339_vm3, %v3844_v12, %v1944_v20  ;;  %v1946_v31 = vrot.slane %v1944_v20, 4  ;;  %v4667_v19 = vld [vmem:[%s4307_s25 + $0x58] sm:$0xf] }
  0x68   : > { %v3878_v32 = vcombine.low %v385_v18, %v395_v28  ;;  %v744_v33 = vsel %vm4339_vm3, %v742_v63, %v743_v15  ;;  %v987_v34 = vrot.slane %v985_v27, 4  ;;  %v988_v35 = vshll.u32 %v4613_v11, 16 }
  0x69   : > { %2741 = vrot.lane.b32.xlu0 %v3987_v29, %s4265_s11  ;;  %v3894_v37 = vcombine.low %v741_v25, %v744_v33  ;;  %v1948_v38 = vsel %vm4339_vm3, %v1946_v31, %v1947_v21  ;;  %v998_v39 = vshrl.u32 %v3708_v26, 16  ;;  %v3910_v2 = vcombine.low %v4613_v11, %v3708_v26 }
  0x6a   : > { %2155 = vrot.lane.b32.xlu1 %v3878_v32, %s4261_s7  ;;  %v3988_v40 = vcombine.low %v1945_v30, %v1948_v38  ;;  %v990_v42 = vrot.slane %v988_v35, 5  ;;  %v3685_v14 = vrot.slane %v640_v43, 9  ;;  %v733_v44 = vrot.slane %v4564_v9, 5 }
  0x6b   : > { %v736_v46 = vrot.slane %v4572_v4, 5  ;;  %v994_v47 = vshll.u32 %v3708_v26, 16  ;;  %v1000_v48 = vrot.slane %v998_v39, 4  ;;  %v1004_v49 = vshll.u32 %v3734_v36, 16  ;;  %v4688_v39 = vld [vmem:[%s4307_s25 + $0x48] sm:$0xf] }
  0x6c   : > { %v734_v50 = vsel %vm4339_vm3, %v3685_v14, %v733_v44  ;;  %v735_v51 = vrot.slane %v733_v44, 4  ;;  %v991_v52 = vor.u32 %v990_v42, %v987_v34  ;;  %v961_v22 = vshrl.u32 %v3705_v41, 16  ;;  %v4681_v34 = vld [vmem:[%s4307_s25 + $0x5c] sm:$0x1]  ;;  %v4692_v14 = vld [vmem:[%s4307_s25 + $0x4c] sm:$0xf] }
  0x6d   : > { %2743 = vrot.lane.b32.xlu0 %v3988_v40, %s4265_s11  ;;  %v996_v56 = vrot.slane %v994_v47, 5  ;;  %v1006_v9 = vrot.slane %v1004_v49, 5  ;;  %v964_v54 = vshll.u32 %v3705_v41, 16  ;;  %v974_v58 = vshrl.u32 %v4643_v45, 16 }
  0x6e   : > { %2235 = vrot.lane.b32.xlu1 %v3894_v37, %s4259_s5  ;;  %v737_v4 = vsel %vm4339_vm3, %v735_v51, %v736_v46  ;;  %v992_v59 = vrot.slane %v991_v52, 4  ;;  %v963_v60 = vrot.slane %v961_v22, 4  ;;  %v3909_v61 = vcombine.low %v3705_v41, %v4643_v45  ;;  %v4702_v22 = vld [vmem:[%s4307_s25 + $0x4c] sm:$0xf] }
  0x6f   : > { %v3893_v0 = vcombine.low %v734_v50, %v737_v4  ;;  %v1001_v1 = vor.u32 %v1000_v48, %v996_v56  ;;  %v966_v16 = vrot.slane %v964_v54, 5  ;;  %v3766_v3 = vrot.slane %v3750_v55, 9  ;;  %v213_v48 = vld [vmem:[%s4307_s25 + $0x48] sm:$0xf] }
  0x70   : > { %v997_v5 = vsel %vm4364_vm6, %v992_v59, %v996_v56  ;;  %v1349_v6 = vrot.slane %v3708_v26, 5  ;;  %v1352_v7 = vrot.slane %v3734_v36, 5  ;;  %v970_v8 = vshll.u32 %v4643_v45, 16  ;;  %v3749_v26 = vld [vmem:[%s4307_s25 + $0x3c] sm:$0xe] }
  0x71   : > { %2233 = vrot.lane.b32.xlu0 %v3893_v0, %s4259_s5  ;;  %v1002_v10 = vrot.slane %v1001_v1, 4  ;;  %v967_v11 = vor.u32 %v966_v16, %v963_v60  ;;  %v976_v53 = vrot.slane %v974_v58, 4  ;;  %v980_v13 = vshll.u32 %v3733_v62, 16  ;;  %v4710_v58 = vld [vmem:[%s4307_s25 + $0x50] sm:$0x1] }
  0x72   : > { %2331 = vrot.lane.b32.xlu1 %v3910_v2, %s4258_s30  ;;  %v1350_v15 = vsel %vm4339_vm3, %v3766_v3, %v1349_v6  ;;  %v1351_v12 = vrot.slane %v1349_v6, 4  ;;  %v972_v18 = vrot.slane %v970_v8, 5  ;;  %v1594_v20 = vshrl.u32 %v4657_v17, 16 }
  0x73   : > { %v1007_v21 = vsel %vm4364_vm6, %v1002_v10, %v1006_v9  ;;  %v968_v23 = vrot.slane %v967_v11, 4  ;;  %v982_v25 = vrot.slane %v980_v13, 5  ;;  %v1597_v63 = vshll.u32 %v4657_v17, 16  ;;  %v215_v13 = vld [vmem:[%s4307_s25 + $0x54] sm:$0xf] }
  0x74   : > { %v3926_v27 = vcombine.low %v997_v5, %v1007_v21  ;;  %v1353_v28 = vsel %vm4339_vm3, %v1351_v12, %v1352_v7  ;;  %v977_v29 = vor.u32 %v976_v53, %v972_v18  ;;  %v1596_v30 = vrot.slane %v1594_v20, 4  ;;  %v4721_v7 = vld [vmem:[%s4307_s25 + $0x50] sm:$0x1]  ;;  %v216_v21 = vld [vmem:[%s4307_s25 + $0x58] sm:$0xf] }
  0x75   : > { %2329 = vrot.lane.b32.xlu0 %v3909_v61, %s4258_s30  ;;  %v3942_v31 = vcombine.low %v1350_v15, %v1353_v28  ;;  %v973_v43 = vsel %vm4364_vm6, %v968_v23, %v972_v18  ;;  %v1599_v32 = vrot.slane %v1597_v63, 5  ;;  %v1607_v33 = vshrl.u32 %v4667_v19, 16 }
  0x76   : > { %2411 = vrot.lane.b32.xlu1 %v3926_v27, %s4260_s6  ;;  %v978_v35 = vrot.slane %v977_v29, 4  ;;  %v3958_v36 = vcombine.low %v4657_v17, %v4667_v19  ;;  %v3765_v37 = vrot.slane %v3749_v26, 9  ;;  %v1342_v38 = vrot.slane %v4643_v45, 5 }
  0x77   : > { %v1345_v2 = vrot.slane %v3733_v62, 5  ;;  %v1600_v41 = vor.u32 %v1599_v32, %v1596_v30  ;;  %v1603_v40 = vshll.u32 %v4667_v19, 16  ;;  %v1609_v42 = vrot.slane %v1607_v33, 4  ;;  %v240_v30 = vld [vmem:[%s4307_s25 + $0x5c] sm:$0x1] }
  0x78   : > { %v983_v44 = vsel %vm4364_vm6, %v978_v35, %v982_v25  ;;  %v1343_v46 = vsel %vm4339_vm3, %v3765_v37, %v1342_v38  ;;  %v1344_v47 = vrot.slane %v1342_v38, 4  ;;  %v1613_v45 = vshll.u32 %v4681_v34, 16 }
  0x79   : > { %v3925_v49 = vcombine.low %v973_v43, %v983_v44  ;;  %v1601_v50 = vrot.slane %v1600_v41, 4  ;;  %v1605_v51 = vrot.slane %v1603_v40, 5  ;;  %v1570_v52 = vshrl.u32 %v4688_v39, 16 }
  0x7a   : > { %2491 = vrot.lane.b32.xlu1 %v3942_v31, %s4262_s8  ;;  %v1346_v55 = vsel %vm4339_vm3, %v1344_v47, %v1345_v2  ;;  %v1615_v56 = vrot.slane %v1613_v45, 5  ;;  %v1573_v9 = vshll.u32 %v4688_v39, 16  ;;  %v1583_v54 = vshrl.u32 %v4692_v14, 16 }
  0x7b   : > { %2409 = vrot.lane.b32.xlu0 %v3925_v49, %s4260_s6  ;;  %v3941_v4 = vcombine.low %v1343_v46, %v1346_v55  ;;  %v1606_v59 = vsel %vm4364_vm6, %v1601_v50, %v1605_v51  ;;  %v1610_v60 = vor.u32 %v1609_v42, %v1605_v51  ;;  %v1572_v61 = vrot.slane %v1570_v52, 4  ;;  %v643_v46 = vld [vmem:[%s4307_s25 + $0x54] sm:$0xe] }
  0x7c   : > { %v1575_v62 = vrot.slane %v1573_v9, 5  ;;  %v3957_v0 = vcombine.low %v4688_v39, %v4692_v14  ;;  %v397_v1 = vshrl.u32 %v213_v48, 16  ;;  %v400_v16 = vshll.u32 %v213_v48, 16 }
  0x7d   : > { %v1611_v3 = vrot.slane %v1610_v60, 4  ;;  %v406_v17 = vshll.u32 %v4702_v22, 16  ;;  %v410_v5 = vshrl.u32 %v4702_v22, 16  ;;  %v416_v6 = vshll.u32 %v4710_v58, 16 }
  0x7e   : > { %2587 = vrot.lane.b32.xlu1 %v3958_v36, %s4263_s9  ;;  %v399_v8 = vrot.slane %v397_v1, 4  ;;  %v402_v10 = vrot.slane %v400_v16, 5  ;;  %v1576_v11 = vor.u32 %v1575_v62, %v1572_v61  ;;  %v1579_v53 = vshll.u32 %v4692_v14, 16  ;;  %v3829_v36 = vld [vmem:[%s4307_s25 + $0x48] sm:$0xe] }
  0x7f   : > { %2489 = vrot.lane.b32.xlu0 %v3941_v4, %s4262_s8  ;;  %v1616_v15 = vsel %vm4364_vm6, %v1611_v3, %v1615_v56  ;;  %v408_v12 = vrot.slane %v406_v17, 5  ;;  %v412_v18 = vrot.slane %v410_v5, 4  ;;  %v418_v20 = vrot.slane %v416_v6, 5  ;;  %v3830_v56 = vld [vmem:[%s4307_s25 + $0x54] sm:$0xe] }
  0x80   : > { %v3974_v23 = vcombine.low %v1606_v59, %v1616_v15  ;;  %v403_v25 = vor.u32 %v402_v10, %v399_v8  ;;  %v1577_v63 = vrot.slane %v1576_v11, 4  ;;  %v1581_v26 = vrot.slane %v1579_v53, 5  ;;  %v4751_v1 = vld [vmem:[%s4307_s25 + $0x60] sm:$0xf] }
  0x81   : > { %v413_v27 = vor.u32 %v412_v18, %v408_v12  ;;  %v1585_v28 = vrot.slane %v1583_v54, 4  ;;  %v1589_v29 = vshll.u32 %v4721_v7, 16  ;;  %v421_v31 = vshrl.u32 %v215_v13, 16 }
  0x82   : > { %2667 = vrot.lane.b32.xlu1 %v3974_v23, %s4264_s10  ;;  %v404_v43 = vrot.slane %v403_v25, 4  ;;  %v1582_v32 = vsel %vm4364_vm6, %v1577_v63, %v1581_v26  ;;  %v424_v33 = vshll.u32 %v215_v13, 16  ;;  %v430_v35 = vshll.u32 %v216_v21, 16  ;;  %v4763_v13 = vld [vmem:[%s4307_s25 + $0x64] sm:$0xf] }
  0x83   : > { %2585 = vrot.lane.b32.xlu0 %v3957_v0, %s4263_s9  ;;  %v414_v37 = vrot.slane %v413_v27, 4  ;;  %v1586_v38 = vor.u32 %v1585_v28, %v1581_v26  ;;  %v1591_v39 = vrot.slane %v1589_v29, 5  ;;  %v423_v2 = vrot.slane %v421_v31, 4  ;;  %v4777_v27 = vld [vmem:[%s4307_s25 + $0x68] sm:$0x1] }
  0x84   : > { %v409_v41 = vsel %vm4364_vm6, %v404_v43, %v408_v12  ;;  %v426_v40 = vrot.slane %v424_v33, 5  ;;  %v432_v42 = vrot.slane %v430_v35, 5  ;;  %v434_v44 = vshrl.u32 %v216_v21, 16  ;;  %v3709_v43 = vld [vmem:[%s4307_s25 + $0x54] sm:$0xf] }
  0x85   : > { %v419_v47 = vsel %vm4364_vm6, %v414_v37, %v418_v20  ;;  %v1587_v45 = vrot.slane %v1586_v38, 4  ;;  %v440_v48 = vshll.u32 %v240_v30, 16  ;;  %v3845_v49 = vrot.slane %v3829_v36, 9  ;;  %v4789_v37 = vld [vmem:[%s4307_s25 + $0x58] sm:$0xf] }
  0x86   : > { %v3879_v50 = vcombine.low %v409_v41, %v419_v47  ;;  %v427_v51 = vor.u32 %v426_v40, %v423_v2  ;;  %v436_v52 = vrot.slane %v434_v44, 4  ;;  %v1951_v55 = vrot.slane %v4692_v14, 5  ;;  %v3752_v47 = vld [vmem:[%s4307_s25 + $0x60] sm:$0xe] }
  0x87   : > { %v1592_v9 = vsel %vm4364_vm6, %v1587_v45, %v1591_v39  ;;  %v442_v54 = vrot.slane %v440_v48, 5  ;;  %v1954_v4 = vrot.slane %v4721_v7, 5  ;;  %v3688_v59 = vrot.slane %v643_v46, 9 }
  0x88   : > { %2157 = vrot.lane.b32.xlu1 %v3879_v50, %s4261_s7  ;;  %v3973_v60 = vcombine.low %v1582_v32, %v1592_v9  ;;  %v428_v61 = vrot.slane %v427_v51, 4  ;;  %v437_v62 = vor.u32 %v436_v52, %v432_v42  ;;  %v1952_v0 = vsel %vm4339_vm3, %v3845_v49, %v1951_v55  ;;  %v4766_v12 = vpop.permute.xlu1 %2323 }
  0x89   : > { %v1953_v14 = vrot.slane %v1951_v55, 4  ;;  %v754_v16 = vrot.slane %v216_v21, 5  ;;  %v757_v3 = vrot.slane %v240_v30, 5  ;;  %v3846_v17 = vrot.slane %v3830_v56, 9  ;;  %v642_v21 = vld [vmem:[%s4307_s25 + $0x48] sm:$0xe] }
  0x8a   : > { %2665 = vrot.lane.b32.xlu0 %v3973_v60, %s4264_s10  ;;  %v433_v5 = vsel %vm4364_vm6, %v428_v61, %v432_v42  ;;  %v438_v6 = vrot.slane %v437_v62, 4  ;;  %v1958_v7 = vrot.slane %v4667_v19, 5  ;;  %v1961_v8 = vrot.slane %v4681_v34, 5  ;;  %v3735_v56 = vld [vmem:[%s4307_s25 + $0x5c] sm:$0x1] }
  0x8b   : > { %v1955_v10 = vsel %vm4339_vm3, %v1953_v14, %v1954_v4  ;;  %v755_v11 = vsel %vm4339_vm3, %v3688_v59, %v754_v16  ;;  %v756_v53 = vrot.slane %v754_v16, 4  ;;  %v1033_v15 = vshrl.u32 %v4751_v1, 16  ;;  %v4807_v60 = vld [vmem:[%s4307_s25 + $0x6c] sm:$0xf]  ;;  %v4809_v61 = vpop.permute.xlu0 %2321 }
  0x8c   : > { %v443_v19 = vsel %vm4364_vm6, %v438_v6, %v442_v54  ;;  %v3989_v18 = vcombine.low %v1952_v0, %v1955_v10  ;;  %v1959_v34 = vsel %vm4339_vm3, %v3846_v17, %v1958_v7  ;;  %v1960_v20 = vrot.slane %v1958_v7, 4 }
  0x8d   : > { %v3880_v23 = vcombine.low %v433_v5, %v443_v19  ;;  %v758_v25 = vsel %vm4339_vm3, %v756_v53, %v757_v3  ;;  %v1035_v63 = vrot.slane %v1033_v15, 4  ;;  %v1036_v26 = vshll.u32 %v4751_v1, 16 }
  0x8e   : > { %2745 = vrot.lane.b32.xlu0 %v3989_v18, %s4265_s11  ;;  %v3896_v28 = vcombine.low %v755_v11, %v758_v25  ;;  %v1962_v29 = vsel %vm4339_vm3, %v1960_v20, %v1961_v8  ;;  %v1046_v30 = vshrl.u32 %v4763_v13, 16  ;;  %v3912_v31 = vcombine.low %v4751_v1, %v4763_v13  ;;  %v4823_v11 = vld [vmem:[%s4307_s25 + $0x70] sm:$0xf] }
  0x8f   : > { %2159 = vrot.lane.b32.xlu1 %v3880_v23, %s4261_s7  ;;  %v3990_v32 = vcombine.low %v1959_v34, %v1962_v29  ;;  %v1038_v33 = vrot.slane %v1036_v26, 5  ;;  %v3687_v35 = vrot.slane %v642_v21, 9  ;;  %v747_v36 = vrot.slane %v4702_v22, 5  ;;  %v3751_v34 = vld [vmem:[%s4307_s25 + $0x54] sm:$0xe] }
  0x90   : > { %v750_v38 = vrot.slane %v4710_v58, 5  ;;  %v1042_v39 = vshll.u32 %v4763_v13, 16  ;;  %v1048_v2 = vrot.slane %v1046_v30, 4  ;;  %v1052_v41 = vshll.u32 %v4777_v27, 16  ;;  %v4837_v29 = vld [vmem:[%s4307_s25 + $0x74] sm:$0x1] }
  0x91   : > { %v748_v40 = vsel %vm4339_vm3, %v3687_v35, %v747_v36  ;;  %v749_v42 = vrot.slane %v747_v36, 4  ;;  %v1039_v44 = vor.u32 %v1038_v33, %v1035_v63  ;;  %v1009_v46 = vshrl.u32 %v3709_v43, 16  ;;  %v4797_v45 = vpop.permute.xlu1 %2225  ;;  %v4844_v35 = vld [vmem:[%s4307_s25 + $0x60] sm:$0xf] }
  0x92   : > { %2747 = vrot.lane.b32.xlu0 %v3990_v32, %s4265_s11  ;;  %v1044_v22 = vrot.slane %v1042_v39, 5  ;;  %v1054_v58 = vrot.slane %v1052_v41, 5  ;;  %v1012_v48 = vshll.u32 %v3709_v43, 16  ;;  %v1022_v49 = vshrl.u32 %v4789_v37, 16 }
  0x93   : > { %2239 = vrot.lane.b32.xlu1 %v3896_v28, %s4259_s5  ;;  %v751_v50 = vsel %vm4339_vm3, %v749_v42, %v750_v38  ;;  %v1040_v51 = vrot.slane %v1039_v44, 4  ;;  %v1011_v52 = vrot.slane %v1009_v46, 4  ;;  %v3911_v55 = vcombine.low %v3709_v43, %v4789_v37  ;;  %v4853_v46 = vld [vmem:[%s4307_s25 + $0x64] sm:$0xf] }
  0x94   : > { %v3895_v9 = vcombine.low %v748_v40, %v751_v50  ;;  %v1049_v54 = vor.u32 %v1048_v2, %v1044_v22  ;;  %v1014_v4 = vrot.slane %v1012_v48, 5  ;;  %v3768_v59 = vrot.slane %v3752_v47, 9 }
  0x95   : > { %v1045_v62 = vsel %vm4364_vm6, %v1040_v51, %v1044_v22  ;;  %v1363_v0 = vrot.slane %v4763_v13, 5  ;;  %v1366_v1 = vrot.slane %v4777_v27, 5  ;;  %v1018_v14 = vshll.u32 %v4789_v37, 16  ;;  %v4816_v16 = vpop.permute.xlu1 %2227 }
  0x96   : > { %2237 = vrot.lane.b32.xlu0 %v3895_v9, %s4259_s5  ;;  %v1050_v3 = vrot.slane %v1049_v54, 4  ;;  %v1015_v17 = vor.u32 %v1014_v4, %v1011_v52  ;;  %v1024_v5 = vrot.slane %v1022_v49, 4  ;;  %v1028_v6 = vshll.u32 %v3735_v56, 16  ;;  %v217_v52 = vld [vmem:[%s4307_s25 + $0x60] sm:$0xf] }
  0x97   : > { %2335 = vrot.lane.b32.xlu1 %v3912_v31, %s4258_s30  ;;  %v1364_v7 = vsel %vm4339_vm3, %v3768_v59, %v1363_v0  ;;  %v1365_v8 = vrot.slane %v1363_v0, 4  ;;  %v1020_v10 = vrot.slane %v1018_v14, 5  ;;  %v1642_v53 = vshrl.u32 %v4807_v60, 16  ;;  %v4221_v14 = vld [vmem:[%s4307_s25 + $0x4] sm:$0xf] }
  0x98   : > { %v1055_v13 = vsel %vm4364_vm6, %v1050_v3, %v1054_v58  ;;  %v1016_v15 = vrot.slane %v1015_v17, 4  ;;  %v1030_v19 = vrot.slane %v1028_v6, 5  ;;  %v1645_v18 = vshll.u32 %v4807_v60, 16  ;;  %v4222_v3 = vld [vmem:[%s4307_s25] sm:$0xf] }
  0x99   : > { %v3928_v20 = vcombine.low %v1045_v62, %v1055_v13  ;;  %v1367_v21 = vsel %vm4339_vm3, %v1365_v8, %v1366_v1  ;;  %v1025_v23 = vor.u32 %v1024_v5, %v1020_v10  ;;  %v1644_v25 = vrot.slane %v1642_v53, 4  ;;  %v4832_v63 = vpop.permute.xlu1 %2403  ;;  %v4873_v62 = vld [vmem:[%s4307_s25 + $0x68] sm:$0x1] }
  0x9a   : > { %2333 = vrot.lane.b32.xlu0 %v3911_v55, %s4258_s30  ;;  %v3944_v26 = vcombine.low %v1364_v7, %v1367_v21  ;;  %v1647_v27 = vrot.slane %v1645_v18, 5  ;;  %v1655_v28 = vshrl.u32 %v4823_v11, 16  ;;  %v2146_v30 = vpop.permute.xlu0 %2145  ;;  %v1021_v31 = vsel %vm4364_vm6, %v1016_v15, %v1020_v10  ;;  %v4890_v21 = vld [vmem:[%s4307_s25 + $0x68] sm:$0x1] }
  0x9b   : > { %2415 = vrot.lane.b32.xlu1 %v3928_v20, %s4260_s6  ;;  %v1026_v43 = vrot.slane %v1025_v23, 4  ;;  %v3767_v32 = vrot.slane %v3751_v34, 9  ;;  %v1356_v33 = vrot.slane %v4789_v37, 5  ;;  %v1359_v36 = vrot.slane %v3735_v56, 5  ;;  %v219_v23 = vld [vmem:[%s4307_s25 + $0x6c] sm:$0xf] }
  0x9c   : > { %v1648_v38 = vor.u32 %v1647_v27, %v1644_v25  ;;  %v1651_v39 = vshll.u32 %v4823_v11, 16  ;;  %v1657_v2 = vrot.slane %v1655_v28, 4  ;;  %v1661_v44 = vshll.u32 %v4837_v29, 16 }
  0x9d   : > { %v1031_v41 = vsel %vm4364_vm6, %v1026_v43, %v1030_v19  ;;  %v1357_v40 = vsel %vm4339_vm3, %v3767_v32, %v1356_v33  ;;  %v1358_v42 = vrot.slane %v1356_v33, 4  ;;  %v1618_v58 = vshrl.u32 %v4844_v35, 16 }
  0x9e   : > { %v3927_v37 = vcombine.low %v1021_v31, %v1031_v41  ;;  %v1649_v47 = vrot.slane %v1648_v38, 4  ;;  %v1653_v22 = vrot.slane %v1651_v39, 5  ;;  %v3960_v48 = vcombine.low %v4807_v60, %v4823_v11  ;;  %v4870_v60 = vld [vmem:[%s4307_s25 + $0x64] sm:$0xf]  ;;  %v4223_v38 = vld [vmem:[%s4307_s25 + $0x10] sm:$0xf] }
  0x9f   : > { %2495 = vrot.lane.b32.xlu1 %v3944_v26, %s4262_s8  ;;  %v1360_v49 = vsel %vm4339_vm3, %v1358_v42, %v1359_v36  ;;  %v1663_v50 = vrot.slane %v1661_v44, 5  ;;  %v1621_v51 = vshll.u32 %v4844_v35, 16  ;;  %v2148_v55 = vpop.permute.xlu0 %2147  ;;  %v4863_v56 = vpop.permute.xlu1 %2483  ;;  %v1631_v59 = vshrl.u32 %v4853_v46, 16  ;;  %v4224_v39 = vld [vmem:[%s4307_s25 + $0xc] sm:$0xf] }
  0xa0   : > { %2413 = vrot.lane.b32.xlu0 %v3927_v37, %s4260_s6  ;;  %v3943_v9 = vcombine.low %v1357_v40, %v1360_v49  ;;  %v1654_v54 = vsel %vm4364_vm6, %v1649_v47, %v1653_v22  ;;  %v1658_v4 = vor.u32 %v1657_v2, %v1653_v22  ;;  %v1620_v0 = vrot.slane %v1618_v58, 4  ;;  %v4901_v41 = vld [vmem:[%s4307_s25 + $0x70] sm:$0xf]  ;;  %v4907_v22 = vld [vmem:[%s4307_s25 + $0x74] sm:$0x1] }
  0xa1   : > { %v1623_v1 = vrot.slane %v1621_v51, 5  ;;  %v3857_v17 = vcombine.low %v4222_v3, %v4221_v14  ;;  %vm2769_vm7 = vcmask 31744   ;;  %v3959_v6 = vcombine.low %v4844_v35, %v4853_v46 }
  0xa2   : > { %v1659_v5 = vrot.slane %v1658_v4, 4  ;;  %v445_v7 = vshrl.u32 %v217_v52, 16  ;;  %v448_v8 = vshll.u32 %v217_v52, 16  ;;  %vm2818_vm8 = vcmask 64512   ;;  %v3831_v52 = vld [vmem:[%s4307_s25 + $0x60] sm:$0xe] }
  0xa3   : > { %2591 = vrot.lane.b32.xlu1 %v3960_v48, %s4263_s9  ;;  %v454_v10 = vshll.u32 %v4870_v60, 16  ;;  %v458_v53 = vshrl.u32 %v4870_v60, 16  ;;  %v464_v13 = vshll.u32 %v4873_v62, 16  ;;  %v4883_v15 = vpop.permute.xlu0 %2401  ;;  %v2772_v18 = vsel %vm2769_vm7, %v3857_v17, %v2146_v30  ;;  %v4893_v31 = vpop.permute.xlu1 %2579 }
  0xa4   : > { %2493 = vrot.lane.b32.xlu0 %v3943_v9, %s4262_s8  ;;  %v1664_v19 = vsel %vm4364_vm6, %v1659_v5, %v1663_v50  ;;  %v447_v34 = vrot.slane %v445_v7, 4  ;;  %v450_v20 = vrot.slane %v448_v8, 5  ;;  %v1624_v32 = vor.u32 %v1623_v1, %v1620_v0 }
  0xa5   : > { %v3976_v25 = vcombine.low %v1654_v54, %v1664_v19  ;;  %v456_v26 = vrot.slane %v454_v10, 5  ;;  %v460_v27 = vrot.slane %v458_v53, 4  ;;  %v466_v28 = vrot.slane %v464_v13, 5 }
  0xa6   : > { %v451_v43 = vor.u32 %v450_v20, %v447_v34  ;;  %v1627_v33 = vshll.u32 %v4853_v46, 16  ;;  %v1633_v30 = vrot.slane %v1631_v59, 4  ;;  %v1637_v36 = vshll.u32 %v4890_v21, 16 }
  0xa7   : > { %2671 = vrot.lane.b32.xlu1 %v3976_v25, %s4264_s10  ;;  %v461_v35 = vor.u32 %v460_v27, %v456_v26  ;;  %v3858_v2 = vcombine.low %v4224_v39, %v4223_v38  ;;  %v469_v40 = vshrl.u32 %v219_v23, 16  ;;  %v4903_v42 = vpop.permute.xlu0 %2481  ;;  %v1625_v37 = vrot.slane %v1624_v32, 4  ;;  %v3832_v32 = vld [vmem:[%s4307_s25 + $0x6c] sm:$0xe] }
  0xa8   : > { %2589 = vrot.lane.b32.xlu0 %v3959_v6, %s4263_s9  ;;  %v452_v44 = vrot.slane %v451_v43, 4  ;;  %v1629_v47 = vrot.slane %v1627_v33, 5  ;;  %v472_v58 = vshll.u32 %v219_v23, 16  ;;  %v1639_v49 = vrot.slane %v1637_v36, 5 }
  0xa9   : > { %v462_v48 = vrot.slane %v461_v35, 4  ;;  %v2775_v50 = vsel %vm2769_vm7, %v3858_v2, %v2148_v55  ;;  %v471_v51 = vrot.slane %v469_v40, 4  ;;  %v478_v14 = vshll.u32 %v4901_v41, 16 }
  0xaa   : > { %v457_v9 = vsel %vm4364_vm6, %v452_v44, %v456_v26  ;;  %v1630_v54 = vsel %vm4364_vm6, %v1625_v37, %v1629_v47  ;;  %v1634_v4 = vor.u32 %v1633_v30, %v1629_v47  ;;  %v2822_v59 = vsel %vm2818_vm8, %v2775_v50, %v4816_v16  ;;  %v4921_v3 = vpop.permute.xlu1 %2659  ;;  %v3715_v37 = vld [vmem:[%s4307_s25 + $0x78] sm:$0xf] }
  0xab   : > { %v467_v0 = vsel %vm4364_vm6, %v462_v48, %v466_v28  ;;  %v474_v1 = vrot.slane %v472_v58, 5  ;;  %v482_v55 = vshrl.u32 %v4901_v41, 16  ;;  %v488_v6 = vshll.u32 %v4907_v22, 16  ;;  %v4924_v8 = vpop.permute.xlu0 %2577  ;;  %v645_v28 = vld [vmem:[%s4307_s25 + $0x6c] sm:$0xe] }
  0xac   : > { %v3881_v17 = vcombine.low %v457_v9, %v467_v0  ;;  %v1635_v5 = vrot.slane %v1634_v4, 4  ;;  %v3847_v7 = vrot.slane %v3831_v52, 9  ;;  %v480_v16 = vrot.slane %v478_v14, 5 }
  0xad   : > { %v475_v10 = vor.u32 %v474_v1, %v471_v51  ;;  %v484_v53 = vrot.slane %v482_v55, 4  ;;  %v1965_v13 = vrot.slane %v4853_v46, 5  ;;  %v2820_v19 = vsel %vm2818_vm8, %v2772_v18, %v4797_v45  ;;  %v644_v51 = vld [vmem:[%s4307_s25 + $0x60] sm:$0xe] }
  0xae   : > { %2161 = vrot.lane.b32.xlu1 %v3881_v17, %s4261_s7  ;;  %v1640_v34 = vsel %vm4364_vm6, %v1635_v5, %v1639_v49  ;;  %v490_v20 = vrot.slane %v488_v6, 5  ;;  %v1968_v23 = vrot.slane %v4890_v21, 5  ;;  %vm2851_vm9 = vcmask 97280   ;;  %v4988_v5 = vld [vmem:[%s4307_s25 + $0x80] sm:$0x1] }
  0xaf   : > { %v3975_v25 = vcombine.low %v1630_v54, %v1640_v34  ;;  %v476_v26 = vrot.slane %v475_v10, 4  ;;  %v485_v27 = vor.u32 %v484_v53, %v480_v16  ;;  %v1966_v46 = vsel %vm4339_vm3, %v3847_v7, %v1965_v13  ;;  %v5001_v34 = vld [vmem:[%s4307_s25 + $0x70] sm:$0xf] }
  0xb0   : > { %v1967_v43 = vrot.slane %v1965_v13, 4  ;;  %vm2884_vm10 = vcmask 130048   ;;  %v2855_v45 = vsel %vm2851_vm9, %v2822_v59, %v4766_v12  ;;  %vm2917_vm11 = vcmask 162816   ;;  %v4942_v33 = vpop.permute.xlu1 %2149  ;;  %v4189_v59 = vld [vmem:[%s6106_s1 + $0x10] ss:$0 sps:$4 sm:$0x33]  }
  0xb1   : > { %2669 = vrot.lane.b32.xlu0 %v3975_v25, %s4264_s10  ;;  %v481_v18 = vsel %vm4364_vm6, %v476_v26, %v480_v16  ;;  %v486_v21 = vrot.slane %v485_v27, 4  ;;  %v2888_v35 = vsel %vm2884_vm10, %v2855_v45, %v4832_v63  ;;  %v2853_v12 = vsel %vm2851_vm9, %v2820_v19, %v4809_v61  ;;  %v4960_v61 = vld [vmem:[%s4307_s25 + $0x7c] sm:$0xf]  ;;  %v4993_v16 = vld [vmem:[%s4307_s25 + $0x6c] sm:$0xf] }
  0xb2   : > { %v1969_v30 = vsel %vm4339_vm3, %v1967_v43, %v1968_v23  ;;  %v3690_v36 = vrot.slane %v645_v28, 9  ;;  %v4950_v38 = vpop.permute.xlu0 %2657  ;;  %v768_v40 = vrot.slane %v4901_v41, 5  ;;  %v771_v44 = vrot.slane %v4907_v22, 5 }
  0xb3   : > { %v491_v39 = vsel %vm4364_vm6, %v486_v21, %v490_v20  ;;  %v3991_v2 = vcombine.low %v1966_v46, %v1969_v30  ;;  %v3848_v58 = vrot.slane %v3832_v32, 9  ;;  %v1972_v63 = vrot.slane %v4823_v11, 5  ;;  %v4192_v21 = vld [vmem:[%s6106_s1 + $0x8] sm:$0xff]   ;;  %v3754_v32 = vld [vmem:[%s4307_s25 + $0x78] sm:$0xe] }
  0xb4   : > { %v3882_v47 = vcombine.low %v481_v18, %v491_v39  ;;  %v1975_v48 = vrot.slane %v4837_v29, 5  ;;  %v2921_v49 = vsel %vm2917_vm11, %v2888_v35, %v4863_v56  ;;  %v2886_v50 = vsel %vm2884_vm10, %v2853_v12, %v4883_v15 }
  0xb5   : > { %2749 = vrot.lane.b32.xlu0 %v3991_v2, %s4265_s11  ;;  %v769_v41 = vsel %vm4339_vm3, %v3690_v36, %v768_v40  ;;  %v770_v22 = vrot.slane %v768_v40, 4  ;;  %v1973_v11 = vsel %vm4339_vm3, %v3848_v58, %v1972_v63  ;;  %v1974_v29 = vrot.slane %v1972_v63, 4 }
  0xb6   : > { %2163 = vrot.lane.b32.xlu1 %v3882_v47, %s4261_s7  ;;  %vm2950_vm12 = vcmask 195584   ;;  %v1081_v52 = vshrl.u32 %v3715_v37, 16  ;;  %v4973_v9 = vpop.permute.xlu0 %2737  ;;  %v2919_v15 = vsel %vm2917_vm11, %v2886_v50, %v4903_v42  ;;  %v1084_v54 = vshll.u32 %v3715_v37, 16  ;;  %v5033_v47 = vld [vmem:[%s4307_s25 + $0x74] sm:$0x1] }
  0xb7   : > { %v772_v56 = vsel %vm4339_vm3, %v770_v22, %v771_v44  ;;  %v1094_v4 = vshrl.u32 %v4960_v61, 16  ;;  %v4983_v0 = vpop.permute.xlu1 %2151  ;;  %v1976_v14 = vsel %vm4339_vm3, %v1974_v29, %v1975_v48  ;;  %v3689_v17 = vrot.slane %v644_v51, 9  ;;  %v4194_v51 = vld [vmem:[%s6106_s1] sm:$0xff]  }
  0xb8   : > { %v3898_v1 = vcombine.low %v769_v41, %v772_v56  ;;  %v1083_v55 = vrot.slane %v1081_v52, 4  ;;  %v3992_v6 = vcombine.low %v1973_v11, %v1976_v14  ;;  %v1086_v42 = vrot.slane %v1084_v54, 5  ;;  %v5049_v11 = vld [vmem:[%s4307_s25 + $0x84] sm:$0xf]  ;;  %v5054_v52 = vld [vmem:[%s4307_s25 + $0x18] sm:$0xf] }
  0xb9   : > { %v761_v7 = vrot.slane %v4870_v60, 5  ;;  %v764_v10 = vrot.slane %v4873_v62, 5  ;;  %v2954_v53 = vsel %vm2950_vm12, %v2921_v49, %v4893_v31  ;;  %v3914_v13 = vcombine.low %v3715_v37, %v4960_v61  ;;  %v5057_v56 = vld [vmem:[%s4307_s25 + $0x1c] sm:$0xf] }
  0xba   : > { %2243 = vrot.lane.b32.xlu1 %v3898_v1, %s4259_s5  ;;  %vm3102_vm13 = vcmask 1041408   ;;  %v1090_v19 = vshll.u32 %v4960_v61, 16  ;;  %v5003_v20 = vpop.permute.xlu0 %2739  ;;  %2751 = vrot.lane.b32.xlu0 %v3992_v6, %s4265_s11  ;;  %vm2983_vm14 = vcmask 228352   ;;  %v1087_v31 = vor.u32 %v1086_v42, %v1083_v55 }
  0xbb   : > { %v762_v60 = vsel %vm4339_vm3, %v3689_v17, %v761_v7  ;;  %v763_v62 = vrot.slane %v761_v7, 4  ;;  %4150 = vmatprep.subr.msk.bf16.mxu0 %vm3102_vm13, %v4189_v59  ;;  %v5009_v23 = vpop.permute.xlu1 %2231  ;;  %v1096_v26 = vrot.slane %v1094_v4, 4  ;;  %v1100_v27 = vshll.u32 %v4988_v5, 16  ;;  %4151 = vmatprep.subr.msk.bf16.mxu1 %vm3102_vm13, %v4189_v59  ;;  %v5063_v4 = vld [vmem:[%s4307_s25 + $0x88] sm:$0xf] }
  0xbc   : > { %v1092_v25 = vrot.slane %v1090_v19, 5  ;;  %v1057_v28 = vshrl.u32 %v4993_v16, 16  ;;  %v1088_v43 = vrot.slane %v1087_v31, 4  ;;  %v1060_v45 = vshll.u32 %v4993_v16, 16  ;;  %v4228_v19 = vld [vmem:[%s4307_s25 + $0x28] sm:$0xf] }
  0xbd   : > { %v765_v46 = vsel %vm4339_vm3, %v763_v62, %v764_v10  ;;  %v1070_v18 = vshrl.u32 %v5001_v34, 16  ;;  %v1102_v12 = vrot.slane %v1100_v27, 5  ;;  %v5027_v2 = vsel %vm2983_vm14, %v2954_v53, %v4921_v3 }
  0xbe   : > { %2339 = vrot.lane.b32.xlu1 %v3914_v13, %s4258_s30  ;;  %v3897_v30 = vcombine.low %v762_v60, %v765_v46  ;;  %v1097_v35 = vor.u32 %v1096_v26, %v1092_v25  ;;  %v1059_v36 = vrot.slane %v1057_v28, 4  ;;  %v5023_v39 = vpop.permute.xlu0 %2229  ;;  %v2952_v40 = vsel %vm2950_vm12, %v2919_v15, %v4924_v8  ;;  %v4227_v13 = vld [vmem:[%s4307_s25 + $0x24] sm:$0xf] }
  0xbf   : > { %v1062_v44 = vrot.slane %v1060_v45, 5  ;;  %v3104_v37 = vsel %vm3102_vm13, %v4189_v59, 0  ;;  %v5035_v58 = vpop.permute.xlu1 %2327  ;;  %v1093_v63 = vsel %vm4364_vm6, %v1088_v43, %v1092_v25  ;;  %v3913_v48 = vcombine.low %v4993_v16, %v5001_v34  ;;  %v3753_v16 = vld [vmem:[%s4307_s25 + $0x6c] sm:$0xe] }
  0xc0   : > { %2241 = vrot.lane.b32.xlu0 %v3897_v30, %s4259_s5  ;;  %v1098_v3 = vrot.slane %v1097_v35, 4  ;;  %4107 = vmatpush3.bf16.msra.mxu0 %v3104_v37  ;;  %v3770_v8 = vrot.slane %v3754_v32, 9  ;;  %v1377_v49 = vrot.slane %v4960_v61, 5  ;;  %v1380_v50 = vrot.slane %v4988_v5, 5  ;;  %v5092_v35 = vld [vmem:[%s4307_s25 + $0x8c] sm:$0x1] }
  0xc1   : > { %4108 = vmatprep.subr.bf16.mxu0 %v4192_v21  ;;  %v1063_v41 = vor.u32 %v1062_v44, %v1059_v36  ;;  %v1066_v22 = vshll.u32 %v5001_v34, 16  ;;  %4147 = vmatpush3.bf16.msra.mxu1 %v3104_v37  ;;  %v3859_v61 = vcombine.low %v5054_v52, %v5057_v56  ;;  %v1072_v15 = vrot.slane %v1070_v18, 4  ;;  %v5104_v44 = vld [vmem:[%s4307_s25 + $0x78] sm:$0xf]  ;;  %v5137_v56 = vld [vmem:[%s4307_s25 + $0x7c] sm:$0xf] }
  0xc2   : > { %v1103_v29 = vsel %vm4364_vm6, %v1098_v3, %v1102_v12  ;;  %v1076_v54 = vshll.u32 %v5033_v47, 16  ;;  %v5065_v59 = vpop.permute.xlu0 %2325  ;;  %4145 = vmatprep.subr.bf16.mxu1 %v4192_v21  ;;  %v1378_v14 = vsel %vm4339_vm3, %v3770_v8, %v1377_v49  ;;  %v1379_v55 = vrot.slane %v1377_v49, 4  ;;  %v5117_v49 = vld [vmem:[%s4307_s25 + $0x7c] sm:$0xf] }
  0xc3   : > { %v3930_v1 = vcombine.low %v1093_v63, %v1103_v29  ;;  %v1064_v17 = vrot.slane %v1063_v41, 4  ;;  %v5069_v5 = vpop.permute.xlu1 %2407  ;;  %v2985_v6 = vsel %vm2983_vm14, %v2952_v40, %v4950_v38  ;;  %v1068_v42 = vrot.slane %v1066_v22, 5 }
  0xc4   : > { %2337 = vrot.lane.b32.xlu0 %v3913_v48, %s4258_s30  ;;  %v1078_v7 = vrot.slane %v1076_v54, 5  ;;  %4109 = vmatpush3.bf16.msra.mxu0 %v4192_v21  ;;  %v1690_v10 = vshrl.u32 %v5049_v11, 16  ;;  %v1381_v53 = vsel %vm4339_vm3, %v1379_v55, %v1380_v50  ;;  %v3860_v60 = vcombine.low %v4227_v13, %v4228_v19 }
  0xc5   : > { %2419 = vrot.lane.b32.xlu1 %v3930_v1, %s4260_s6  ;;  %4110 = vmatprep.subr.bf16.mxu0 %v4194_v51  ;;  %v1693_v62 = vshll.u32 %v5049_v11, 16  ;;  %v1703_v31 = vshrl.u32 %v5063_v4, 16  ;;  %v3946_v38 = vcombine.low %v1378_v14, %v1381_v53  ;;  %v1069_v25 = vsel %vm4364_vm6, %v1064_v17, %v1068_v42 }
  0xc6   : > { %v1073_v26 = vor.u32 %v1072_v15, %v1068_v42  ;;  %v3962_v27 = vcombine.low %v5049_v11, %v5063_v4  ;;  %4148 = vmatpush3.bf16.msra.mxu1 %v4192_v21  ;;  %v1692_v28 = vrot.slane %v1690_v10, 4  ;;  %v3769_v43 = vrot.slane %v3753_v16, 9 }
  0xc7   : > { %v1695_v46 = vrot.slane %v1693_v62, 5  ;;  %v1370_v45 = vrot.slane %v5001_v34, 5  ;;  %v5088_v18 = vpop.permute.xlu1 %2487  ;;  %4146 = vmatprep.subr.bf16.mxu1 %v4194_v51  ;;  %v1373_v30 = vrot.slane %v5033_v47, 5  ;;  %vm3016_vm15 = vcmask 261120   ;;  %v5154_v62 = vld [vmem:[%s4307_s25 + $0x80] sm:$0x1] }
  0xc8   : > { %v1074_v32 = vrot.slane %v1073_v26, 4  ;;  %vm3069_vm0 = vcmask 293888   ;;  %4111 = vmatpush3.bf16.msra.mxu0 %v4194_v51  ;;  %v5094_v12 = vpop.permute.xlu0 %2405  ;;  %v2781_v21 = vsel %vm2769_vm7, %v3860_v60, %v4983_v0  ;;  %v3018_v40 = vsel %vm3016_vm15, %v2985_v6, %v4973_v9 }
  0xc9   : > { %2499 = vrot.lane.b32.xlu1 %v3946_v38, %s4262_s8  ;;  %v1371_v34 = vsel %vm4339_vm3, %v3769_v43, %v1370_v45  ;;  %v1372_v36 = vrot.slane %v1370_v45, 4  ;;  %4112 = vmatprep.mubr.msk.bf16.mxu0 %vm3069_vm0, %v3018_v40  ;;  %v3020_v47 = vsel %vm3016_vm15, %v5027_v2, %v5003_v20  ;;  %v1696_v0 = vor.u32 %v1695_v46, %v1692_v28  ;;  %v223_v43 = vld [vmem:[%s4307_s25 + $0x84] sm:$0xf] }
  0xca   : > { %v1079_v37 = vsel %vm4364_vm6, %v1074_v32, %v1078_v7  ;;  %v1699_v63 = vshll.u32 %v5063_v4, 16  ;;  %4149 = vmatpush3.bf16.msra.mxu1 %v4194_v51  ;;  %v1705_v48 = vrot.slane %v1703_v31, 4  ;;  %v1709_v8 = vshll.u32 %v5092_v35, 16  ;;  %v221_v51 = vld [vmem:[%s4307_s25 + $0x78] sm:$0xf] }
  0xcb   : > { %v3929_v3 = vcombine.low %v1069_v25, %v1079_v37  ;;  %v1374_v9 = vsel %vm4339_vm3, %v1372_v36, %v1373_v30  ;;  %4113 = vmatmul.mubr.msk.bf16.vlgmr.msra.gmra.mxu0 %vm3069_vm0, %v3020_v47  ;;  %v5120_v50 = vpop.permute.xlu1 %2583  ;;  %v2778_v20 = vsel %vm2769_vm7, %v3859_v61, %v4942_v33  ;;  %v1697_v2 = vrot.slane %v1696_v0, 4  ;;  %v5140_v33 = vld [vmem:[%s4307_s25 + $0x80] sm:$0x1]  ;;  %v224_v37 = vld [vmem:[%s4307_s25 + $0x88] sm:$0xf] }
  0xcc   : > { %v1701_v41 = vrot.slane %v1699_v63, 5  ;;  %v1666_v22 = vshrl.u32 %v5104_v44, 16  ;;  %v5129_v11 = vpop.permute.xlu0 %2485  ;;  %v3945_v29 = vcombine.low %v1371_v34, %v1374_v9  ;;  %v2826_v15 = vsel %vm2818_vm8, %v2781_v21, %v5009_v23  ;;  %v5173_v63 = vld [vmem:[%s4307_s25 + $0x8c] sm:$0x1] }
  0xcd   : > { %2417 = vrot.lane.b32.xlu0 %v3929_v3, %s4260_s6  ;;  %2595 = vrot.lane.b32.xlu1 %v3962_v27, %s4263_s9  ;;  %v1711_v54 = vrot.slane %v1709_v8, 5  ;;  %v1669_v52 = vshll.u32 %v5104_v44, 16  ;;  %v1679_v14 = vshrl.u32 %v5117_v49, 16  ;;  %v3961_v55 = vcombine.low %v5104_v44, %v5117_v49 }
  0xce   : > { %v1706_v61 = vor.u32 %v1705_v48, %v1701_v41  ;;  %v1668_v1 = vrot.slane %v1666_v22, 4  ;;  %v1702_v17 = vsel %vm4364_vm6, %v1697_v2, %v1701_v41  ;;  %v493_v23 = vshrl.u32 %v221_v51, 16  ;;  %v3833_v41 = vld [vmem:[%s4307_s25 + $0x78] sm:$0xe] }
  0xcf   : > { %v1671_v6 = vrot.slane %v1669_v52, 5  ;;  %v496_v42 = vshll.u32 %v221_v51, 16  ;;  %v502_v10 = vshll.u32 %v5137_v56, 16  ;;  %v506_v16 = vshrl.u32 %v5137_v56, 16  ;;  %v5150_v13 = vpop.permute.xlu1 %2663 }
  0xd0   : > { %v1707_v7 = vrot.slane %v1706_v61, 4  ;;  %v512_v53 = vshll.u32 %v5140_v33, 16  ;;  %v495_v19 = vrot.slane %v493_v23, 4  ;;  %v1675_v38 = vshll.u32 %v5117_v49, 16  ;;  %v5157_v25 = vpop.permute.xlu0 %2581 }
  0xd1   : > { %2497 = vrot.lane.b32.xlu0 %v3945_v29, %s4262_s8  ;;  %v498_v60 = vrot.slane %v496_v42, 5  ;;  %v1672_v31 = vor.u32 %v1671_v6, %v1668_v1  ;;  %v2859_v27 = vsel %vm2851_vm9, %v2826_v15, %v5035_v58  ;;  %v504_v28 = vrot.slane %v502_v10, 5 }
  0xd2   : > { %v1712_v26 = vsel %vm4364_vm6, %v1707_v7, %v1711_v54  ;;  %v508_v46 = vrot.slane %v506_v16, 4  ;;  %v1677_v21 = vrot.slane %v1675_v38, 5  ;;  %v514_v36 = vrot.slane %v512_v53, 5  ;;  %v647_v16 = vld [vmem:[%s4307_s25 + $0x84] sm:$0xe] }
  0xd3   : > { %v3978_v45 = vcombine.low %v1702_v17, %v1712_v26  ;;  %v499_v32 = vor.u32 %v498_v60, %v495_v19  ;;  %v1673_v30 = vrot.slane %v1672_v31, 4  ;;  %v1681_v40 = vrot.slane %v1679_v14, 4  ;;  %v3834_v38 = vld [vmem:[%s4307_s25 + $0x84] sm:$0xe] }
  0xd4   : > { %v509_v34 = vor.u32 %v508_v46, %v504_v28  ;;  %v1685_v44 = vshll.u32 %v5154_v62, 16  ;;  %v2824_v58 = vsel %vm2818_vm8, %v2778_v20, %v5023_v39  ;;  %v517_v3 = vshrl.u32 %v223_v43, 16 }
  0xd5   : > { %2675 = vrot.lane.b32.xlu1 %v3978_v45, %s4264_s10  ;;  %2593 = vrot.lane.b32.xlu0 %v3961_v55, %s4263_s9  ;;  %v500_v47 = vrot.slane %v499_v32, 4  ;;  %v1678_v0 = vsel %vm4364_vm6, %v1673_v30, %v1677_v21  ;;  %v1682_v48 = vor.u32 %v1681_v40, %v1677_v21  ;;  %v520_v2 = vshll.u32 %v223_v43, 16  ;;  %v5176_v22 = vpop.permute.xlu1 %2153 }
  0xd6   : > { %v510_v9 = vrot.slane %v509_v34, 4  ;;  %v1687_v8 = vrot.slane %v1685_v44, 5  ;;  %v519_v29 = vrot.slane %v517_v3, 4  ;;  %v526_v39 = vshll.u32 %v224_v37, 16 }
  0xd7   : > { %v505_v51 = vsel %vm4364_vm6, %v500_v47, %v504_v28  ;;  %v530_v20 = vshrl.u32 %v224_v37, 16  ;;  %v5180_v15 = vpop.permute.xlu0 %2661  ;;  %v1683_v52 = vrot.slane %v1682_v48, 4  ;;  %v522_v61 = vrot.slane %v520_v2, 5  ;;  %v5215_v47 = vld [vmem:[%s4307_s25 + $0x94] sm:$0xf] }
  0xd8   : > { %v515_v54 = vsel %vm4364_vm6, %v510_v9, %v514_v36  ;;  %v536_v1 = vshll.u32 %v5173_v63, 16  ;;  %v528_v55 = vrot.slane %v526_v39, 5  ;;  %v3849_v6 = vrot.slane %v3833_v41, 9  ;;  %v3719_v36 = vld [vmem:[%s4307_s25 + $0x90] sm:$0xf] }
  0xd9   : > { %v3883_v14 = vcombine.low %v505_v51, %v515_v54  ;;  %v532_v17 = vrot.slane %v530_v20, 4  ;;  %v1688_v23 = vsel %vm4364_vm6, %v1683_v52, %v1687_v8  ;;  %v2892_v42 = vsel %vm2884_vm10, %v2859_v27, %v5069_v5  ;;  %v646_v48 = vld [vmem:[%s4307_s25 + $0x78] sm:$0xe]  ;;  %v5237_v52 = vld [vmem:[%s4307_s25 + $0x98] sm:$0x1] }
  0xda   : > { %v523_v7 = vor.u32 %v522_v61, %v519_v29  ;;  %v1979_v10 = vrot.slane %v5117_v49, 5  ;;  %v3977_v53 = vcombine.low %v1678_v0, %v1688_v23  ;;  %v538_v60 = vrot.slane %v536_v1, 5 }
  0xdb   : > { %2165 = vrot.lane.b32.xlu1 %v3883_v14, %s4261_s7  ;;  %v533_v19 = vor.u32 %v532_v17, %v528_v55  ;;  %v1982_v31 = vrot.slane %v5154_v62, 5  ;;  %v5194_v26 = vpop.permute.xlu0 %2741  ;;  %v2857_v28 = vsel %vm2851_vm9, %v2824_v58, %v5065_v59  ;;  %v3692_v45 = vrot.slane %v647_v16, 9  ;;  %v5242_v14 = vld [vmem:[%s4307_s25 + $0x84] sm:$0xf] }
  0xdc   : > { %v524_v46 = vrot.slane %v523_v7, 4  ;;  %v1980_v5 = vsel %vm4339_vm3, %v3849_v6, %v1979_v10  ;;  %v1981_v49 = vrot.slane %v1979_v10, 4  ;;  %v5200_v27 = vpop.permute.xlu1 %2155  ;;  %2673 = vrot.lane.b32.xlu0 %v3977_v53, %s4264_s10  ;;  %v782_v62 = vrot.slane %v224_v37, 5 }
  0xdd   : > { %v534_v43 = vrot.slane %v533_v19, 4  ;;  %v785_v32 = vrot.slane %v5173_v63, 5  ;;  %v3850_v21 = vrot.slane %v3834_v38, 9  ;;  %v1986_v34 = vrot.slane %v5063_v4, 5  ;;  %v5257_v19 = vld [vmem:[%s4307_s25 + $0x88] sm:$0xf] }
  0xde   : > { %v529_v30 = vsel %vm4364_vm6, %v524_v46, %v528_v55  ;;  %v1983_v59 = vsel %vm4339_vm3, %v1981_v49, %v1982_v31  ;;  %v783_v37 = vsel %vm4339_vm3, %v3692_v45, %v782_v62  ;;  %v784_v58 = vrot.slane %v782_v62, 4 }
  0xdf   : > { %v539_v40 = vsel %vm4364_vm6, %v534_v43, %v538_v60  ;;  %v3993_v44 = vcombine.low %v1980_v5, %v1983_v59  ;;  %v5217_v0 = vpop.permute.xlu0 %2743  ;;  %v1987_v3 = vsel %vm4339_vm3, %v3850_v21, %v1986_v34  ;;  %v1988_v9 = vrot.slane %v1986_v34, 4  ;;  %v3756_v5 = vld [vmem:[%s4307_s25 + $0x90] sm:$0xe] }
  0xe0   : > { %v3884_v63 = vcombine.low %v529_v30, %v539_v40  ;;  %v1989_v4 = vrot.slane %v5092_v35, 5  ;;  %v5223_v8 = vpop.permute.xlu1 %2235  ;;  %v2925_v2 = vsel %vm2917_vm11, %v2892_v42, %v5088_v18  ;;  %v2890_v41 = vsel %vm2884_vm10, %v2857_v28, %v5094_v12 }
  0xe1   : > { %2753 = vrot.lane.b32.xlu0 %v3993_v44, %s4265_s11  ;;  %v786_v51 = vsel %vm4339_vm3, %v784_v58, %v785_v32  ;;  %v1129_v29 = vshrl.u32 %v3719_v36, 16  ;;  %v1132_v20 = vshll.u32 %v3719_v36, 16  ;;  %v1142_v54 = vshrl.u32 %v5215_v47, 16 }
  0xe2   : > { %2167 = vrot.lane.b32.xlu1 %v3884_v63, %s4261_s7  ;;  %v3900_v39 = vcombine.low %v783_v37, %v786_v51  ;;  %v1990_v35 = vsel %vm4339_vm3, %v1988_v9, %v1989_v4  ;;  %v2958_v18 = vsel %vm2950_vm12, %v2925_v2, %v5120_v50  ;;  %v3691_v1 = vrot.slane %v646_v48, 9  ;;  %v5285_v37 = vld [vmem:[%s4307_s25 + $0x8c] sm:$0x1] }
  0xe3   : > { %v3994_v61 = vcombine.low %v1987_v3, %v1990_v35  ;;  %v1131_v12 = vrot.slane %v1129_v29, 4  ;;  %v5244_v55 = vpop.permute.xlu0 %2233  ;;  %v2923_v17 = vsel %vm2917_vm11, %v2890_v41, %v5129_v11  ;;  %v1134_v6 = vrot.slane %v1132_v20, 5  ;;  %v5295_v41 = vld [vmem:[%s4307_s25 + $0x9c] sm:$0xf]  ;;  %v4230_v20 = vld [vmem:[%s4307_s25 + $0x40] sm:$0xf] }
  0xe4   : > { %v775_v23 = vrot.slane %v5137_v56, 5  ;;  %v778_v42 = vrot.slane %v5140_v33, 5  ;;  %v5250_v7 = vpop.permute.xlu1 %2331  ;;  %v3916_v50 = vcombine.low %v3719_v36, %v5215_v47  ;;  %v1138_v10 = vshll.u32 %v5215_v47, 16  ;;  %v4229_v35 = vld [vmem:[%s4307_s25 + $0x3c] sm:$0xf] }
  0xe5   : > { %2755 = vrot.lane.b32.xlu0 %v3994_v61, %s4265_s11  ;;  %v1144_v16 = vrot.slane %v1142_v54, 4  ;;  %v1148_v53 = vshll.u32 %v5237_v52, 16  ;;  %v1135_v33 = vor.u32 %v1134_v6, %v1131_v12  ;;  %v1105_v60 = vshrl.u32 %v5242_v14, 16  ;;  %v4231_v6 = vld [vmem:[%s4307_s25 + $0x30] sm:$0xf] }
  0xe6   : > { %2247 = vrot.lane.b32.xlu1 %v3900_v39, %s4259_s5  ;;  %v776_v11 = vsel %vm4339_vm3, %v3691_v1, %v775_v23  ;;  %v777_v56 = vrot.slane %v775_v23, 4  ;;  %v5265_v31 = vsel %vm2983_vm14, %v2958_v18, %v5150_v13  ;;  %v2956_v38 = vsel %vm2950_vm12, %v2923_v17, %v5157_v25  ;;  %v3755_v17 = vld [vmem:[%s4307_s25 + $0x84] sm:$0xe]  ;;  %v4232_v23 = vld [vmem:[%s4307_s25 + $0x34] sm:$0xf] }
  0xe7   : > { %v1140_v28 = vrot.slane %v1138_v10, 5  ;;  %v1108_v46 = vshll.u32 %v5242_v14, 16  ;;  %v5271_v49 = vpop.permute.xlu0 %2329  ;;  %v1136_v45 = vrot.slane %v1135_v33, 4  ;;  %v1107_v62 = vrot.slane %v1105_v60, 4 }
  0xe8   : > { %v779_v43 = vsel %vm4339_vm3, %v777_v56, %v778_v42  ;;  %v1118_v32 = vshrl.u32 %v5257_v19, 16  ;;  %v5276_v30 = vpop.permute.xlu1 %2411  ;;  %v1150_v21 = vrot.slane %v1148_v53, 5  ;;  %v3915_v36 = vcombine.low %v5242_v14, %v5257_v19 }
  0xe9   : > { %v3899_v13 = vcombine.low %v776_v11, %v779_v43  ;;  %v1145_v59 = vor.u32 %v1144_v16, %v1140_v28  ;;  %v1110_v25 = vrot.slane %v1108_v46, 5  ;;  %v1141_v34 = vsel %vm4364_vm6, %v1136_v45, %v1140_v28 }
  0xea   : > { %2343 = vrot.lane.b32.xlu1 %v3916_v50, %s4258_s30  ;;  %v3772_v40 = vrot.slane %v3756_v5, 9  ;;  %v1391_v44 = vrot.slane %v5215_v47, 5  ;;  %v2989_v63 = vsel %vm2983_vm14, %v2956_v38, %v5180_v15  ;;  %v1394_v3 = vrot.slane %v5237_v52, 5  ;;  %v5305_v52 = vld [vmem:[%s4307_s25 + $0xa0] sm:$0xf] }
  0xeb   : > { %2245 = vrot.lane.b32.xlu0 %v3899_v13, %s4259_s5  ;;  %v1146_v58 = vrot.slane %v1145_v59, 4  ;;  %v1111_v9 = vor.u32 %v1110_v25, %v1107_v62  ;;  %v1114_v47 = vshll.u32 %v5257_v19, 16  ;;  %v1120_v2 = vrot.slane %v1118_v32, 4  ;;  %v5330_v5 = vld [vmem:[%s4307_s25 + $0xa4] sm:$0x1] }
  0xec   : > { %v1392_v4 = vsel %vm4339_vm3, %v3772_v40, %v1391_v44  ;;  %v1393_v48 = vrot.slane %v1391_v44, 4  ;;  %v5297_v51 = vpop.permute.xlu1 %2491  ;;  %v1124_v39 = vshll.u32 %v5285_v37, 16  ;;  %v3862_v54 = vcombine.low %v4229_v35, %v4230_v20  ;;  %v5338_v13 = vld [vmem:[%s4307_s25 + $0x90] sm:$0xf] }
  0xed   : > { %v1151_v15 = vsel %vm4364_vm6, %v1146_v58, %v1150_v21  ;;  %v1112_v29 = vrot.slane %v1111_v9, 4  ;;  %v5307_v61 = vpop.permute.xlu0 %2409  ;;  %v1116_v1 = vrot.slane %v1114_v47, 5  ;;  %v3022_v14 = vsel %vm3016_vm15, %v2989_v63, %v5194_v26 }
  0xee   : > { %v3932_v18 = vcombine.low %v1141_v34, %v1151_v15  ;;  %v1395_v12 = vsel %vm4339_vm3, %v1393_v48, %v1394_v3  ;;  %v3861_v42 = vcombine.low %v4231_v6, %v4232_v23  ;;  %v1126_v10 = vrot.slane %v1124_v39, 5  ;;  %4116 = vmatprep.mubr.msk.bf16.mxu0 %vm3069_vm0, %v3022_v14 }
  0xef   : > { %2341 = vrot.lane.b32.xlu0 %v3915_v36, %s4258_s30  ;;  %v3948_v50 = vcombine.low %v1392_v4, %v1395_v12  ;;  %v1738_v16 = vshrl.u32 %v5295_v41, 16  ;;  %v1121_v53 = vor.u32 %v1120_v2, %v1116_v1  ;;  %v2787_v26 = vsel %vm2769_vm7, %v3862_v54, %v5200_v27  ;;  %v225_v2 = vld [vmem:[%s4307_s25 + $0x90] sm:$0xf]  ;;  %v5372_v54 = vld [vmem:[%s4307_s25 + $0x98] sm:$0x1] }
  0xf0   : > { %2423 = vrot.lane.b32.xlu1 %v3932_v18, %s4260_s6  ;;  %v1741_v11 = vshll.u32 %v5295_v41, 16  ;;  %v1751_v56 = vshrl.u32 %v5305_v52, 16  ;;  %v5324_v33 = vpop.permute.xlu1 %2587  ;;  %v1117_v60 = vsel %vm4364_vm6, %v1112_v29, %v1116_v1  ;;  %v3771_v28 = vrot.slane %v3755_v17, 9 }
  0xf1   : > { %v1740_v38 = vrot.slane %v1738_v16, 4  ;;  %v1384_v46 = vrot.slane %v5257_v19, 5  ;;  %v5332_v43 = vpop.permute.xlu0 %2489  ;;  %v1122_v45 = vrot.slane %v1121_v53, 4  ;;  %v3964_v27 = vcombine.low %v5295_v41, %v5305_v52  ;;  %v5366_v41 = vld [vmem:[%s4307_s25 + $0x94] sm:$0xf] }
  0xf2   : > { %v1743_v62 = vrot.slane %v1741_v11, 5  ;;  %v1387_v32 = vrot.slane %v5285_v37, 5  ;;  %v3024_v19 = vsel %vm3016_vm15, %v5265_v31, %v5217_v0  ;;  %v1747_v25 = vshll.u32 %v5305_v52, 16  ;;  %v5354_v31 = vld [vmem:[%s4307_s25 + $0x94] sm:$0xf] }
  0xf3   : > { %v1385_v59 = vsel %vm4339_vm3, %v3771_v28, %v1384_v46  ;;  %v1386_v21 = vrot.slane %v1384_v46, 4  ;;  %v1127_v34 = vsel %vm4364_vm6, %v1122_v45, %v1126_v10  ;;  %v1753_v40 = vrot.slane %v1751_v56, 4  ;;  %4117 = vmatmul.mubr.msk.bf16.gmra.mxu0 %vm3069_vm0, %v3024_v19  ;;  %v5386_v10 = vld [vmem:[%s4307_s25 + $0x98] sm:$0x1] }
  0xf4   : > { %2503 = vrot.lane.b32.xlu1 %v3948_v50, %s4262_s8  ;;  %v1744_v36 = vor.u32 %v1743_v62, %v1740_v38  ;;  %v1757_v44 = vshll.u32 %v5330_v5, 16  ;;  %v3931_v37 = vcombine.low %v1117_v60, %v1127_v34  ;;  %v1749_v0 = vrot.slane %v1747_v25, 5  ;;  %v5357_v3 = vpop.permute.xlu1 %2667  ;;  %v227_v60 = vld [vmem:[%s4307_s25 + $0x9c] sm:$0xf] }
  0xf5   : > { %v1388_v58 = vsel %vm4339_vm3, %v1386_v21, %v1387_v32  ;;  %v1714_v63 = vshrl.u32 %v5338_v13, 16  ;;  %v2784_v9 = vsel %vm2769_vm7, %v3861_v42, %v5176_v22  ;;  %v2830_v4 = vsel %vm2818_vm8, %v2787_v26, %v5223_v8  ;;  %v5368_v15 = vpop.permute.xlu0 %2585  ;;  %v5402_v21 = vld [vmem:[%s4307_s25 + $0xa0] sm:$0xf] }
  0xf6   : > { %v1745_v48 = vrot.slane %v1744_v36, 4  ;;  %v1717_v47 = vshll.u32 %v5338_v13, 16  ;;  %2421 = vrot.lane.b32.xlu0 %v3931_v37, %s4260_s6  ;;  %v3947_v29 = vcombine.low %v1385_v59, %v1388_v58  ;;  %v1754_v39 = vor.u32 %v1753_v40, %v1749_v0  ;;  %v5409_v37 = vld [vmem:[%s4307_s25 + $0xa4] sm:$0x1] }
  0xf7   : > { %v1759_v35 = vrot.slane %v1757_v44, 5  ;;  %v1716_v20 = vrot.slane %v1714_v63, 4  ;;  %v1727_v18 = vshrl.u32 %v5354_v31, 16  ;;  %v3963_v12 = vcombine.low %v5338_v13, %v5354_v31 }
  0xf8   : > { %2599 = vrot.lane.b32.xlu1 %v3964_v27, %s4263_s9  ;;  %v1750_v22 = vsel %vm4364_vm6, %v1745_v48, %v1749_v0  ;;  %v1719_v8 = vrot.slane %v1717_v47, 5  ;;  %v1755_v1 = vrot.slane %v1754_v39, 4  ;;  %v541_v14 = vshrl.u32 %v225_v2, 16 }
  0xf9   : > { %v544_v17 = vshll.u32 %v225_v2, 16  ;;  %v550_v6 = vshll.u32 %v5366_v41, 16  ;;  %v2863_v23 = vsel %vm2851_vm9, %v2830_v4, %v5250_v7  ;;  %v554_v42 = vshrl.u32 %v5366_v41, 16 }
  0xfa   : > { %v560_v50 = vshll.u32 %v5372_v54, 16  ;;  %v1720_v16 = vor.u32 %v1719_v8, %v1716_v20  ;;  %2501 = vrot.lane.b32.xlu0 %v3947_v29, %s4262_s8  ;;  %v1760_v53 = vsel %vm4364_vm6, %v1755_v1, %v1759_v35  ;;  %v543_v26 = vrot.slane %v541_v14, 4  ;;  %v5392_v38 = vpop.permute.xlu1 %2157  ;;  %v3835_v35 = vld [vmem:[%s4307_s25 + $0x90] sm:$0xe] }
  0xfb   : > { %v546_v11 = vrot.slane %v544_v17, 5  ;;  %v552_v56 = vrot.slane %v550_v6, 5  ;;  %v3980_v7 = vcombine.low %v1750_v22, %v1760_v53  ;;  %v2828_v28 = vsel %vm2818_vm8, %v2784_v9, %v5244_v55 }
  0xfc   : > { %v556_v46 = vrot.slane %v554_v42, 4  ;;  %v792_v45 = vrot.slane %v5372_v54, 5  ;;  %v5397_v62 = vpop.permute.xlu0 %2665  ;;  %v1723_v32 = vshll.u32 %v5354_v31, 16  ;;  %v1729_v13 = vrot.slane %v1727_v18, 4 }
  0xfd   : > { %v547_v27 = vor.u32 %v546_v11, %v543_v26  ;;  %v1733_v59 = vshll.u32 %v5386_v10, 16  ;;  %2679 = vrot.lane.b32.xlu1 %v3980_v7, %s4264_s10  ;;  %v562_v25 = vrot.slane %v560_v50, 5  ;;  %v1721_v34 = vrot.slane %v1720_v16, 4  ;;  %v649_v16 = vld [vmem:[%s4307_s25 + $0x9c] sm:$0xe] }
  0xfe   : > { %v557_v19 = vor.u32 %v556_v46, %v552_v56  ;;  %v565_v55 = vshrl.u32 %v227_v60, 16  ;;  %2597 = vrot.lane.b32.xlu0 %v3963_v12, %s4263_s9  ;;  %v1725_v40 = vrot.slane %v1723_v32, 5  ;;  %v2896_v44 = vsel %vm2884_vm10, %v2863_v23, %v5276_v30  ;;  %v3836_v7 = vld [vmem:[%s4307_s25 + $0x9c] sm:$0xe] }
  0xff   : > { %v548_v36 = vrot.slane %v547_v27, 4  ;;  %v568_v58 = vshll.u32 %v227_v60, 16  ;;  %v574_v9 = vshll.u32 %v5402_v21, 16  ;;  %v578_v4 = vshrl.u32 %v5402_v21, 16 }
 0x100   : > { %v558_v0 = vrot.slane %v557_v19, 4  ;;  %v567_v63 = vrot.slane %v565_v55, 4  ;;  %v5413_v48 = vpop.permute.xlu0 %2745  ;;  %v1730_v2 = vor.u32 %v1729_v13, %v1725_v40  ;;  %v1735_v29 = vrot.slane %v1733_v59, 5 }
 0x101   : > { %v553_v47 = vsel %vm4364_vm6, %v548_v36, %v552_v56  ;;  %v570_v39 = vrot.slane %v568_v58, 5  ;;  %v5418_v30 = vpop.permute.xlu1 %2159  ;;  %v576_v22 = vrot.slane %v574_v9, 5  ;;  %v580_v8 = vrot.slane %v578_v4, 4  ;;  %v3723_v36 = vld [vmem:[%s4307_s25 + $0xa8] sm:$0xf] }
 0x102   : > { %v563_v20 = vsel %vm4364_vm6, %v558_v0, %v562_v25  ;;  %v584_v18 = vshll.u32 %v5409_v37, 16  ;;  %v1726_v1 = vsel %vm4364_vm6, %v1721_v34, %v1725_v40  ;;  %v1731_v14 = vrot.slane %v1730_v2, 4 }
 0x103   : > { %v3885_v12 = vcombine.low %v553_v47, %v563_v20  ;;  %v571_v17 = vor.u32 %v570_v39, %v567_v63  ;;  %v581_v6 = vor.u32 %v580_v8, %v576_v22  ;;  %v3851_v42 = vrot.slane %v3835_v35, 9  ;;  %v5456_v63 = vld [vmem:[%s4307_s25 + $0xac] sm:$0xf] }
 0x104   : > { %v586_v23 = vrot.slane %v584_v18, 5  ;;  %v1993_v50 = vrot.slane %v5354_v31, 5  ;;  %v5427_v53 = vpop.permute.xlu0 %2747  ;;  %v1736_v26 = vsel %vm4364_vm6, %v1731_v14, %v1735_v29  ;;  %v2861_v11 = vsel %vm2851_vm9, %v2828_v28, %v5271_v49  ;;  %v648_v29 = vld [vmem:[%s4307_s25 + $0x90] sm:$0xe]  ;;  %v5478_v18 = vld [vmem:[%s4307_s25 + $0xb0] sm:$0x1] }
 0x105   : > { %2169 = vrot.lane.b32.xlu1 %v3885_v12, %s4261_s7  ;;  %v572_v56 = vrot.slane %v571_v17, 4  ;;  %v1996_v60 = vrot.slane %v5386_v10, 5  ;;  %v5436_v46 = vpop.permute.xlu1 %2239  ;;  %v3979_v27 = vcombine.low %v1726_v1, %v1736_v26  ;;  %v582_v31 = vrot.slane %v581_v6, 4  ;;  %v5493_v26 = vld [vmem:[%s4307_s25 + $0xa0] sm:$0xf] }
 0x106   : > { %v1994_v32 = vsel %vm4339_vm3, %v3851_v42, %v1993_v50  ;;  %v1995_v13 = vrot.slane %v1993_v50, 4  ;;  %v799_v19 = vrot.slane %v5409_v37, 5  ;;  %v3694_v49 = vrot.slane %v649_v16, 9 }
 0x107   : > { %v577_v59 = vsel %vm4364_vm6, %v572_v56, %v576_v22  ;;  %v796_v28 = vrot.slane %v5402_v21, 5  ;;  %2677 = vrot.lane.b32.xlu0 %v3979_v27, %s4264_s10  ;;  %v587_v10 = vsel %vm4364_vm6, %v582_v31, %v586_v23  ;;  %v3852_v34 = vrot.slane %v3836_v7, 9 }
 0x108   : > { %v1997_v25 = vsel %vm4339_vm3, %v1995_v13, %v1996_v60  ;;  %v2000_v55 = vrot.slane %v5305_v52, 5  ;;  %v5451_v40 = vpop.permute.xlu0 %2237  ;;  %v3886_v58 = vcombine.low %v577_v59, %v587_v10  ;;  %v2929_v4 = vsel %vm2917_vm11, %v2896_v44, %v5297_v51 }
 0x109   : > { %v3995_v37 = vcombine.low %v1994_v32, %v1997_v25  ;;  %v797_v21 = vsel %vm4339_vm3, %v3694_v49, %v796_v28  ;;  %v798_v0 = vrot.slane %v796_v28, 4  ;;  %v5458_v9 = vpop.permute.xlu1 %2335  ;;  %v2003_v2 = vrot.slane %v5330_v5, 5  ;;  %v3758_v49 = vld [vmem:[%s4307_s25 + $0xa8] sm:$0xe] }
 0x10a   : > { %v2001_v52 = vsel %vm4339_vm3, %v3852_v34, %v2000_v55  ;;  %v2002_v47 = vrot.slane %v2000_v55, 4  ;;  %2171 = vrot.lane.b32.xlu1 %v3886_v58, %s4261_s7  ;;  %v2894_v39 = vsel %vm2884_vm10, %v2861_v11, %v5307_v61  ;;  %v1177_v20 = vshrl.u32 %v3723_v36, 16  ;;  %v5481_v61 = vld [vmem:[%s4307_s25 + $0x9c] sm:$0xf] }
 0x10b   : > { %v800_v35 = vsel %vm4339_vm3, %v798_v0, %v799_v19  ;;  %v1180_v22 = vshll.u32 %v3723_v36, 16  ;;  %2757 = vrot.lane.b32.xlu0 %v3995_v37, %s4265_s11  ;;  %v2962_v5 = vsel %vm2950_vm12, %v2929_v4, %v5324_v33  ;;  %v1190_v8 = vshrl.u32 %v5456_v63, 16 }
 0x10c   : > { %v3902_v51 = vcombine.low %v797_v21, %v800_v35  ;;  %v2004_v44 = vsel %vm4339_vm3, %v2002_v47, %v2003_v2  ;;  %v5483_v12 = vpop.permute.xlu0 %2333  ;;  %v1179_v14 = vrot.slane %v1177_v20, 4  ;;  %v3693_v6 = vrot.slane %v648_v29, 9  ;;  %v5524_v21 = vld [vmem:[%s4307_s25 + $0xa4] sm:$0x1] }
 0x10d   : > { %v3996_v1 = vcombine.low %v2001_v52, %v2004_v44  ;;  %v1182_v17 = vrot.slane %v1180_v22, 5  ;;  %v5485_v23 = vpop.permute.xlu1 %2415  ;;  %v2927_v42 = vsel %vm2917_vm11, %v2894_v39, %v5332_v43  ;;  %v3918_v50 = vcombine.low %v3723_v36, %v5456_v63  ;;  %v5533_v39 = vld [vmem:[%s4307_s25 + $0xb4] sm:$0xf] }
 0x10e   : > { %v789_v33 = vrot.slane %v5366_v41, 5  ;;  %v1186_v16 = vshll.u32 %v5456_v63, 16  ;;  %2251 = vrot.lane.b32.xlu1 %v3902_v51, %s4259_s5  ;;  %v1192_v56 = vrot.slane %v1190_v8, 4  ;;  %v1196_v60 = vshll.u32 %v5478_v18, 16  ;;  %v4233_v8 = vld [vmem:[%s4307_s25 + $0x54] sm:$0xf] }
 0x10f   : > { %v1183_v11 = vor.u32 %v1182_v17, %v1179_v14  ;;  %v1153_v7 = vshrl.u32 %v5481_v61, 16  ;;  %2759 = vrot.lane.b32.xlu0 %v3996_v1, %s4265_s11  ;;  %v1156_v31 = vshll.u32 %v5481_v61, 16  ;;  %v5504_v32 = vsel %vm2983_vm14, %v2962_v5, %v5357_v3  ;;  %v5545_v1 = vld [vmem:[%s4307_s25 + $0xb8] sm:$0xf]  ;;  %v4235_v17 = vld [vmem:[%s4307_s25 + $0x48] sm:$0xf] }
 0x110   : > { %v790_v43 = vsel %vm4339_vm3, %v3693_v6, %v789_v33  ;;  %v791_v27 = vrot.slane %v789_v33, 4  ;;  %v1188_v41 = vrot.slane %v1186_v16, 5  ;;  %v1166_v19 = vshrl.u32 %v5493_v26, 16  ;;  %v4236_v6 = vld [vmem:[%s4307_s25 + $0x4c] sm:$0xf] }
 0x111   : > { %v1184_v13 = vrot.slane %v1183_v11, 4  ;;  %v1155_v59 = vrot.slane %v1153_v7, 4  ;;  %v5508_v28 = vpop.permute.xlu1 %2495  ;;  %v1198_v34 = vrot.slane %v1196_v60, 5  ;;  %v1158_v55 = vrot.slane %v1156_v31, 5  ;;  %v3757_v11 = vld [vmem:[%s4307_s25 + $0x9c] sm:$0xe] }
 0x112   : > { %v793_v10 = vsel %vm4339_vm3, %v791_v27, %v792_v45  ;;  %v1193_v25 = vor.u32 %v1192_v56, %v1188_v41  ;;  %v5514_v36 = vpop.permute.xlu0 %2413  ;;  %2347 = vrot.lane.b32.xlu1 %v3918_v50, %s4258_s30  ;;  %v2960_v58 = vsel %vm2950_vm12, %v2927_v42, %v5368_v15  ;;  %v3917_v54 = vcombine.low %v5481_v61, %v5493_v26 }
 0x113   : > { %v3901_v3 = vcombine.low %v790_v43, %v793_v10  ;;  %v1189_v37 = vsel %vm4364_vm6, %v1184_v13, %v1188_v41  ;;  %v3774_v0 = vrot.slane %v3758_v49, 9  ;;  %v1405_v4 = vrot.slane %v5456_v63, 5  ;;  %v5568_v10 = vld [vmem:[%s4307_s25 + $0xbc] sm:$0x1] }
 0x114   : > { %v1194_v45 = vrot.slane %v1193_v25, 4  ;;  %v1408_v52 = vrot.slane %v5478_v18, 5  ;;  %v2993_v15 = vsel %vm2983_vm14, %v2960_v58, %v5397_v62  ;;  %v1159_v47 = vor.u32 %v1158_v55, %v1155_v59  ;;  %v4234_v18 = vld [vmem:[%s4307_s25 + $0x58] sm:$0xf] }
 0x115   : > { %2249 = vrot.lane.b32.xlu0 %v3901_v3, %s4259_s5  ;;  %v1162_v2 = vshll.u32 %v5493_v26, 16  ;;  %v1168_v29 = vrot.slane %v1166_v19, 4  ;;  %v1406_v35 = vsel %vm4339_vm3, %v3774_v0, %v1405_v4  ;;  %v1407_v20 = vrot.slane %v1405_v4, 4  ;;  %v5540_v62 = vpop.permute.xlu1 %2591  ;;  %v5578_v3 = vld [vmem:[%s4307_s25 + $0xa8] sm:$0xf] }
 0x116   : > { %v1199_v63 = vsel %vm4364_vm6, %v1194_v45, %v1198_v34  ;;  %v1172_v22 = vshll.u32 %v5524_v21, 16  ;;  %v1160_v44 = vrot.slane %v1159_v47, 4  ;;  %v3864_v61 = vcombine.low %v4233_v8, %v4234_v18  ;;  %v5547_v14 = vpop.permute.xlu0 %2493 }
 0x117   : > { %v3934_v51 = vcombine.low %v1189_v37, %v1199_v63  ;;  %v1164_v5 = vrot.slane %v1162_v2, 5  ;;  %v3863_v42 = vcombine.low %v4235_v17, %v4236_v6  ;;  %v1409_v50 = vsel %vm4339_vm3, %v1407_v20, %v1408_v52  ;;  %v5592_v52 = vld [vmem:[%s4307_s25 + $0xac] sm:$0xf] }
 0x118   : > { %v3026_v33 = vsel %vm3016_vm15, %v2993_v15, %v5413_v48  ;;  %v1786_v16 = vshrl.u32 %v5533_v39, 16  ;;  %v3950_v56 = vcombine.low %v1406_v35, %v1409_v50  ;;  %v1174_v7 = vrot.slane %v1172_v22, 5 }
 0x119   : > { %2427 = vrot.lane.b32.xlu1 %v3934_v51, %s4260_s6  ;;  %2345 = vrot.lane.b32.xlu0 %v3917_v54, %s4258_s30  ;;  %v1169_v60 = vor.u32 %v1168_v29, %v1164_v5  ;;  %v1789_v43 = vshll.u32 %v5533_v39, 16  ;;  %v1165_v27 = vsel %vm4364_vm6, %v1160_v44, %v1164_v5  ;;  %v2793_v48 = vsel %vm2769_vm7, %v3864_v61, %v5418_v30  ;;  %v5580_v58 = vpop.permute.xlu1 %2671  ;;  %v5605_v51 = vld [vmem:[%s4307_s25 + $0xac] sm:$0xf]  ;;  %v5608_v44 = vld [vmem:[%s4307_s25 + $0xb0] sm:$0x1] }
 0x11a   : > { %v1788_v41 = vrot.slane %v1786_v16, 4  ;;  %v1799_v31 = vshrl.u32 %v5545_v1, 16  ;;  %4120 = vmatprep.mubr.msk.bf16.mxu0 %vm3069_vm0, %v3026_v33  ;;  %v3773_v19 = vrot.slane %v3757_v11, 9  ;;  %v1398_v49 = vrot.slane %v5493_v26, 5 }
 0x11b   : > { %v1170_v13 = vrot.slane %v1169_v60, 4  ;;  %v1791_v59 = vrot.slane %v1789_v43, 5  ;;  %v3966_v25 = vcombine.low %v5533_v39, %v5545_v1  ;;  %v1401_v34 = vrot.slane %v5524_v21, 5  ;;  %v5599_v39 = vld [vmem:[%s4307_s25 + $0xa8] sm:$0xf] }
 0x11c   : > { %v3028_v30 = vsel %vm3016_vm15, %v5504_v32, %v5427_v53  ;;  %v1795_v55 = vshll.u32 %v5545_v1, 16  ;;  %v1399_v37 = vsel %vm4339_vm3, %v3773_v19, %v1398_v49  ;;  %v1400_v54 = vrot.slane %v1398_v49, 4  ;;  %v5588_v53 = vpop.permute.xlu0 %2589  ;;  %v5631_v43 = vld [vmem:[%s4307_s25 + $0xb0] sm:$0x1]  ;;  %v5635_v19 = vld [vmem:[%s4307_s25 + $0xb4] sm:$0xf] }
 0x11d   : > { %2507 = vrot.lane.b32.xlu1 %v3950_v56, %s4262_s8  ;;  %v1175_v26 = vsel %vm4364_vm6, %v1170_v13, %v1174_v7  ;;  %v1792_v21 = vor.u32 %v1791_v59, %v1788_v41  ;;  %4121 = vmatmul.mubr.msk.bf16.gmra.mxu0 %vm3069_vm0, %v3028_v30  ;;  %v1801_v0 = vrot.slane %v1799_v31, 4  ;;  %v1805_v4 = vshll.u32 %v5568_v10, 16 }
 0x11e   : > { %v3933_v32 = vcombine.low %v1165_v27, %v1175_v26  ;;  %v1797_v45 = vrot.slane %v1795_v55, 5  ;;  %v1402_v15 = vsel %vm4339_vm3, %v1400_v54, %v1401_v34  ;;  %v1762_v2 = vshrl.u32 %v5578_v3, 16  ;;  %v5642_v54 = vld [vmem:[%s4307_s25 + $0xb8] sm:$0xf] }
 0x11f   : > { %v1793_v47 = vrot.slane %v1792_v21, 4  ;;  %v1765_v29 = vshll.u32 %v5578_v3, 16  ;;  %v2790_v63 = vsel %vm2769_vm7, %v3863_v42, %v5392_v38  ;;  %v3949_v35 = vcombine.low %v1399_v37, %v1402_v15 }
 0x120   : > { %2425 = vrot.lane.b32.xlu0 %v3933_v32, %s4260_s6  ;;  %v1802_v20 = vor.u32 %v1801_v0, %v1797_v45  ;;  %v1807_v22 = vrot.slane %v1805_v4, 5  ;;  %v2834_v5 = vsel %vm2818_vm8, %v2793_v48, %v5436_v46  ;;  %v1764_v8 = vrot.slane %v1762_v2, 4  ;;  %v5619_v50 = vpop.permute.xlu1 %2161  ;;  %v248_v0 = vld [vmem:[%s4307_s25 + $0xbc] sm:$0x1] }
 0x121   : > { %2603 = vrot.lane.b32.xlu1 %v3966_v25, %s4263_s9  ;;  %v1767_v18 = vrot.slane %v1765_v29, 5  ;;  %v1775_v61 = vshrl.u32 %v5592_v52, 16  ;;  %v1798_v38 = vsel %vm4364_vm6, %v1793_v47, %v1797_v45  ;;  %v3965_v6 = vcombine.low %v5578_v3, %v5592_v52 }
 0x122   : > { %v1803_v17 = vrot.slane %v1802_v20, 4  ;;  %v589_v42 = vshrl.u32 %v5599_v39, 16  ;;  %v592_v33 = vshll.u32 %v5599_v39, 16  ;;  %v598_v46 = vshll.u32 %v5605_v51, 16 }
 0x123   : > { %v602_v16 = vshrl.u32 %v5605_v51, 16  ;;  %v608_v11 = vshll.u32 %v5608_v44, 16  ;;  %v5625_v56 = vpop.permute.xlu0 %2669  ;;  %v1768_v27 = vor.u32 %v1767_v18, %v1764_v8  ;;  %v1771_v48 = vshll.u32 %v5592_v52, 16 }
 0x124   : > { %2505 = vrot.lane.b32.xlu0 %v3949_v35, %s4262_s8  ;;  %v1808_v60 = vsel %vm4364_vm6, %v1803_v17, %v1807_v22  ;;  %v591_v7 = vrot.slane %v589_v42, 4  ;;  %v594_v31 = vrot.slane %v592_v33, 5  ;;  %v600_v13 = vrot.slane %v598_v46, 5  ;;  %v651_v46 = vld [vmem:[%s4307_s25 + $0xb4] sm:$0xe] }
 0x125   : > { %v3982_v41 = vcombine.low %v1798_v38, %v1808_v60  ;;  %v604_v59 = vrot.slane %v602_v16, 4  ;;  %v2867_v49 = vsel %vm2851_vm9, %v2834_v5, %v5458_v9  ;;  %v1769_v25 = vrot.slane %v1768_v27, 4 }
 0x126   : > { %v1773_v34 = vrot.slane %v1771_v48, 5  ;;  %v1777_v30 = vrot.slane %v1775_v61, 4  ;;  %v595_v55 = vor.u32 %v594_v31, %v591_v7  ;;  %v610_v26 = vrot.slane %v608_v11, 5 }
 0x127   : > { %2683 = vrot.lane.b32.xlu1 %v3982_v41, %s4264_s10  ;;  %v605_v3 = vor.u32 %v604_v59, %v600_v13  ;;  %v1781_v37 = vshll.u32 %v5631_v43, 16  ;;  %v5644_v21 = vpop.permute.xlu0 %2749  ;;  %v2832_v9 = vsel %vm2818_vm8, %v2790_v63, %v5451_v40  ;;  %v613_v4 = vshrl.u32 %v5635_v19, 16  ;;  %v3837_v63 = vld [vmem:[%s4307_s25 + $0xa8] sm:$0xe] }
 0x128   : > { %2601 = vrot.lane.b32.xlu0 %v3965_v6, %s4263_s9  ;;  %v1774_v32 = vsel %vm4364_vm6, %v1769_v25, %v1773_v34  ;;  %v1778_v45 = vor.u32 %v1777_v30, %v1773_v34  ;;  %v5653_v15 = vpop.permute.xlu1 %2163  ;;  %v596_v47 = vrot.slane %v595_v55, 4  ;;  %v616_v35 = vshll.u32 %v5635_v19, 16  ;;  %v3838_v25 = vld [vmem:[%s4307_s25 + $0xb4] sm:$0xe] }
 0x129   : > { %v606_v2 = vrot.slane %v605_v3, 4  ;;  %v1783_v29 = vrot.slane %v1781_v37, 5  ;;  %v615_v22 = vrot.slane %v613_v4, 4  ;;  %v622_v5 = vshll.u32 %v5642_v54, 16 }
 0x12a   : > { %v1779_v20 = vrot.slane %v1778_v45, 4  ;;  %v626_v40 = vshrl.u32 %v5642_v54, 16  ;;  %v601_v8 = vsel %vm4364_vm6, %v596_v47, %v600_v13  ;;  %v618_v61 = vrot.slane %v616_v35, 5 }
 0x12b   : > { %v611_v18 = vsel %vm4364_vm6, %v606_v2, %v610_v26  ;;  %v632_v38 = vshll.u32 %v248_v0, 16  ;;  %v624_v42 = vrot.slane %v622_v5, 5  ;;  %v2900_v60 = vsel %vm2884_vm10, %v2867_v49, %v5485_v23  ;;  %v3727_v2 = vld [vmem:[%s4307_s25 + $0xc0] sm:$0xf] }
 0x12c   : > { %v3887_v17 = vcombine.low %v601_v8, %v611_v18  ;;  %v1784_v6 = vsel %vm4364_vm6, %v1779_v20, %v1783_v29  ;;  %v628_v33 = vrot.slane %v626_v40, 4  ;;  %v5666_v16 = vpop.permute.xlu1 %2243  ;;  %v619_v7 = vor.u32 %v618_v61, %v615_v22  ;;  %v5670_v48 = vpop.permute.xlu0 %2751  ;;  %v5696_v29 = vld [vmem:[%s4307_s25 + $0xc4] sm:$0xf]  ;;  %v650_v40 = vld [vmem:[%s4307_s25 + $0xa8] sm:$0xe] }
 0x12d   : > { %v3981_v11 = vcombine.low %v1774_v32, %v1784_v6  ;;  %v3853_v27 = vrot.slane %v3837_v63, 9  ;;  %v634_v31 = vrot.slane %v632_v38, 5  ;;  %v2007_v13 = vrot.slane %v5592_v52, 5  ;;  %v5715_v6 = vld [vmem:[%s4307_s25 + $0xc8] sm:$0x1] }
 0x12e   : > { %2173 = vrot.lane.b32.xlu1 %v3887_v17, %s4261_s7  ;;  %v629_v41 = vor.u32 %v628_v33, %v624_v42  ;;  %v2010_v59 = vrot.slane %v5631_v43, 5  ;;  %v2865_v34 = vsel %vm2851_vm9, %v2832_v9, %v5483_v12  ;;  %v620_v30 = vrot.slane %v619_v7, 4 }
 0x12f   : > { %2681 = vrot.lane.b32.xlu0 %v3981_v11, %s4264_s10  ;;  %v3696_v23 = vrot.slane %v651_v46, 9  ;;  %v810_v49 = vrot.slane %v5642_v54, 5  ;;  %v2008_v3 = vsel %vm4339_vm3, %v3853_v27, %v2007_v13  ;;  %v2009_v26 = vrot.slane %v2007_v13, 4  ;;  %v3725_v46 = vld [vmem:[%s4307_s25 + $0xb4] sm:$0xf] }
 0x130   : > { %v630_v55 = vrot.slane %v629_v41, 4  ;;  %v813_v52 = vrot.slane %v248_v0, 5  ;;  %v625_v43 = vsel %vm4364_vm6, %v620_v30, %v624_v42  ;;  %v3854_v9 = vrot.slane %v3838_v25, 9  ;;  %v5686_v32 = vpop.permute.xlu1 %2339 }
 0x131   : > { %v811_v37 = vsel %vm4339_vm3, %v3696_v23, %v810_v49  ;;  %v812_v12 = vrot.slane %v810_v49, 4  ;;  %v2011_v4 = vsel %vm4339_vm3, %v2009_v26, %v2010_v59  ;;  %v2014_v47 = vrot.slane %v5545_v1, 5 }
 0x132   : > { %v635_v45 = vsel %vm4364_vm6, %v630_v55, %v634_v31  ;;  %v2017_v0 = vrot.slane %v5568_v10, 5  ;;  %v3997_v20 = vcombine.low %v2008_v3, %v2011_v4  ;;  %v2933_v22 = vsel %vm2917_vm11, %v2900_v60, %v5508_v28  ;;  %v5703_v63 = vpop.permute.xlu0 %2241 }
 0x133   : > { %v3888_v35 = vcombine.low %v625_v43, %v635_v45  ;;  %v814_v5 = vsel %vm4339_vm3, %v812_v12, %v813_v52  ;;  %v2898_v1 = vsel %vm2884_vm10, %v2865_v34, %v5514_v36  ;;  %v2015_v10 = vsel %vm4339_vm3, %v3854_v9, %v2014_v47  ;;  %v5731_v34 = vld [vmem:[%s4307_s25 + $0xb8] sm:$0xf]  ;;  %v3760_v43 = vld [vmem:[%s4307_s25 + $0xc0] sm:$0xe] }
 0x134   : > { %v2016_v8 = vrot.slane %v2014_v47, 4  ;;  %v2966_v18 = vsel %vm2950_vm12, %v2933_v22, %v5540_v62  ;;  %2761 = vrot.lane.b32.xlu0 %v3997_v20, %s4265_s11  ;;  %v3904_v28 = vcombine.low %v811_v37, %v814_v5  ;;  %v1225_v61 = vshrl.u32 %v3727_v2, 16 }
 0x135   : > { %2175 = vrot.lane.b32.xlu1 %v3888_v35, %s4261_s7  ;;  %v1228_v38 = vshll.u32 %v3727_v2, 16  ;;  %v1238_v17 = vshrl.u32 %v5696_v29, 16  ;;  %v3695_v42 = vrot.slane %v650_v40, 9  ;;  %v803_v33 = vrot.slane %v5605_v51, 5 }
 0x136   : > { %v2018_v36 = vsel %vm4339_vm3, %v2016_v8, %v2017_v0  ;;  %v806_v62 = vrot.slane %v5608_v44, 5  ;;  %v2931_v60 = vsel %vm2917_vm11, %v2898_v1, %v5547_v14  ;;  %v1227_v7 = vrot.slane %v1225_v61, 4  ;;  %v5736_v49 = vpop.permute.xlu0 %2337 }
 0x137   : > { %v3998_v11 = vcombine.low %v2015_v10, %v2018_v36  ;;  %v1230_v27 = vrot.slane %v1228_v38, 5  ;;  %v5724_v41 = vpop.permute.xlu1 %2419  ;;  %v3920_v31 = vcombine.low %v3727_v2, %v5696_v29  ;;  %v804_v13 = vsel %vm4339_vm3, %v3695_v42, %v803_v33  ;;  %v4237_v42 = vld [vmem:[%s4307_s25 + $0x6c] sm:$0xf] }
 0x138   : > { %v805_v59 = vrot.slane %v803_v33, 4  ;;  %v1234_v25 = vshll.u32 %v5696_v29, 16  ;;  %v1240_v44 = vrot.slane %v1238_v17, 4  ;;  %v1244_v30 = vshll.u32 %v5715_v6, 16  ;;  %v4238_v33 = vld [vmem:[%s4307_s25 + $0x70] sm:$0xf] }
 0x139   : > { %2255 = vrot.lane.b32.xlu1 %v3904_v28, %s4259_s5  ;;  %2763 = vrot.lane.b32.xlu0 %v3998_v11, %s4265_s11  ;;  %v1231_v14 = vor.u32 %v1230_v27, %v1227_v7  ;;  %v1201_v23 = vshrl.u32 %v3725_v46, 16  ;;  %v5742_v3 = vsel %vm2983_vm14, %v2966_v18, %v5580_v58  ;;  %v1204_v52 = vshll.u32 %v3725_v46, 16 }
 0x13a   : > { %v807_v55 = vsel %vm4339_vm3, %v805_v59, %v806_v62  ;;  %v1236_v26 = vrot.slane %v1234_v25, 5  ;;  %v1214_v45 = vshrl.u32 %v5731_v34, 16  ;;  %v2964_v4 = vsel %vm2950_vm12, %v2931_v60, %v5588_v53  ;;  %v3743_v53 = vld [vmem:[%s4307_s25 + $0xbc] sm:$0x1]  ;;  %v4240_v59 = vld [vmem:[%s4307_s25 + $0x64] sm:$0xf] }
 0x13b   : > { %v3903_v37 = vcombine.low %v804_v13, %v807_v55  ;;  %v1232_v12 = vrot.slane %v1231_v14, 4  ;;  %v1203_v9 = vrot.slane %v1201_v23, 4  ;;  %v1246_v0 = vrot.slane %v1244_v30, 5  ;;  %v5748_v35 = vpop.permute.xlu1 %2499  ;;  %v4239_v13 = vld [vmem:[%s4307_s25 + $0x60] sm:$0xf] }
 0x13c   : > { %v1241_v47 = vor.u32 %v1240_v44, %v1236_v26  ;;  %v1206_v2 = vrot.slane %v1204_v52, 5  ;;  %v3919_v20 = vcombine.low %v3725_v46, %v5731_v34  ;;  %v3776_v22 = vrot.slane %v3760_v43, 9  ;;  %v5773_v46 = vld [vmem:[%s4307_s25 + $0xd0] sm:$0xf] }
 0x13d   : > { %2351 = vrot.lane.b32.xlu1 %v3920_v31, %s4258_s30  ;;  %2253 = vrot.lane.b32.xlu0 %v3903_v37, %s4259_s5  ;;  %v1237_v58 = vsel %vm4364_vm6, %v1232_v12, %v1236_v26  ;;  %v1419_v5 = vrot.slane %v5696_v29, 5  ;;  %v2997_v1 = vsel %vm2983_vm14, %v2964_v4, %v5625_v56  ;;  %v1422_v10 = vrot.slane %v5715_v6, 5  ;;  %v5764_v29 = vld [vmem:[%s4307_s25 + $0xcc] sm:$0xf]  ;;  %v3759_v31 = vld [vmem:[%s4307_s25 + $0xb4] sm:$0xe] }
 0x13e   : > { %v1242_v40 = vrot.slane %v1241_v47, 4  ;;  %v1207_v8 = vor.u32 %v1206_v2, %v1203_v9  ;;  %v1210_v61 = vshll.u32 %v5731_v34, 16  ;;  %v1216_v38 = vrot.slane %v1214_v45, 4  ;;  %v3824_v4 = vld [vmem:[%s4307_s25 + $0xd4] sm:$0x1] }
 0x13f   : > { %v1420_v18 = vsel %vm4339_vm3, %v3776_v22, %v1419_v5  ;;  %v1421_v28 = vrot.slane %v1419_v5, 4  ;;  %v5766_v17 = vpop.permute.xlu0 %2417  ;;  %v1220_v6 = vshll.u32 %v3743_v53, 16  ;;  %v3866_v62 = vcombine.low %v4237_v42, %v4238_v33  ;;  %v5785_v23 = vpop.permute.xlu1 %2595 }
 0x140   : > { %v1247_v56 = vsel %vm4364_vm6, %v1242_v40, %v1246_v0  ;;  %v1208_v36 = vrot.slane %v1207_v8, 4  ;;  %v1212_v7 = vrot.slane %v1210_v61, 5  ;;  %v3030_v27 = vsel %vm3016_vm15, %v2997_v1, %v5644_v21  ;;  %v5811_v8 = vld [vmem:[%s4307_s25 + $0xc4] sm:$0xf] }
 0x141   : > { %v3936_v11 = vcombine.low %v1237_v58, %v1247_v56  ;;  %2349 = vrot.lane.b32.xlu0 %v3919_v20, %s4258_s30  ;;  %v1423_v60 = vsel %vm4339_vm3, %v1421_v28, %v1422_v10  ;;  %v3865_v25 = vcombine.low %v4239_v13, %v4240_v59  ;;  %v1222_v44 = vrot.slane %v1220_v6, 5  ;;  %4124 = vmatprep.mubr.msk.bf16.mxu0 %vm3069_vm0, %v3030_v27  ;;  %v3805_v58 = vld [vmem:[%s4307_s25 + $0xc0] sm:$0xf] }
 0x142   : > { %v3952_v14 = vcombine.low %v1420_v18, %v1423_v60  ;;  %v1834_v30 = vshrl.u32 %v5764_v29, 16  ;;  %v1217_v55 = vor.u32 %v1216_v38, %v1212_v7  ;;  %v2799_v21 = vsel %vm2769_vm7, %v3866_v62, %v5653_v15  ;;  %v3823_v60 = vld [vmem:[%s4307_s25 + $0xc8] sm:$0x1] }
 0x143   : > { %2431 = vrot.lane.b32.xlu1 %v3936_v11, %s4260_s6  ;;  %v1837_v26 = vshll.u32 %v5764_v29, 16  ;;  %v1847_v52 = vshrl.u32 %v5773_v46, 16  ;;  %v5792_v43 = vpop.permute.xlu0 %2497  ;;  %v1213_v37 = vsel %vm4364_vm6, %v1208_v36, %v1212_v7  ;;  %v3775_v9 = vrot.slane %v3759_v31, 9  ;;  %v3840_v36 = vld [vmem:[%s4307_s25 + $0xcc] sm:$0xe] }
 0x144   : > { %v1836_v12 = vrot.slane %v1834_v30, 4  ;;  %v1412_v45 = vrot.slane %v5731_v34, 5  ;;  %v1218_v47 = vrot.slane %v1217_v55, 4  ;;  %v3968_v15 = vcombine.low %v5764_v29, %v5773_v46 }
 0x145   : > { %v1839_v0 = vrot.slane %v1837_v26, 5  ;;  %v1415_v2 = vrot.slane %v3743_v53, 5  ;;  %v3032_v5 = vsel %vm3016_vm15, %v5742_v3, %v5670_v48  ;;  %v1843_v40 = vshll.u32 %v5773_v46, 16 }
 0x146   : > { %v1413_v20 = vsel %vm4339_vm3, %v3775_v9, %v1412_v45  ;;  %v1414_v22 = vrot.slane %v1412_v45, 4  ;;  %v1223_v34 = vsel %vm4364_vm6, %v1218_v47, %v1222_v44  ;;  %v1849_v10 = vrot.slane %v1847_v52, 4  ;;  %4125 = vmatmul.mubr.msk.bf16.gmra.mxu0 %vm3069_vm0, %v3032_v5 }
 0x147   : > { %2511 = vrot.lane.b32.xlu1 %v3952_v14, %s4262_s8  ;;  %v1840_v1 = vor.u32 %v1839_v0, %v1836_v12  ;;  %v1853_v53 = vshll.u32 %v3824_v4, 16  ;;  %v3935_v18 = vcombine.low %v1213_v37, %v1223_v34  ;;  %v1845_v3 = vrot.slane %v1843_v40, 5  ;;  %v5816_v61 = vpop.permute.xlu1 %2675  ;;  %v2594_v6 = vpop.permute.xlu0 %2593 }
 0x148   : > { %v1416_v48 = vsel %vm4339_vm3, %v1414_v22, %v1415_v2  ;;  %v1810_v28 = vshrl.u32 %v3805_v58, 16  ;;  %v1813_v56 = vshll.u32 %v3805_v58, 16  ;;  %v1823_v11 = vshrl.u32 %v5811_v8, 16 }
 0x149   : > { %v3951_v38 = vcombine.low %v1413_v20, %v1416_v48  ;;  %v1841_v29 = vrot.slane %v1840_v1, 4  ;;  %2429 = vrot.lane.b32.xlu0 %v3935_v18, %s4260_s6  ;;  %v1850_v42 = vor.u32 %v1849_v10, %v1845_v3  ;;  %v1855_v33 = vrot.slane %v1853_v53, 5 }
 0x14a   : > { %v1812_v62 = vrot.slane %v1810_v28, 4  ;;  %v2796_v7 = vsel %vm2769_vm7, %v3865_v25, %v5619_v50  ;;  %v2838_v27 = vsel %vm2818_vm8, %v2799_v21, %v5666_v16  ;;  %v1815_v13 = vrot.slane %v1813_v56, 5  ;;  %v3839_v50 = vld [vmem:[%s4307_s25 + $0xc0] sm:$0xe] }
 0x14b   : > { %2607 = vrot.lane.b32.xlu1 %v3968_v15, %s4263_s9  ;;  %v1846_v31 = vsel %vm4364_vm6, %v1841_v29, %v1845_v3  ;;  %v1851_v59 = vrot.slane %v1850_v42, 4  ;;  %v3856_v14 = vrot.slane %v3840_v36, 9  ;;  %v2028_v44 = vrot.slane %v5773_v46, 5 }
 0x14c   : > { %v2031_v30 = vrot.slane %v3824_v4, 5  ;;  %v1816_v55 = vor.u32 %v1815_v13, %v1812_v62  ;;  %v1819_v26 = vshll.u32 %v5811_v8, 16  ;;  %v1825_v52 = vrot.slane %v1823_v11, 4 }
 0x14d   : > { %v1829_v37 = vshll.u32 %v3823_v60, 16  ;;  %2509 = vrot.lane.b32.xlu0 %v3951_v38, %s4262_s8  ;;  %v1856_v16 = vsel %vm4364_vm6, %v1851_v59, %v1855_v33  ;;  %v3967_v25 = vcombine.low %v3805_v58, %v5811_v8  ;;  %v2029_v21 = vsel %vm4339_vm3, %v3856_v14, %v2028_v44  ;;  %v5838_v9 = vpop.permute.xlu1 %2165  ;;  %v4241_v14 = vld [vmem:[%s4307_s25 + $0x78] sm:$0xf] }
 0x14e   : > { %v2030_v12 = vrot.slane %v2028_v44, 4  ;;  %v3984_v46 = vcombine.low %v1846_v31, %v1856_v16  ;;  %v2836_v45 = vsel %vm2818_vm8, %v2796_v7, %v5703_v63  ;;  %v1817_v4 = vrot.slane %v1816_v55, 4  ;;  %v2674_v0 = vpop.permute.xlu0 %2673  ;;  %v4242_v44 = vld [vmem:[%s4307_s25 + $0x7c] sm:$0xf]  ;;  %v4243_v55 = vld [vmem:[%s4307_s25 + $0x84] sm:$0xf] }
 0x14f   : > { %v1821_v47 = vrot.slane %v1819_v26, 5  ;;  %v1831_v2 = vrot.slane %v1829_v37, 5  ;;  %v3855_v20 = vrot.slane %v3839_v50, 9  ;;  %v2021_v58 = vrot.slane %v5811_v8, 5  ;;  %v4244_v26 = vld [vmem:[%s4307_s25 + $0x88] sm:$0xf] }
 0x150   : > { %v2032_v15 = vsel %vm4339_vm3, %v2030_v12, %v2031_v30  ;;  %2687 = vrot.lane.b32.xlu1 %v3984_v46, %s4264_s10  ;;  %v2869_v40 = vsel %vm2851_vm9, %v2836_v45, %v5736_v49  ;;  %v2024_v34 = vrot.slane %v3823_v60, 5  ;;  %v2871_v10 = vsel %vm2851_vm9, %v2838_v27, %v5686_v32 }
 0x151   : > { %v4000_v22 = vcombine.low %v2029_v21, %v2032_v15  ;;  %v1826_v5 = vor.u32 %v1825_v52, %v1821_v47  ;;  %2605 = vrot.lane.b32.xlu0 %v3967_v25, %s4263_s9  ;;  %v2023_v63 = vrot.slane %v2021_v58, 4  ;;  %v2902_v1 = vsel %vm2884_vm10, %v2869_v40, %v5766_v17 }
 0x152   : > { %v1822_v53 = vsel %vm4364_vm6, %v1817_v4, %v1821_v47  ;;  %v2935_v18 = vsel %vm2917_vm11, %v2902_v1, %v5792_v43  ;;  %v2904_v49 = vsel %vm2884_vm10, %v2871_v10, %v5724_v41  ;;  %v2022_v3 = vsel %vm4339_vm3, %v3855_v20, %v2021_v58 }
 0x153   : > { %v1827_v8 = vrot.slane %v1826_v5, 4  ;;  %v2754_v48 = vpop.permute.xlu0 %2753  ;;  %v2968_v28 = vsel %vm2950_vm12, %v2935_v18, %v2594_v6  ;;  %v2025_v38 = vsel %vm4339_vm3, %v2023_v63, %v2024_v34  ;;  %v2937_v43 = vsel %vm2917_vm11, %v2904_v49, %v5748_v35 }
 0x154   : > { %v2168_v17 = vpop.permute.xlu1 %2167  ;;  %2767 = vrot.lane.b32.xlu1 %v4000_v22, %s4265_s11  ;;  %v3001_v29 = vsel %vm2983_vm14, %v2968_v28, %v2674_v0  ;;  %v2970_v56 = vsel %vm2950_vm12, %v2937_v43, %v5785_v23  ;;  %v3871_v24 = vcombine.low %v5599_v39, %v5605_v51  ;;  %v3872_v35 = vcombine.low %v5635_v19, %v5642_v54 }
 0x155   : > { %v1832_v32 = vsel %vm4364_vm6, %v1827_v8, %v1831_v2  ;;  %v3034_v36 = vsel %vm3016_vm15, %v3001_v29, %v2754_v48  ;;  %v3003_v6 = vsel %vm2983_vm14, %v2970_v56, %v5816_v61  ;;  %v3999_v42 = vcombine.low %v2022_v3, %v2025_v38 }
 0x156   : > { %v3983_v41 = vcombine.low %v1822_v53, %v1832_v32  ;;  %4128 = vmatprep.mubr.msk.bf16.mxu1 %vm3069_vm0, %v3034_v36  ;;  %v3867_v30 = vcombine.low %v4241_v14, %v4242_v44  ;;  %v3868_v52 = vcombine.low %v4243_v55, %v4244_v26  ;;  %vm3395_vm1 = vcmask 60416  }
 0x157   : > { %v2756_v57 = vpop.permute.xlu0 %2755  ;;  %vm3499_vm2 = vcmask 57344  }
 0x158   : > { %2685 = vrot.lane.b32.xlu0 %v3983_v41, %s4264_s10  ;;  %v2248_v23 = vpop.permute.xlu1 %2247  ;;  %v3036_v33 = vsel %vm3016_vm15, %v3003_v6, %v2756_v57  ;;  %v2802_v16 = vsel %vm2769_vm7, %v3867_v30, %v5838_v9  ;;  %v2805_v25 = vsel %vm2769_vm7, %v3868_v52, %v2168_v17 }
 0x159   : > { %4129 = vmatmul.mubr.msk.bf16.vlgmr.msra.gmra.mxu1 %vm3069_vm0, %v3036_v33  ;;  %v2842_v45 = vsel %vm2818_vm8, %v2805_v25, %v2248_v23  ;;  %v4246_v25 = vld [vmem:[%s4307_s25 + $0x94] sm:$0xf] }
 0x15c   : > { %2765 = vrot.lane.b32.xlu0 %v3999_v42, %s4265_s11  ;;  %v2344_v61 = vpop.permute.xlu1 %2343 }
 0x15d   : > { %v2246_v62 = vpop.permute.xlu0 %2245  ;;  %v2875_v2 = vsel %vm2851_vm9, %v2842_v45, %v2344_v61 }
 0x15e   : > { %v2840_v21 = vsel %vm2818_vm8, %v2802_v16, %v2246_v62  ;;  %v4245_v16 = vld [vmem:[%s4307_s25 + $0x90] sm:$0xf] }
 0x161   : > { %v2342_v60 = vpop.permute.xlu0 %2341 }
 0x162   : > { %v2424_v11 = vpop.permute.xlu1 %2423  ;;  %v2873_v12 = vsel %vm2851_vm9, %v2840_v21, %v2342_v60  ;;  %v3869_v21 = vcombine.low %v4245_v16, %v4246_v25 }
 0x163   : > { %v2908_v58 = vsel %vm2884_vm10, %v2875_v2, %v2424_v11 }
 0x166   : > { %v2504_v7 = vpop.permute.xlu1 %2503 }
 0x167   : > { %v2941_v5 = vsel %vm2917_vm11, %v2908_v58, %v2504_v7 }
 0x168   : > { %v2422_v27 = vpop.permute.xlu0 %2421 }
 0x169   : > { %v2906_v4 = vsel %vm2884_vm10, %v2873_v12, %v2422_v27  ;;  %v4247_v12 = vld [vmem:[%s4307_s25 + $0x9c] sm:$0xf] }
 0x16a   : > { %v2600_v31 = vpop.permute.xlu1 %2599 }
 0x16b   : > { %v2974_v40 = vsel %vm2950_vm12, %v2941_v5, %v2600_v31 }
 0x16c   : > { %v2502_v13 = vpop.permute.xlu0 %2501 }
 0x16d   : > { %v2939_v47 = vsel %vm2917_vm11, %v2906_v4, %v2502_v13 }
 0x16f   : > { %v2680_v59 = vpop.permute.xlu1 %2679 }
 0x170   : > { %v2598_v37 = vpop.permute.xlu0 %2597  ;;  %v3007_v63 = vsel %vm2983_vm14, %v2974_v40, %v2680_v59 }
 0x171   : > { %v2972_v0 = vsel %vm2950_vm12, %v2939_v47, %v2598_v37 }
 0x177   : > { %v5888_v50 = vpop.permute.xlu1 %2169 }
 0x178   : > { %v2808_v4 = vsel %vm2769_vm7, %v3869_v21, %v5888_v50 }
 0x179   : > { %v2678_v46 = vpop.permute.xlu0 %2677 }
 0x17a   : > { %v3005_v9 = vsel %vm2983_vm14, %v2972_v0, %v2678_v46  ;;  %v4248_v46 = vld [vmem:[%s4307_s25 + $0xa0] sm:$0xf] }
 0x17b   : > { %v3870_v45 = vcombine.low %v4247_v12, %v4248_v46 }
 0x17c   : > { %v5899_v15 = vpop.permute.xlu1 %2171 }
 0x17d   : > { %v2758_v20 = vpop.permute.xlu0 %2757  ;;  %v2811_v47 = vsel %vm2769_vm7, %v3870_v45, %v5899_v15 }
 0x17e   : > { %v3038_v22 = vsel %vm3016_vm15, %v3005_v9, %v2758_v20 }
 0x17f   : > { %4132 = vmatprep.mubr.msk.bf16.mxu1 %vm3069_vm0, %v3038_v22 }
 0x180   : > { %v2252_v34 = vpop.permute.xlu1 %2251 }
 0x181   : > { %v2760_v1 = vpop.permute.xlu0 %2759  ;;  %v2846_v58 = vsel %vm2818_vm8, %v2811_v47, %v2252_v34 }
 0x182   : > { %v3040_v10 = vsel %vm3016_vm15, %v3007_v63, %v2760_v1 }
 0x183   : > { %4133 = vmatmul.mubr.msk.bf16.gmra.mxu1 %vm3069_vm0, %v3040_v10 }
 0x184   : > { %v2348_v53 = vpop.permute.xlu1 %2347 }
 0x185   : > { %v2879_v50 = vsel %vm2851_vm9, %v2846_v58, %v2348_v53 }
 0x187   : > { %v2250_v8 = vpop.permute.xlu0 %2249 }
 0x188   : > { %v2844_v9 = vsel %vm2818_vm8, %v2808_v4, %v2250_v8 }
 0x18b   : > { %v2428_v18 = vpop.permute.xlu1 %2427  ;;  %v2346_v48 = vpop.permute.xlu0 %2345 }
 0x18c   : > { %v4114_v49 = vpop.f32.mrf.mxu0  ;;  %v2877_v20 = vsel %vm2851_vm9, %v2844_v9, %v2346_v48  ;;  %v2912_v10 = vsel %vm2884_vm10, %v2879_v50, %v2428_v18 }
 0x18d   : > { %v4057_v3 = vpack.c.bf16 %v4114_v49, %v4114_v49  ;;  %v3504_v42 = vmul.f32 %v4114_v49, %v4114_v49  ;;  %v3432_v62 = vsel %vm2818_vm8, %v4114_v49, 0.0 }
 0x18e   : > { %v3140_v28 = vpop.f32.mrf.mxu0 }
 0x18f   : > { %v2508_v17 = vpop.permute.xlu1 %2507  ;;  %3398 = vst.msk [vmem:[%s4302_s22 + $0x8] sm:$0xf] %vm3395_vm1, %v4057_v3  ;;  %v4055_v32 = vpack.c.bf16 %v3140_v28, %v3140_v28  ;;  %v3502_v41 = vmul.f32 %v3140_v28, %v3140_v28  ;;  %v3429_v36 = vsel %vm2818_vm8, %v3140_v28, 0.0  ;;  %v3537_v14 = vsel %vm2818_vm8, %v3504_v42, 0.0 }
 0x190   : > { %v4115_v38 = vpop.f32.mrf.mxu0  ;;  %v2945_v48 = vsel %vm2917_vm11, %v2912_v10, %v2508_v17 }
 0x191   : > { %3396 = vst.msk [vmem:[%s4302_s22] sm:$0xf] %vm3395_vm1, %v4055_v32  ;;  %v4058_v43 = vpack.c.bf16 %v4115_v38, %v4115_v38  ;;  %v3534_v60 = vsel %vm2818_vm8, %v3502_v41, 0.0  ;;  %v3505_v7 = vmul.f32 %v4115_v38, %v4115_v38  ;;  %v3434_v13 = vsel %vm2818_vm8, %v4115_v38, 0.0 }
 0x192   : > { %v2426_v29 = vpop.permute.xlu0 %2425  ;;  %v3143_v56 = vpop.f32.mrf.mxu0 }
 0x193   : > { %3399 = vst.msk [vmem:[%s4302_s22 + $0xc] sm:$0xf] %vm3395_vm1, %v4058_v43  ;;  %v4056_v6 = vpack.c.bf16 %v3143_v56, %v3143_v56  ;;  %v3430_v57 = vsel %vm2818_vm8, %v3143_v56, 0.0  ;;  %v3503_v33 = vmul.f32 %v3143_v56, %v3143_v56  ;;  %v2604_v61 = vpop.permute.xlu1 %2603  ;;  %v3539_v55 = vsel %vm2818_vm8, %v3505_v7, 0.0 }
 0x194   : > { %v3431_v23 = vadd.f32 %v3430_v57, %v3429_v36  ;;  %v2910_v22 = vsel %vm2884_vm10, %v2877_v20, %v2426_v29  ;;  %v2978_v34 = vsel %vm2950_vm12, %v2945_v48, %v2604_v61 }
 0x195   : > { %3397 = vst.msk [vmem:[%s4302_s22 + $0x4] sm:$0xf] %vm3395_vm1, %v4056_v6  ;;  %v3535_v31 = vsel %vm2818_vm8, %v3503_v33, 0.0 }
 0x196   : > { %v2506_v11 = vpop.permute.xlu0 %2505  ;;  %v3433_v27 = vadd.f32 %v3432_v62, %v3431_v23  ;;  %v3536_v59 = vadd.f32 %v3535_v31, %v3534_v60 }
 0x197   : > { %v2943_v5 = vsel %vm2917_vm11, %v2910_v22, %v2506_v11 }
 0x198   : > { %v3435_v44 = vadd.f32 %v3434_v13, %v3433_v27  ;;  %v3538_v30 = vadd.f32 %v3537_v14, %v3536_v59 }
 0x199   : > { %v2684_v26 = vpop.permute.xlu1 %2683 }
 0x19a   : > { %v2602_v52 = vpop.permute.xlu0 %2601  ;;  %v3540_v37 = vadd.f32 %v3539_v55, %v3538_v30  ;;  %v3011_v49 = vsel %vm2983_vm14, %v2978_v34, %v2684_v26 }
 0x19b   : > { %v2976_v40 = vsel %vm2950_vm12, %v2943_v5, %v2602_v52 }
 0x1a0   : > { %v5935_v0 = vpop.permute.xlu1 %2173 }
 0x1a1   : > { %v2682_v2 = vpop.permute.xlu0 %2681  ;;  %v2814_v9 = vsel %vm2769_vm7, %v3871_v24, %v5935_v0 }
 0x1a2   : > { %v3009_v63 = vsel %vm2983_vm14, %v2976_v40, %v2682_v2 }
 0x1a6   : > { %v2762_v1 = vpop.permute.xlu0 %2761 }
 0x1a7   : > { %v2176_v15 = vpop.permute.xlu1 %2175  ;;  %v3042_v8 = vsel %vm3016_vm15, %v3009_v63, %v2762_v1 }
 0x1a8   : > { %4136 = vmatprep.mubr.msk.bf16.mxu1 %vm3069_vm0, %v3042_v8  ;;  %v2817_v47 = vsel %vm2769_vm7, %v3872_v35, %v2176_v15 }
 0x1ab   : > { %v2256_v3 = vpop.permute.xlu1 %2255  ;;  %v2764_v28 = vpop.permute.xlu0 %2763 }
 0x1ac   : > { %v3044_v53 = vsel %vm3016_vm15, %v3011_v49, %v2764_v28  ;;  %v2850_v20 = vsel %vm2818_vm8, %v2817_v47, %v2256_v3 }
 0x1ad   : > { %4137 = vmatmul.mubr.msk.bf16.gmra.mxu1 %vm3069_vm0, %v3044_v53 }
 0x1af   : > { %v2352_v32 = vpop.permute.xlu1 %2351  ;;  %v2254_v18 = vpop.permute.xlu0 %2253 }
 0x1b0   : > { %v2848_v58 = vsel %vm2818_vm8, %v2814_v9, %v2254_v18  ;;  %v2883_v40 = vsel %vm2851_vm9, %v2850_v20, %v2352_v32 }
 0x1b3   : > { %v4118_v38 = vpop.f32.mrf.mxu0  ;;  %v2350_v17 = vpop.permute.xlu0 %2349 }
 0x1b4   : > { %v4061_v29 = vpack.c.bf16 %v4118_v38, %v4118_v38  ;;  %v3508_v60 = vmul.f32 %v4118_v38, %v4118_v38  ;;  %v3440_v14 = vsel %vm2818_vm8, %v4118_v38, 0.0  ;;  %v2881_v22 = vsel %vm2851_vm9, %v2848_v58, %v2350_v17 }
 0x1b5   : > { %v2432_v43 = vpop.permute.xlu1 %2431  ;;  %v3156_v41 = vpop.f32.mrf.mxu0 }
 0x1b6   : > { %3402 = vst.msk [vmem:[%s4302_s22 + $0x18] sm:$0xf] %vm3395_vm1, %v4061_v29  ;;  %v4059_v56 = vpack.c.bf16 %v3156_v41, %v3156_v41  ;;  %v3436_v36 = vsel %vm2818_vm8, %v3156_v41, 0.0  ;;  %v3506_v6 = vmul.f32 %v3156_v41, %v3156_v41  ;;  %v3545_v52 = vsel %vm2818_vm8, %v3508_v60, 0.0 }
 0x1b7   : > { %v3437_v57 = vadd.f32 %v3436_v36, %v3435_v44  ;;  %v4119_v42 = vpop.f32.mrf.mxu0  ;;  %v2916_v54 = vsel %vm2884_vm10, %v2883_v40, %v2432_v43 }
 0x1b8   : > { %3400 = vst.msk [vmem:[%s4302_s22 + $0x10] sm:$0xf] %vm3395_vm1, %v4059_v56  ;;  %v3541_v23 = vsel %vm2818_vm8, %v3506_v6, 0.0  ;;  %v4062_v33 = vpack.c.bf16 %v4119_v42, %v4119_v42  ;;  %v3509_v44 = vmul.f32 %v4119_v42, %v4119_v42 }
 0x1b9   : > { %v3542_v61 = vadd.f32 %v3541_v23, %v3540_v37  ;;  %v3159_v62 = vpop.f32.mrf.mxu0  ;;  %v2512_v11 = vpop.permute.xlu1 %2511  ;;  %v3442_v37 = vsel %vm2818_vm8, %v4119_v42, 0.0 }
 0x1ba   : > { %3403 = vst.msk [vmem:[%s4302_s22 + $0x1c] sm:$0xf] %vm3395_vm1, %v4062_v33  ;;  %v4060_v7 = vpack.c.bf16 %v3159_v62, %v3159_v62  ;;  %v3438_v27 = vsel %vm2818_vm8, %v3159_v62, 0.0  ;;  %v3507_v31 = vmul.f32 %v3159_v62, %v3159_v62  ;;  %v3547_v46 = vsel %vm2818_vm8, %v3509_v44, 0.0 }
 0x1bb   : > { %v2430_v13 = vpop.permute.xlu0 %2429  ;;  %v3439_v59 = vadd.f32 %v3438_v27, %v3437_v57  ;;  %v2949_v39 = vsel %vm2917_vm11, %v2916_v54, %v2512_v11 }
 0x1bc   : > { %3401 = vst.msk [vmem:[%s4302_s22 + $0x14] sm:$0xf] %vm3395_vm1, %v4060_v7  ;;  %v3543_v30 = vsel %vm2818_vm8, %v3507_v31, 0.0  ;;  %v2914_v19 = vsel %vm2884_vm10, %v2881_v22, %v2430_v13 }
 0x1bd   : > { %v3441_v55 = vadd.f32 %v3440_v14, %v3439_v59  ;;  %v3544_v26 = vadd.f32 %v3543_v30, %v3542_v61  ;;  %v2608_v12 = vpop.permute.xlu1 %2607 }
 0x1be   : > { %v2982_v0 = vsel %vm2950_vm12, %v2949_v39, %v2608_v12 }
 0x1bf   : > { %v2510_v16 = vpop.permute.xlu0 %2509  ;;  %v3546_v25 = vadd.f32 %v3545_v52, %v3544_v26  ;;  %v3443_v21 = vadd.f32 %v3442_v37, %v3441_v55 }
 0x1c0   : > { %v2947_v35 = vsel %vm2917_vm11, %v2914_v19, %v2510_v16 }
 0x1c1   : > { %v3548_v45 = vadd.f32 %v3547_v46, %v3546_v25 }
 0x1c2   : > { %v2688_v2 = vpop.permute.xlu1 %2687 }
 0x1c3   : > { %v2606_v4 = vpop.permute.xlu0 %2605  ;;  %v3015_v15 = vsel %vm2983_vm14, %v2982_v0, %v2688_v2 }
 0x1c4   : > { %v2980_v51 = vsel %vm2950_vm12, %v2947_v35, %v2606_v4 }
 0x1c6   : > { %v2768_v24 = vpop.permute.xlu1 %2767 }
 0x1c7   : > { %v3048_v10 = vsel %vm3016_vm15, %v3015_v15, %v2768_v24 }
 0x1ca   : > { %v2686_v5 = vpop.permute.xlu0 %2685 }
 0x1cb   : > { %v3013_v50 = vsel %vm2983_vm14, %v2980_v51, %v2686_v5 }
 0x1ce   : > { %v2766_v63 = vpop.permute.xlu0 %2765 }
 0x1cf   : > { %v3046_v1 = vsel %vm3016_vm15, %v3013_v50, %v2766_v63 }
 0x1d0   : > { %4140 = vmatprep.mubr.msk.bf16.mxu1 %vm3069_vm0, %v3046_v1 }
 0x1d1   : > { %4141 = vmatmul.mubr.msk.bf16.gmra.mxu1 %vm3069_vm0, %v3048_v10 }
 0x1dd   : > { %v4122_v8 = vpop.f32.mrf.mxu0 }
 0x1de   : > { %v4065_v48 = vpack.c.bf16 %v4122_v8, %v4122_v8  ;;  %v3512_v17 = vmul.f32 %v4122_v8, %v4122_v8  ;;  %v3448_v57 = vsel %vm2818_vm8, %v4122_v8, 0.0 }
 0x1df   : > { %v3172_v34 = vpop.f32.mrf.mxu0 }
 0x1e0   : > { %3406 = vst.msk [vmem:[%s4302_s22 + $0x28] sm:$0xf] %vm3395_vm1, %v4065_v48  ;;  %v4063_v49 = vpack.c.bf16 %v3172_v34, %v3172_v34  ;;  %v3444_v3 = vsel %vm2818_vm8, %v3172_v34, 0.0  ;;  %v3510_v28 = vmul.f32 %v3172_v34, %v3172_v34  ;;  %v3553_v62 = vsel %vm2818_vm8, %v3512_v17, 0.0 }
 0x1e1   : > { %v3445_v53 = vadd.f32 %v3444_v3, %v3443_v21  ;;  %v4123_v32 = vpop.f32.mrf.mxu0 }
 0x1e2   : > { %3404 = vst.msk [vmem:[%s4302_s22 + $0x20] sm:$0xf] %vm3395_vm1, %v4063_v49  ;;  %v3549_v18 = vsel %vm2818_vm8, %v3510_v28, 0.0  ;;  %v4066_v38 = vpack.c.bf16 %v4123_v32, %v4123_v32  ;;  %v3513_v42 = vmul.f32 %v4123_v32, %v4123_v32  ;;  %v3450_v11 = vsel %vm2818_vm8, %v4123_v32, 0.0 }
 0x1e3   : > { %v3550_v43 = vadd.f32 %v3549_v18, %v3548_v45  ;;  %v3175_v29 = vpop.f32.mrf.mxu0 }
 0x1e4   : > { %3407 = vst.msk [vmem:[%s4302_s22 + $0x2c] sm:$0xf] %vm3395_vm1, %v4066_v38  ;;  %v4064_v41 = vpack.c.bf16 %v3175_v29, %v3175_v29  ;;  %v3446_v56 = vsel %vm2818_vm8, %v3175_v29, 0.0  ;;  %v3511_v36 = vmul.f32 %v3175_v29, %v3175_v29  ;;  %v3555_v27 = vsel %vm2818_vm8, %v3513_v42, 0.0 }
 0x1e5   : > { %v3447_v6 = vadd.f32 %v3446_v56, %v3445_v53 }
 0x1e6   : > { %3405 = vst.msk [vmem:[%s4302_s22 + $0x24] sm:$0xf] %vm3395_vm1, %v4064_v41  ;;  %v3551_v23 = vsel %vm2818_vm8, %v3511_v36, 0.0 }
 0x1e7   : > { %v3449_v33 = vadd.f32 %v3448_v57, %v3447_v6  ;;  %v3552_v61 = vadd.f32 %v3551_v23, %v3550_v43 }
 0x1e9   : > { %v3554_v60 = vadd.f32 %v3553_v62, %v3552_v61  ;;  %v3451_v7 = vadd.f32 %v3450_v11, %v3449_v33 }
 0x1eb   : > { %v3556_v31 = vadd.f32 %v3555_v27, %v3554_v60 }
 0x206   : > { %v4126_v13 = vpop.f32.mrf.mxu0 }
 0x207   : > { %v4069_v59 = vpack.c.bf16 %v4126_v13, %v4126_v13  ;;  %v3516_v12 = vmul.f32 %v4126_v13, %v4126_v13  ;;  %v3456_v2 = vsel %vm2818_vm8, %v4126_v13, 0.0 }
 0x208   : > { %v3188_v14 = vpop.f32.mrf.mxu0 }
 0x209   : > { %3410 = vst.msk [vmem:[%s4302_s22 + $0x38] sm:$0xf] %vm3395_vm1, %v4069_v59  ;;  %v4067_v44 = vpack.c.bf16 %v3188_v14, %v3188_v14  ;;  %v3452_v30 = vsel %vm2818_vm8, %v3188_v14, 0.0  ;;  %v3514_v55 = vmul.f32 %v3188_v14, %v3188_v14  ;;  %v3561_v5 = vsel %vm2818_vm8, %v3516_v12, 0.0 }
 0x20a   : > { %v3453_v26 = vadd.f32 %v3452_v30, %v3451_v7  ;;  %v4127_v52 = vpop.f32.mrf.mxu0 }
 0x20b   : > { %3408 = vst.msk [vmem:[%s4302_s22 + $0x30] sm:$0xf] %vm3395_vm1, %v4067_v44  ;;  %v3557_v37 = vsel %vm2818_vm8, %v3514_v55, 0.0  ;;  %v4070_v16 = vpack.c.bf16 %v4127_v52, %v4127_v52  ;;  %v3517_v9 = vmul.f32 %v4127_v52, %v4127_v52  ;;  %v3458_v40 = vsel %vm2818_vm8, %v4127_v52, 0.0 }
 0x20c   : > { %v3558_v25 = vadd.f32 %v3557_v37, %v3556_v31  ;;  %v3191_v21 = vpop.f32.mrf.mxu0 }
 0x20d   : > { %3411 = vst.msk [vmem:[%s4302_s22 + $0x3c] sm:$0xf] %vm3395_vm1, %v4070_v16  ;;  %v4068_v46 = vpack.c.bf16 %v3191_v21, %v3191_v21  ;;  %v3454_v45 = vsel %vm2818_vm8, %v3191_v21, 0.0  ;;  %v3515_v4 = vmul.f32 %v3191_v21, %v3191_v21  ;;  %v3563_v35 = vsel %vm2818_vm8, %v3517_v9, 0.0 }
 0x20e   : > { %v3455_v47 = vadd.f32 %v3454_v45, %v3453_v26 }
 0x20f   : > { %3409 = vst.msk [vmem:[%s4302_s22 + $0x34] sm:$0xf] %vm3395_vm1, %v4068_v46  ;;  %v3559_v20 = vsel %vm2818_vm8, %v3515_v4, 0.0 }
 0x210   : > { %v3457_v58 = vadd.f32 %v3456_v2, %v3455_v47  ;;  %v3560_v22 = vadd.f32 %v3559_v20, %v3558_v25 }
 0x212   : > { %v3562_v19 = vadd.f32 %v3561_v5, %v3560_v22  ;;  %v3459_v54 = vadd.f32 %v3458_v40, %v3457_v58 }
 0x214   : > { %v3564_v39 = vadd.f32 %v3563_v35, %v3562_v19 }
 0x219   : > { %v4130_v51 = vpop.f32.mrf.mxu1 }
 0x21a   : > { %v4073_v24 = vpack.c.bf16 %v4130_v51, %v4130_v51  ;;  %v3520_v3 = vmul.f32 %v4130_v51, %v4130_v51  ;;  %v3464_v38 = vsel %vm2818_vm8, %v4130_v51, 0.0 }
 0x21b   : > { %v3204_v0 = vpop.f32.mrf.mxu1 }
 0x21c   : > { %3414 = vst.msk [vmem:[%s4302_s22 + $0x48] sm:$0xf] %vm3395_vm1, %v4073_v24  ;;  %v4071_v50 = vpack.c.bf16 %v3204_v0, %v3204_v0  ;;  %v3460_v63 = vsel %vm2818_vm8, %v3204_v0, 0.0  ;;  %v3518_v15 = vmul.f32 %v3204_v0, %v3204_v0  ;;  %v3569_v56 = vsel %vm2818_vm8, %v3520_v3, 0.0 }
 0x21d   : > { %v3461_v1 = vadd.f32 %v3460_v63, %v3459_v54  ;;  %v4131_v10 = vpop.f32.mrf.mxu1 }
 0x21e   : > { %3412 = vst.msk [vmem:[%s4302_s22 + $0x40] sm:$0xf] %vm3395_vm1, %v4071_v50  ;;  %v3565_v8 = vsel %vm2818_vm8, %v3518_v15, 0.0  ;;  %v4074_v48 = vpack.c.bf16 %v4131_v10, %v4131_v10  ;;  %v3521_v43 = vmul.f32 %v4131_v10, %v4131_v10  ;;  %v3466_v36 = vsel %vm2818_vm8, %v4131_v10, 0.0 }
 0x21f   : > { %v3566_v34 = vadd.f32 %v3565_v8, %v3564_v39  ;;  %v3207_v49 = vpop.f32.mrf.mxu1 }
 0x220   : > { %3415 = vst.msk [vmem:[%s4302_s22 + $0x4c] sm:$0xf] %vm3395_vm1, %v4074_v48  ;;  %v4072_v28 = vpack.c.bf16 %v3207_v49, %v3207_v49  ;;  %v3462_v53 = vsel %vm2818_vm8, %v3207_v49, 0.0  ;;  %v3519_v32 = vmul.f32 %v3207_v49, %v3207_v49  ;;  %v3571_v42 = vsel %vm2818_vm8, %v3521_v43, 0.0 }
 0x221   : > { %v3463_v18 = vadd.f32 %v3462_v53, %v3461_v1 }
 0x222   : > { %3413 = vst.msk [vmem:[%s4302_s22 + $0x44] sm:$0xf] %vm3395_vm1, %v4072_v28  ;;  %v3567_v29 = vsel %vm2818_vm8, %v3519_v32, 0.0 }
 0x223   : > { %v3465_v17 = vadd.f32 %v3464_v38, %v3463_v18  ;;  %v3568_v41 = vadd.f32 %v3567_v29, %v3566_v34 }
 0x225   : > { %v3570_v6 = vadd.f32 %v3569_v56, %v3568_v41  ;;  %v3467_v57 = vadd.f32 %v3466_v36, %v3465_v17 }
 0x227   : > { %v3572_v23 = vadd.f32 %v3571_v42, %v3570_v6 }
 0x243   : > { %v4134_v33 = vpop.f32.mrf.mxu1 }
 0x244   : > { %v4077_v61 = vpack.c.bf16 %v4134_v33, %v4134_v33  ;;  %v3524_v44 = vmul.f32 %v4134_v33, %v4134_v33  ;;  %v3472_v16 = vsel %vm2818_vm8, %v4134_v33, 0.0 }
 0x245   : > { %v3220_v62 = vpop.f32.mrf.mxu1 }
 0x246   : > { %3418 = vst.msk [vmem:[%s4302_s22 + $0x58] sm:$0xf] %vm3395_vm1, %v4077_v61  ;;  %v4075_v11 = vpack.c.bf16 %v3220_v62, %v3220_v62  ;;  %v3468_v60 = vsel %vm2818_vm8, %v3220_v62, 0.0  ;;  %v3522_v7 = vmul.f32 %v3220_v62, %v3220_v62  ;;  %v3577_v45 = vsel %vm2818_vm8, %v3524_v44, 0.0 }
 0x247   : > { %v4135_v27 = vpop.f32.mrf.mxu1  ;;  %v3469_v59 = vadd.f32 %v3468_v60, %v3467_v57 }
 0x248   : > { %3416 = vst.msk [vmem:[%s4302_s22 + $0x50] sm:$0xf] %vm3395_vm1, %v4075_v11  ;;  %v3573_v31 = vsel %vm2818_vm8, %v3522_v7, 0.0  ;;  %v4078_v13 = vpack.c.bf16 %v4135_v27, %v4135_v27  ;;  %v3525_v25 = vmul.f32 %v4135_v27, %v4135_v27  ;;  %v3474_v4 = vsel %vm2818_vm8, %v4135_v27, 0.0 }
 0x249   : > { %v3223_v14 = vpop.f32.mrf.mxu1  ;;  %v3574_v52 = vadd.f32 %v3573_v31, %v3572_v23 }
 0x24a   : > { %3419 = vst.msk [vmem:[%s4302_s22 + $0x5c] sm:$0xf] %vm3395_vm1, %v4078_v13  ;;  %v4076_v30 = vpack.c.bf16 %v3223_v14, %v3223_v14  ;;  %v3470_v55 = vsel %vm2818_vm8, %v3223_v14, 0.0  ;;  %v3523_v26 = vmul.f32 %v3223_v14, %v3223_v14  ;;  %v3579_v9 = vsel %vm2818_vm8, %v3525_v25, 0.0 }
 0x24b   : > { %v3471_v37 = vadd.f32 %v3470_v55, %v3469_v59 }
 0x24c   : > { %3417 = vst.msk [vmem:[%s4302_s22 + $0x54] sm:$0xf] %vm3395_vm1, %v4076_v30  ;;  %v3575_v21 = vsel %vm2818_vm8, %v3523_v26, 0.0 }
 0x24d   : > { %v3473_v12 = vadd.f32 %v3472_v16, %v3471_v37  ;;  %v3576_v46 = vadd.f32 %v3575_v21, %v3574_v52 }
 0x24f   : > { %v3578_v47 = vadd.f32 %v3577_v45, %v3576_v46  ;;  %v3475_v2 = vadd.f32 %v3474_v4, %v3473_v12 }
 0x251   : > { %v3580_v20 = vadd.f32 %v3579_v9, %v3578_v47 }
 0x26d   : > { %v4138_v58 = vpop.f32.mrf.mxu1 }
 0x26e   : > { %v4081_v22 = vpack.c.bf16 %v4138_v58, %v4138_v58  ;;  %v3528_v48 = vmul.f32 %v4138_v58, %v4138_v58  ;;  %v3480_v49 = vsel %vm2818_vm8, %v4138_v58, 0.0 }
 0x26f   : > { %v3236_v5 = vpop.f32.mrf.mxu1 }
 0x270   : > { %3422 = vst.msk [vmem:[%s4302_s22 + $0x68] sm:$0xf] %vm3395_vm1, %v4081_v22  ;;  %v4079_v40 = vpack.c.bf16 %v3236_v5, %v3236_v5  ;;  %v3526_v51 = vmul.f32 %v3236_v5, %v3236_v5  ;;  %v3476_v24 = vsel %vm2818_vm8, %v3236_v5, 0.0  ;;  %v3585_v53 = vsel %vm2818_vm8, %v3528_v48, 0.0  ;;  %v3428_v22 = vld [vmem:[%s6108_s3] sm:$0x1] }
 0x271   : > { %v4139_v19 = vpop.f32.mrf.mxu1  ;;  %v3477_v15 = vadd.f32 %v3476_v24, %v3475_v2 }
 0x272   : > { %3420 = vst.msk [vmem:[%s4302_s22 + $0x60] sm:$0xf] %vm3395_vm1, %v4079_v40  ;;  %v4082_v54 = vpack.c.bf16 %v4139_v19, %v4139_v19  ;;  %v3581_v50 = vsel %vm2818_vm8, %v3526_v51, 0.0  ;;  %v3529_v32 = vmul.f32 %v4139_v19, %v4139_v19  ;;  %v3482_v29 = vsel %vm2818_vm8, %v4139_v19, 0.0  ;;  %v3501_v19 = vld [vmem:[%s6109_s4] sm:$0x1] }
 0x273   : > { %v3239_v35 = vpop.f32.mrf.mxu1  ;;  %v3582_v10 = vadd.f32 %v3581_v50, %v3580_v20 }
 0x274   : > { %3423 = vst.msk [vmem:[%s4302_s22 + $0x6c] sm:$0xf] %vm3395_vm1, %v4082_v54  ;;  %v4080_v39 = vpack.c.bf16 %v3239_v35, %v3239_v35  ;;  %v3527_v0 = vmul.f32 %v3239_v35, %v3239_v35  ;;  %v3478_v63 = vsel %vm2818_vm8, %v3239_v35, 0.0  ;;  %v3587_v57 = vsel %vm2818_vm8, %v3529_v32, 0.0 }
 0x275   : > { %v3479_v8 = vadd.f32 %v3478_v63, %v3477_v15 }
 0x276   : > { %3421 = vst.msk [vmem:[%s4302_s22 + $0x64] sm:$0xf] %vm3395_vm1, %v4080_v39  ;;  %v3583_v1 = vsel %vm2818_vm8, %v3527_v0, 0.0 }
 0x277   : > { %v3584_v34 = vadd.f32 %v3583_v1, %v3582_v10  ;;  %v3481_v3 = vadd.f32 %v3480_v49, %v3479_v8 }
 0x279   : > { %v3586_v38 = vadd.f32 %v3585_v53, %v3584_v34  ;;  %v3483_v36 = vadd.f32 %v3482_v29, %v3481_v3 }
 0x27b   : > { %v3588_v61 = vadd.f32 %v3587_v57, %v3586_v38 }
 0x291   : > { %v4142_v28 = vpop.f32.mrf.mxu1 }
 0x292   : > { %v4085_v18 = vpack.c.bf16 %v4142_v28, %v4142_v28  ;;  %v3532_v11 = vmul.f32 %v4142_v28, %v4142_v28  ;;  %v3488_v59 = vsel %vm2818_vm8, %v4142_v28, 0.0 }
 0x293   : > { %v3252_v43 = vpop.f32.mrf.mxu1 }
 0x294   : > { %3426 = vst.msk [vmem:[%s4302_s22 + $0x78] sm:$0xf] %vm3395_vm1, %v4085_v18  ;;  %v4083_v17 = vpack.c.bf16 %v3252_v43, %v3252_v43  ;;  %v3484_v41 = vsel %vm2818_vm8, %v3252_v43, 0.0  ;;  %v3530_v56 = vmul.f32 %v3252_v43, %v3252_v43  ;;  %v3593_v26 = vsel %vm2818_vm8, %v3532_v11, 0.0 }
 0x295   : > { %v4143_v6 = vpop.f32.mrf.mxu1  ;;  %v3485_v33 = vadd.f32 %v3484_v41, %v3483_v36 }
 0x296   : > { %3424 = vst.msk [vmem:[%s4302_s22 + $0x70] sm:$0xf] %vm3395_vm1, %v4083_v17  ;;  %v3589_v42 = vsel %vm2818_vm8, %v3530_v56, 0.0  ;;  %v4086_v23 = vpack.c.bf16 %v4143_v6, %v4143_v6  ;;  %v3533_v14 = vmul.f32 %v4143_v6, %v4143_v6  ;;  %v3490_v52 = vsel %vm2818_vm8, %v4143_v6, 0.0 }
 0x297   : > { %v3255_v62 = vpop.f32.mrf.mxu1  ;;  %v3590_v31 = vadd.f32 %v3589_v42, %v3588_v61 }
 0x298   : > { %3427 = vst.msk [vmem:[%s4302_s22 + $0x7c] sm:$0xf] %vm3395_vm1, %v4086_v23  ;;  %v4084_v60 = vpack.c.bf16 %v3255_v62, %v3255_v62  ;;  %v3486_v7 = vsel %vm2818_vm8, %v3255_v62, 0.0  ;;  %v3531_v27 = vmul.f32 %v3255_v62, %v3255_v62  ;;  %v3595_v25 = vsel %vm2818_vm8, %v3533_v14, 0.0 }
 0x299   : > { %v3487_v13 = vadd.f32 %v3486_v7, %v3485_v33 }
 0x29a   : > { %3425 = vst.msk [vmem:[%s4302_s22 + $0x74] sm:$0xf] %vm3395_vm1, %v4084_v60  ;;  %v3591_v44 = vsel %vm2818_vm8, %v3531_v27, 0.0 }
 0x29b   : > { %v3489_v30 = vadd.f32 %v3488_v59, %v3487_v13  ;;  %v3592_v55 = vadd.f32 %v3591_v44, %v3590_v31 }
 0x29d   : > { %v3491_v37 = vadd.f32 %v3490_v52, %v3489_v30  ;;  %v3594_v16 = vadd.f32 %v3593_v26, %v3592_v55 }
 0x29f   : > { %v3492_v21 = vrot.slane %v3491_v37, 4  ;;  %v3596_v12 = vadd.f32 %v3595_v25, %v3594_v16 }
 0x2a1   : > { %v3493_v46 = vadd.f32 %v3492_v21, %v3491_v37  ;;  %v3597_v45 = vrot.slane %v3596_v12, 4 }
 0x2a3   : > { %v3494_v4 = vrot.slane %v3493_v46, 2  ;;  %v3598_v47 = vadd.f32 %v3597_v45, %v3596_v12 }
 0x2a5   : > { %v3495_v2 = vadd.f32 %v3494_v4, %v3493_v46  ;;  %v3599_v9 = vrot.slane %v3598_v47, 2 }
 0x2a7   : > { %v3496_v20 = vrot.slane %v3495_v2, 1  ;;  %v3600_v58 = vadd.f32 %v3599_v9, %v3598_v47 }
 0x2a9   : > { %v3497_v5 = vadd.f32 %v3496_v20, %v3495_v2  ;;  %v3601_v40 = vrot.slane %v3600_v58, 1 }
 0x2ab   : > { %v3498_v54 = vadd.f32 %v3497_v5, %v3428_v22  ;;  %v3602_v35 = vadd.f32 %v3601_v40, %v3600_v58 }
 0x2ad   : > { %3500 = vst.msk [vmem:[%s6108_s3] sm:$0x1] %vm3499_vm2, %v3498_v54  ;;  %v3603_v39 = vadd.f32 %v3602_v35, %v3501_v19 }
 0x2af   : > { %3604 = vst.msk [vmem:[%s6109_s4] sm:$0x1] %vm3499_vm2, %v3603_v39 }
 0x2b0 PF: > { %s15_s15 = sadd.s32 1, %s4255_s15  }
 0x2b1   : > { %p12_p5 = scmp.ge.s32.totalorder %s15_s15, 4  }
 0x2b3   :  { %14 = sbr.rel (!%p12_p5) target bundleno = 1 (0x1), region = 80 }

// kernel: basic_block_forward.7
= control target key start
LH: loop header
LB: loop body
LE: loop exit
PB: predicated region body
PF: predicated region fallthrough
CT: control target
= control target key end

     0   :  { %s4321_s15 = smov 0   ;;  %s6144_s0 = inlined_call_operand.vmem [shape: bf16[2,18,18,8], index: 0, kind: input, shape index: {}]   ;;  %s6145_s1 = inlined_call_operand.vmem [shape: bf16[72,8], index: 1, kind: input, shape index: {}]   ;;  %s6146_s2 = inlined_call_operand.vmem [shape: bf16[2,256,8], index: 2, kind: output, shape index: {0}]   ;;  %s6147_s3 = inlined_call_operand.vmem [shape: f32[1,8], index: 3, kind: output, shape index: {1}]   ;;  %s6148_s4 = inlined_call_operand.vmem [shape: f32[1,8], index: 4, kind: output, shape index: {2}]  }
   0x1 LB: > { %s3688_s16 = sadd.s32 4294967295, %s4285_s15   ;;  %p3692_p0 = scmp.ge.s32.totalorder %s4285_s15, 1  ;;  %s4285_s15 = sphi %s4321_s15, %s15_s15  }
   0x2   : > { %p157_p1 = scmp.lt.s32.totalorder %s4285_s15, 3 }
   0x4   : > { %p158_p2 = pnand %p3692_p0, %p157_p1 }
   0x5   : > { %p183_p3 = scmp.lt.s32.totalorder (!%p158_p2), %s3688_s16, 1  ;;  %p3696_p4 = scmp.ne.s32.totalorder (!%p158_p2), %s3688_s16, 0 }
   0x6   : > { %161 = sbr.rel (%p158_p2) target bundleno = 688 (0x2b0), region = 28 }
   0xb   : > { %s184_s17 = scalar_select %p183_p3, %s3688_s16, 1 }
   0xc   : > { %197 = sbr.rel (%p3696_p4) target bundleno = 19 (0x13), region = 32 }
   0xd   : > { %s4180_s18 = smul.u32 216, %s184_s17  ;;  %s4072_s19 = sshll.u32 %s184_s17, 7 }
   0xe   : > { %s4332_s22 = scalar_lea.vmem %s6146_s2, %s4072_s19 }
   0xf   : > { %s4337_s25 = scalar_lea.vmem %s6144_s0, %s4180_s18 }
  0x11   : > { %vm198_vm0 = vcmask 57344   ;;  %v4287_v0 = vmov 0.0  }
  0x12   : > { %199 = vst.msk [vmem:[%s6147_s3] sm:$0x1] %vm198_vm0, %v4287_v0  ;;  %200 = vst.msk [vmem:[%s6148_s4] sm:$0x1] %vm198_vm0, %v4287_v0 }
  0x13 PF: > { %v3715_v1 = vld [vmem:[%s4337_s25 + $0x18] sm:$0xf]  ;;  %v4347_v2 = vld [vmem:[%s4337_s25 + $0x1c] sm:$0xf]  ;;  %vm700_vm1 = vcmask 1042432   ;;  %vm701_vm2 = vcmask 1046532  }
  0x14   : > { %v898_v3 = vshll.u32 %v4347_v2, 16  ;;  %v902_v4 = vshrl.u32 %v4347_v2, 16  ;;  %v3922_v5 = vcombine.low %v3715_v1, %v4347_v2  ;;  %v889_v6 = vshrl.u32 %v3715_v1, 16  ;;  %v3713_v7 = vld [vmem:[%s4337_s25 + $0xc] sm:$0xf]  ;;  %s4288_s30 = smov 24   ;;  %vm4369_vm3 = vmor %vm700_vm1, %vm701_vm2 }
  0x15   : > { %v892_v8 = vshll.u32 %v3715_v1, 16  ;;  %v4354_v9 = vld [vmem:[%s4337_s25 + $0x10] sm:$0xf]  ;;  %v865_v10 = vshrl.u32 %v3713_v7, 16  ;;  %v868_v11 = vshll.u32 %v3713_v7, 16  ;;  %s4289_s5 = smov 16  }
  0x16   : > { %v4356_v12 = vrot.slane %v902_v4, 4  ;;  %2323 = vrot.lane.b32.xlu1 %v3922_v5, %s4288_s30  ;;  %v891_v13 = vrot.slane %v889_v6, 4  ;;  %v874_v14 = vshll.u32 %v4354_v9, 16  ;;  %v878_v15 = vshrl.u32 %v4354_v9, 16  ;;  %v202_v16 = vld [vmem:[%s4337_s25 + $0x4] sm:$0xf] }
  0x17   : > { %v894_v17 = vrot.slane %v892_v8, 5  ;;  %v3921_v18 = vcombine.low %v3713_v7, %v4354_v9  ;;  %v867_v19 = vrot.slane %v865_v10, 4  ;;  %v870_v20 = vrot.slane %v868_v11, 5  ;;  %v233_v21 = vld [vmem:[%s4337_s25 + $0x8] sm:$0x1]  ;;  %s4290_s6 = smov 32  }
  0x18   : > { %v4364_v22 = vrot.slane %v878_v15, 4  ;;  %v636_v23 = vld [vmem:[%s4337_s25] sm:$0xe]  ;;  %v705_v25 = vrot.slane %v202_v16, 5  ;;  %v708_v26 = vrot.slane %v233_v21, 5  ;;  %v262_v27 = vshll.u32 %v202_v16, 16 }
  0x19   : > { %v895_v28 = vor.u32 %v894_v17, %v891_v13  ;;  %2321 = vrot.lane.b32.xlu0 %v3921_v18, %s4288_s30  ;;  %v871_v29 = vor.u32 %v870_v20, %v867_v19  ;;  %v3697_v30 = vrot.slane %v636_v23, 9  ;;  %v204_v31 = vld [vmem:[%s4337_s25 + $0x10] sm:$0xf]  ;;  %v234_v32 = vld [vmem:[%s4337_s25 + $0x14] sm:$0x1]  ;;  %v266_v33 = vshrl.u32 %v202_v16, 16 }
  0x1a   : > { %v707_v34 = vrot.slane %v705_v25, 4  ;;  %v637_v35 = vld [vmem:[%s4337_s25 + $0xc] sm:$0xe]  ;;  %v712_v36 = vrot.slane %v204_v31, 5  ;;  %v715_v37 = vrot.slane %v234_v32, 5  ;;  %v264_v38 = vrot.slane %v262_v27, 5 }
  0x1b   : > { %v896_v39 = vrot.slane %v895_v28, 4  ;;  %v4377_v40 = vrot.slane %v871_v29, 4  ;;  %v706_v41 = vsel %vm4369_vm3, %v3697_v30, %v705_v25  ;;  %v3698_v42 = vrot.slane %v637_v35, 9  ;;  %v201_v43 = vld [vmem:[%s4337_s25] sm:$0xf]  ;;  %s4291_s7 = smov 8  }
  0x1c   : > { %v709_v44 = vsel %vm4369_vm3, %v707_v34, %v708_v26  ;;  %v714_v45 = vrot.slane %v712_v36, 4  ;;  %vm249_vm4 = vsmask.f32 3328  ;;  %vm250_vm5 = vsmask.f32 7440  ;;  %s4292_s8 = smov 40  }
  0x1d   : > { %v3905_v46 = vcombine.low %v706_v41, %v709_v44  ;;  %v713_v47 = vsel %vm4369_vm3, %v3698_v42, %v712_v36  ;;  %v253_v48 = vshrl.u32 %v201_v43, 16  ;;  %v256_v49 = vshll.u32 %v201_v43, 16  ;;  %v4387_v50 = vld [vmem:[%s4337_s25 + $0x20] sm:$0x1]  ;;  %v203_v55 = vld [vmem:[%s4337_s25 + $0xc] sm:$0xf]  ;;  %vm4394_vm6 = vmor %vm249_vm4, %vm250_vm5 }
  0x1e   : > { %v716_v51 = vsel %vm4369_vm3, %v714_v45, %v715_v37  ;;  %v268_v52 = vrot.slane %v266_v33, 4  ;;  %v272_v53 = vshll.u32 %v233_v21, 16  ;;  %v900_v54 = vrot.slane %v898_v3, 5  ;;  %v3762_v17 = vld [vmem:[%s4337_s25 + $0x18] sm:$0xe]  ;;  %s4293_s9 = smov 48  }
  0x1f   : > { %2225 = vrot.lane.b32.xlu1 %v3905_v46, %s4289_s5  ;;  %v3906_v56 = vcombine.low %v713_v47, %v716_v51  ;;  %v255_v58 = vrot.slane %v253_v48, 4  ;;  %v258_v59 = vrot.slane %v256_v49, 5  ;;  %v908_v60 = vshll.u32 %v4387_v50, 16  ;;  %v3745_v21 = vld [vmem:[%s4337_s25 + $0x14] sm:$0x1]  ;;  %s4294_s10 = smov 56  }
  0x20   : > { %v269_v61 = vor.u32 %v268_v52, %v264_v38  ;;  %v274_v62 = vrot.slane %v272_v53, 5  ;;  %v901_v63 = vsel %vm4394_vm6, %v896_v39, %v900_v54  ;;  %v905_v0 = vor.u32 %v4356_v12, %v900_v54  ;;  %v3795_v28 = vld [vmem:[%s4337_s25 + $0x24] sm:$0xf]  ;;  %v3761_v45 = vld [vmem:[%s4337_s25 + $0xc] sm:$0xe]  ;;  %s4295_s11 = smov 64  }
  0x21   : > { %v259_v1 = vor.u32 %v258_v59, %v255_v58  ;;  %v910_v3 = vrot.slane %v908_v60, 5  ;;  %v277_v4 = vshrl.u32 %v203_v55, 16  ;;  %v280_v5 = vshll.u32 %v203_v55, 16  ;;  %v4441_v58 = vld [vmem:[%s4337_s25 + $0x18] sm:$0xf] }
  0x22   : > { %v270_v6 = vrot.slane %v269_v61, 4  ;;  %v906_v7 = vrot.slane %v905_v0, 4  ;;  %v286_v8 = vshll.u32 %v204_v31, 16  ;;  %v290_v10 = vshrl.u32 %v204_v31, 16 }
  0x23   : > { %2227 = vrot.lane.b32.xlu1 %v3906_v56, %s4289_s5  ;;  %v260_v11 = vrot.slane %v259_v1, 4  ;;  %v279_v13 = vrot.slane %v277_v4, 4  ;;  %v282_v15 = vrot.slane %v280_v5, 5  ;;  %v296_v16 = vshll.u32 %v234_v32, 16 }
  0x24   : > { %v275_v12 = vsel %vm4394_vm6, %v270_v6, %v274_v62  ;;  %v911_v18 = vsel %vm4394_vm6, %v906_v7, %v910_v3  ;;  %v288_v19 = vrot.slane %v286_v8, 5  ;;  %v292_v20 = vrot.slane %v290_v10, 4  ;;  %v205_v8 = vld [vmem:[%s4337_s25 + $0x18] sm:$0xf] }
  0x25   : > { %v265_v23 = vsel %vm4394_vm6, %v260_v11, %v264_v38  ;;  %v3938_v25 = vcombine.low %v901_v63, %v911_v18  ;;  %v283_v26 = vor.u32 %v282_v15, %v279_v13  ;;  %v298_v27 = vrot.slane %v296_v16, 5  ;;  %v4449_v63 = vld [vmem:[%s4337_s25 + $0x1c] sm:$0xf] }
  0x26   : > { %v3889_v29 = vcombine.low %v265_v23, %v275_v12  ;;  %v293_v30 = vor.u32 %v292_v20, %v288_v19  ;;  %v3778_v31 = vrot.slane %v3762_v17, 9  ;;  %v1321_v32 = vrot.slane %v4347_v2, 5  ;;  %v4421_v2 = vld [vmem:[%s4337_s25 + $0x28] sm:$0xf]  ;;  %v4463_v16 = vld [vmem:[%s4337_s25 + $0x1c] sm:$0xf] }
  0x27   : > { %2403 = vrot.lane.b32.xlu1 %v3938_v25, %s4290_s6  ;;  %v284_v33 = vrot.slane %v283_v26, 4  ;;  %v1324_v34 = vrot.slane %v4387_v50, 5  ;;  %v876_v35 = vrot.slane %v874_v14, 5  ;;  %v884_v36 = vshll.u32 %v3745_v21, 16  ;;  %v4466_v17 = vld [vmem:[%s4337_s25 + $0x20] sm:$0x1] }
  0x28   : > { %2145 = vrot.lane.b32.xlu0 %v3889_v29, %s4291_s7  ;;  %v294_v37 = vrot.slane %v293_v30, 4  ;;  %v1322_v38 = vsel %vm4369_vm3, %v3778_v31, %v1321_v32  ;;  %v1323_v39 = vrot.slane %v1321_v32, 4  ;;  %v1498_v41 = vshrl.u32 %v3795_v28, 16  ;;  %v4476_v31 = vld [vmem:[%s4337_s25 + $0x20] sm:$0x1] }
  0x29   : > { %v289_v42 = vsel %vm4394_vm6, %v284_v33, %v288_v19  ;;  %v877_v14 = vsel %vm4394_vm6, %v4377_v40, %v876_v35  ;;  %v881_v43 = vor.u32 %v4364_v22, %v876_v35  ;;  %v886_v44 = vrot.slane %v884_v36, 5  ;;  %v4436_v40 = vld [vmem:[%s4337_s25 + $0x2c] sm:$0x1]  ;;  %v207_v36 = vld [vmem:[%s4337_s25 + $0x24] sm:$0xf] }
  0x2a   : > { %v299_v46 = vsel %vm4394_vm6, %v294_v37, %v298_v27  ;;  %v1325_v47 = vsel %vm4369_vm3, %v1323_v39, %v1324_v34  ;;  %v1500_v48 = vrot.slane %v1498_v41, 4  ;;  %v1501_v49 = vshll.u32 %v3795_v28, 16 }
  0x2b   : > { %v3890_v50 = vcombine.low %v289_v42, %v299_v46  ;;  %v3954_v51 = vcombine.low %v1322_v38, %v1325_v47  ;;  %v882_v52 = vrot.slane %v881_v43, 4  ;;  %v1511_v53 = vshrl.u32 %v4421_v2, 16  ;;  %v208_v42 = vld [vmem:[%s4337_s25 + $0x28] sm:$0xf] }
  0x2c   : > { %v1503_v22 = vrot.slane %v1501_v49, 5  ;;  %v3970_v54 = vcombine.low %v3795_v28, %v4421_v2  ;;  %v3777_v55 = vrot.slane %v3761_v45, 9  ;;  %v1314_v56 = vrot.slane %v4354_v9, 5  ;;  %v236_v49 = vld [vmem:[%s4337_s25 + $0x2c] sm:$0x1] }
  0x2d   : > { %2147 = vrot.lane.b32.xlu0 %v3890_v50, %s4291_s7  ;;  %2483 = vrot.lane.b32.xlu1 %v3954_v51, %s4292_s8  ;;  %v887_v59 = vsel %vm4394_vm6, %v882_v52, %v886_v44  ;;  %v1317_v60 = vrot.slane %v3745_v21, 5  ;;  %v1507_v61 = vshll.u32 %v4421_v2, 16  ;;  %v1513_v62 = vrot.slane %v1511_v53, 4 }
  0x2e   : > { %v3937_v9 = vcombine.low %v877_v14, %v887_v59  ;;  %v1315_v0 = vsel %vm4369_vm3, %v3777_v55, %v1314_v56  ;;  %v1316_v1 = vrot.slane %v1314_v56, 4  ;;  %v1504_v3 = vor.u32 %v1503_v22, %v1500_v48 }
  0x2f   : > { %v1509_v4 = vrot.slane %v1507_v61, 5  ;;  %v1517_v5 = vshll.u32 %v4436_v40, 16  ;;  %v1474_v6 = vshrl.u32 %v4441_v58, 16  ;;  %v1477_v7 = vshll.u32 %v4441_v58, 16 }
  0x30   : > { %v1318_v10 = vsel %vm4369_vm3, %v1316_v1, %v1317_v60  ;;  %v1505_v11 = vrot.slane %v1504_v3, 4  ;;  %v1487_v13 = vshrl.u32 %v4449_v63, 16  ;;  %v3969_v15 = vcombine.low %v4441_v58, %v4449_v63 }
  0x31   : > { %2401 = vrot.lane.b32.xlu0 %v3937_v9, %s4290_s6  ;;  %2579 = vrot.lane.b32.xlu1 %v3970_v54, %s4293_s9  ;;  %v3953_v12 = vcombine.low %v1315_v0, %v1318_v10  ;;  %v1514_v18 = vor.u32 %v1513_v62, %v1509_v4  ;;  %v1519_v19 = vrot.slane %v1517_v5, 5  ;;  %v1476_v20 = vrot.slane %v1474_v6, 4  ;;  %v3841_v54 = vld [vmem:[%s4337_s25 + $0x18] sm:$0xe]  ;;  %v639_v0 = vld [vmem:[%s4337_s25 + $0x24] sm:$0xe] }
  0x32   : > { %v1510_v21 = vsel %vm4394_vm6, %v1505_v11, %v1509_v4  ;;  %v1479_v23 = vrot.slane %v1477_v7, 5  ;;  %v301_v25 = vshrl.u32 %v205_v8, 16  ;;  %v304_v26 = vshll.u32 %v205_v8, 16  ;;  %v3842_v11 = vld [vmem:[%s4337_s25 + $0x24] sm:$0xe] }
  0x33   : > { %v1515_v27 = vrot.slane %v1514_v18, 4  ;;  %v310_v28 = vshll.u32 %v4463_v16, 16  ;;  %v314_v29 = vshrl.u32 %v4463_v16, 16  ;;  %v320_v30 = vshll.u32 %v4466_v17, 16 }
  0x34   : > { %v303_v32 = vrot.slane %v301_v25, 4  ;;  %v306_v33 = vrot.slane %v304_v26, 5  ;;  %v1480_v34 = vor.u32 %v1479_v23, %v1476_v20  ;;  %v1483_v35 = vshll.u32 %v4449_v63, 16  ;;  %v4505_v25 = vld [vmem:[%s4337_s25 + $0x30] sm:$0xf] }
  0x35   : > { %2481 = vrot.lane.b32.xlu0 %v3953_v12, %s4292_s8  ;;  %v1520_v37 = vsel %vm4394_vm6, %v1515_v27, %v1519_v19  ;;  %v312_v38 = vrot.slane %v310_v28, 5  ;;  %v316_v39 = vrot.slane %v314_v29, 4  ;;  %v322_v41 = vrot.slane %v320_v30, 5 }
  0x36   : > { %v3986_v14 = vcombine.low %v1510_v21, %v1520_v37  ;;  %v307_v43 = vor.u32 %v306_v33, %v303_v32  ;;  %v1481_v44 = vrot.slane %v1480_v34, 4  ;;  %v1485_v45 = vrot.slane %v1483_v35, 5 }
  0x37   : > { %v317_v46 = vor.u32 %v316_v39, %v312_v38  ;;  %v1489_v47 = vrot.slane %v1487_v13, 4  ;;  %v1493_v48 = vshll.u32 %v4476_v31, 16  ;;  %v325_v50 = vshrl.u32 %v207_v36, 16 }
  0x38   : > { %2659 = vrot.lane.b32.xlu1 %v3986_v14, %s4294_s10  ;;  %v308_v51 = vrot.slane %v307_v43, 4  ;;  %v1486_v52 = vsel %vm4394_vm6, %v1481_v44, %v1485_v45  ;;  %v328_v53 = vshll.u32 %v207_v36, 16  ;;  %v334_v22 = vshll.u32 %v208_v42, 16  ;;  %v3720_v36 = vld [vmem:[%s4337_s25 + $0x34] sm:$0xf] }
  0x39   : > { %2577 = vrot.lane.b32.xlu0 %v3969_v15, %s4293_s9  ;;  %v318_v55 = vrot.slane %v317_v46, 4  ;;  %v1490_v56 = vor.u32 %v1489_v47, %v1485_v45  ;;  %v1495_v58 = vrot.slane %v1493_v48, 5  ;;  %v327_v59 = vrot.slane %v325_v50, 4  ;;  %v3748_v45 = vld [vmem:[%s4337_s25 + $0x38] sm:$0x1] }
  0x3a   : > { %v313_v60 = vsel %vm4394_vm6, %v308_v51, %v312_v38  ;;  %v330_v61 = vrot.slane %v328_v53, 5  ;;  %v336_v62 = vrot.slane %v334_v22, 5  ;;  %v338_v9 = vshrl.u32 %v208_v42, 16  ;;  %v3717_v50 = vld [vmem:[%s4337_s25 + $0x24] sm:$0xf] }
  0x3b   : > { %v323_v1 = vsel %vm4394_vm6, %v318_v55, %v322_v41  ;;  %v1491_v3 = vrot.slane %v1490_v56, 4  ;;  %v344_v4 = vshll.u32 %v236_v49, 16  ;;  %v3857_v5 = vrot.slane %v3841_v54, 9  ;;  %v4535_v54 = vld [vmem:[%s4337_s25 + $0x28] sm:$0xf] }
  0x3c   : > { %v3891_v6 = vcombine.low %v313_v60, %v323_v1  ;;  %v331_v7 = vor.u32 %v330_v61, %v327_v59  ;;  %v340_v8 = vrot.slane %v338_v9, 4  ;;  %v1923_v10 = vrot.slane %v4449_v63, 5 }
  0x3d   : > { %v1496_v13 = vsel %vm4394_vm6, %v1491_v3, %v1495_v58  ;;  %v346_v15 = vrot.slane %v344_v4, 5  ;;  %v1926_v12 = vrot.slane %v4476_v31, 5  ;;  %v3700_v18 = vrot.slane %v639_v0, 9  ;;  %v3764_v0 = vld [vmem:[%s4337_s25 + $0x30] sm:$0xe] }
  0x3e   : > { %2149 = vrot.lane.b32.xlu1 %v3891_v6, %s4291_s7  ;;  %v3985_v19 = vcombine.low %v1486_v52, %v1496_v13  ;;  %v332_v20 = vrot.slane %v331_v7, 4  ;;  %v341_v21 = vor.u32 %v340_v8, %v336_v62  ;;  %v1924_v23 = vsel %vm4369_vm3, %v3857_v5, %v1923_v10  ;;  %v3747_v8 = vld [vmem:[%s4337_s25 + $0x2c] sm:$0x1] }
  0x3f   : > { %v1925_v63 = vrot.slane %v1923_v10, 4  ;;  %v726_v26 = vrot.slane %v208_v42, 5  ;;  %v729_v27 = vrot.slane %v236_v49, 5  ;;  %v3858_v28 = vrot.slane %v3842_v11, 9 }
  0x40   : > { %2657 = vrot.lane.b32.xlu0 %v3985_v19, %s4294_s10  ;;  %v337_v29 = vsel %vm4394_vm6, %v332_v20, %v336_v62  ;;  %v342_v30 = vrot.slane %v341_v21, 4  ;;  %v1930_v31 = vrot.slane %v4421_v2, 5  ;;  %v1933_v32 = vrot.slane %v4436_v40, 5  ;;  %v638_v40 = vld [vmem:[%s4337_s25 + $0x18] sm:$0xe] }
  0x41   : > { %v1927_v33 = vsel %vm4369_vm3, %v1925_v63, %v1926_v12  ;;  %v727_v34 = vsel %vm4369_vm3, %v3700_v18, %v726_v26  ;;  %v728_v35 = vrot.slane %v726_v26, 4  ;;  %v937_v37 = vshrl.u32 %v4505_v25, 16  ;;  %v4549_v12 = vld [vmem:[%s4337_s25 + $0x3c] sm:$0xf] }
  0x42   : > { %v347_v38 = vsel %vm4394_vm6, %v342_v30, %v346_v15  ;;  %v4001_v39 = vcombine.low %v1924_v23, %v1927_v33  ;;  %v1931_v2 = vsel %vm4369_vm3, %v3858_v28, %v1930_v31  ;;  %v1932_v41 = vrot.slane %v1930_v31, 4  ;;  %v4559_v30 = vld [vmem:[%s4337_s25 + $0x40] sm:$0xf] }
  0x43   : > { %v3892_v42 = vcombine.low %v337_v29, %v347_v38  ;;  %v730_v14 = vsel %vm4369_vm3, %v728_v35, %v729_v27  ;;  %v939_v43 = vrot.slane %v937_v37, 4  ;;  %v940_v44 = vshll.u32 %v4505_v25, 16 }
  0x44   : > { %2737 = vrot.lane.b32.xlu0 %v4001_v39, %s4295_s11  ;;  %v3908_v46 = vcombine.low %v727_v34, %v730_v14  ;;  %v1934_v47 = vsel %vm4369_vm3, %v1932_v41, %v1933_v32  ;;  %v950_v48 = vshrl.u32 %v3720_v36, 16  ;;  %v3924_v49 = vcombine.low %v4505_v25, %v3720_v36 }
  0x45   : > { %2151 = vrot.lane.b32.xlu1 %v3892_v42, %s4291_s7  ;;  %v4002_v51 = vcombine.low %v1931_v2, %v1934_v47  ;;  %v942_v52 = vrot.slane %v940_v44, 5  ;;  %v3699_v53 = vrot.slane %v638_v40, 9  ;;  %v719_v22 = vrot.slane %v4463_v16, 5 }
  0x46   : > { %v722_v55 = vrot.slane %v4466_v17, 5  ;;  %v946_v56 = vshll.u32 %v3720_v36, 16  ;;  %v952_v58 = vrot.slane %v950_v48, 4  ;;  %v956_v59 = vshll.u32 %v3748_v45, 16  ;;  %v4580_v48 = vld [vmem:[%s4337_s25 + $0x30] sm:$0xf] }
  0x47   : > { %v720_v60 = vsel %vm4369_vm3, %v3699_v53, %v719_v22  ;;  %v721_v61 = vrot.slane %v719_v22, 4  ;;  %v943_v62 = vor.u32 %v942_v52, %v939_v43  ;;  %v913_v9 = vshrl.u32 %v3717_v50, 16  ;;  %v4573_v43 = vld [vmem:[%s4337_s25 + $0x44] sm:$0x1]  ;;  %v4584_v53 = vld [vmem:[%s4337_s25 + $0x34] sm:$0xf] }
  0x48   : > { %2739 = vrot.lane.b32.xlu0 %v4002_v51, %s4295_s11  ;;  %v948_v1 = vrot.slane %v946_v56, 5  ;;  %v958_v16 = vrot.slane %v956_v59, 5  ;;  %v916_v3 = vshll.u32 %v3717_v50, 16  ;;  %v926_v4 = vshrl.u32 %v4535_v54, 16 }
  0x49   : > { %2231 = vrot.lane.b32.xlu1 %v3908_v46, %s4289_s5  ;;  %v723_v17 = vsel %vm4369_vm3, %v721_v61, %v722_v55  ;;  %v944_v5 = vrot.slane %v943_v62, 4  ;;  %v915_v6 = vrot.slane %v913_v9, 4  ;;  %v3923_v7 = vcombine.low %v3717_v50, %v4535_v54  ;;  %v4594_v9 = vld [vmem:[%s4337_s25 + $0x34] sm:$0xf] }
  0x4a   : > { %v3907_v10 = vcombine.low %v720_v60, %v723_v17  ;;  %v953_v11 = vor.u32 %v952_v58, %v948_v1  ;;  %v918_v13 = vrot.slane %v916_v3, 5  ;;  %v3780_v15 = vrot.slane %v3764_v0, 9  ;;  %v209_v58 = vld [vmem:[%s4337_s25 + $0x30] sm:$0xf] }
  0x4b   : > { %v949_v18 = vsel %vm4394_vm6, %v944_v5, %v948_v1  ;;  %v1335_v19 = vrot.slane %v3720_v36, 5  ;;  %v1338_v20 = vrot.slane %v3748_v45, 5  ;;  %v922_v21 = vshll.u32 %v4535_v54, 16  ;;  %v3763_v36 = vld [vmem:[%s4337_s25 + $0x24] sm:$0xe] }
  0x4c   : > { %2229 = vrot.lane.b32.xlu0 %v3907_v10, %s4289_s5  ;;  %v954_v23 = vrot.slane %v953_v11, 4  ;;  %v919_v25 = vor.u32 %v918_v13, %v915_v6  ;;  %v928_v63 = vrot.slane %v926_v4, 4  ;;  %v932_v26 = vshll.u32 %v3747_v8, 16  ;;  %v4602_v4 = vld [vmem:[%s4337_s25 + $0x38] sm:$0x1] }
  0x4d   : > { %2327 = vrot.lane.b32.xlu1 %v3924_v49, %s4288_s30  ;;  %v1336_v27 = vsel %vm4369_vm3, %v3780_v15, %v1335_v19  ;;  %v1337_v28 = vrot.slane %v1335_v19, 4  ;;  %v924_v29 = vrot.slane %v922_v21, 5  ;;  %v1546_v31 = vshrl.u32 %v4549_v12, 16 }
  0x4e   : > { %v959_v32 = vsel %vm4394_vm6, %v954_v23, %v958_v16  ;;  %v920_v33 = vrot.slane %v919_v25, 4  ;;  %v934_v34 = vrot.slane %v932_v26, 5  ;;  %v1549_v35 = vshll.u32 %v4549_v12, 16  ;;  %v211_v26 = vld [vmem:[%s4337_s25 + $0x3c] sm:$0xf] }
  0x4f   : > { %v3940_v37 = vcombine.low %v949_v18, %v959_v32  ;;  %v1339_v38 = vsel %vm4369_vm3, %v1337_v28, %v1338_v20  ;;  %v929_v39 = vor.u32 %v928_v63, %v924_v29  ;;  %v1548_v2 = vrot.slane %v1546_v31, 4  ;;  %v4613_v20 = vld [vmem:[%s4337_s25 + $0x38] sm:$0x1]  ;;  %v212_v32 = vld [vmem:[%s4337_s25 + $0x40] sm:$0xf] }
  0x50   : > { %2325 = vrot.lane.b32.xlu0 %v3923_v7, %s4288_s30  ;;  %v3956_v41 = vcombine.low %v1336_v27, %v1339_v38  ;;  %v925_v40 = vsel %vm4394_vm6, %v920_v33, %v924_v29  ;;  %v1551_v42 = vrot.slane %v1549_v35, 5  ;;  %v1559_v14 = vshrl.u32 %v4559_v30, 16 }
  0x51   : > { %2407 = vrot.lane.b32.xlu1 %v3940_v37, %s4290_s6  ;;  %v930_v44 = vrot.slane %v929_v39, 4  ;;  %v3972_v45 = vcombine.low %v4549_v12, %v4559_v30  ;;  %v3779_v46 = vrot.slane %v3763_v36, 9  ;;  %v1328_v47 = vrot.slane %v4535_v54, 5  ;;  %v4623_v37 = vld [vmem:[%s4337_s25 + $0x44] sm:$0x1] }
  0x52   : > { %v1331_v49 = vrot.slane %v3747_v8, 5  ;;  %v1552_v50 = vor.u32 %v1551_v42, %v1548_v2  ;;  %v1555_v51 = vshll.u32 %v4559_v30, 16  ;;  %v1561_v52 = vrot.slane %v1559_v14, 4 }
  0x53   : > { %v935_v22 = vsel %vm4394_vm6, %v930_v44, %v934_v34  ;;  %v1329_v55 = vsel %vm4369_vm3, %v3779_v46, %v1328_v47  ;;  %v1330_v56 = vrot.slane %v1328_v47, 4  ;;  %v1565_v54 = vshll.u32 %v4573_v43, 16 }
  0x54   : > { %v3939_v59 = vcombine.low %v925_v40, %v935_v22  ;;  %v1553_v60 = vrot.slane %v1552_v50, 4  ;;  %v1557_v61 = vrot.slane %v1555_v51, 5  ;;  %v1522_v62 = vshrl.u32 %v4580_v48, 16  ;;  %v3843_v40 = vld [vmem:[%s4337_s25 + $0x30] sm:$0xe] }
  0x55   : > { %2487 = vrot.lane.b32.xlu1 %v3956_v41, %s4292_s8  ;;  %v1332_v0 = vsel %vm4369_vm3, %v1330_v56, %v1331_v49  ;;  %v1567_v1 = vrot.slane %v1565_v54, 5  ;;  %v1525_v16 = vshll.u32 %v4580_v48, 16  ;;  %v1535_v3 = vshrl.u32 %v4584_v53, 16 }
  0x56   : > { %2405 = vrot.lane.b32.xlu0 %v3939_v59, %s4290_s6  ;;  %v3955_v17 = vcombine.low %v1329_v55, %v1332_v0  ;;  %v1558_v5 = vsel %vm4394_vm6, %v1553_v60, %v1557_v61  ;;  %v1562_v6 = vor.u32 %v1561_v52, %v1557_v61  ;;  %v1524_v7 = vrot.slane %v1522_v62, 4  ;;  %v641_v55 = vld [vmem:[%s4337_s25 + $0x3c] sm:$0xe] }
  0x57   : > { %v1527_v8 = vrot.slane %v1525_v16, 5  ;;  %v3971_v10 = vcombine.low %v4580_v48, %v4584_v53  ;;  %v349_v11 = vshrl.u32 %v209_v58, 16  ;;  %v352_v13 = vshll.u32 %v209_v58, 16  ;;  %v3844_v60 = vld [vmem:[%s4337_s25 + $0x3c] sm:$0xe] }
  0x58   : > { %v1563_v15 = vrot.slane %v1562_v6, 4  ;;  %v358_v12 = vshll.u32 %v4594_v9, 16  ;;  %v362_v18 = vshrl.u32 %v4594_v9, 16  ;;  %v368_v19 = vshll.u32 %v4602_v4, 16 }
  0x59   : > { %2583 = vrot.lane.b32.xlu1 %v3972_v45, %s4293_s9  ;;  %v351_v21 = vrot.slane %v349_v11, 4  ;;  %v354_v23 = vrot.slane %v352_v13, 5  ;;  %v1528_v25 = vor.u32 %v1527_v8, %v1524_v7  ;;  %v1531_v63 = vshll.u32 %v4584_v53, 16  ;;  %v4646_v11 = vld [vmem:[%s4337_s25 + $0x48] sm:$0xf] }
  0x5a   : > { %2485 = vrot.lane.b32.xlu0 %v3955_v17, %s4292_s8  ;;  %v1568_v27 = vsel %vm4394_vm6, %v1563_v15, %v1567_v1  ;;  %v360_v28 = vrot.slane %v358_v12, 5  ;;  %v364_v29 = vrot.slane %v362_v18, 4  ;;  %v370_v31 = vrot.slane %v368_v19, 5 }
  0x5b   : > { %v3988_v33 = vcombine.low %v1558_v5, %v1568_v27  ;;  %v355_v34 = vor.u32 %v354_v23, %v351_v21  ;;  %v1529_v35 = vrot.slane %v1528_v25, 4  ;;  %v1533_v36 = vrot.slane %v1531_v63, 5 }
  0x5c   : > { %v365_v38 = vor.u32 %v364_v29, %v360_v28  ;;  %v1537_v39 = vrot.slane %v1535_v3, 4  ;;  %v1541_v2 = vshll.u32 %v4613_v20, 16  ;;  %v373_v41 = vshrl.u32 %v211_v26, 16 }
  0x5d   : > { %2663 = vrot.lane.b32.xlu1 %v3988_v33, %s4294_s10  ;;  %v356_v42 = vrot.slane %v355_v34, 4  ;;  %v1534_v14 = vsel %vm4394_vm6, %v1529_v35, %v1533_v36  ;;  %v376_v44 = vshll.u32 %v211_v26, 16  ;;  %v382_v45 = vshll.u32 %v212_v32, 16  ;;  %v3724_v26 = vld [vmem:[%s4337_s25 + $0x4c] sm:$0xf] }
  0x5e   : > { %2581 = vrot.lane.b32.xlu0 %v3971_v10, %s4293_s9  ;;  %v366_v46 = vrot.slane %v365_v38, 4  ;;  %v1538_v47 = vor.u32 %v1537_v39, %v1533_v36  ;;  %v1543_v48 = vrot.slane %v1541_v2, 5  ;;  %v375_v49 = vrot.slane %v373_v41, 4 }
  0x5f   : > { %v361_v50 = vsel %vm4394_vm6, %v356_v42, %v360_v28  ;;  %v378_v51 = vrot.slane %v376_v44, 5  ;;  %v384_v52 = vrot.slane %v382_v45, 5  ;;  %v386_v22 = vshrl.u32 %v212_v32, 16  ;;  %v640_v28 = vld [vmem:[%s4337_s25 + $0x30] sm:$0xe] }
  0x60   : > { %v371_v56 = vsel %vm4394_vm6, %v366_v46, %v370_v31  ;;  %v1539_v54 = vrot.slane %v1538_v47, 4  ;;  %v392_v58 = vshll.u32 %v4623_v37, 16  ;;  %v3859_v59 = vrot.slane %v3843_v40, 9  ;;  %v4677_v40 = vld [vmem:[%s4337_s25 + $0x40] sm:$0xf] }
  0x61   : > { %v3893_v61 = vcombine.low %v361_v50, %v371_v56  ;;  %v379_v62 = vor.u32 %v378_v51, %v375_v49  ;;  %v388_v0 = vrot.slane %v386_v22, 4  ;;  %v1937_v1 = vrot.slane %v4584_v53, 5 }
  0x62   : > { %v1544_v16 = vsel %vm4394_vm6, %v1539_v54, %v1543_v48  ;;  %v394_v3 = vrot.slane %v392_v58, 5  ;;  %v1940_v17 = vrot.slane %v4613_v20, 5  ;;  %v3702_v5 = vrot.slane %v641_v55, 9  ;;  %v3766_v55 = vld [vmem:[%s4337_s25 + $0x48] sm:$0xe] }
  0x63   : > { %2153 = vrot.lane.b32.xlu1 %v3893_v61, %s4291_s7  ;;  %v3987_v6 = vcombine.low %v1534_v14, %v1544_v16  ;;  %v380_v7 = vrot.slane %v379_v62, 4  ;;  %v389_v8 = vor.u32 %v388_v0, %v384_v52  ;;  %v1938_v10 = vsel %vm4369_vm3, %v3859_v59, %v1937_v1  ;;  %v3749_v62 = vld [vmem:[%s4337_s25 + $0x44] sm:$0x1] }
  0x64   : > { %v1939_v53 = vrot.slane %v1937_v1, 4  ;;  %v740_v13 = vrot.slane %v212_v32, 5  ;;  %v743_v15 = vrot.slane %v4623_v37, 5  ;;  %v3860_v12 = vrot.slane %v3844_v60, 9  ;;  %v4666_v32 = vld [vmem:[%s4337_s25 + $0x50] sm:$0x1] }
  0x65   : > { %2661 = vrot.lane.b32.xlu0 %v3987_v6, %s4294_s10  ;;  %v385_v18 = vsel %vm4394_vm6, %v380_v7, %v384_v52  ;;  %v390_v19 = vrot.slane %v389_v8, 4  ;;  %v1944_v20 = vrot.slane %v4559_v30, 5  ;;  %v1947_v21 = vrot.slane %v4573_v43, 5  ;;  %v3721_v37 = vld [vmem:[%s4337_s25 + $0x3c] sm:$0xf] }
  0x66   : > { %v1941_v23 = vsel %vm4369_vm3, %v1939_v53, %v1940_v17  ;;  %v741_v25 = vsel %vm4369_vm3, %v3702_v5, %v740_v13  ;;  %v742_v63 = vrot.slane %v740_v13, 4  ;;  %v985_v27 = vshrl.u32 %v4646_v11, 16  ;;  %v4694_v17 = vld [vmem:[%s4337_s25 + $0x54] sm:$0xf] }
  0x67   : > { %v395_v29 = vsel %vm4394_vm6, %v390_v19, %v394_v3  ;;  %v4003_v31 = vcombine.low %v1938_v10, %v1941_v23  ;;  %v1945_v30 = vsel %vm4369_vm3, %v3860_v12, %v1944_v20  ;;  %v1946_v43 = vrot.slane %v1944_v20, 4  ;;  %v4705_v19 = vld [vmem:[%s4337_s25 + $0x58] sm:$0xf] }
  0x68   : > { %v3894_v33 = vcombine.low %v385_v18, %v395_v29  ;;  %v744_v34 = vsel %vm4369_vm3, %v742_v63, %v743_v15  ;;  %v987_v35 = vrot.slane %v985_v27, 4  ;;  %v988_v36 = vshll.u32 %v4646_v11, 16 }
  0x69   : > { %2741 = vrot.lane.b32.xlu0 %v4003_v31, %s4295_s11  ;;  %v3910_v38 = vcombine.low %v741_v25, %v744_v34  ;;  %v1948_v39 = vsel %vm4369_vm3, %v1946_v43, %v1947_v21  ;;  %v998_v2 = vshrl.u32 %v3724_v26, 16  ;;  %v3926_v41 = vcombine.low %v4646_v11, %v3724_v26  ;;  %v4719_v34 = vld [vmem:[%s4337_s25 + $0x5c] sm:$0x1] }
  0x6a   : > { %2155 = vrot.lane.b32.xlu1 %v3894_v33, %s4291_s7  ;;  %v4004_v42 = vcombine.low %v1945_v30, %v1948_v39  ;;  %v990_v14 = vrot.slane %v988_v36, 5  ;;  %v3701_v44 = vrot.slane %v640_v28, 9  ;;  %v733_v45 = vrot.slane %v4594_v9, 5  ;;  %v4726_v39 = vld [vmem:[%s4337_s25 + $0x48] sm:$0xf] }
  0x6b   : > { %v736_v46 = vrot.slane %v4602_v4, 5  ;;  %v994_v47 = vshll.u32 %v3724_v26, 16  ;;  %v1000_v48 = vrot.slane %v998_v2, 4  ;;  %v1004_v49 = vshll.u32 %v4666_v32, 16 }
  0x6c   : > { %v734_v50 = vsel %vm4369_vm3, %v3701_v44, %v733_v45  ;;  %v735_v51 = vrot.slane %v733_v45, 4  ;;  %v991_v52 = vor.u32 %v990_v14, %v987_v35  ;;  %v961_v22 = vshrl.u32 %v3721_v37, 16  ;;  %v4730_v44 = vld [vmem:[%s4337_s25 + $0x4c] sm:$0xf] }
  0x6d   : > { %2743 = vrot.lane.b32.xlu0 %v4004_v42, %s4295_s11  ;;  %v996_v56 = vrot.slane %v994_v47, 5  ;;  %v1006_v54 = vrot.slane %v1004_v49, 5  ;;  %v964_v9 = vshll.u32 %v3721_v37, 16  ;;  %v974_v4 = vshrl.u32 %v4677_v40, 16 }
  0x6e   : > { %2235 = vrot.lane.b32.xlu1 %v3910_v38, %s4289_s5  ;;  %v737_v58 = vsel %vm4369_vm3, %v735_v51, %v736_v46  ;;  %v992_v59 = vrot.slane %v991_v52, 4  ;;  %v963_v60 = vrot.slane %v961_v22, 4  ;;  %v3925_v61 = vcombine.low %v3721_v37, %v4677_v40  ;;  %v4740_v22 = vld [vmem:[%s4337_s25 + $0x4c] sm:$0xf] }
  0x6f   : > { %v3909_v0 = vcombine.low %v734_v50, %v737_v58  ;;  %v1001_v1 = vor.u32 %v1000_v48, %v996_v56  ;;  %v966_v16 = vrot.slane %v964_v9, 5  ;;  %v3782_v3 = vrot.slane %v3766_v55, 9  ;;  %v213_v48 = vld [vmem:[%s4337_s25 + $0x48] sm:$0xf] }
  0x70   : > { %v997_v5 = vsel %vm4394_vm6, %v992_v59, %v996_v56  ;;  %v1349_v6 = vrot.slane %v3724_v26, 5  ;;  %v1352_v7 = vrot.slane %v4666_v32, 5  ;;  %v970_v8 = vshll.u32 %v4677_v40, 16  ;;  %v3765_v26 = vld [vmem:[%s4337_s25 + $0x3c] sm:$0xe] }
  0x71   : > { %2233 = vrot.lane.b32.xlu0 %v3909_v0, %s4289_s5  ;;  %v1002_v10 = vrot.slane %v1001_v1, 4  ;;  %v967_v11 = vor.u32 %v966_v16, %v963_v60  ;;  %v976_v53 = vrot.slane %v974_v4, 4  ;;  %v980_v13 = vshll.u32 %v3749_v62, 16  ;;  %v4748_v4 = vld [vmem:[%s4337_s25 + $0x50] sm:$0x1] }
  0x72   : > { %2331 = vrot.lane.b32.xlu1 %v3926_v41, %s4288_s30  ;;  %v1350_v15 = vsel %vm4369_vm3, %v3782_v3, %v1349_v6  ;;  %v1351_v12 = vrot.slane %v1349_v6, 4  ;;  %v972_v18 = vrot.slane %v970_v8, 5  ;;  %v1594_v20 = vshrl.u32 %v4694_v17, 16 }
  0x73   : > { %v1007_v21 = vsel %vm4394_vm6, %v1002_v10, %v1006_v54  ;;  %v968_v23 = vrot.slane %v967_v11, 4  ;;  %v982_v25 = vrot.slane %v980_v13, 5  ;;  %v1597_v63 = vshll.u32 %v4694_v17, 16  ;;  %v215_v13 = vld [vmem:[%s4337_s25 + $0x54] sm:$0xf] }
  0x74   : > { %v3942_v27 = vcombine.low %v997_v5, %v1007_v21  ;;  %v1353_v28 = vsel %vm4369_vm3, %v1351_v12, %v1352_v7  ;;  %v977_v29 = vor.u32 %v976_v53, %v972_v18  ;;  %v1596_v31 = vrot.slane %v1594_v20, 4  ;;  %v4759_v7 = vld [vmem:[%s4337_s25 + $0x50] sm:$0x1]  ;;  %v216_v21 = vld [vmem:[%s4337_s25 + $0x58] sm:$0xf] }
  0x75   : > { %2329 = vrot.lane.b32.xlu0 %v3925_v61, %s4288_s30  ;;  %v3958_v30 = vcombine.low %v1350_v15, %v1353_v28  ;;  %v973_v43 = vsel %vm4394_vm6, %v968_v23, %v972_v18  ;;  %v1599_v32 = vrot.slane %v1597_v63, 5  ;;  %v1607_v33 = vshrl.u32 %v4705_v19, 16 }
  0x76   : > { %2411 = vrot.lane.b32.xlu1 %v3942_v27, %s4290_s6  ;;  %v978_v35 = vrot.slane %v977_v29, 4  ;;  %v3974_v36 = vcombine.low %v4694_v17, %v4705_v19  ;;  %v3781_v37 = vrot.slane %v3765_v26, 9  ;;  %v1342_v38 = vrot.slane %v4677_v40, 5 }
  0x77   : > { %v1345_v2 = vrot.slane %v3749_v62, 5  ;;  %v1600_v41 = vor.u32 %v1599_v32, %v1596_v31  ;;  %v1603_v42 = vshll.u32 %v4705_v19, 16  ;;  %v1609_v14 = vrot.slane %v1607_v33, 4  ;;  %v240_v31 = vld [vmem:[%s4337_s25 + $0x5c] sm:$0x1] }
  0x78   : > { %v983_v45 = vsel %vm4394_vm6, %v978_v35, %v982_v25  ;;  %v1343_v46 = vsel %vm4369_vm3, %v3781_v37, %v1342_v38  ;;  %v1344_v47 = vrot.slane %v1342_v38, 4  ;;  %v1613_v40 = vshll.u32 %v4719_v34, 16 }
  0x79   : > { %v3941_v49 = vcombine.low %v973_v43, %v983_v45  ;;  %v1601_v50 = vrot.slane %v1600_v41, 4  ;;  %v1605_v51 = vrot.slane %v1603_v42, 5  ;;  %v1570_v52 = vshrl.u32 %v4726_v39, 16 }
  0x7a   : > { %2491 = vrot.lane.b32.xlu1 %v3958_v30, %s4292_s8  ;;  %v1346_v55 = vsel %vm4369_vm3, %v1344_v47, %v1345_v2  ;;  %v1615_v56 = vrot.slane %v1613_v40, 5  ;;  %v1573_v54 = vshll.u32 %v4726_v39, 16  ;;  %v1583_v9 = vshrl.u32 %v4730_v44, 16 }
  0x7b   : > { %2409 = vrot.lane.b32.xlu0 %v3941_v49, %s4290_s6  ;;  %v3957_v58 = vcombine.low %v1343_v46, %v1346_v55  ;;  %v1606_v59 = vsel %vm4394_vm6, %v1601_v50, %v1605_v51  ;;  %v1610_v60 = vor.u32 %v1609_v14, %v1605_v51  ;;  %v1572_v61 = vrot.slane %v1570_v52, 4  ;;  %v643_v46 = vld [vmem:[%s4337_s25 + $0x54] sm:$0xe] }
  0x7c   : > { %v1575_v62 = vrot.slane %v1573_v54, 5  ;;  %v3973_v0 = vcombine.low %v4726_v39, %v4730_v44  ;;  %v397_v1 = vshrl.u32 %v213_v48, 16  ;;  %v400_v16 = vshll.u32 %v213_v48, 16 }
  0x7d   : > { %v1611_v3 = vrot.slane %v1610_v60, 4  ;;  %v406_v17 = vshll.u32 %v4740_v22, 16  ;;  %v410_v5 = vshrl.u32 %v4740_v22, 16  ;;  %v416_v6 = vshll.u32 %v4748_v4, 16 }
  0x7e   : > { %2587 = vrot.lane.b32.xlu1 %v3974_v36, %s4293_s9  ;;  %v399_v8 = vrot.slane %v397_v1, 4  ;;  %v402_v10 = vrot.slane %v400_v16, 5  ;;  %v1576_v11 = vor.u32 %v1575_v62, %v1572_v61  ;;  %v1579_v53 = vshll.u32 %v4730_v44, 16  ;;  %v3845_v36 = vld [vmem:[%s4337_s25 + $0x48] sm:$0xe] }
  0x7f   : > { %2489 = vrot.lane.b32.xlu0 %v3957_v58, %s4292_s8  ;;  %v1616_v15 = vsel %vm4394_vm6, %v1611_v3, %v1615_v56  ;;  %v408_v12 = vrot.slane %v406_v17, 5  ;;  %v412_v18 = vrot.slane %v410_v5, 4  ;;  %v418_v20 = vrot.slane %v416_v6, 5  ;;  %v3846_v56 = vld [vmem:[%s4337_s25 + $0x54] sm:$0xe] }
  0x80   : > { %v3990_v23 = vcombine.low %v1606_v59, %v1616_v15  ;;  %v403_v25 = vor.u32 %v402_v10, %v399_v8  ;;  %v1577_v63 = vrot.slane %v1576_v11, 4  ;;  %v1581_v26 = vrot.slane %v1579_v53, 5  ;;  %v4789_v1 = vld [vmem:[%s4337_s25 + $0x60] sm:$0xf] }
  0x81   : > { %v413_v27 = vor.u32 %v412_v18, %v408_v12  ;;  %v1585_v28 = vrot.slane %v1583_v9, 4  ;;  %v1589_v29 = vshll.u32 %v4759_v7, 16  ;;  %v421_v30 = vshrl.u32 %v215_v13, 16 }
  0x82   : > { %2667 = vrot.lane.b32.xlu1 %v3990_v23, %s4294_s10  ;;  %v404_v43 = vrot.slane %v403_v25, 4  ;;  %v1582_v32 = vsel %vm4394_vm6, %v1577_v63, %v1581_v26  ;;  %v424_v33 = vshll.u32 %v215_v13, 16  ;;  %v430_v35 = vshll.u32 %v216_v21, 16  ;;  %v4801_v13 = vld [vmem:[%s4337_s25 + $0x64] sm:$0xf] }
  0x83   : > { %2585 = vrot.lane.b32.xlu0 %v3973_v0, %s4293_s9  ;;  %v414_v37 = vrot.slane %v413_v27, 4  ;;  %v1586_v38 = vor.u32 %v1585_v28, %v1581_v26  ;;  %v1591_v39 = vrot.slane %v1589_v29, 5  ;;  %v423_v2 = vrot.slane %v421_v30, 4  ;;  %v4815_v27 = vld [vmem:[%s4337_s25 + $0x68] sm:$0x1] }
  0x84   : > { %v409_v41 = vsel %vm4394_vm6, %v404_v43, %v408_v12  ;;  %v426_v42 = vrot.slane %v424_v33, 5  ;;  %v432_v14 = vrot.slane %v430_v35, 5  ;;  %v434_v45 = vshrl.u32 %v216_v21, 16  ;;  %v3725_v43 = vld [vmem:[%s4337_s25 + $0x54] sm:$0xf] }
  0x85   : > { %v419_v47 = vsel %vm4394_vm6, %v414_v37, %v418_v20  ;;  %v1587_v40 = vrot.slane %v1586_v38, 4  ;;  %v440_v48 = vshll.u32 %v240_v31, 16  ;;  %v3861_v49 = vrot.slane %v3845_v36, 9  ;;  %v4827_v37 = vld [vmem:[%s4337_s25 + $0x58] sm:$0xf] }
  0x86   : > { %v3895_v50 = vcombine.low %v409_v41, %v419_v47  ;;  %v427_v51 = vor.u32 %v426_v42, %v423_v2  ;;  %v436_v52 = vrot.slane %v434_v45, 4  ;;  %v1951_v55 = vrot.slane %v4730_v44, 5  ;;  %v3768_v47 = vld [vmem:[%s4337_s25 + $0x60] sm:$0xe] }
  0x87   : > { %v1592_v54 = vsel %vm4394_vm6, %v1587_v40, %v1591_v39  ;;  %v442_v9 = vrot.slane %v440_v48, 5  ;;  %v1954_v58 = vrot.slane %v4759_v7, 5  ;;  %v3704_v59 = vrot.slane %v643_v46, 9 }
  0x88   : > { %2157 = vrot.lane.b32.xlu1 %v3895_v50, %s4291_s7  ;;  %v3989_v60 = vcombine.low %v1582_v32, %v1592_v54  ;;  %v428_v61 = vrot.slane %v427_v51, 4  ;;  %v437_v62 = vor.u32 %v436_v52, %v432_v14  ;;  %v1952_v0 = vsel %vm4369_vm3, %v3861_v49, %v1951_v55  ;;  %v4804_v12 = vpop.permute.xlu1 %2323 }
  0x89   : > { %v1953_v44 = vrot.slane %v1951_v55, 4  ;;  %v754_v16 = vrot.slane %v216_v21, 5  ;;  %v757_v3 = vrot.slane %v240_v31, 5  ;;  %v3862_v17 = vrot.slane %v3846_v56, 9  ;;  %v642_v21 = vld [vmem:[%s4337_s25 + $0x48] sm:$0xe] }
  0x8a   : > { %2665 = vrot.lane.b32.xlu0 %v3989_v60, %s4294_s10  ;;  %v433_v5 = vsel %vm4394_vm6, %v428_v61, %v432_v14  ;;  %v438_v6 = vrot.slane %v437_v62, 4  ;;  %v1958_v7 = vrot.slane %v4705_v19, 5  ;;  %v1961_v8 = vrot.slane %v4719_v34, 5  ;;  %v3751_v56 = vld [vmem:[%s4337_s25 + $0x5c] sm:$0x1] }
  0x8b   : > { %v1955_v10 = vsel %vm4369_vm3, %v1953_v44, %v1954_v58  ;;  %v755_v11 = vsel %vm4369_vm3, %v3704_v59, %v754_v16  ;;  %v756_v53 = vrot.slane %v754_v16, 4  ;;  %v1033_v15 = vshrl.u32 %v4789_v1, 16  ;;  %v4845_v60 = vld [vmem:[%s4337_s25 + $0x6c] sm:$0xf]  ;;  %v4847_v61 = vpop.permute.xlu0 %2321 }
  0x8c   : > { %v443_v19 = vsel %vm4394_vm6, %v438_v6, %v442_v9  ;;  %v4005_v18 = vcombine.low %v1952_v0, %v1955_v10  ;;  %v1959_v34 = vsel %vm4369_vm3, %v3862_v17, %v1958_v7  ;;  %v1960_v20 = vrot.slane %v1958_v7, 4 }
  0x8d   : > { %v3896_v23 = vcombine.low %v433_v5, %v443_v19  ;;  %v758_v25 = vsel %vm4369_vm3, %v756_v53, %v757_v3  ;;  %v1035_v63 = vrot.slane %v1033_v15, 4  ;;  %v1036_v26 = vshll.u32 %v4789_v1, 16 }
  0x8e   : > { %2745 = vrot.lane.b32.xlu0 %v4005_v18, %s4295_s11  ;;  %v3912_v28 = vcombine.low %v755_v11, %v758_v25  ;;  %v1962_v29 = vsel %vm4369_vm3, %v1960_v20, %v1961_v8  ;;  %v1046_v31 = vshrl.u32 %v4801_v13, 16  ;;  %v3928_v30 = vcombine.low %v4789_v1, %v4801_v13  ;;  %v4861_v11 = vld [vmem:[%s4337_s25 + $0x70] sm:$0xf] }
  0x8f   : > { %2159 = vrot.lane.b32.xlu1 %v3896_v23, %s4291_s7  ;;  %v4006_v32 = vcombine.low %v1959_v34, %v1962_v29  ;;  %v1038_v33 = vrot.slane %v1036_v26, 5  ;;  %v3703_v35 = vrot.slane %v642_v21, 9  ;;  %v747_v36 = vrot.slane %v4740_v22, 5  ;;  %v3767_v34 = vld [vmem:[%s4337_s25 + $0x54] sm:$0xe] }
  0x90   : > { %v750_v38 = vrot.slane %v4748_v4, 5  ;;  %v1042_v39 = vshll.u32 %v4801_v13, 16  ;;  %v1048_v2 = vrot.slane %v1046_v31, 4  ;;  %v1052_v41 = vshll.u32 %v4815_v27, 16  ;;  %v4875_v29 = vld [vmem:[%s4337_s25 + $0x74] sm:$0x1] }
  0x91   : > { %v748_v42 = vsel %vm4369_vm3, %v3703_v35, %v747_v36  ;;  %v749_v14 = vrot.slane %v747_v36, 4  ;;  %v1039_v45 = vor.u32 %v1038_v33, %v1035_v63  ;;  %v1009_v46 = vshrl.u32 %v3725_v43, 16  ;;  %v4835_v40 = vpop.permute.xlu1 %2225  ;;  %v4882_v35 = vld [vmem:[%s4337_s25 + $0x60] sm:$0xf] }
  0x92   : > { %2747 = vrot.lane.b32.xlu0 %v4006_v32, %s4295_s11  ;;  %v1044_v22 = vrot.slane %v1042_v39, 5  ;;  %v1054_v4 = vrot.slane %v1052_v41, 5  ;;  %v1012_v48 = vshll.u32 %v3725_v43, 16  ;;  %v1022_v49 = vshrl.u32 %v4827_v37, 16 }
  0x93   : > { %2239 = vrot.lane.b32.xlu1 %v3912_v28, %s4289_s5  ;;  %v751_v50 = vsel %vm4369_vm3, %v749_v14, %v750_v38  ;;  %v1040_v51 = vrot.slane %v1039_v45, 4  ;;  %v1011_v52 = vrot.slane %v1009_v46, 4  ;;  %v3927_v55 = vcombine.low %v3725_v43, %v4827_v37  ;;  %v4891_v46 = vld [vmem:[%s4337_s25 + $0x64] sm:$0xf] }
  0x94   : > { %v3911_v54 = vcombine.low %v748_v42, %v751_v50  ;;  %v1049_v9 = vor.u32 %v1048_v2, %v1044_v22  ;;  %v1014_v58 = vrot.slane %v1012_v48, 5  ;;  %v3784_v59 = vrot.slane %v3768_v47, 9 }
  0x95   : > { %v1045_v62 = vsel %vm4394_vm6, %v1040_v51, %v1044_v22  ;;  %v1363_v0 = vrot.slane %v4801_v13, 5  ;;  %v1366_v1 = vrot.slane %v4815_v27, 5  ;;  %v1018_v44 = vshll.u32 %v4827_v37, 16  ;;  %v4854_v16 = vpop.permute.xlu1 %2227 }
  0x96   : > { %2237 = vrot.lane.b32.xlu0 %v3911_v54, %s4289_s5  ;;  %v1050_v3 = vrot.slane %v1049_v9, 4  ;;  %v1015_v17 = vor.u32 %v1014_v58, %v1011_v52  ;;  %v1024_v5 = vrot.slane %v1022_v49, 4  ;;  %v1028_v6 = vshll.u32 %v3751_v56, 16  ;;  %v217_v52 = vld [vmem:[%s4337_s25 + $0x60] sm:$0xf] }
  0x97   : > { %2335 = vrot.lane.b32.xlu1 %v3928_v30, %s4288_s30  ;;  %v1364_v7 = vsel %vm4369_vm3, %v3784_v59, %v1363_v0  ;;  %v1365_v8 = vrot.slane %v1363_v0, 4  ;;  %v1020_v10 = vrot.slane %v1018_v44, 5  ;;  %v1642_v53 = vshrl.u32 %v4845_v60, 16  ;;  %v4251_v44 = vld [vmem:[%s4337_s25 + $0x4] sm:$0xf] }
  0x98   : > { %v1055_v13 = vsel %vm4394_vm6, %v1050_v3, %v1054_v4  ;;  %v1016_v15 = vrot.slane %v1015_v17, 4  ;;  %v1030_v19 = vrot.slane %v1028_v6, 5  ;;  %v1645_v18 = vshll.u32 %v4845_v60, 16  ;;  %v4252_v3 = vld [vmem:[%s4337_s25] sm:$0xf] }
  0x99   : > { %v3944_v20 = vcombine.low %v1045_v62, %v1055_v13  ;;  %v1367_v21 = vsel %vm4369_vm3, %v1365_v8, %v1366_v1  ;;  %v1025_v23 = vor.u32 %v1024_v5, %v1020_v10  ;;  %v1644_v25 = vrot.slane %v1642_v53, 4  ;;  %v4870_v63 = vpop.permute.xlu1 %2403  ;;  %v4911_v62 = vld [vmem:[%s4337_s25 + $0x68] sm:$0x1] }
  0x9a   : > { %2333 = vrot.lane.b32.xlu0 %v3927_v55, %s4288_s30  ;;  %v3960_v26 = vcombine.low %v1364_v7, %v1367_v21  ;;  %v1647_v27 = vrot.slane %v1645_v18, 5  ;;  %v1655_v28 = vshrl.u32 %v4861_v11, 16  ;;  %v2146_v31 = vpop.permute.xlu0 %2145  ;;  %v1021_v30 = vsel %vm4394_vm6, %v1016_v15, %v1020_v10  ;;  %v4928_v21 = vld [vmem:[%s4337_s25 + $0x68] sm:$0x1] }
  0x9b   : > { %2415 = vrot.lane.b32.xlu1 %v3944_v20, %s4290_s6  ;;  %v1026_v43 = vrot.slane %v1025_v23, 4  ;;  %v3783_v32 = vrot.slane %v3767_v34, 9  ;;  %v1356_v33 = vrot.slane %v4827_v37, 5  ;;  %v1359_v36 = vrot.slane %v3751_v56, 5  ;;  %v219_v23 = vld [vmem:[%s4337_s25 + $0x6c] sm:$0xf] }
  0x9c   : > { %v1648_v38 = vor.u32 %v1647_v27, %v1644_v25  ;;  %v1651_v39 = vshll.u32 %v4861_v11, 16  ;;  %v1657_v2 = vrot.slane %v1655_v28, 4  ;;  %v1661_v45 = vshll.u32 %v4875_v29, 16 }
  0x9d   : > { %v1031_v41 = vsel %vm4394_vm6, %v1026_v43, %v1030_v19  ;;  %v1357_v42 = vsel %vm4369_vm3, %v3783_v32, %v1356_v33  ;;  %v1358_v14 = vrot.slane %v1356_v33, 4  ;;  %v1618_v4 = vshrl.u32 %v4882_v35, 16 }
  0x9e   : > { %v3943_v37 = vcombine.low %v1021_v30, %v1031_v41  ;;  %v1649_v47 = vrot.slane %v1648_v38, 4  ;;  %v1653_v22 = vrot.slane %v1651_v39, 5  ;;  %v3976_v48 = vcombine.low %v4845_v60, %v4861_v11  ;;  %v4908_v60 = vld [vmem:[%s4337_s25 + $0x64] sm:$0xf]  ;;  %v4253_v38 = vld [vmem:[%s4337_s25 + $0x10] sm:$0xf] }
  0x9f   : > { %2495 = vrot.lane.b32.xlu1 %v3960_v26, %s4292_s8  ;;  %v1360_v49 = vsel %vm4369_vm3, %v1358_v14, %v1359_v36  ;;  %v1663_v50 = vrot.slane %v1661_v45, 5  ;;  %v1621_v51 = vshll.u32 %v4882_v35, 16  ;;  %v2148_v55 = vpop.permute.xlu0 %2147  ;;  %v4901_v56 = vpop.permute.xlu1 %2483  ;;  %v1631_v59 = vshrl.u32 %v4891_v46, 16  ;;  %v4254_v39 = vld [vmem:[%s4337_s25 + $0xc] sm:$0xf] }
  0xa0   : > { %2413 = vrot.lane.b32.xlu0 %v3943_v37, %s4290_s6  ;;  %v3959_v54 = vcombine.low %v1357_v42, %v1360_v49  ;;  %v1654_v9 = vsel %vm4394_vm6, %v1649_v47, %v1653_v22  ;;  %v1658_v58 = vor.u32 %v1657_v2, %v1653_v22  ;;  %v1620_v0 = vrot.slane %v1618_v4, 4  ;;  %v4939_v41 = vld [vmem:[%s4337_s25 + $0x70] sm:$0xf]  ;;  %v4945_v22 = vld [vmem:[%s4337_s25 + $0x74] sm:$0x1] }
  0xa1   : > { %v1623_v1 = vrot.slane %v1621_v51, 5  ;;  %v3873_v17 = vcombine.low %v4252_v3, %v4251_v44  ;;  %vm2769_vm7 = vcmask 64512   ;;  %v3975_v6 = vcombine.low %v4882_v35, %v4891_v46 }
  0xa2   : > { %v1659_v5 = vrot.slane %v1658_v58, 4  ;;  %v445_v7 = vshrl.u32 %v217_v52, 16  ;;  %v448_v8 = vshll.u32 %v217_v52, 16  ;;  %vm2818_vm8 = vcmask 130048   ;;  %v3847_v52 = vld [vmem:[%s4337_s25 + $0x60] sm:$0xe] }
  0xa3   : > { %2591 = vrot.lane.b32.xlu1 %v3976_v48, %s4293_s9  ;;  %v454_v10 = vshll.u32 %v4908_v60, 16  ;;  %v458_v53 = vshrl.u32 %v4908_v60, 16  ;;  %v464_v13 = vshll.u32 %v4911_v62, 16  ;;  %v4921_v15 = vpop.permute.xlu0 %2401  ;;  %v2772_v18 = vsel %vm2769_vm7, %v3873_v17, %v2146_v31  ;;  %v4931_v30 = vpop.permute.xlu1 %2579 }
  0xa4   : > { %2493 = vrot.lane.b32.xlu0 %v3959_v54, %s4292_s8  ;;  %v1664_v19 = vsel %vm4394_vm6, %v1659_v5, %v1663_v50  ;;  %v447_v34 = vrot.slane %v445_v7, 4  ;;  %v450_v20 = vrot.slane %v448_v8, 5  ;;  %v1624_v32 = vor.u32 %v1623_v1, %v1620_v0 }
  0xa5   : > { %v3992_v25 = vcombine.low %v1654_v9, %v1664_v19  ;;  %v456_v26 = vrot.slane %v454_v10, 5  ;;  %v460_v27 = vrot.slane %v458_v53, 4  ;;  %v466_v28 = vrot.slane %v464_v13, 5 }
  0xa6   : > { %v451_v43 = vor.u32 %v450_v20, %v447_v34  ;;  %v1627_v33 = vshll.u32 %v4891_v46, 16  ;;  %v1633_v31 = vrot.slane %v1631_v59, 4  ;;  %v1637_v36 = vshll.u32 %v4928_v21, 16 }
  0xa7   : > { %2671 = vrot.lane.b32.xlu1 %v3992_v25, %s4294_s10  ;;  %v461_v35 = vor.u32 %v460_v27, %v456_v26  ;;  %v3874_v2 = vcombine.low %v4254_v39, %v4253_v38  ;;  %v469_v42 = vshrl.u32 %v219_v23, 16  ;;  %v4941_v14 = vpop.permute.xlu0 %2481  ;;  %v1625_v37 = vrot.slane %v1624_v32, 4 }
  0xa8   : > { %2589 = vrot.lane.b32.xlu0 %v3975_v6, %s4293_s9  ;;  %v452_v45 = vrot.slane %v451_v43, 4  ;;  %v1629_v47 = vrot.slane %v1627_v33, 5  ;;  %v472_v4 = vshll.u32 %v219_v23, 16  ;;  %v1639_v49 = vrot.slane %v1637_v36, 5  ;;  %v645_v43 = vld [vmem:[%s4337_s25 + $0x6c] sm:$0xe] }
  0xa9   : > { %v462_v48 = vrot.slane %v461_v35, 4  ;;  %v2775_v50 = vsel %vm2769_vm7, %v3874_v2, %v2148_v55  ;;  %v471_v51 = vrot.slane %v469_v42, 4  ;;  %v478_v44 = vshll.u32 %v4939_v41, 16  ;;  %v3848_v33 = vld [vmem:[%s4337_s25 + $0x6c] sm:$0xe] }
  0xaa   : > { %v457_v54 = vsel %vm4394_vm6, %v452_v45, %v456_v26  ;;  %v1630_v9 = vsel %vm4394_vm6, %v1625_v37, %v1629_v47  ;;  %v1634_v58 = vor.u32 %v1633_v31, %v1629_v47  ;;  %v2822_v59 = vsel %vm2818_vm8, %v2775_v50, %v4854_v16  ;;  %v4959_v3 = vpop.permute.xlu1 %2659 }
  0xab   : > { %v467_v0 = vsel %vm4394_vm6, %v462_v48, %v466_v28  ;;  %v474_v1 = vrot.slane %v472_v4, 5  ;;  %v482_v55 = vshrl.u32 %v4939_v41, 16  ;;  %v488_v6 = vshll.u32 %v4945_v22, 16  ;;  %v4962_v8 = vpop.permute.xlu0 %2577  ;;  %v3731_v48 = vld [vmem:[%s4337_s25 + $0x78] sm:$0xf] }
  0xac   : > { %v3897_v17 = vcombine.low %v457_v54, %v467_v0  ;;  %v1635_v5 = vrot.slane %v1634_v58, 4  ;;  %v3863_v7 = vrot.slane %v3847_v52, 9  ;;  %v480_v53 = vrot.slane %v478_v44, 5  ;;  %v5010_v52 = vld [vmem:[%s4337_s25 + $0x7c] sm:$0xf] }
  0xad   : > { %v475_v10 = vor.u32 %v474_v1, %v471_v51  ;;  %v484_v16 = vrot.slane %v482_v55, 4  ;;  %v1965_v13 = vrot.slane %v4891_v46, 5  ;;  %v2820_v19 = vsel %vm2818_vm8, %v2772_v18, %v4835_v40  ;;  %v4216_v46 = vld [vmem:[%s6145_s1 + $0x20] ss:$0 sps:$4 sm:$0xff]   ;;  %v644_v58 = vld [vmem:[%s4337_s25 + $0x60] sm:$0xe] }
  0xae   : > { %2161 = vrot.lane.b32.xlu1 %v3897_v17, %s4291_s7  ;;  %v1640_v34 = vsel %vm4394_vm6, %v1635_v5, %v1639_v49  ;;  %v490_v20 = vrot.slane %v488_v6, 5  ;;  %v1968_v23 = vrot.slane %v4928_v21, 5  ;;  %vm2851_vm9 = vcmask 195584   ;;  %v5035_v6 = vld [vmem:[%s4337_s25 + $0x80] sm:$0x1] }
  0xaf   : > { %v3991_v25 = vcombine.low %v1630_v9, %v1640_v34  ;;  %v476_v26 = vrot.slane %v475_v10, 4  ;;  %v485_v27 = vor.u32 %v484_v16, %v480_v53  ;;  %v1966_v40 = vsel %vm4369_vm3, %v3863_v7, %v1965_v13 }
  0xb0   : > { %v1967_v18 = vrot.slane %v1965_v13, 4  ;;  %vm2884_vm10 = vcmask 261120   ;;  %v2855_v28 = vsel %vm2851_vm9, %v2822_v59, %v4804_v12  ;;  %vm2917_vm11 = vcmask 326656   ;;  %v4983_v31 = vpop.permute.xlu1 %2149  ;;  %v5038_v13 = vld [vmem:[%s4337_s25 + $0x6c] sm:$0xf] }
  0xb1   : > { %2669 = vrot.lane.b32.xlu0 %v3991_v25, %s4294_s10  ;;  %v481_v21 = vsel %vm4394_vm6, %v476_v26, %v480_v53  ;;  %v486_v32 = vrot.slane %v485_v27, 4  ;;  %v2888_v36 = vsel %vm2884_vm10, %v2855_v28, %v4870_v63  ;;  %v2853_v12 = vsel %vm2851_vm9, %v2820_v19, %v4847_v61  ;;  %v4217_v63 = vld [vmem:[%s6145_s1 + $0x18] sm:$0xff]  }
  0xb2   : > { %v1969_v35 = vsel %vm4369_vm3, %v1967_v18, %v1968_v23  ;;  %vm3118_vm12 = vcmask 1043456   ;;  %v4991_v38 = vpop.permute.xlu0 %2657  ;;  %v3706_v42 = vrot.slane %v645_v43, 9  ;;  %v768_v45 = vrot.slane %v4939_v41, 5 }
  0xb3   : > { %v491_v39 = vsel %vm4394_vm6, %v486_v32, %v490_v20  ;;  %v4007_v2 = vcombine.low %v1966_v40, %v1969_v35  ;;  %4178 = vmatprep.subr.msk.bf16.mxu0 %vm3118_vm12, %v4216_v46  ;;  %4179 = vmatprep.subr.msk.bf16.mxu1 %vm3118_vm12, %v4216_v46  ;;  %v771_v37 = vrot.slane %v4945_v22, 5  ;;  %v3864_v47 = vrot.slane %v3848_v33, 9  ;;  %v3770_v35 = vld [vmem:[%s4337_s25 + $0x78] sm:$0xe] }
  0xb4   : > { %v3898_v61 = vcombine.low %v481_v21, %v491_v39  ;;  %v1972_v4 = vrot.slane %v4861_v11, 5  ;;  %v769_v49 = vsel %vm4369_vm3, %v3706_v42, %v768_v45  ;;  %v770_v41 = vrot.slane %v768_v45, 4 }
  0xb5   : > { %2749 = vrot.lane.b32.xlu0 %v4007_v2, %s4295_s11  ;;  %v1975_v50 = vrot.slane %v4875_v29, 5  ;;  %v3120_v51 = vsel %vm3118_vm12, %v4216_v46, 0  ;;  %v2921_v22 = vsel %vm2917_vm11, %v2888_v36, %v4901_v56  ;;  %v2886_v11 = vsel %vm2884_vm10, %v2853_v12, %v4921_v15  ;;  %v4219_v15 = vld [vmem:[%s6145_s1 + $0x10] sm:$0xff]  }
  0xb6   : > { %2163 = vrot.lane.b32.xlu1 %v3898_v61, %s4291_s7  ;;  %v1973_v54 = vsel %vm4369_vm3, %v3864_v47, %v1972_v4  ;;  %v1974_v9 = vrot.slane %v1972_v4, 4  ;;  %4127 = vmatpush3.bf16.msra.mxu0 %v3120_v51  ;;  %v5020_v29 = vpop.permute.xlu0 %2737  ;;  %v772_v59 = vsel %vm4369_vm3, %v770_v41, %v771_v37  ;;  %vm2950_vm13 = vcmask 392192   ;;  %v5051_v46 = vld [vmem:[%s4337_s25 + $0x70] sm:$0xf]  ;;  %v4224_v37 = vld [vmem:[%s6145_s1] sm:$0xff]  }
  0xb7   : > { %4128 = vmatprep.subr.bf16.mxu0 %v4217_v63  ;;  %v1081_v0 = vshrl.u32 %v3731_v48, 16  ;;  %v1084_v56 = vshll.u32 %v3731_v48, 16  ;;  %v5027_v1 = vpop.permute.xlu1 %2151  ;;  %4173 = vmatpush3.bf16.msra.mxu1 %v3120_v51  ;;  %v3914_v44 = vcombine.low %v769_v49, %v772_v59  ;;  %v2919_v17 = vsel %vm2917_vm11, %v2886_v11, %v4941_v14  ;;  %v5087_v41 = vld [vmem:[%s4337_s25 + $0x74] sm:$0x1] }
  0xb8   : > { %v1976_v55 = vsel %vm4369_vm3, %v1974_v9, %v1975_v50  ;;  %v1094_v5 = vshrl.u32 %v5010_v52, 16  ;;  %4169 = vmatprep.subr.bf16.mxu1 %v4217_v63  ;;  %v3705_v16 = vrot.slane %v644_v58, 9  ;;  %v2954_v19 = vsel %vm2950_vm13, %v2921_v22, %v4931_v30  ;;  %v5096_v9 = vld [vmem:[%s4337_s25 + $0x18] sm:$0xf]  ;;  %v5099_v58 = vld [vmem:[%s4337_s25 + $0x1c] sm:$0xf] }
  0xb9   : > { %v4008_v7 = vcombine.low %v1973_v54, %v1976_v55  ;;  %v1083_v10 = vrot.slane %v1081_v0, 4  ;;  %v1086_v53 = vrot.slane %v1084_v56, 5  ;;  %v3930_v34 = vcombine.low %v3731_v48, %v5010_v52  ;;  %v5093_v54 = vld [vmem:[%s4337_s25 + $0x84] sm:$0xf] }
  0xba   : > { %2243 = vrot.lane.b32.xlu1 %v3914_v44, %s4289_s5  ;;  %v761_v14 = vrot.slane %v4908_v60, 5  ;;  %v764_v20 = vrot.slane %v4911_v62, 5  ;;  %4129 = vmatpush3.bf16.msra.mxu0 %v4217_v63  ;;  %v5046_v23 = vpop.permute.xlu0 %2739  ;;  %vm2983_vm14 = vcmask 457728   ;;  %v1090_v26 = vshll.u32 %v5010_v52, 16  ;;  %v4222_v60 = vld [vmem:[%s6145_s1 + $0x8] sm:$0xff]  }
  0xbb   : > { %2751 = vrot.lane.b32.xlu0 %v4008_v7, %s4295_s11  ;;  %4130 = vmatprep.subr.bf16.mxu0 %v4219_v15  ;;  %v1087_v25 = vor.u32 %v1086_v53, %v1083_v10  ;;  %v1096_v27 = vrot.slane %v1094_v5, 4  ;;  %v5056_v30 = vpop.permute.xlu1 %2231  ;;  %v1100_v18 = vshll.u32 %v5035_v6, 16  ;;  %v1057_v28 = vshrl.u32 %v5038_v13, 16  ;;  %v4257_v53 = vld [vmem:[%s4337_s25 + $0x24] sm:$0xf] }
  0xbc   : > { %v762_v62 = vsel %vm4369_vm3, %v3705_v16, %v761_v14  ;;  %v763_v40 = vrot.slane %v761_v14, 4  ;;  %4174 = vmatpush3.bf16.msra.mxu1 %v4217_v63  ;;  %v2952_v43 = vsel %vm2950_vm13, %v2919_v17, %v4962_v8  ;;  %v1092_v32 = vrot.slane %v1090_v26, 5  ;;  %v4258_v16 = vld [vmem:[%s4337_s25 + $0x28] sm:$0xf]  ;;  %v3769_v14 = vld [vmem:[%s4337_s25 + $0x6c] sm:$0xe] }
  0xbd   : > { %v1088_v21 = vrot.slane %v1087_v25, 4  ;;  %v1060_v33 = vshll.u32 %v5038_v13, 16  ;;  %4170 = vmatprep.subr.bf16.mxu1 %v4219_v15  ;;  %v5071_v12 = vsel %vm2983_vm14, %v2954_v19, %v4959_v3  ;;  %v1059_v39 = vrot.slane %v1057_v28, 4  ;;  %v5117_v19 = vld [vmem:[%s4337_s25 + $0x88] sm:$0xf] }
  0xbe   : > { %2339 = vrot.lane.b32.xlu1 %v3930_v34, %s4288_s30  ;;  %v765_v36 = vsel %vm4369_vm3, %v763_v40, %v764_v20  ;;  %v1070_v2 = vshrl.u32 %v5051_v46, 16  ;;  %4131 = vmatpush3.bf16.msra.mxu0 %v4219_v15  ;;  %v5074_v8 = vpop.permute.xlu0 %2229  ;;  %v1097_v45 = vor.u32 %v1096_v27, %v1092_v32  ;;  %v1102_v63 = vrot.slane %v1100_v18, 5 }
  0xbf   : > { %v3913_v42 = vcombine.low %v762_v62, %v765_v36  ;;  %v1062_v61 = vrot.slane %v1060_v33, 5  ;;  %4132 = vmatprep.subr.bf16.mxu0 %v4222_v60  ;;  %v5079_v3 = vpop.permute.xlu1 %2327  ;;  %v1093_v47 = vsel %vm4394_vm6, %v1088_v21, %v1092_v32  ;;  %v3929_v4 = vcombine.low %v5038_v13, %v5051_v46  ;;  %v5136_v36 = vld [vmem:[%s4337_s25 + $0x8c] sm:$0x1] }
  0xc0   : > { %v3786_v48 = vrot.slane %v3770_v35, 9  ;;  %v1377_v49 = vrot.slane %v5010_v52, 5  ;;  %4175 = vmatpush3.bf16.msra.mxu1 %v4219_v15  ;;  %v1098_v50 = vrot.slane %v1097_v45, 4  ;;  %v1380_v51 = vrot.slane %v5035_v6, 5  ;;  %v3809_v45 = vld [vmem:[%s4337_s25 + $0x78] sm:$0xf] }
  0xc1   : > { %2241 = vrot.lane.b32.xlu0 %v3913_v42, %s4289_s5  ;;  %v1063_v22 = vor.u32 %v1062_v61, %v1059_v39  ;;  %v1066_v11 = vshll.u32 %v5051_v46, 16  ;;  %4171 = vmatprep.subr.bf16.mxu1 %v4222_v60  ;;  %v3875_v52 = vcombine.low %v5096_v9, %v5099_v58  ;;  %v1072_v56 = vrot.slane %v1070_v2, 4 }
  0xc2   : > { %v1378_v59 = vsel %vm4369_vm3, %v3786_v48, %v1377_v49  ;;  %v1379_v0 = vrot.slane %v1377_v49, 4  ;;  %4133 = vmatpush3.bf16.msra.mxu0 %v4222_v60  ;;  %v5105_v15 = vpop.permute.xlu0 %2325  ;;  %v1103_v44 = vsel %vm4394_vm6, %v1098_v50, %v1102_v63  ;;  %v1076_v5 = vshll.u32 %v5087_v41, 16 }
  0xc3   : > { %v1064_v55 = vrot.slane %v1063_v22, 4  ;;  %v1068_v17 = vrot.slane %v1066_v11, 5  ;;  %4134 = vmatprep.subr.bf16.mxu0 %v4224_v37  ;;  %v5110_v6 = vpop.permute.xlu1 %2407  ;;  %v3946_v7 = vcombine.low %v1093_v47, %v1103_v44  ;;  %v3876_v13 = vcombine.low %v4257_v53, %v4258_v16  ;;  %v221_v11 = vld [vmem:[%s4337_s25 + $0x78] sm:$0xf] }
  0xc4   : > { %v1381_v10 = vsel %vm4369_vm3, %v1379_v0, %v1380_v51  ;;  %v1690_v34 = vshrl.u32 %v5093_v54, 16  ;;  %4176 = vmatpush3.bf16.msra.mxu1 %v4222_v60  ;;  %v2985_v20 = vsel %vm2983_vm14, %v2952_v43, %v4991_v38  ;;  %v1078_v27 = vrot.slane %v1076_v5, 5 }
  0xc5   : > { %2337 = vrot.lane.b32.xlu0 %v3929_v4, %s4288_s30  ;;  %v3962_v25 = vcombine.low %v1378_v59, %v1381_v10  ;;  %v1073_v26 = vor.u32 %v1072_v56, %v1068_v17  ;;  %4172 = vmatprep.subr.bf16.mxu1 %v4224_v37  ;;  %v1069_v62 = vsel %vm4394_vm6, %v1064_v55, %v1068_v17  ;;  %v1693_v60 = vshll.u32 %v5093_v54, 16  ;;  %v5176_v55 = vld [vmem:[%s4337_s25 + $0x7c] sm:$0xf]  ;;  %v5179_v17 = vld [vmem:[%s4337_s25 + $0x80] sm:$0x1] }
  0xc6   : > { %2419 = vrot.lane.b32.xlu1 %v3946_v7, %s4290_s6  ;;  %v2781_v40 = vsel %vm2769_vm7, %v3876_v13, %v5027_v1  ;;  %v1692_v18 = vrot.slane %v1690_v34, 4  ;;  %4135 = vmatpush3.bf16.msra.mxu0 %v4224_v37  ;;  %v1703_v38 = vshrl.u32 %v5117_v19, 16  ;;  %v3785_v43 = vrot.slane %v3769_v14, 9 }
  0xc7   : > { %v1074_v28 = vrot.slane %v1073_v26, 4  ;;  %v1370_v21 = vrot.slane %v5051_v46, 5  ;;  %v5132_v32 = vpop.permute.xlu1 %2487  ;;  %v1695_v33 = vrot.slane %v1693_v60, 5  ;;  %v1373_v35 = vrot.slane %v5087_v41, 5  ;;  %v5159_v41 = vld [vmem:[%s4337_s25 + $0x7c] sm:$0xf] }
  0xc8   : > { %vm3016_vm15 = vcmask 523264   ;;  %vm3085_vm0 = vcmask 588800   ;;  %v5138_v1 = vpop.permute.xlu0 %2405  ;;  %4177 = vmatpush3.bf16.msra.mxu1 %v4224_v37  ;;  %v3978_v61 = vcombine.low %v5093_v54, %v5117_v19  ;;  %v1699_v47 = vshll.u32 %v5117_v19, 16  ;;  %v5193_v26 = vld [vmem:[%s4337_s25 + $0x80] sm:$0x1] }
  0xc9   : > { %v1079_v39 = vsel %vm4394_vm6, %v1074_v28, %v1078_v27  ;;  %v1371_v2 = vsel %vm4369_vm3, %v3785_v43, %v1370_v21  ;;  %v1372_v46 = vrot.slane %v1370_v21, 4  ;;  %v3018_v42 = vsel %vm3016_vm15, %v2985_v20, %v5020_v29  ;;  %v223_v43 = vld [vmem:[%s4337_s25 + $0x84] sm:$0xf] }
  0xca   : > { %2499 = vrot.lane.b32.xlu1 %v3962_v25, %s4292_s8  ;;  %v3945_v63 = vcombine.low %v1069_v62, %v1079_v39  ;;  %4136 = vmatprep.mubr.msk.bf16.mxu0 %vm3085_vm0, %v3018_v42  ;;  %v3020_v37 = vsel %vm3016_vm15, %v5071_v12, %v5046_v23  ;;  %v1696_v29 = vor.u32 %v1695_v33, %v1692_v18  ;;  %v1705_v48 = vrot.slane %v1703_v38, 4 }
  0xcb   : > { %v1374_v4 = vsel %vm4369_vm3, %v1372_v46, %v1373_v35  ;;  %v1709_v49 = vshll.u32 %v5136_v36, 16  ;;  %4137 = vmatmul.mubr.msk.bf16.vlgmr.msra.gmra.mxu0 %vm3085_vm0, %v3020_v37  ;;  %v5162_v50 = vpop.permute.xlu1 %2583  ;;  %v1701_v12 = vrot.slane %v1699_v47, 5  ;;  %v1666_v51 = vshrl.u32 %v3809_v45, 16  ;;  %v5212_v47 = vld [vmem:[%s4337_s25 + $0x8c] sm:$0x1] }
  0xcc   : > { %2417 = vrot.lane.b32.xlu0 %v3945_v63, %s4290_s6  ;;  %v3961_v23 = vcombine.low %v1371_v2, %v1374_v4  ;;  %v1669_v22 = vshll.u32 %v3809_v45, 16  ;;  %v5166_v54 = vpop.permute.xlu0 %2485  ;;  %v2778_v59 = vsel %vm2769_vm7, %v3875_v52, %v4983_v31  ;;  %v2826_v0 = vsel %vm2818_vm8, %v2781_v40, %v5056_v30  ;;  %v224_v63 = vld [vmem:[%s4337_s25 + $0x88] sm:$0xf] }
  0xcd   : > { %v1697_v56 = vrot.slane %v1696_v29, 4  ;;  %v1711_v44 = vrot.slane %v1709_v49, 5  ;;  %v1706_v5 = vor.u32 %v1705_v48, %v1701_v12  ;;  %v1668_v7 = vrot.slane %v1666_v51, 4 }
  0xce   : > { %2595 = vrot.lane.b32.xlu1 %v3978_v61, %s4293_s9  ;;  %v1671_v10 = vrot.slane %v1669_v22, 5  ;;  %v1679_v53 = vshrl.u32 %v5159_v41, 16  ;;  %v3977_v9 = vcombine.low %v3809_v45, %v5159_v41  ;;  %v493_v30 = vshrl.u32 %v221_v11, 16 }
  0xcf   : > { %v1702_v31 = vsel %vm4394_vm6, %v1697_v56, %v1701_v12  ;;  %v496_v58 = vshll.u32 %v221_v11, 16  ;;  %v1707_v52 = vrot.slane %v1706_v5, 4  ;;  %v502_v16 = vshll.u32 %v5176_v55, 16  ;;  %v5190_v14 = vpop.permute.xlu1 %2663  ;;  %v3849_v12 = vld [vmem:[%s4337_s25 + $0x78] sm:$0xe] }
  0xd0   : > { %2497 = vrot.lane.b32.xlu0 %v3961_v23, %s4292_s8  ;;  %v506_v13 = vshrl.u32 %v5176_v55, 16  ;;  %v512_v34 = vshll.u32 %v5179_v17, 16  ;;  %v495_v20 = vrot.slane %v493_v30, 4  ;;  %v1672_v27 = vor.u32 %v1671_v10, %v1668_v7  ;;  %v5196_v40 = vpop.permute.xlu0 %2581 }
  0xd1   : > { %v498_v25 = vrot.slane %v496_v58, 5  ;;  %v1675_v62 = vshll.u32 %v5159_v41, 16  ;;  %v1712_v18 = vsel %vm4394_vm6, %v1707_v52, %v1711_v44  ;;  %v2859_v60 = vsel %vm2851_vm9, %v2826_v0, %v5079_v3 }
  0xd2   : > { %v504_v28 = vrot.slane %v502_v16, 5  ;;  %v508_v38 = vrot.slane %v506_v13, 4  ;;  %v3994_v21 = vcombine.low %v1702_v31, %v1712_v18  ;;  %v1673_v35 = vrot.slane %v1672_v27, 4  ;;  %v647_v13 = vld [vmem:[%s4337_s25 + $0x84] sm:$0xe] }
  0xd3   : > { %v499_v33 = vor.u32 %v498_v25, %v495_v20  ;;  %v1677_v39 = vrot.slane %v1675_v62, 5  ;;  %v514_v46 = vrot.slane %v512_v34, 5  ;;  %v1681_v42 = vrot.slane %v1679_v53, 4  ;;  %v3850_v62 = vld [vmem:[%s4337_s25 + $0x84] sm:$0xe] }
  0xd4   : > { %2593 = vrot.lane.b32.xlu0 %v3977_v9, %s4293_s9  ;;  %v509_v2 = vor.u32 %v508_v38, %v504_v28  ;;  %v1685_v45 = vshll.u32 %v5193_v26, 16  ;;  %2675 = vrot.lane.b32.xlu1 %v3994_v21, %s4294_s10  ;;  %v2824_v3 = vsel %vm2818_vm8, %v2778_v59, %v5074_v8  ;;  %v517_v4 = vshrl.u32 %v223_v43, 16 }
  0xd5   : > { %v500_v61 = vrot.slane %v499_v33, 4  ;;  %v1678_v37 = vsel %vm4394_vm6, %v1673_v35, %v1677_v39  ;;  %v1682_v48 = vor.u32 %v1681_v42, %v1677_v39  ;;  %v520_v23 = vshll.u32 %v223_v43, 16  ;;  %v5215_v51 = vpop.permute.xlu1 %2153 }
  0xd6   : > { %v510_v29 = vrot.slane %v509_v2, 4  ;;  %v1687_v49 = vrot.slane %v1685_v45, 5  ;;  %v519_v11 = vrot.slane %v517_v4, 4  ;;  %v526_v8 = vshll.u32 %v224_v63, 16 }
  0xd7   : > { %v505_v22 = vsel %vm4394_vm6, %v500_v61, %v504_v28  ;;  %v530_v59 = vshrl.u32 %v224_v63, 16  ;;  %v5219_v0 = vpop.permute.xlu0 %2661  ;;  %v1683_v44 = vrot.slane %v1682_v48, 4  ;;  %v522_v5 = vrot.slane %v520_v23, 5  ;;  %v5254_v61 = vld [vmem:[%s4337_s25 + $0x94] sm:$0xf] }
  0xd8   : > { %v515_v56 = vsel %vm4394_vm6, %v510_v29, %v514_v46  ;;  %v536_v7 = vshll.u32 %v5212_v47, 16  ;;  %v528_v53 = vrot.slane %v526_v8, 5  ;;  %v3865_v9 = vrot.slane %v3849_v12, 9  ;;  %v3735_v46 = vld [vmem:[%s4337_s25 + $0x90] sm:$0xf] }
  0xd9   : > { %v3899_v10 = vcombine.low %v505_v22, %v515_v56  ;;  %v532_v31 = vrot.slane %v530_v59, 4  ;;  %v1688_v30 = vsel %vm4394_vm6, %v1683_v44, %v1687_v49  ;;  %v2892_v58 = vsel %vm2884_vm10, %v2859_v60, %v5110_v6  ;;  %v646_v48 = vld [vmem:[%s4337_s25 + $0x78] sm:$0xe]  ;;  %v5276_v44 = vld [vmem:[%s4337_s25 + $0x98] sm:$0x1] }
  0xda   : > { %v523_v52 = vor.u32 %v522_v5, %v519_v11  ;;  %v1979_v16 = vrot.slane %v5159_v41, 5  ;;  %v3993_v34 = vcombine.low %v1678_v37, %v1688_v30  ;;  %v538_v25 = vrot.slane %v536_v7, 5 }
  0xdb   : > { %2165 = vrot.lane.b32.xlu1 %v3899_v10, %s4291_s7  ;;  %v533_v20 = vor.u32 %v532_v31, %v528_v53  ;;  %v1982_v27 = vrot.slane %v5193_v26, 5  ;;  %v5233_v18 = vpop.permute.xlu0 %2741  ;;  %v2857_v28 = vsel %vm2851_vm9, %v2824_v3, %v5105_v15  ;;  %v3708_v21 = vrot.slane %v647_v13, 9  ;;  %v5281_v10 = vld [vmem:[%s4337_s25 + $0x84] sm:$0xf] }
  0xdc   : > { %v524_v38 = vrot.slane %v523_v52, 4  ;;  %v1980_v6 = vsel %vm4369_vm3, %v3865_v9, %v1979_v16  ;;  %v1981_v41 = vrot.slane %v1979_v16, 4  ;;  %v5239_v60 = vpop.permute.xlu1 %2155  ;;  %2673 = vrot.lane.b32.xlu0 %v3993_v34, %s4294_s10  ;;  %v782_v26 = vrot.slane %v224_v63, 5 }
  0xdd   : > { %v534_v43 = vrot.slane %v533_v20, 4  ;;  %v785_v33 = vrot.slane %v5212_v47, 5  ;;  %v3866_v39 = vrot.slane %v3850_v62, 9  ;;  %v1986_v2 = vrot.slane %v5117_v19, 5  ;;  %v5296_v20 = vld [vmem:[%s4337_s25 + $0x88] sm:$0xf] }
  0xde   : > { %v529_v35 = vsel %vm4394_vm6, %v524_v38, %v528_v53  ;;  %v1983_v15 = vsel %vm4369_vm3, %v1981_v41, %v1982_v27  ;;  %v783_v63 = vsel %vm4369_vm3, %v3708_v21, %v782_v26  ;;  %v784_v3 = vrot.slane %v782_v26, 4 }
  0xdf   : > { %v539_v42 = vsel %vm4394_vm6, %v534_v43, %v538_v25  ;;  %v4009_v45 = vcombine.low %v1980_v6, %v1983_v15  ;;  %v5256_v37 = vpop.permute.xlu0 %2743  ;;  %v1987_v4 = vsel %vm4369_vm3, %v3866_v39, %v1986_v2  ;;  %v1988_v29 = vrot.slane %v1986_v2, 4  ;;  %v3772_v6 = vld [vmem:[%s4337_s25 + $0x90] sm:$0xe] }
  0xe0   : > { %v3900_v47 = vcombine.low %v529_v35, %v539_v42  ;;  %v1989_v19 = vrot.slane %v5136_v36, 5  ;;  %v5262_v49 = vpop.permute.xlu1 %2235  ;;  %v2925_v23 = vsel %vm2917_vm11, %v2892_v58, %v5132_v32  ;;  %v2890_v12 = vsel %vm2884_vm10, %v2857_v28, %v5138_v1 }
  0xe1   : > { %2753 = vrot.lane.b32.xlu0 %v4009_v45, %s4295_s11  ;;  %v786_v22 = vsel %vm4369_vm3, %v784_v3, %v785_v33  ;;  %v1129_v11 = vshrl.u32 %v3735_v46, 16  ;;  %v1132_v59 = vshll.u32 %v3735_v46, 16  ;;  %v1142_v56 = vshrl.u32 %v5254_v61, 16 }
  0xe2   : > { %2167 = vrot.lane.b32.xlu1 %v3900_v47, %s4291_s7  ;;  %v3916_v8 = vcombine.low %v783_v63, %v786_v22  ;;  %v1990_v36 = vsel %vm4369_vm3, %v1988_v29, %v1989_v19  ;;  %v2958_v32 = vsel %vm2950_vm13, %v2925_v23, %v5162_v50  ;;  %v3707_v7 = vrot.slane %v646_v48, 9  ;;  %v5324_v63 = vld [vmem:[%s4337_s25 + $0x8c] sm:$0x1] }
  0xe3   : > { %v4010_v5 = vcombine.low %v1987_v4, %v1990_v36  ;;  %v1131_v1 = vrot.slane %v1129_v11, 4  ;;  %v5283_v53 = vpop.permute.xlu0 %2233  ;;  %v2923_v31 = vsel %vm2917_vm11, %v2890_v12, %v5166_v54  ;;  %v1134_v9 = vrot.slane %v1132_v59, 5  ;;  %v5334_v12 = vld [vmem:[%s4337_s25 + $0x9c] sm:$0xf]  ;;  %v4260_v59 = vld [vmem:[%s4337_s25 + $0x40] sm:$0xf] }
  0xe4   : > { %v775_v30 = vrot.slane %v5176_v55, 5  ;;  %v778_v58 = vrot.slane %v5179_v17, 5  ;;  %v5289_v52 = vpop.permute.xlu1 %2331  ;;  %v3932_v50 = vcombine.low %v3735_v46, %v5254_v61  ;;  %v1138_v16 = vshll.u32 %v5254_v61, 16  ;;  %v4259_v36 = vld [vmem:[%s4337_s25 + $0x3c] sm:$0xf] }
  0xe5   : > { %2755 = vrot.lane.b32.xlu0 %v4010_v5, %s4295_s11  ;;  %v1144_v13 = vrot.slane %v1142_v56, 4  ;;  %v1148_v34 = vshll.u32 %v5276_v44, 16  ;;  %v1135_v17 = vor.u32 %v1134_v9, %v1131_v1  ;;  %v1105_v25 = vshrl.u32 %v5281_v10, 16  ;;  %v4261_v9 = vld [vmem:[%s4337_s25 + $0x30] sm:$0xf] }
  0xe6   : > { %2247 = vrot.lane.b32.xlu1 %v3916_v8, %s4289_s5  ;;  %v776_v54 = vsel %vm4369_vm3, %v3707_v7, %v775_v30  ;;  %v777_v55 = vrot.slane %v775_v30, 4  ;;  %v5304_v27 = vsel %vm2983_vm14, %v2958_v32, %v5190_v14  ;;  %v2956_v62 = vsel %vm2950_vm13, %v2923_v31, %v5196_v40  ;;  %v3771_v31 = vld [vmem:[%s4337_s25 + $0x84] sm:$0xe]  ;;  %v4262_v30 = vld [vmem:[%s4337_s25 + $0x34] sm:$0xf] }
  0xe7   : > { %v1140_v28 = vrot.slane %v1138_v16, 5  ;;  %v1108_v38 = vshll.u32 %v5281_v10, 16  ;;  %v5310_v41 = vpop.permute.xlu0 %2329  ;;  %v1136_v21 = vrot.slane %v1135_v17, 4  ;;  %v1107_v26 = vrot.slane %v1105_v25, 4 }
  0xe8   : > { %v779_v43 = vsel %vm4369_vm3, %v777_v55, %v778_v58  ;;  %v1118_v33 = vshrl.u32 %v5296_v20, 16  ;;  %v5315_v35 = vpop.permute.xlu1 %2411  ;;  %v1150_v39 = vrot.slane %v1148_v34, 5  ;;  %v3931_v46 = vcombine.low %v5281_v10, %v5296_v20 }
  0xe9   : > { %v3915_v14 = vcombine.low %v776_v54, %v779_v43  ;;  %v1145_v15 = vor.u32 %v1144_v13, %v1140_v28  ;;  %v1110_v40 = vrot.slane %v1108_v38, 5  ;;  %v1141_v2 = vsel %vm4394_vm6, %v1136_v21, %v1140_v28 }
  0xea   : > { %2343 = vrot.lane.b32.xlu1 %v3932_v50, %s4288_s30  ;;  %v3788_v42 = vrot.slane %v3772_v6, 9  ;;  %v1391_v45 = vrot.slane %v5254_v61, 5  ;;  %v2989_v47 = vsel %vm2983_vm14, %v2956_v62, %v5219_v0  ;;  %v1394_v4 = vrot.slane %v5276_v44, 5  ;;  %v5344_v44 = vld [vmem:[%s4337_s25 + $0xa0] sm:$0xf] }
  0xeb   : > { %2245 = vrot.lane.b32.xlu0 %v3915_v14, %s4289_s5  ;;  %v1146_v3 = vrot.slane %v1145_v15, 4  ;;  %v1111_v29 = vor.u32 %v1110_v40, %v1107_v26  ;;  %v1114_v61 = vshll.u32 %v5296_v20, 16  ;;  %v1120_v23 = vrot.slane %v1118_v33, 4  ;;  %v5369_v6 = vld [vmem:[%s4337_s25 + $0xa4] sm:$0x1] }
  0xec   : > { %v1392_v19 = vsel %vm4369_vm3, %v3788_v42, %v1391_v45  ;;  %v1393_v48 = vrot.slane %v1391_v45, 4  ;;  %v5336_v22 = vpop.permute.xlu1 %2491  ;;  %v1124_v8 = vshll.u32 %v5324_v63, 16  ;;  %v3878_v56 = vcombine.low %v4259_v36, %v4260_v59  ;;  %v5377_v14 = vld [vmem:[%s4337_s25 + $0x90] sm:$0xf] }
  0xed   : > { %v1151_v0 = vsel %vm4394_vm6, %v1146_v3, %v1150_v39  ;;  %v1112_v11 = vrot.slane %v1111_v29, 4  ;;  %v5346_v5 = vpop.permute.xlu0 %2409  ;;  %v1116_v7 = vrot.slane %v1114_v61, 5  ;;  %v3022_v10 = vsel %vm3016_vm15, %v2989_v47, %v5233_v18 }
  0xee   : > { %v3948_v32 = vcombine.low %v1141_v2, %v1151_v0  ;;  %v1395_v1 = vsel %vm4369_vm3, %v1393_v48, %v1394_v4  ;;  %v3877_v58 = vcombine.low %v4261_v9, %v4262_v30  ;;  %v1126_v16 = vrot.slane %v1124_v8, 5  ;;  %4140 = vmatprep.mubr.msk.bf16.mxu0 %vm3085_vm0, %v3022_v10 }
  0xef   : > { %2341 = vrot.lane.b32.xlu0 %v3931_v46, %s4288_s30  ;;  %v3964_v50 = vcombine.low %v1392_v19, %v1395_v1  ;;  %v1738_v13 = vshrl.u32 %v5334_v12, 16  ;;  %v1121_v34 = vor.u32 %v1120_v23, %v1116_v7  ;;  %v2787_v18 = vsel %vm2769_vm7, %v3878_v56, %v5239_v60  ;;  %v225_v23 = vld [vmem:[%s4337_s25 + $0x90] sm:$0xf]  ;;  %v5411_v56 = vld [vmem:[%s4337_s25 + $0x98] sm:$0x1] }
  0xf0   : > { %2423 = vrot.lane.b32.xlu1 %v3948_v32, %s4290_s6  ;;  %v1741_v54 = vshll.u32 %v5334_v12, 16  ;;  %v1751_v55 = vshrl.u32 %v5344_v44, 16  ;;  %v5363_v17 = vpop.permute.xlu1 %2587  ;;  %v1117_v25 = vsel %vm4394_vm6, %v1112_v11, %v1116_v7  ;;  %v3787_v28 = vrot.slane %v3771_v31, 9 }
  0xf1   : > { %v1740_v62 = vrot.slane %v1738_v13, 4  ;;  %v1384_v38 = vrot.slane %v5296_v20, 5  ;;  %v5371_v43 = vpop.permute.xlu0 %2489  ;;  %v1122_v21 = vrot.slane %v1121_v34, 4  ;;  %v3980_v60 = vcombine.low %v5334_v12, %v5344_v44  ;;  %v5405_v12 = vld [vmem:[%s4337_s25 + $0x94] sm:$0xf] }
  0xf2   : > { %v1743_v26 = vrot.slane %v1741_v54, 5  ;;  %v1387_v33 = vrot.slane %v5324_v63, 5  ;;  %v3024_v20 = vsel %vm3016_vm15, %v5304_v27, %v5256_v37  ;;  %v1747_v40 = vshll.u32 %v5344_v44, 16  ;;  %v5393_v27 = vld [vmem:[%s4337_s25 + $0x94] sm:$0xf] }
  0xf3   : > { %v1385_v15 = vsel %vm4369_vm3, %v3787_v28, %v1384_v38  ;;  %v1386_v39 = vrot.slane %v1384_v38, 4  ;;  %v1127_v2 = vsel %vm4394_vm6, %v1122_v21, %v1126_v16  ;;  %v1753_v42 = vrot.slane %v1751_v55, 4  ;;  %4141 = vmatmul.mubr.msk.bf16.gmra.mxu0 %vm3085_vm0, %v3024_v20  ;;  %v5425_v16 = vld [vmem:[%s4337_s25 + $0x98] sm:$0x1] }
  0xf4   : > { %2503 = vrot.lane.b32.xlu1 %v3964_v50, %s4292_s8  ;;  %v1744_v46 = vor.u32 %v1743_v26, %v1740_v62  ;;  %v1757_v45 = vshll.u32 %v5369_v6, 16  ;;  %v3947_v63 = vcombine.low %v1117_v25, %v1127_v2  ;;  %v1749_v37 = vrot.slane %v1747_v40, 5  ;;  %v5396_v4 = vpop.permute.xlu1 %2667  ;;  %v227_v25 = vld [vmem:[%s4337_s25 + $0x9c] sm:$0xf] }
  0xf5   : > { %v1388_v3 = vsel %vm4369_vm3, %v1386_v39, %v1387_v33  ;;  %v1714_v47 = vshrl.u32 %v5377_v14, 16  ;;  %v2784_v29 = vsel %vm2769_vm7, %v3877_v58, %v5215_v51  ;;  %v2830_v19 = vsel %vm2818_vm8, %v2787_v18, %v5262_v49  ;;  %v5407_v0 = vpop.permute.xlu0 %2585  ;;  %v5441_v39 = vld [vmem:[%s4337_s25 + $0xa0] sm:$0xf] }
  0xf6   : > { %v1745_v48 = vrot.slane %v1744_v46, 4  ;;  %v1717_v61 = vshll.u32 %v5377_v14, 16  ;;  %2421 = vrot.lane.b32.xlu0 %v3947_v63, %s4290_s6  ;;  %v3963_v11 = vcombine.low %v1385_v15, %v1388_v3  ;;  %v1754_v8 = vor.u32 %v1753_v42, %v1749_v37  ;;  %v5448_v63 = vld [vmem:[%s4337_s25 + $0xa4] sm:$0x1] }
  0xf7   : > { %v1759_v36 = vrot.slane %v1757_v45, 5  ;;  %v1716_v59 = vrot.slane %v1714_v47, 4  ;;  %v1727_v32 = vshrl.u32 %v5393_v27, 16  ;;  %v3979_v1 = vcombine.low %v5377_v14, %v5393_v27 }
  0xf8   : > { %2599 = vrot.lane.b32.xlu1 %v3980_v60, %s4293_s9  ;;  %v1750_v51 = vsel %vm4394_vm6, %v1745_v48, %v1749_v37  ;;  %v1719_v49 = vrot.slane %v1717_v61, 5  ;;  %v1755_v7 = vrot.slane %v1754_v8, 4  ;;  %v541_v10 = vshrl.u32 %v225_v23, 16 }
  0xf9   : > { %v544_v31 = vshll.u32 %v225_v23, 16  ;;  %v550_v9 = vshll.u32 %v5405_v12, 16  ;;  %v2863_v30 = vsel %vm2851_vm9, %v2830_v19, %v5289_v52  ;;  %v554_v58 = vshrl.u32 %v5405_v12, 16 }
  0xfa   : > { %v560_v50 = vshll.u32 %v5411_v56, 16  ;;  %v1720_v13 = vor.u32 %v1719_v49, %v1716_v59  ;;  %2501 = vrot.lane.b32.xlu0 %v3963_v11, %s4292_s8  ;;  %v1760_v34 = vsel %vm4394_vm6, %v1755_v7, %v1759_v36  ;;  %v543_v18 = vrot.slane %v541_v10, 4  ;;  %v5431_v62 = vpop.permute.xlu1 %2157  ;;  %v3851_v36 = vld [vmem:[%s4337_s25 + $0x90] sm:$0xe] }
  0xfb   : > { %v546_v54 = vrot.slane %v544_v31, 5  ;;  %v552_v55 = vrot.slane %v550_v9, 5  ;;  %v3996_v52 = vcombine.low %v1750_v51, %v1760_v34  ;;  %v2828_v28 = vsel %vm2818_vm8, %v2784_v29, %v5283_v53 }
  0xfc   : > { %v556_v38 = vrot.slane %v554_v58, 4  ;;  %v792_v21 = vrot.slane %v5411_v56, 5  ;;  %v5436_v26 = vpop.permute.xlu0 %2665  ;;  %v1723_v33 = vshll.u32 %v5393_v27, 16  ;;  %v1729_v14 = vrot.slane %v1727_v32, 4 }
  0xfd   : > { %v547_v60 = vor.u32 %v546_v54, %v543_v18  ;;  %v1733_v15 = vshll.u32 %v5425_v16, 16  ;;  %2679 = vrot.lane.b32.xlu1 %v3996_v52, %s4294_s10  ;;  %v562_v40 = vrot.slane %v560_v50, 5  ;;  %v1721_v2 = vrot.slane %v1720_v13, 4  ;;  %v649_v13 = vld [vmem:[%s4337_s25 + $0x9c] sm:$0xe] }
  0xfe   : > { %v557_v20 = vor.u32 %v556_v38, %v552_v55  ;;  %v565_v53 = vshrl.u32 %v227_v25, 16  ;;  %2597 = vrot.lane.b32.xlu0 %v3979_v1, %s4293_s9  ;;  %v1725_v42 = vrot.slane %v1723_v33, 5  ;;  %v2896_v45 = vsel %vm2884_vm10, %v2863_v30, %v5315_v35  ;;  %v3852_v52 = vld [vmem:[%s4337_s25 + $0x9c] sm:$0xe] }
  0xff   : > { %v548_v46 = vrot.slane %v547_v60, 4  ;;  %v568_v3 = vshll.u32 %v227_v25, 16  ;;  %v574_v29 = vshll.u32 %v5441_v39, 16  ;;  %v578_v19 = vshrl.u32 %v5441_v39, 16 }
 0x100   : > { %v558_v37 = vrot.slane %v557_v20, 4  ;;  %v567_v47 = vrot.slane %v565_v53, 4  ;;  %v5452_v48 = vpop.permute.xlu0 %2745  ;;  %v1730_v23 = vor.u32 %v1729_v14, %v1725_v42  ;;  %v1735_v11 = vrot.slane %v1733_v15, 5 }
 0x101   : > { %v553_v61 = vsel %vm4394_vm6, %v548_v46, %v552_v55  ;;  %v570_v8 = vrot.slane %v568_v3, 5  ;;  %v5457_v35 = vpop.permute.xlu1 %2159  ;;  %v576_v51 = vrot.slane %v574_v29, 5  ;;  %v580_v49 = vrot.slane %v578_v19, 4  ;;  %v3739_v46 = vld [vmem:[%s4337_s25 + $0xa8] sm:$0xf] }
 0x102   : > { %v563_v59 = vsel %vm4394_vm6, %v558_v37, %v562_v40  ;;  %v584_v32 = vshll.u32 %v5448_v63, 16  ;;  %v1726_v7 = vsel %vm4394_vm6, %v1721_v2, %v1725_v42  ;;  %v1731_v10 = vrot.slane %v1730_v23, 4 }
 0x103   : > { %v3901_v1 = vcombine.low %v553_v61, %v563_v59  ;;  %v571_v31 = vor.u32 %v570_v8, %v567_v47  ;;  %v581_v9 = vor.u32 %v580_v49, %v576_v51  ;;  %v3867_v58 = vrot.slane %v3851_v36, 9  ;;  %v5495_v47 = vld [vmem:[%s4337_s25 + $0xac] sm:$0xf] }
 0x104   : > { %v586_v30 = vrot.slane %v584_v32, 5  ;;  %v1993_v50 = vrot.slane %v5393_v27, 5  ;;  %v5466_v34 = vpop.permute.xlu0 %2747  ;;  %v1736_v18 = vsel %vm4394_vm6, %v1731_v10, %v1735_v11  ;;  %v2861_v54 = vsel %vm2851_vm9, %v2828_v28, %v5310_v41  ;;  %v648_v11 = vld [vmem:[%s4337_s25 + $0x90] sm:$0xe]  ;;  %v5517_v32 = vld [vmem:[%s4337_s25 + $0xb0] sm:$0x1] }
 0x105   : > { %2169 = vrot.lane.b32.xlu1 %v3901_v1, %s4291_s7  ;;  %v572_v55 = vrot.slane %v571_v31, 4  ;;  %v1996_v25 = vrot.slane %v5425_v16, 5  ;;  %v5475_v38 = vpop.permute.xlu1 %2239  ;;  %v3995_v60 = vcombine.low %v1726_v7, %v1736_v18  ;;  %v582_v27 = vrot.slane %v581_v9, 4  ;;  %v5532_v18 = vld [vmem:[%s4337_s25 + $0xa0] sm:$0xf] }
 0x106   : > { %v1994_v33 = vsel %vm4369_vm3, %v3867_v58, %v1993_v50  ;;  %v1995_v14 = vrot.slane %v1993_v50, 4  ;;  %v799_v20 = vrot.slane %v5448_v63, 5  ;;  %v3710_v41 = vrot.slane %v649_v13, 9 }
 0x107   : > { %v577_v15 = vsel %vm4394_vm6, %v572_v55, %v576_v51  ;;  %v796_v28 = vrot.slane %v5441_v39, 5  ;;  %2677 = vrot.lane.b32.xlu0 %v3995_v60, %s4294_s10  ;;  %v587_v16 = vsel %vm4394_vm6, %v582_v27, %v586_v30  ;;  %v3868_v2 = vrot.slane %v3852_v52, 9 }
 0x108   : > { %v1997_v40 = vsel %vm4369_vm3, %v1995_v14, %v1996_v25  ;;  %v2000_v53 = vrot.slane %v5344_v44, 5  ;;  %v5490_v42 = vpop.permute.xlu0 %2237  ;;  %v3902_v3 = vcombine.low %v577_v15, %v587_v16  ;;  %v2929_v19 = vsel %vm2917_vm11, %v2896_v45, %v5336_v22 }
 0x109   : > { %v4011_v63 = vcombine.low %v1994_v33, %v1997_v40  ;;  %v797_v39 = vsel %vm4369_vm3, %v3710_v41, %v796_v28  ;;  %v798_v37 = vrot.slane %v796_v28, 4  ;;  %v5497_v29 = vpop.permute.xlu1 %2335  ;;  %v2003_v23 = vrot.slane %v5369_v6, 5  ;;  %v3774_v41 = vld [vmem:[%s4337_s25 + $0xa8] sm:$0xe] }
 0x10a   : > { %v2001_v44 = vsel %vm4369_vm3, %v3868_v2, %v2000_v53  ;;  %v2002_v61 = vrot.slane %v2000_v53, 4  ;;  %2171 = vrot.lane.b32.xlu1 %v3902_v3, %s4291_s7  ;;  %v2894_v8 = vsel %vm2884_vm10, %v2861_v54, %v5346_v5  ;;  %v1177_v59 = vshrl.u32 %v3739_v46, 16  ;;  %v5520_v5 = vld [vmem:[%s4337_s25 + $0x9c] sm:$0xf] }
 0x10b   : > { %v800_v36 = vsel %vm4369_vm3, %v798_v37, %v799_v20  ;;  %v1180_v51 = vshll.u32 %v3739_v46, 16  ;;  %2757 = vrot.lane.b32.xlu0 %v4011_v63, %s4295_s11  ;;  %v2962_v6 = vsel %vm2950_vm13, %v2929_v19, %v5363_v17  ;;  %v1190_v49 = vshrl.u32 %v5495_v47, 16 }
 0x10c   : > { %v3918_v22 = vcombine.low %v797_v39, %v800_v36  ;;  %v2004_v45 = vsel %vm4369_vm3, %v2002_v61, %v2003_v23  ;;  %v5522_v1 = vpop.permute.xlu0 %2333  ;;  %v1179_v10 = vrot.slane %v1177_v59, 4  ;;  %v3709_v9 = vrot.slane %v648_v11, 9  ;;  %v5563_v39 = vld [vmem:[%s4337_s25 + $0xa4] sm:$0x1] }
 0x10d   : > { %v4012_v7 = vcombine.low %v2001_v44, %v2004_v45  ;;  %v1182_v31 = vrot.slane %v1180_v51, 5  ;;  %v5524_v30 = vpop.permute.xlu1 %2415  ;;  %v2927_v58 = vsel %vm2917_vm11, %v2894_v8, %v5371_v43  ;;  %v3934_v50 = vcombine.low %v3739_v46, %v5495_v47  ;;  %v5572_v8 = vld [vmem:[%s4337_s25 + $0xb4] sm:$0xf] }
 0x10e   : > { %v789_v17 = vrot.slane %v5405_v12, 5  ;;  %v1186_v13 = vshll.u32 %v5495_v47, 16  ;;  %2251 = vrot.lane.b32.xlu1 %v3918_v22, %s4289_s5  ;;  %v1192_v55 = vrot.slane %v1190_v49, 4  ;;  %v1196_v25 = vshll.u32 %v5517_v32, 16  ;;  %v4263_v49 = vld [vmem:[%s4337_s25 + $0x54] sm:$0xf] }
 0x10f   : > { %v1183_v54 = vor.u32 %v1182_v31, %v1179_v10  ;;  %v1153_v52 = vshrl.u32 %v5520_v5, 16  ;;  %2759 = vrot.lane.b32.xlu0 %v4012_v7, %s4295_s11  ;;  %v1156_v27 = vshll.u32 %v5520_v5, 16  ;;  %v5543_v33 = vsel %vm2983_vm14, %v2962_v6, %v5396_v4  ;;  %v5584_v7 = vld [vmem:[%s4337_s25 + $0xb8] sm:$0xf]  ;;  %v4265_v31 = vld [vmem:[%s4337_s25 + $0x48] sm:$0xf] }
 0x110   : > { %v790_v43 = vsel %vm4369_vm3, %v3709_v9, %v789_v17  ;;  %v791_v60 = vrot.slane %v789_v17, 4  ;;  %v1188_v12 = vrot.slane %v1186_v13, 5  ;;  %v1166_v20 = vshrl.u32 %v5532_v18, 16  ;;  %v4266_v9 = vld [vmem:[%s4337_s25 + $0x4c] sm:$0xf] }
 0x111   : > { %v1184_v14 = vrot.slane %v1183_v54, 4  ;;  %v1155_v15 = vrot.slane %v1153_v52, 4  ;;  %v5547_v28 = vpop.permute.xlu1 %2495  ;;  %v1198_v2 = vrot.slane %v1196_v25, 5  ;;  %v1158_v53 = vrot.slane %v1156_v27, 5  ;;  %v3773_v54 = vld [vmem:[%s4337_s25 + $0x9c] sm:$0xe] }
 0x112   : > { %v793_v16 = vsel %vm4369_vm3, %v791_v60, %v792_v21  ;;  %v1193_v40 = vor.u32 %v1192_v55, %v1188_v12  ;;  %v5553_v46 = vpop.permute.xlu0 %2413  ;;  %2347 = vrot.lane.b32.xlu1 %v3934_v50, %s4288_s30  ;;  %v2960_v3 = vsel %vm2950_vm13, %v2927_v58, %v5407_v0  ;;  %v3933_v56 = vcombine.low %v5520_v5, %v5532_v18 }
 0x113   : > { %v3917_v4 = vcombine.low %v790_v43, %v793_v16  ;;  %v1189_v63 = vsel %vm4394_vm6, %v1184_v14, %v1188_v12  ;;  %v3790_v37 = vrot.slane %v3774_v41, 9  ;;  %v1405_v19 = vrot.slane %v5495_v47, 5  ;;  %v5607_v16 = vld [vmem:[%s4337_s25 + $0xbc] sm:$0x1] }
 0x114   : > { %v1194_v21 = vrot.slane %v1193_v40, 4  ;;  %v1408_v44 = vrot.slane %v5517_v32, 5  ;;  %v2993_v0 = vsel %vm2983_vm14, %v2960_v3, %v5436_v26  ;;  %v1159_v61 = vor.u32 %v1158_v53, %v1155_v15  ;;  %v4264_v32 = vld [vmem:[%s4337_s25 + $0x58] sm:$0xf] }
 0x115   : > { %2249 = vrot.lane.b32.xlu0 %v3917_v4, %s4289_s5  ;;  %v1162_v23 = vshll.u32 %v5532_v18, 16  ;;  %v1168_v11 = vrot.slane %v1166_v20, 4  ;;  %v1406_v36 = vsel %vm4369_vm3, %v3790_v37, %v1405_v19  ;;  %v1407_v59 = vrot.slane %v1405_v19, 4  ;;  %v5579_v26 = vpop.permute.xlu1 %2591  ;;  %v5617_v4 = vld [vmem:[%s4337_s25 + $0xa8] sm:$0xf] }
 0x116   : > { %v1199_v47 = vsel %vm4394_vm6, %v1194_v21, %v1198_v2  ;;  %v1172_v51 = vshll.u32 %v5563_v39, 16  ;;  %v1160_v45 = vrot.slane %v1159_v61, 4  ;;  %v3880_v5 = vcombine.low %v4263_v49, %v4264_v32  ;;  %v5586_v10 = vpop.permute.xlu0 %2493 }
 0x117   : > { %v3950_v22 = vcombine.low %v1189_v63, %v1199_v47  ;;  %v1164_v6 = vrot.slane %v1162_v23, 5  ;;  %v3879_v58 = vcombine.low %v4265_v31, %v4266_v9  ;;  %v1409_v50 = vsel %vm4369_vm3, %v1407_v59, %v1408_v44  ;;  %v5631_v44 = vld [vmem:[%s4337_s25 + $0xac] sm:$0xf] }
 0x118   : > { %v3026_v17 = vsel %vm3016_vm15, %v2993_v0, %v5452_v48  ;;  %v1786_v13 = vshrl.u32 %v5572_v8, 16  ;;  %v3966_v55 = vcombine.low %v1406_v36, %v1409_v50  ;;  %v1174_v52 = vrot.slane %v1172_v51, 5 }
 0x119   : > { %2427 = vrot.lane.b32.xlu1 %v3950_v22, %s4290_s6  ;;  %2345 = vrot.lane.b32.xlu0 %v3933_v56, %s4288_s30  ;;  %v1169_v25 = vor.u32 %v1168_v11, %v1164_v6  ;;  %v1789_v43 = vshll.u32 %v5572_v8, 16  ;;  %v1165_v60 = vsel %vm4394_vm6, %v1160_v45, %v1164_v6  ;;  %v2793_v48 = vsel %vm2769_vm7, %v3880_v5, %v5457_v35  ;;  %v5619_v3 = vpop.permute.xlu1 %2671  ;;  %v5644_v22 = vld [vmem:[%s4337_s25 + $0xac] sm:$0xf]  ;;  %v5647_v45 = vld [vmem:[%s4337_s25 + $0xb0] sm:$0x1] }
 0x11a   : > { %v1788_v12 = vrot.slane %v1786_v13, 4  ;;  %v1799_v27 = vshrl.u32 %v5584_v7, 16  ;;  %4144 = vmatprep.mubr.msk.bf16.mxu0 %vm3085_vm0, %v3026_v17  ;;  %v3789_v20 = vrot.slane %v3773_v54, 9  ;;  %v1398_v41 = vrot.slane %v5532_v18, 5 }
 0x11b   : > { %v1170_v14 = vrot.slane %v1169_v25, 4  ;;  %v1791_v15 = vrot.slane %v1789_v43, 5  ;;  %v3982_v40 = vcombine.low %v5572_v8, %v5584_v7  ;;  %v1401_v2 = vrot.slane %v5563_v39, 5  ;;  %v5638_v8 = vld [vmem:[%s4337_s25 + $0xa8] sm:$0xf] }
 0x11c   : > { %v3028_v35 = vsel %vm3016_vm15, %v5543_v33, %v5466_v34  ;;  %v1795_v53 = vshll.u32 %v5584_v7, 16  ;;  %v1399_v63 = vsel %vm4369_vm3, %v3789_v20, %v1398_v41  ;;  %v1400_v56 = vrot.slane %v1398_v41, 4  ;;  %v5627_v34 = vpop.permute.xlu0 %2589  ;;  %v5670_v43 = vld [vmem:[%s4337_s25 + $0xb0] sm:$0x1]  ;;  %v5674_v20 = vld [vmem:[%s4337_s25 + $0xb4] sm:$0xf] }
 0x11d   : > { %2507 = vrot.lane.b32.xlu1 %v3966_v55, %s4292_s8  ;;  %v1175_v18 = vsel %vm4394_vm6, %v1170_v14, %v1174_v52  ;;  %v1792_v39 = vor.u32 %v1791_v15, %v1788_v12  ;;  %4145 = vmatmul.mubr.msk.bf16.gmra.mxu0 %vm3085_vm0, %v3028_v35  ;;  %v1801_v37 = vrot.slane %v1799_v27, 4  ;;  %v1805_v19 = vshll.u32 %v5607_v16, 16 }
 0x11e   : > { %v3949_v33 = vcombine.low %v1165_v60, %v1175_v18  ;;  %v1797_v21 = vrot.slane %v1795_v53, 5  ;;  %v1402_v0 = vsel %vm4369_vm3, %v1400_v56, %v1401_v2  ;;  %v1762_v23 = vshrl.u32 %v5617_v4, 16  ;;  %v5681_v56 = vld [vmem:[%s4337_s25 + $0xb8] sm:$0xf] }
 0x11f   : > { %v1793_v61 = vrot.slane %v1792_v39, 4  ;;  %v1765_v11 = vshll.u32 %v5617_v4, 16  ;;  %v2790_v47 = vsel %vm2769_vm7, %v3879_v58, %v5431_v62  ;;  %v3965_v36 = vcombine.low %v1399_v63, %v1402_v0 }
 0x120   : > { %2425 = vrot.lane.b32.xlu0 %v3949_v33, %s4290_s6  ;;  %v1802_v59 = vor.u32 %v1801_v37, %v1797_v21  ;;  %v1807_v51 = vrot.slane %v1805_v19, 5  ;;  %v2834_v6 = vsel %vm2818_vm8, %v2793_v48, %v5475_v38  ;;  %v1764_v49 = vrot.slane %v1762_v23, 4  ;;  %v5658_v50 = vpop.permute.xlu1 %2161  ;;  %v248_v37 = vld [vmem:[%s4337_s25 + $0xbc] sm:$0x1] }
 0x121   : > { %2603 = vrot.lane.b32.xlu1 %v3982_v40, %s4293_s9  ;;  %v1767_v32 = vrot.slane %v1765_v11, 5  ;;  %v1775_v5 = vshrl.u32 %v5631_v44, 16  ;;  %v1798_v62 = vsel %vm4394_vm6, %v1793_v61, %v1797_v21  ;;  %v3981_v9 = vcombine.low %v5617_v4, %v5631_v44 }
 0x122   : > { %v1803_v31 = vrot.slane %v1802_v59, 4  ;;  %v589_v58 = vshrl.u32 %v5638_v8, 16  ;;  %v592_v17 = vshll.u32 %v5638_v8, 16  ;;  %v598_v38 = vshll.u32 %v5644_v22, 16 }
 0x123   : > { %v602_v13 = vshrl.u32 %v5644_v22, 16  ;;  %v608_v54 = vshll.u32 %v5647_v45, 16  ;;  %v5664_v55 = vpop.permute.xlu0 %2669  ;;  %v1768_v60 = vor.u32 %v1767_v32, %v1764_v49  ;;  %v1771_v48 = vshll.u32 %v5631_v44, 16 }
 0x124   : > { %2505 = vrot.lane.b32.xlu0 %v3965_v36, %s4292_s8  ;;  %v1808_v25 = vsel %vm4394_vm6, %v1803_v31, %v1807_v51  ;;  %v591_v52 = vrot.slane %v589_v58, 4  ;;  %v594_v27 = vrot.slane %v592_v17, 5  ;;  %v600_v14 = vrot.slane %v598_v38, 5  ;;  %v651_v38 = vld [vmem:[%s4337_s25 + $0xb4] sm:$0xe] }
 0x125   : > { %v3998_v12 = vcombine.low %v1798_v62, %v1808_v25  ;;  %v604_v15 = vrot.slane %v602_v13, 4  ;;  %v2867_v41 = vsel %vm2851_vm9, %v2834_v6, %v5497_v29  ;;  %v1769_v40 = vrot.slane %v1768_v60, 4 }
 0x126   : > { %v1773_v2 = vrot.slane %v1771_v48, 5  ;;  %v1777_v35 = vrot.slane %v1775_v5, 4  ;;  %v595_v53 = vor.u32 %v594_v27, %v591_v52  ;;  %v610_v18 = vrot.slane %v608_v54, 5 }
 0x127   : > { %2683 = vrot.lane.b32.xlu1 %v3998_v12, %s4294_s10  ;;  %v605_v4 = vor.u32 %v604_v15, %v600_v14  ;;  %v1781_v63 = vshll.u32 %v5670_v43, 16  ;;  %v5683_v39 = vpop.permute.xlu0 %2749  ;;  %v2832_v29 = vsel %vm2818_vm8, %v2790_v47, %v5490_v42  ;;  %v613_v19 = vshrl.u32 %v5674_v20, 16  ;;  %v3853_v47 = vld [vmem:[%s4337_s25 + $0xa8] sm:$0xe] }
 0x128   : > { %2601 = vrot.lane.b32.xlu0 %v3981_v9, %s4293_s9  ;;  %v1774_v33 = vsel %vm4394_vm6, %v1769_v40, %v1773_v2  ;;  %v1778_v21 = vor.u32 %v1777_v35, %v1773_v2  ;;  %v5692_v0 = vpop.permute.xlu1 %2163  ;;  %v596_v61 = vrot.slane %v595_v53, 4  ;;  %v616_v36 = vshll.u32 %v5674_v20, 16  ;;  %v3854_v40 = vld [vmem:[%s4337_s25 + $0xb4] sm:$0xe] }
 0x129   : > { %v606_v23 = vrot.slane %v605_v4, 4  ;;  %v1783_v11 = vrot.slane %v1781_v63, 5  ;;  %v615_v51 = vrot.slane %v613_v19, 4  ;;  %v622_v6 = vshll.u32 %v5681_v56, 16 }
 0x12a   : > { %v1779_v59 = vrot.slane %v1778_v21, 4  ;;  %v626_v42 = vshrl.u32 %v5681_v56, 16  ;;  %v601_v49 = vsel %vm4394_vm6, %v596_v61, %v600_v14  ;;  %v618_v5 = vrot.slane %v616_v36, 5 }
 0x12b   : > { %v611_v32 = vsel %vm4394_vm6, %v606_v23, %v610_v18  ;;  %v632_v62 = vshll.u32 %v248_v37, 16  ;;  %v624_v58 = vrot.slane %v622_v6, 5  ;;  %v2900_v25 = vsel %vm2884_vm10, %v2867_v41, %v5524_v30  ;;  %v5733_v23 = vld [vmem:[%s4337_s25 + $0xc4] sm:$0xf] }
 0x12c   : > { %v3903_v31 = vcombine.low %v601_v49, %v611_v32  ;;  %v1784_v9 = vsel %vm4394_vm6, %v1779_v59, %v1783_v11  ;;  %v628_v17 = vrot.slane %v626_v42, 4  ;;  %v5705_v13 = vpop.permute.xlu1 %2243  ;;  %v619_v52 = vor.u32 %v618_v5, %v615_v51  ;;  %v650_v42 = vld [vmem:[%s4337_s25 + $0xa8] sm:$0xe] }
 0x12d   : > { %v3997_v54 = vcombine.low %v1774_v33, %v1784_v9  ;;  %v3869_v60 = vrot.slane %v3853_v47, 9  ;;  %v5709_v48 = vpop.permute.xlu0 %2751  ;;  %v634_v27 = vrot.slane %v632_v62, 5  ;;  %v2007_v14 = vrot.slane %v5631_v44, 5  ;;  %v5754_v9 = vld [vmem:[%s4337_s25 + $0xc8] sm:$0x1] }
 0x12e   : > { %2173 = vrot.lane.b32.xlu1 %v3903_v31, %s4291_s7  ;;  %v629_v12 = vor.u32 %v628_v17, %v624_v58  ;;  %v2010_v15 = vrot.slane %v5670_v43, 5  ;;  %v2865_v2 = vsel %vm2851_vm9, %v2832_v29, %v5522_v1  ;;  %v620_v30 = vrot.slane %v619_v52, 4 }
 0x12f   : > { %2681 = vrot.lane.b32.xlu0 %v3997_v54, %s4294_s10  ;;  %v3712_v41 = vrot.slane %v651_v38, 9  ;;  %v810_v35 = vrot.slane %v5681_v56, 5  ;;  %v2008_v4 = vsel %vm4369_vm3, %v3869_v60, %v2007_v14  ;;  %v2009_v18 = vrot.slane %v2007_v14, 4  ;;  %v3741_v38 = vld [vmem:[%s4337_s25 + $0xb4] sm:$0xf] }
 0x130   : > { %v630_v53 = vrot.slane %v629_v12, 4  ;;  %v813_v44 = vrot.slane %v248_v37, 5  ;;  %v625_v43 = vsel %vm4394_vm6, %v620_v30, %v624_v58  ;;  %v3870_v29 = vrot.slane %v3854_v40, 9  ;;  %v3743_v37 = vld [vmem:[%s4337_s25 + $0xc0] sm:$0xf]  ;;  %v5735_v11 = vpop.permute.xlu1 %2339 }
 0x131   : > { %v811_v63 = vsel %vm4369_vm3, %v3712_v41, %v810_v35  ;;  %v812_v1 = vrot.slane %v810_v35, 4  ;;  %v2011_v21 = vsel %vm4369_vm3, %v2009_v18, %v2010_v15  ;;  %v2014_v19 = vrot.slane %v5584_v7, 5  ;;  %v5768_v40 = vld [vmem:[%s4337_s25 + $0xb8] sm:$0xf] }
 0x132   : > { %v635_v33 = vsel %vm4394_vm6, %v630_v53, %v634_v27  ;;  %v2017_v61 = vrot.slane %v5607_v16, 5  ;;  %v4013_v59 = vcombine.low %v2008_v4, %v2011_v21  ;;  %v2933_v51 = vsel %vm2917_vm11, %v2900_v25, %v5547_v28 }
 0x133   : > { %v3904_v36 = vcombine.low %v625_v43, %v635_v33  ;;  %v814_v6 = vsel %vm4369_vm3, %v812_v1, %v813_v44  ;;  %v5742_v47 = vpop.permute.xlu0 %2241  ;;  %v2898_v7 = vsel %vm2884_vm10, %v2865_v2, %v5553_v46  ;;  %v2015_v16 = vsel %vm4369_vm3, %v3870_v29, %v2014_v19  ;;  %v3776_v43 = vld [vmem:[%s4337_s25 + $0xc0] sm:$0xe] }
 0x134   : > { %v2016_v49 = vrot.slane %v2014_v19, 4  ;;  %v2966_v32 = vsel %vm2950_vm13, %v2933_v51, %v5579_v26  ;;  %2761 = vrot.lane.b32.xlu0 %v4013_v59, %s4295_s11  ;;  %v3920_v28 = vcombine.low %v811_v63, %v814_v6  ;;  %v1225_v5 = vshrl.u32 %v3743_v37, 16 }
 0x135   : > { %2175 = vrot.lane.b32.xlu1 %v3904_v36, %s4291_s7  ;;  %v1228_v62 = vshll.u32 %v3743_v37, 16  ;;  %v1238_v31 = vshrl.u32 %v5733_v23, 16  ;;  %v3711_v58 = vrot.slane %v650_v42, 9  ;;  %v803_v17 = vrot.slane %v5644_v22, 5 }
 0x136   : > { %v2018_v46 = vsel %vm4369_vm3, %v2016_v49, %v2017_v61  ;;  %v806_v26 = vrot.slane %v5647_v45, 5  ;;  %v2931_v25 = vsel %vm2917_vm11, %v2898_v7, %v5586_v10  ;;  %v1227_v52 = vrot.slane %v1225_v5, 4 }
 0x137   : > { %v4014_v54 = vcombine.low %v2015_v16, %v2018_v46  ;;  %v1230_v60 = vrot.slane %v1228_v62, 5  ;;  %v3936_v12 = vcombine.low %v3743_v37, %v5733_v23  ;;  %v804_v27 = vsel %vm4369_vm3, %v3711_v58, %v803_v17  ;;  %v5772_v45 = vpop.permute.xlu0 %2337  ;;  %v4267_v58 = vld [vmem:[%s4337_s25 + $0x6c] sm:$0xf] }
 0x138   : > { %v805_v14 = vrot.slane %v803_v17, 4  ;;  %v1234_v15 = vshll.u32 %v5733_v23, 16  ;;  %v5770_v2 = vpop.permute.xlu1 %2419  ;;  %v1240_v30 = vrot.slane %v1238_v31, 4  ;;  %v1244_v41 = vshll.u32 %v5754_v9, 16  ;;  %v5805_v31 = vld [vmem:[%s4337_s25 + $0xcc] sm:$0xf] }
 0x139   : > { %2255 = vrot.lane.b32.xlu1 %v3920_v28, %s4289_s5  ;;  %2763 = vrot.lane.b32.xlu0 %v4014_v54, %s4295_s11  ;;  %v1231_v10 = vor.u32 %v1230_v60, %v1227_v52  ;;  %v1201_v35 = vshrl.u32 %v3741_v38, 16  ;;  %v5781_v4 = vsel %vm2983_vm14, %v2966_v32, %v5619_v3  ;;  %v1204_v44 = vshll.u32 %v3741_v38, 16  ;;  %v4268_v17 = vld [vmem:[%s4337_s25 + $0x70] sm:$0xf] }
 0x13a   : > { %v807_v53 = vsel %vm4369_vm3, %v805_v14, %v806_v26  ;;  %v1236_v18 = vrot.slane %v1234_v15, 5  ;;  %v1214_v33 = vshrl.u32 %v5768_v40, 16  ;;  %v2964_v21 = vsel %vm2950_vm13, %v2931_v25, %v5627_v34  ;;  %v3759_v34 = vld [vmem:[%s4337_s25 + $0xbc] sm:$0x1]  ;;  %v4270_v14 = vld [vmem:[%s4337_s25 + $0x64] sm:$0xf] }
 0x13b   : > { %v3919_v63 = vcombine.low %v804_v27, %v807_v53  ;;  %v1232_v1 = vrot.slane %v1231_v10, 4  ;;  %v1203_v29 = vrot.slane %v1201_v35, 4  ;;  %v1246_v61 = vrot.slane %v1244_v41, 5  ;;  %v4269_v27 = vld [vmem:[%s4337_s25 + $0x60] sm:$0xf] }
 0x13c   : > { %v1241_v19 = vor.u32 %v1240_v30, %v1236_v18  ;;  %v1206_v37 = vrot.slane %v1204_v44, 5  ;;  %v5787_v36 = vpop.permute.xlu1 %2499  ;;  %v3935_v59 = vcombine.low %v3741_v38, %v5768_v40  ;;  %v3792_v51 = vrot.slane %v3776_v43, 9  ;;  %v5812_v38 = vld [vmem:[%s4337_s25 + $0xd0] sm:$0xf] }
 0x13d   : > { %2351 = vrot.lane.b32.xlu1 %v3936_v12, %s4288_s30  ;;  %2253 = vrot.lane.b32.xlu0 %v3919_v63, %s4289_s5  ;;  %v1237_v3 = vsel %vm4394_vm6, %v1232_v1, %v1236_v18  ;;  %v1419_v6 = vrot.slane %v5733_v23, 5  ;;  %v2997_v7 = vsel %vm2983_vm14, %v2964_v21, %v5664_v55  ;;  %v1422_v16 = vrot.slane %v5754_v9, 5  ;;  %v3775_v12 = vld [vmem:[%s4337_s25 + $0xb4] sm:$0xe]  ;;  %v3840_v21 = vld [vmem:[%s4337_s25 + $0xd4] sm:$0x1] }
 0x13e   : > { %v1242_v42 = vrot.slane %v1241_v19, 4  ;;  %v1207_v49 = vor.u32 %v1206_v37, %v1203_v29  ;;  %v5799_v32 = vpop.permute.xlu0 %2417  ;;  %v1210_v62 = vshll.u32 %v5768_v40, 16  ;;  %v1216_v23 = vrot.slane %v1214_v33, 4 }
 0x13f   : > { %v1420_v28 = vsel %vm4369_vm3, %v3792_v51, %v1419_v6  ;;  %v1421_v5 = vrot.slane %v1419_v6, 4  ;;  %v1220_v9 = vshll.u32 %v3759_v34, 16  ;;  %v3882_v26 = vcombine.low %v4267_v58, %v4268_v17 }
 0x140   : > { %v1247_v55 = vsel %vm4394_vm6, %v1242_v42, %v1246_v61  ;;  %v1208_v46 = vrot.slane %v1207_v49, 4  ;;  %v1212_v52 = vrot.slane %v1210_v62, 5  ;;  %v3030_v60 = vsel %vm3016_vm15, %v2997_v7, %v5683_v39  ;;  %v5824_v35 = vpop.permute.xlu1 %2595  ;;  %v5850_v49 = vld [vmem:[%s4337_s25 + $0xc4] sm:$0xf] }
 0x141   : > { %v3952_v54 = vcombine.low %v1237_v3, %v1247_v55  ;;  %2349 = vrot.lane.b32.xlu0 %v3935_v59, %s4288_s30  ;;  %v1423_v25 = vsel %vm4369_vm3, %v1421_v5, %v1422_v16  ;;  %v3881_v15 = vcombine.low %v4269_v27, %v4270_v14  ;;  %v1222_v30 = vrot.slane %v1220_v9, 5  ;;  %4148 = vmatprep.mubr.msk.bf16.mxu0 %vm3085_vm0, %v3030_v60  ;;  %v3821_v3 = vld [vmem:[%s4337_s25 + $0xc0] sm:$0xf] }
 0x142   : > { %v3968_v10 = vcombine.low %v1420_v28, %v1423_v25  ;;  %v1834_v41 = vshrl.u32 %v5805_v31, 16  ;;  %v1217_v53 = vor.u32 %v1216_v23, %v1212_v52  ;;  %v2799_v39 = vsel %vm2769_vm7, %v3882_v26, %v5692_v0  ;;  %v5831_v43 = vpop.permute.xlu0 %2497  ;;  %v3839_v25 = vld [vmem:[%s4337_s25 + $0xc8] sm:$0x1] }
 0x143   : > { %2431 = vrot.lane.b32.xlu1 %v3952_v54, %s4290_s6  ;;  %v1837_v18 = vshll.u32 %v5805_v31, 16  ;;  %v1847_v44 = vshrl.u32 %v5812_v38, 16  ;;  %v1213_v63 = vsel %vm4394_vm6, %v1208_v46, %v1212_v52  ;;  %v3791_v29 = vrot.slane %v3775_v12, 9  ;;  %v3856_v46 = vld [vmem:[%s4337_s25 + $0xcc] sm:$0xe] }
 0x144   : > { %v1836_v1 = vrot.slane %v1834_v41, 4  ;;  %v1412_v33 = vrot.slane %v5768_v40, 5  ;;  %v1218_v19 = vrot.slane %v1217_v53, 4  ;;  %v3984_v0 = vcombine.low %v5805_v31, %v5812_v38 }
 0x145   : > { %v1839_v61 = vrot.slane %v1837_v18, 5  ;;  %v1415_v37 = vrot.slane %v3759_v34, 5  ;;  %v3032_v6 = vsel %vm3016_vm15, %v5781_v4, %v5709_v48  ;;  %v1843_v42 = vshll.u32 %v5812_v38, 16 }
 0x146   : > { %v1413_v59 = vsel %vm4369_vm3, %v3791_v29, %v1412_v33  ;;  %v1414_v51 = vrot.slane %v1412_v33, 4  ;;  %v1223_v40 = vsel %vm4394_vm6, %v1218_v19, %v1222_v30  ;;  %v1849_v16 = vrot.slane %v1847_v44, 4  ;;  %4149 = vmatmul.mubr.msk.bf16.gmra.mxu0 %vm3085_vm0, %v3032_v6  ;;  %v5855_v62 = vpop.permute.xlu1 %2675  ;;  %v2594_v9 = vpop.permute.xlu0 %2593 }
 0x147   : > { %2511 = vrot.lane.b32.xlu1 %v3968_v10, %s4292_s8  ;;  %v1840_v7 = vor.u32 %v1839_v61, %v1836_v1  ;;  %v1853_v34 = vshll.u32 %v3840_v21, 16  ;;  %v3951_v28 = vcombine.low %v1213_v63, %v1223_v40  ;;  %v1845_v4 = vrot.slane %v1843_v42, 5 }
 0x148   : > { %v1416_v48 = vsel %vm4369_vm3, %v1414_v51, %v1415_v37  ;;  %v1810_v5 = vshrl.u32 %v3821_v3, 16  ;;  %v1813_v55 = vshll.u32 %v3821_v3, 16  ;;  %v1823_v54 = vshrl.u32 %v5850_v49, 16 }
 0x149   : > { %v3967_v23 = vcombine.low %v1413_v59, %v1416_v48  ;;  %v1841_v31 = vrot.slane %v1840_v7, 4  ;;  %2429 = vrot.lane.b32.xlu0 %v3951_v28, %s4290_s6  ;;  %v1850_v58 = vor.u32 %v1849_v16, %v1845_v4  ;;  %v1855_v17 = vrot.slane %v1853_v34, 5 }
 0x14a   : > { %v1812_v26 = vrot.slane %v1810_v5, 4  ;;  %v2796_v52 = vsel %vm2769_vm7, %v3881_v15, %v5658_v50  ;;  %v2838_v60 = vsel %vm2818_vm8, %v2799_v39, %v5705_v13  ;;  %v1815_v27 = vrot.slane %v1813_v55, 5  ;;  %v3855_v50 = vld [vmem:[%s4337_s25 + $0xc0] sm:$0xe] }
 0x14b   : > { %2607 = vrot.lane.b32.xlu1 %v3984_v0, %s4293_s9  ;;  %v1846_v12 = vsel %vm4394_vm6, %v1841_v31, %v1845_v4  ;;  %v1851_v14 = vrot.slane %v1850_v58, 4  ;;  %v3872_v10 = vrot.slane %v3856_v46, 9  ;;  %v2028_v30 = vrot.slane %v5812_v38, 5 }
 0x14c   : > { %v2031_v41 = vrot.slane %v3840_v21, 5  ;;  %v1816_v53 = vor.u32 %v1815_v27, %v1812_v26  ;;  %v1819_v18 = vshll.u32 %v5850_v49, 16  ;;  %v1825_v44 = vrot.slane %v1823_v54, 4 }
 0x14d   : > { %v1829_v63 = vshll.u32 %v3839_v25, 16  ;;  %2509 = vrot.lane.b32.xlu0 %v3967_v23, %s4292_s8  ;;  %v1856_v13 = vsel %vm4394_vm6, %v1851_v14, %v1855_v17  ;;  %v3983_v15 = vcombine.low %v3821_v3, %v5850_v49  ;;  %v2029_v39 = vsel %vm4369_vm3, %v3872_v10, %v2028_v30  ;;  %v5877_v29 = vpop.permute.xlu1 %2165  ;;  %v4271_v10 = vld [vmem:[%s4337_s25 + $0x78] sm:$0xf] }
 0x14e   : > { %v2030_v1 = vrot.slane %v2028_v30, 4  ;;  %v4000_v38 = vcombine.low %v1846_v12, %v1856_v13  ;;  %v2836_v33 = vsel %vm2818_vm8, %v2796_v52, %v5742_v47  ;;  %v1817_v21 = vrot.slane %v1816_v53, 4  ;;  %v2674_v61 = vpop.permute.xlu0 %2673  ;;  %v4272_v30 = vld [vmem:[%s4337_s25 + $0x7c] sm:$0xf]  ;;  %v4273_v53 = vld [vmem:[%s4337_s25 + $0x84] sm:$0xf] }
 0x14f   : > { %v1821_v19 = vrot.slane %v1819_v18, 5  ;;  %v1831_v37 = vrot.slane %v1829_v63, 5  ;;  %v3871_v59 = vrot.slane %v3855_v50, 9  ;;  %v2021_v3 = vrot.slane %v5850_v49, 5  ;;  %v4274_v18 = vld [vmem:[%s4337_s25 + $0x88] sm:$0xf] }
 0x150   : > { %v2032_v0 = vsel %vm4369_vm3, %v2030_v1, %v2031_v41  ;;  %2687 = vrot.lane.b32.xlu1 %v4000_v38, %s4294_s10  ;;  %v2869_v42 = vsel %vm2851_vm9, %v2836_v33, %v5772_v45  ;;  %v2024_v40 = vrot.slane %v3839_v25, 5  ;;  %v2871_v16 = vsel %vm2851_vm9, %v2838_v60, %v5735_v11 }
 0x151   : > { %v4016_v51 = vcombine.low %v2029_v39, %v2032_v0  ;;  %v1826_v6 = vor.u32 %v1825_v44, %v1821_v19  ;;  %2605 = vrot.lane.b32.xlu0 %v3983_v15, %s4293_s9  ;;  %v2023_v47 = vrot.slane %v2021_v3, 4  ;;  %v2902_v7 = vsel %vm2884_vm10, %v2869_v42, %v5799_v32 }
 0x152   : > { %v1822_v34 = vsel %vm4394_vm6, %v1817_v21, %v1821_v19  ;;  %v2935_v28 = vsel %vm2917_vm11, %v2902_v7, %v5831_v43  ;;  %v2904_v45 = vsel %vm2884_vm10, %v2871_v16, %v5770_v2  ;;  %v2022_v4 = vsel %vm4369_vm3, %v3871_v59, %v2021_v3 }
 0x153   : > { %v1827_v49 = vrot.slane %v1826_v6, 4  ;;  %v2754_v48 = vpop.permute.xlu0 %2753  ;;  %v2968_v5 = vsel %vm2950_vm13, %v2935_v28, %v2594_v9  ;;  %v2025_v23 = vsel %vm4369_vm3, %v2023_v47, %v2024_v40  ;;  %v2937_v43 = vsel %vm2917_vm11, %v2904_v45, %v5787_v36 }
 0x154   : > { %v2168_v32 = vpop.permute.xlu1 %2167  ;;  %2767 = vrot.lane.b32.xlu1 %v4016_v51, %s4295_s11  ;;  %v3001_v31 = vsel %vm2983_vm14, %v2968_v5, %v2674_v61  ;;  %v2970_v55 = vsel %vm2950_vm13, %v2937_v43, %v5824_v35  ;;  %v3887_v24 = vcombine.low %v5638_v8, %v5644_v22  ;;  %v3888_v36 = vcombine.low %v5674_v20, %v5681_v56 }
 0x155   : > { %v1832_v11 = vsel %vm4394_vm6, %v1827_v49, %v1831_v37  ;;  %v3034_v46 = vsel %vm3016_vm15, %v3001_v31, %v2754_v48  ;;  %v3003_v9 = vsel %vm2983_vm14, %v2970_v55, %v5855_v62  ;;  %v4015_v58 = vcombine.low %v2022_v4, %v2025_v23 }
 0x156   : > { %v3999_v2 = vcombine.low %v1822_v34, %v1832_v11  ;;  %4152 = vmatprep.mubr.msk.bf16.mxu1 %vm3085_vm0, %v3034_v46  ;;  %v3883_v41 = vcombine.low %v4271_v10, %v4272_v30  ;;  %v3884_v44 = vcombine.low %v4273_v53, %v4274_v18  ;;  %vm3411_vm1 = vcmask 60416  }
 0x157   : > { %v2756_v57 = vpop.permute.xlu0 %2755  ;;  %vm3515_vm2 = vcmask 57344  }
 0x158   : > { %2685 = vrot.lane.b32.xlu0 %v3999_v2, %s4294_s10  ;;  %v2248_v35 = vpop.permute.xlu1 %2247  ;;  %v3036_v17 = vsel %vm3016_vm15, %v3003_v9, %v2756_v57  ;;  %v2802_v13 = vsel %vm2769_vm7, %v3883_v41, %v5877_v29  ;;  %v2805_v15 = vsel %vm2769_vm7, %v3884_v44, %v2168_v32 }
 0x159   : > { %4153 = vmatmul.mubr.msk.bf16.vlgmr.msra.gmra.mxu1 %vm3085_vm0, %v3036_v17  ;;  %v2842_v33 = vsel %vm2818_vm8, %v2805_v15, %v2248_v35  ;;  %v4276_v15 = vld [vmem:[%s4337_s25 + $0x94] sm:$0xf] }
 0x15c   : > { %2765 = vrot.lane.b32.xlu0 %v4015_v58, %s4295_s11  ;;  %v2344_v62 = vpop.permute.xlu1 %2343 }
 0x15d   : > { %v2246_v26 = vpop.permute.xlu0 %2245  ;;  %v2875_v37 = vsel %vm2851_vm9, %v2842_v33, %v2344_v62 }
 0x15e   : > { %v2840_v39 = vsel %vm2818_vm8, %v2802_v13, %v2246_v26  ;;  %v4275_v13 = vld [vmem:[%s4337_s25 + $0x90] sm:$0xf] }
 0x161   : > { %v2342_v25 = vpop.permute.xlu0 %2341 }
 0x162   : > { %v2424_v54 = vpop.permute.xlu1 %2423  ;;  %v2873_v1 = vsel %vm2851_vm9, %v2840_v39, %v2342_v25  ;;  %v3885_v39 = vcombine.low %v4275_v13, %v4276_v15 }
 0x163   : > { %v2908_v3 = vsel %vm2884_vm10, %v2875_v37, %v2424_v54 }
 0x166   : > { %v2504_v52 = vpop.permute.xlu1 %2503 }
 0x167   : > { %v2941_v6 = vsel %vm2917_vm11, %v2908_v3, %v2504_v52 }
 0x168   : > { %v2422_v60 = vpop.permute.xlu0 %2421 }
 0x169   : > { %v2906_v21 = vsel %vm2884_vm10, %v2873_v1, %v2422_v60  ;;  %v4277_v1 = vld [vmem:[%s4337_s25 + $0x9c] sm:$0xf] }
 0x16a   : > { %v2600_v12 = vpop.permute.xlu1 %2599 }
 0x16b   : > { %v2974_v42 = vsel %vm2950_vm13, %v2941_v6, %v2600_v12 }
 0x16c   : > { %v2502_v27 = vpop.permute.xlu0 %2501 }
 0x16d   : > { %v2939_v19 = vsel %vm2917_vm11, %v2906_v21, %v2502_v27 }
 0x16f   : > { %v2680_v14 = vpop.permute.xlu1 %2679 }
 0x170   : > { %v2598_v63 = vpop.permute.xlu0 %2597  ;;  %v3007_v47 = vsel %vm2983_vm14, %v2974_v42, %v2680_v14 }
 0x171   : > { %v2972_v61 = vsel %vm2950_vm13, %v2939_v19, %v2598_v63 }
 0x177   : > { %v5927_v50 = vpop.permute.xlu1 %2169 }
 0x178   : > { %v2808_v21 = vsel %vm2769_vm7, %v3885_v39, %v5927_v50 }
 0x179   : > { %v2678_v38 = vpop.permute.xlu0 %2677 }
 0x17a   : > { %v3005_v29 = vsel %vm2983_vm14, %v2972_v61, %v2678_v38  ;;  %v4278_v38 = vld [vmem:[%s4337_s25 + $0xa0] sm:$0xf] }
 0x17b   : > { %v3886_v33 = vcombine.low %v4277_v1, %v4278_v38 }
 0x17c   : > { %v5938_v0 = vpop.permute.xlu1 %2171 }
 0x17d   : > { %v2758_v59 = vpop.permute.xlu0 %2757  ;;  %v2811_v19 = vsel %vm2769_vm7, %v3886_v33, %v5938_v0 }
 0x17e   : > { %v3038_v51 = vsel %vm3016_vm15, %v3005_v29, %v2758_v59 }
 0x17f   : > { %4156 = vmatprep.mubr.msk.bf16.mxu1 %vm3085_vm0, %v3038_v51 }
 0x180   : > { %v2252_v40 = vpop.permute.xlu1 %2251 }
 0x181   : > { %v2760_v7 = vpop.permute.xlu0 %2759  ;;  %v2846_v3 = vsel %vm2818_vm8, %v2811_v19, %v2252_v40 }
 0x182   : > { %v3040_v16 = vsel %vm3016_vm15, %v3007_v47, %v2760_v7 }
 0x183   : > { %4157 = vmatmul.mubr.msk.bf16.gmra.mxu1 %vm3085_vm0, %v3040_v16 }
 0x184   : > { %v2348_v34 = vpop.permute.xlu1 %2347 }
 0x185   : > { %v2879_v50 = vsel %vm2851_vm9, %v2846_v3, %v2348_v34 }
 0x187   : > { %v2250_v49 = vpop.permute.xlu0 %2249 }
 0x188   : > { %v2844_v29 = vsel %vm2818_vm8, %v2808_v21, %v2250_v49 }
 0x18b   : > { %v2428_v28 = vpop.permute.xlu1 %2427  ;;  %v2346_v48 = vpop.permute.xlu0 %2345 }
 0x18c   : > { %v4138_v45 = vpop.f32.mrf.mxu0  ;;  %v2877_v59 = vsel %vm2851_vm9, %v2844_v29, %v2346_v48  ;;  %v2912_v16 = vsel %vm2884_vm10, %v2879_v50, %v2428_v28 }
 0x18d   : > { %v4075_v4 = vpack.c.bf16 %v4138_v45, %v4138_v45  ;;  %v3520_v58 = vmul.f32 %v4138_v45, %v4138_v45  ;;  %v3448_v26 = vsel %vm2769_vm7, %v4138_v45, 0.0 }
 0x18e   : > { %v3156_v5 = vpop.f32.mrf.mxu0 }
 0x18f   : > { %v2508_v32 = vpop.permute.xlu1 %2507  ;;  %3414 = vst.msk [vmem:[%s4332_s22 + $0x8] sm:$0xf] %vm3411_vm1, %v4075_v4  ;;  %v4073_v11 = vpack.c.bf16 %v3156_v5, %v3156_v5  ;;  %v3518_v2 = vmul.f32 %v3156_v5, %v3156_v5  ;;  %v3445_v46 = vsel %vm2769_vm7, %v3156_v5, 0.0  ;;  %v3553_v10 = vsel %vm2769_vm7, %v3520_v58, 0.0 }
 0x190   : > { %v4139_v23 = vpop.f32.mrf.mxu0  ;;  %v2945_v48 = vsel %vm2917_vm11, %v2912_v16, %v2508_v32 }
 0x191   : > { %3412 = vst.msk [vmem:[%s4332_s22] sm:$0xf] %vm3411_vm1, %v4073_v11  ;;  %v4076_v43 = vpack.c.bf16 %v4139_v23, %v4139_v23  ;;  %v3550_v25 = vsel %vm2769_vm7, %v3518_v2, 0.0  ;;  %v3521_v52 = vmul.f32 %v4139_v23, %v4139_v23  ;;  %v3450_v27 = vsel %vm2769_vm7, %v4139_v23, 0.0 }
 0x192   : > { %v2426_v31 = vpop.permute.xlu0 %2425  ;;  %v3159_v55 = vpop.f32.mrf.mxu0 }
 0x193   : > { %3415 = vst.msk [vmem:[%s4332_s22 + $0xc] sm:$0xf] %vm3411_vm1, %v4076_v43  ;;  %v4074_v9 = vpack.c.bf16 %v3159_v55, %v3159_v55  ;;  %v3446_v57 = vsel %vm2769_vm7, %v3159_v55, 0.0  ;;  %v3519_v17 = vmul.f32 %v3159_v55, %v3159_v55  ;;  %v2604_v62 = vpop.permute.xlu1 %2603  ;;  %v3555_v53 = vsel %vm2769_vm7, %v3521_v52, 0.0 }
 0x194   : > { %v3447_v35 = vadd.f32 %v3446_v57, %v3445_v46  ;;  %v2910_v51 = vsel %vm2884_vm10, %v2877_v59, %v2426_v31  ;;  %v2978_v40 = vsel %vm2950_vm13, %v2945_v48, %v2604_v62 }
 0x195   : > { %3413 = vst.msk [vmem:[%s4332_s22 + $0x4] sm:$0xf] %vm3411_vm1, %v4074_v9  ;;  %v3551_v12 = vsel %vm2769_vm7, %v3519_v17, 0.0 }
 0x196   : > { %v2506_v54 = vpop.permute.xlu0 %2505  ;;  %v3449_v60 = vadd.f32 %v3448_v26, %v3447_v35  ;;  %v3552_v14 = vadd.f32 %v3551_v12, %v3550_v25 }
 0x197   : > { %v2943_v6 = vsel %vm2917_vm11, %v2910_v51, %v2506_v54 }
 0x198   : > { %v3451_v30 = vadd.f32 %v3450_v27, %v3449_v60  ;;  %v3554_v41 = vadd.f32 %v3553_v10, %v3552_v14 }
 0x199   : > { %v2684_v18 = vpop.permute.xlu1 %2683 }
 0x19a   : > { %v2602_v44 = vpop.permute.xlu0 %2601  ;;  %v3556_v63 = vadd.f32 %v3555_v53, %v3554_v41  ;;  %v3011_v45 = vsel %vm2983_vm14, %v2978_v40, %v2684_v18 }
 0x19b   : > { %v2976_v42 = vsel %vm2950_vm13, %v2943_v6, %v2602_v44 }
 0x1a0   : > { %v5974_v61 = vpop.permute.xlu1 %2173 }
 0x1a1   : > { %v2682_v37 = vpop.permute.xlu0 %2681  ;;  %v2814_v29 = vsel %vm2769_vm7, %v3887_v24, %v5974_v61 }
 0x1a2   : > { %v3009_v47 = vsel %vm2983_vm14, %v2976_v42, %v2682_v37 }
 0x1a6   : > { %v2762_v7 = vpop.permute.xlu0 %2761 }
 0x1a7   : > { %v2176_v0 = vpop.permute.xlu1 %2175  ;;  %v3042_v49 = vsel %vm3016_vm15, %v3009_v47, %v2762_v7 }
 0x1a8   : > { %4160 = vmatprep.mubr.msk.bf16.mxu1 %vm3085_vm0, %v3042_v49  ;;  %v2817_v19 = vsel %vm2769_vm7, %v3888_v36, %v2176_v0 }
 0x1ab   : > { %v2256_v4 = vpop.permute.xlu1 %2255  ;;  %v2764_v5 = vpop.permute.xlu0 %2763 }
 0x1ac   : > { %v3044_v34 = vsel %vm3016_vm15, %v3011_v45, %v2764_v5  ;;  %v2850_v59 = vsel %vm2818_vm8, %v2817_v19, %v2256_v4 }
 0x1ad   : > { %4161 = vmatmul.mubr.msk.bf16.gmra.mxu1 %vm3085_vm0, %v3044_v34 }
 0x1af   : > { %v2352_v11 = vpop.permute.xlu1 %2351  ;;  %v2254_v28 = vpop.permute.xlu0 %2253 }
 0x1b0   : > { %v2848_v3 = vsel %vm2818_vm8, %v2814_v29, %v2254_v28  ;;  %v2883_v42 = vsel %vm2851_vm9, %v2850_v59, %v2352_v11 }
 0x1b3   : > { %v4142_v23 = vpop.f32.mrf.mxu0  ;;  %v2350_v32 = vpop.permute.xlu0 %2349 }
 0x1b4   : > { %v4079_v31 = vpack.c.bf16 %v4142_v23, %v4142_v23  ;;  %v3524_v25 = vmul.f32 %v4142_v23, %v4142_v23  ;;  %v3456_v10 = vsel %vm2769_vm7, %v4142_v23, 0.0  ;;  %v2881_v51 = vsel %vm2851_vm9, %v2848_v3, %v2350_v32 }
 0x1b5   : > { %v2432_v43 = vpop.permute.xlu1 %2431  ;;  %v3172_v2 = vpop.f32.mrf.mxu0 }
 0x1b6   : > { %3418 = vst.msk [vmem:[%s4332_s22 + $0x18] sm:$0xf] %vm3411_vm1, %v4079_v31  ;;  %v4077_v55 = vpack.c.bf16 %v3172_v2, %v3172_v2  ;;  %v3452_v46 = vsel %vm2769_vm7, %v3172_v2, 0.0  ;;  %v3522_v9 = vmul.f32 %v3172_v2, %v3172_v2  ;;  %v3561_v44 = vsel %vm2769_vm7, %v3524_v25, 0.0 }
 0x1b7   : > { %v3453_v57 = vadd.f32 %v3452_v46, %v3451_v30  ;;  %v4143_v58 = vpop.f32.mrf.mxu0  ;;  %v2916_v56 = vsel %vm2884_vm10, %v2883_v42, %v2432_v43 }
 0x1b8   : > { %3416 = vst.msk [vmem:[%s4332_s22 + $0x10] sm:$0xf] %vm3411_vm1, %v4077_v55  ;;  %v3557_v35 = vsel %vm2769_vm7, %v3522_v9, 0.0  ;;  %v4080_v17 = vpack.c.bf16 %v4143_v58, %v4143_v58  ;;  %v3525_v30 = vmul.f32 %v4143_v58, %v4143_v58 }
 0x1b9   : > { %v3558_v62 = vadd.f32 %v3557_v35, %v3556_v63  ;;  %v3175_v26 = vpop.f32.mrf.mxu0  ;;  %v2512_v54 = vpop.permute.xlu1 %2511  ;;  %v3458_v63 = vsel %vm2769_vm7, %v4143_v58, 0.0 }
 0x1ba   : > { %3419 = vst.msk [vmem:[%s4332_s22 + $0x1c] sm:$0xf] %vm3411_vm1, %v4080_v17  ;;  %v4078_v52 = vpack.c.bf16 %v3175_v26, %v3175_v26  ;;  %v3454_v60 = vsel %vm2769_vm7, %v3175_v26, 0.0  ;;  %v3523_v12 = vmul.f32 %v3175_v26, %v3175_v26  ;;  %v3563_v38 = vsel %vm2769_vm7, %v3525_v30, 0.0 }
 0x1bb   : > { %v2430_v27 = vpop.permute.xlu0 %2429  ;;  %v3455_v14 = vadd.f32 %v3454_v60, %v3453_v57  ;;  %v2949_v8 = vsel %vm2917_vm11, %v2916_v56, %v2512_v54 }
 0x1bc   : > { %3417 = vst.msk [vmem:[%s4332_s22 + $0x14] sm:$0xf] %vm3411_vm1, %v4078_v52  ;;  %v3559_v41 = vsel %vm2769_vm7, %v3523_v12, 0.0  ;;  %v2914_v20 = vsel %vm2884_vm10, %v2881_v51, %v2430_v27 }
 0x1bd   : > { %v3457_v53 = vadd.f32 %v3456_v10, %v3455_v14  ;;  %v3560_v18 = vadd.f32 %v3559_v41, %v3558_v62  ;;  %v2608_v1 = vpop.permute.xlu1 %2607 }
 0x1be   : > { %v2982_v61 = vsel %vm2950_vm13, %v2949_v8, %v2608_v1 }
 0x1bf   : > { %v2510_v13 = vpop.permute.xlu0 %2509  ;;  %v3562_v15 = vadd.f32 %v3561_v44, %v3560_v18  ;;  %v3459_v39 = vadd.f32 %v3458_v63, %v3457_v53 }
 0x1c0   : > { %v2947_v36 = vsel %vm2917_vm11, %v2914_v20, %v2510_v13 }
 0x1c1   : > { %v3564_v33 = vadd.f32 %v3563_v38, %v3562_v15 }
 0x1c2   : > { %v2688_v37 = vpop.permute.xlu1 %2687 }
 0x1c3   : > { %v2606_v21 = vpop.permute.xlu0 %2605  ;;  %v3015_v0 = vsel %vm2983_vm14, %v2982_v61, %v2688_v37 }
 0x1c4   : > { %v2980_v22 = vsel %vm2950_vm13, %v2947_v36, %v2606_v21 }
 0x1c6   : > { %v2768_v24 = vpop.permute.xlu1 %2767 }
 0x1c7   : > { %v3048_v16 = vsel %vm3016_vm15, %v3015_v0, %v2768_v24 }
 0x1ca   : > { %v2686_v6 = vpop.permute.xlu0 %2685 }
 0x1cb   : > { %v3013_v50 = vsel %vm2983_vm14, %v2980_v22, %v2686_v6 }
 0x1ce   : > { %v2766_v47 = vpop.permute.xlu0 %2765 }
 0x1cf   : > { %v3046_v7 = vsel %vm3016_vm15, %v3013_v50, %v2766_v47 }
 0x1d0   : > { %4164 = vmatprep.mubr.msk.bf16.mxu1 %vm3085_vm0, %v3046_v7 }
 0x1d1   : > { %4165 = vmatmul.mubr.msk.bf16.gmra.mxu1 %vm3085_vm0, %v3048_v16 }
 0x1dd   : > { %v4146_v49 = vpop.f32.mrf.mxu0 }
 0x1de   : > { %v4083_v48 = vpack.c.bf16 %v4146_v49, %v4146_v49  ;;  %v3528_v32 = vmul.f32 %v4146_v49, %v4146_v49  ;;  %v3464_v57 = vsel %vm2769_vm7, %v4146_v49, 0.0 }
 0x1df   : > { %v3188_v40 = vpop.f32.mrf.mxu0 }
 0x1e0   : > { %3422 = vst.msk [vmem:[%s4332_s22 + $0x28] sm:$0xf] %vm3411_vm1, %v4083_v48  ;;  %v4081_v45 = vpack.c.bf16 %v3188_v40, %v3188_v40  ;;  %v3460_v4 = vsel %vm2769_vm7, %v3188_v40, 0.0  ;;  %v3526_v5 = vmul.f32 %v3188_v40, %v3188_v40  ;;  %v3569_v26 = vsel %vm2769_vm7, %v3528_v32, 0.0 }
 0x1e1   : > { %v3461_v34 = vadd.f32 %v3460_v4, %v3459_v39  ;;  %v4147_v11 = vpop.f32.mrf.mxu0 }
 0x1e2   : > { %3420 = vst.msk [vmem:[%s4332_s22 + $0x20] sm:$0xf] %vm3411_vm1, %v4081_v45  ;;  %v3565_v28 = vsel %vm2769_vm7, %v3526_v5, 0.0  ;;  %v4084_v23 = vpack.c.bf16 %v4147_v11, %v4147_v11  ;;  %v3529_v58 = vmul.f32 %v4147_v11, %v4147_v11  ;;  %v3466_v54 = vsel %vm2769_vm7, %v4147_v11, 0.0 }
 0x1e3   : > { %v3566_v43 = vadd.f32 %v3565_v28, %v3564_v33  ;;  %v3191_v31 = vpop.f32.mrf.mxu0 }
 0x1e4   : > { %3423 = vst.msk [vmem:[%s4332_s22 + $0x2c] sm:$0xf] %vm3411_vm1, %v4084_v23  ;;  %v4082_v2 = vpack.c.bf16 %v3191_v31, %v3191_v31  ;;  %v3462_v55 = vsel %vm2769_vm7, %v3191_v31, 0.0  ;;  %v3527_v46 = vmul.f32 %v3191_v31, %v3191_v31  ;;  %v3571_v60 = vsel %vm2769_vm7, %v3529_v58, 0.0 }
 0x1e5   : > { %v3463_v9 = vadd.f32 %v3462_v55, %v3461_v34 }
 0x1e6   : > { %3421 = vst.msk [vmem:[%s4332_s22 + $0x24] sm:$0xf] %vm3411_vm1, %v4082_v2  ;;  %v3567_v35 = vsel %vm2769_vm7, %v3527_v46, 0.0 }
 0x1e7   : > { %v3465_v17 = vadd.f32 %v3464_v57, %v3463_v9  ;;  %v3568_v62 = vadd.f32 %v3567_v35, %v3566_v43 }
 0x1e9   : > { %v3570_v25 = vadd.f32 %v3569_v26, %v3568_v62  ;;  %v3467_v52 = vadd.f32 %v3466_v54, %v3465_v17 }
 0x1eb   : > { %v3572_v12 = vadd.f32 %v3571_v60, %v3570_v25 }
 0x206   : > { %v4150_v27 = vpop.f32.mrf.mxu0 }
 0x207   : > { %v4087_v14 = vpack.c.bf16 %v4150_v27, %v4150_v27  ;;  %v3532_v1 = vmul.f32 %v4150_v27, %v4150_v27  ;;  %v3472_v37 = vsel %vm2769_vm7, %v4150_v27, 0.0 }
 0x208   : > { %v3204_v10 = vpop.f32.mrf.mxu0 }
 0x209   : > { %3426 = vst.msk [vmem:[%s4332_s22 + $0x38] sm:$0xf] %vm3411_vm1, %v4087_v14  ;;  %v4085_v30 = vpack.c.bf16 %v3204_v10, %v3204_v10  ;;  %v3468_v41 = vsel %vm2769_vm7, %v3204_v10, 0.0  ;;  %v3530_v53 = vmul.f32 %v3204_v10, %v3204_v10  ;;  %v3577_v6 = vsel %vm2769_vm7, %v3532_v1, 0.0 }
 0x20a   : > { %v3469_v18 = vadd.f32 %v3468_v41, %v3467_v52  ;;  %v4151_v44 = vpop.f32.mrf.mxu0 }
 0x20b   : > { %3424 = vst.msk [vmem:[%s4332_s22 + $0x30] sm:$0xf] %vm3411_vm1, %v4085_v30  ;;  %v3573_v63 = vsel %vm2769_vm7, %v3530_v53, 0.0  ;;  %v4088_v13 = vpack.c.bf16 %v4151_v44, %v4151_v44  ;;  %v3533_v29 = vmul.f32 %v4151_v44, %v4151_v44  ;;  %v3474_v42 = vsel %vm2769_vm7, %v4151_v44, 0.0 }
 0x20c   : > { %v3574_v15 = vadd.f32 %v3573_v63, %v3572_v12  ;;  %v3207_v39 = vpop.f32.mrf.mxu0 }
 0x20d   : > { %3427 = vst.msk [vmem:[%s4332_s22 + $0x3c] sm:$0xf] %vm3411_vm1, %v4088_v13  ;;  %v4086_v38 = vpack.c.bf16 %v3207_v39, %v3207_v39  ;;  %v3470_v33 = vsel %vm2769_vm7, %v3207_v39, 0.0  ;;  %v3531_v21 = vmul.f32 %v3207_v39, %v3207_v39  ;;  %v3579_v36 = vsel %vm2769_vm7, %v3533_v29, 0.0 }
 0x20e   : > { %v3471_v19 = vadd.f32 %v3470_v33, %v3469_v18 }
 0x20f   : > { %3425 = vst.msk [vmem:[%s4332_s22 + $0x34] sm:$0xf] %vm3411_vm1, %v4086_v38  ;;  %v3575_v59 = vsel %vm2769_vm7, %v3531_v21, 0.0 }
 0x210   : > { %v3473_v3 = vadd.f32 %v3472_v37, %v3471_v19  ;;  %v3576_v51 = vadd.f32 %v3575_v59, %v3574_v15 }
 0x212   : > { %v3578_v20 = vadd.f32 %v3577_v6, %v3576_v51  ;;  %v3475_v56 = vadd.f32 %v3474_v42, %v3473_v3 }
 0x214   : > { %v3580_v8 = vadd.f32 %v3579_v36, %v3578_v20 }
 0x219   : > { %v4154_v22 = vpop.f32.mrf.mxu1 }
 0x21a   : > { %v4091_v24 = vpack.c.bf16 %v4154_v22, %v4154_v22  ;;  %v3536_v4 = vmul.f32 %v4154_v22, %v4154_v22  ;;  %v3480_v23 = vsel %vm2769_vm7, %v4154_v22, 0.0 }
 0x21b   : > { %v3220_v61 = vpop.f32.mrf.mxu1 }
 0x21c   : > { %3430 = vst.msk [vmem:[%s4332_s22 + $0x48] sm:$0xf] %vm3411_vm1, %v4091_v24  ;;  %v4089_v50 = vpack.c.bf16 %v3220_v61, %v3220_v61  ;;  %v3476_v47 = vsel %vm2769_vm7, %v3220_v61, 0.0  ;;  %v3534_v0 = vmul.f32 %v3220_v61, %v3220_v61  ;;  %v3585_v55 = vsel %vm2769_vm7, %v3536_v4, 0.0 }
 0x21d   : > { %v3477_v7 = vadd.f32 %v3476_v47, %v3475_v56  ;;  %v4155_v16 = vpop.f32.mrf.mxu1 }
 0x21e   : > { %3428 = vst.msk [vmem:[%s4332_s22 + $0x40] sm:$0xf] %vm3411_vm1, %v4089_v50  ;;  %v3581_v49 = vsel %vm2769_vm7, %v3534_v0, 0.0  ;;  %v4092_v48 = vpack.c.bf16 %v4155_v16, %v4155_v16  ;;  %v3537_v43 = vmul.f32 %v4155_v16, %v4155_v16  ;;  %v3482_v46 = vsel %vm2769_vm7, %v4155_v16, 0.0 }
 0x21f   : > { %v3582_v40 = vadd.f32 %v3581_v49, %v3580_v8  ;;  %v3223_v45 = vpop.f32.mrf.mxu1 }
 0x220   : > { %3431 = vst.msk [vmem:[%s4332_s22 + $0x4c] sm:$0xf] %vm3411_vm1, %v4092_v48  ;;  %v4090_v5 = vpack.c.bf16 %v3223_v45, %v3223_v45  ;;  %v3478_v34 = vsel %vm2769_vm7, %v3223_v45, 0.0  ;;  %v3535_v11 = vmul.f32 %v3223_v45, %v3223_v45  ;;  %v3587_v58 = vsel %vm2769_vm7, %v3537_v43, 0.0 }
 0x221   : > { %v3479_v28 = vadd.f32 %v3478_v34, %v3477_v7 }
 0x222   : > { %3429 = vst.msk [vmem:[%s4332_s22 + $0x44] sm:$0xf] %vm3411_vm1, %v4090_v5  ;;  %v3583_v31 = vsel %vm2769_vm7, %v3535_v11, 0.0 }
 0x223   : > { %v3481_v32 = vadd.f32 %v3480_v23, %v3479_v28  ;;  %v3584_v2 = vadd.f32 %v3583_v31, %v3582_v40 }
 0x225   : > { %v3586_v9 = vadd.f32 %v3585_v55, %v3584_v2  ;;  %v3483_v57 = vadd.f32 %v3482_v46, %v3481_v32 }
 0x227   : > { %v3588_v35 = vadd.f32 %v3587_v58, %v3586_v9 }
 0x243   : > { %v4158_v17 = vpop.f32.mrf.mxu1 }
 0x244   : > { %v4095_v62 = vpack.c.bf16 %v4158_v17, %v4158_v17  ;;  %v3540_v30 = vmul.f32 %v4158_v17, %v4158_v17  ;;  %v3488_v13 = vsel %vm2769_vm7, %v4158_v17, 0.0 }
 0x245   : > { %v3236_v26 = vpop.f32.mrf.mxu1 }
 0x246   : > { %3434 = vst.msk [vmem:[%s4332_s22 + $0x58] sm:$0xf] %vm3411_vm1, %v4095_v62  ;;  %v4093_v54 = vpack.c.bf16 %v3236_v26, %v3236_v26  ;;  %v3484_v25 = vsel %vm2769_vm7, %v3236_v26, 0.0  ;;  %v3538_v52 = vmul.f32 %v3236_v26, %v3236_v26  ;;  %v3593_v33 = vsel %vm2769_vm7, %v3540_v30, 0.0 }
 0x247   : > { %v4159_v60 = vpop.f32.mrf.mxu1  ;;  %v3485_v14 = vadd.f32 %v3484_v25, %v3483_v57 }
 0x248   : > { %3432 = vst.msk [vmem:[%s4332_s22 + $0x50] sm:$0xf] %vm3411_vm1, %v4093_v54  ;;  %v3589_v12 = vsel %vm2769_vm7, %v3538_v52, 0.0  ;;  %v4096_v27 = vpack.c.bf16 %v4159_v60, %v4159_v60  ;;  %v3541_v15 = vmul.f32 %v4159_v60, %v4159_v60  ;;  %v3490_v21 = vsel %vm2769_vm7, %v4159_v60, 0.0 }
 0x249   : > { %v3239_v10 = vpop.f32.mrf.mxu1  ;;  %v3590_v44 = vadd.f32 %v3589_v12, %v3588_v35 }
 0x24a   : > { %3435 = vst.msk [vmem:[%s4332_s22 + $0x5c] sm:$0xf] %vm3411_vm1, %v4096_v27  ;;  %v4094_v41 = vpack.c.bf16 %v3239_v10, %v3239_v10  ;;  %v3486_v53 = vsel %vm2769_vm7, %v3239_v10, 0.0  ;;  %v3539_v18 = vmul.f32 %v3239_v10, %v3239_v10  ;;  %v3595_v29 = vsel %vm2769_vm7, %v3541_v15, 0.0 }
 0x24b   : > { %v3487_v63 = vadd.f32 %v3486_v53, %v3485_v14 }
 0x24c   : > { %3433 = vst.msk [vmem:[%s4332_s22 + $0x54] sm:$0xf] %vm3411_vm1, %v4094_v41  ;;  %v3591_v39 = vsel %vm2769_vm7, %v3539_v18, 0.0 }
 0x24d   : > { %v3489_v1 = vadd.f32 %v3488_v13, %v3487_v63  ;;  %v3592_v38 = vadd.f32 %v3591_v39, %v3590_v44 }
 0x24f   : > { %v3594_v19 = vadd.f32 %v3593_v33, %v3592_v38  ;;  %v3491_v37 = vadd.f32 %v3490_v21, %v3489_v1 }
 0x251   : > { %v3596_v59 = vadd.f32 %v3595_v29, %v3594_v19 }
 0x26d   : > { %v4162_v3 = vpop.f32.mrf.mxu1 }
 0x26e   : > { %v4099_v51 = vpack.c.bf16 %v4162_v3, %v4162_v3  ;;  %v3544_v48 = vmul.f32 %v4162_v3, %v4162_v3  ;;  %v3496_v45 = vsel %vm2769_vm7, %v4162_v3, 0.0 }
 0x26f   : > { %v3252_v6 = vpop.f32.mrf.mxu1 }
 0x270   : > { %3438 = vst.msk [vmem:[%s4332_s22 + $0x68] sm:$0xf] %vm3411_vm1, %v4099_v51  ;;  %v4097_v42 = vpack.c.bf16 %v3252_v6, %v3252_v6  ;;  %v3542_v22 = vmul.f32 %v3252_v6, %v3252_v6  ;;  %v3492_v24 = vsel %vm2769_vm7, %v3252_v6, 0.0  ;;  %v3601_v34 = vsel %vm2769_vm7, %v3544_v48, 0.0  ;;  %v3444_v51 = vld [vmem:[%s6147_s3] sm:$0x1] }
 0x271   : > { %v4163_v20 = vpop.f32.mrf.mxu1  ;;  %v3493_v0 = vadd.f32 %v3492_v24, %v3491_v37 }
 0x272   : > { %3436 = vst.msk [vmem:[%s4332_s22 + $0x60] sm:$0xf] %vm3411_vm1, %v4097_v42  ;;  %v4100_v56 = vpack.c.bf16 %v4163_v20, %v4163_v20  ;;  %v3597_v50 = vsel %vm2769_vm7, %v3542_v22, 0.0  ;;  %v3545_v11 = vmul.f32 %v4163_v20, %v4163_v20  ;;  %v3498_v31 = vsel %vm2769_vm7, %v4163_v20, 0.0  ;;  %v3517_v20 = vld [vmem:[%s6148_s4] sm:$0x1] }
 0x273   : > { %v3255_v36 = vpop.f32.mrf.mxu1  ;;  %v3598_v16 = vadd.f32 %v3597_v50, %v3596_v59 }
 0x274   : > { %3439 = vst.msk [vmem:[%s4332_s22 + $0x6c] sm:$0xf] %vm3411_vm1, %v4100_v56  ;;  %v4098_v8 = vpack.c.bf16 %v3255_v36, %v3255_v36  ;;  %v3543_v61 = vmul.f32 %v3255_v36, %v3255_v36  ;;  %v3494_v47 = vsel %vm2769_vm7, %v3255_v36, 0.0  ;;  %v3603_v57 = vsel %vm2769_vm7, %v3545_v11, 0.0 }
 0x275   : > { %v3495_v49 = vadd.f32 %v3494_v47, %v3493_v0 }
 0x276   : > { %3437 = vst.msk [vmem:[%s4332_s22 + $0x64] sm:$0xf] %vm3411_vm1, %v4098_v8  ;;  %v3599_v7 = vsel %vm2769_vm7, %v3543_v61, 0.0 }
 0x277   : > { %v3600_v40 = vadd.f32 %v3599_v7, %v3598_v16  ;;  %v3497_v4 = vadd.f32 %v3496_v45, %v3495_v49 }
 0x279   : > { %v3602_v23 = vadd.f32 %v3601_v34, %v3600_v40  ;;  %v3499_v46 = vadd.f32 %v3498_v31, %v3497_v4 }
 0x27b   : > { %v3604_v62 = vadd.f32 %v3603_v57, %v3602_v23 }
 0x291   : > { %v4166_v5 = vpop.f32.mrf.mxu1 }
 0x292   : > { %v4103_v28 = vpack.c.bf16 %v4166_v5, %v4166_v5  ;;  %v3548_v54 = vmul.f32 %v4166_v5, %v4166_v5  ;;  %v3504_v14 = vsel %vm2769_vm7, %v4166_v5, 0.0 }
 0x293   : > { %v3268_v43 = vpop.f32.mrf.mxu1 }
 0x294   : > { %3442 = vst.msk [vmem:[%s4332_s22 + $0x78] sm:$0xf] %vm3411_vm1, %v4103_v28  ;;  %v4101_v32 = vpack.c.bf16 %v3268_v43, %v3268_v43  ;;  %v3500_v2 = vsel %vm2769_vm7, %v3268_v43, 0.0  ;;  %v3546_v55 = vmul.f32 %v3268_v43, %v3268_v43  ;;  %v3609_v18 = vsel %vm2769_vm7, %v3548_v54, 0.0 }
 0x295   : > { %v4167_v9 = vpop.f32.mrf.mxu1  ;;  %v3501_v17 = vadd.f32 %v3500_v2, %v3499_v46 }
 0x296   : > { %3440 = vst.msk [vmem:[%s4332_s22 + $0x70] sm:$0xf] %vm3411_vm1, %v4101_v32  ;;  %v3605_v58 = vsel %vm2769_vm7, %v3546_v55, 0.0  ;;  %v4104_v35 = vpack.c.bf16 %v4167_v9, %v4167_v9  ;;  %v3549_v10 = vmul.f32 %v4167_v9, %v4167_v9  ;;  %v3506_v44 = vsel %vm2769_vm7, %v4167_v9, 0.0 }
 0x297   : > { %v3271_v26 = vpop.f32.mrf.mxu1  ;;  %v3606_v12 = vadd.f32 %v3605_v58, %v3604_v62 }
 0x298   : > { %3443 = vst.msk [vmem:[%s4332_s22 + $0x7c] sm:$0xf] %vm3411_vm1, %v4104_v35  ;;  %v4102_v25 = vpack.c.bf16 %v3271_v26, %v3271_v26  ;;  %v3502_v52 = vsel %vm2769_vm7, %v3271_v26, 0.0  ;;  %v3547_v60 = vmul.f32 %v3271_v26, %v3271_v26  ;;  %v3611_v15 = vsel %vm2769_vm7, %v3549_v10, 0.0 }
 0x299   : > { %v3503_v27 = vadd.f32 %v3502_v52, %v3501_v17 }
 0x29a   : > { %3441 = vst.msk [vmem:[%s4332_s22 + $0x74] sm:$0xf] %vm3411_vm1, %v4102_v25  ;;  %v3607_v30 = vsel %vm2769_vm7, %v3547_v60, 0.0 }
 0x29b   : > { %v3505_v41 = vadd.f32 %v3504_v14, %v3503_v27  ;;  %v3608_v53 = vadd.f32 %v3607_v30, %v3606_v12 }
 0x29d   : > { %v3507_v63 = vadd.f32 %v3506_v44, %v3505_v41  ;;  %v3610_v13 = vadd.f32 %v3609_v18, %v3608_v53 }
 0x29f   : > { %v3508_v39 = vrot.slane %v3507_v63, 4  ;;  %v3612_v1 = vadd.f32 %v3611_v15, %v3610_v13 }
 0x2a1   : > { %v3509_v38 = vadd.f32 %v3508_v39, %v3507_v63  ;;  %v3613_v33 = vrot.slane %v3612_v1, 4 }
 0x2a3   : > { %v3510_v21 = vrot.slane %v3509_v38, 2  ;;  %v3614_v19 = vadd.f32 %v3613_v33, %v3612_v1 }
 0x2a5   : > { %v3511_v37 = vadd.f32 %v3510_v21, %v3509_v38  ;;  %v3615_v29 = vrot.slane %v3614_v19, 2 }
 0x2a7   : > { %v3512_v59 = vrot.slane %v3511_v37, 1  ;;  %v3616_v3 = vadd.f32 %v3615_v29, %v3614_v19 }
 0x2a9   : > { %v3513_v6 = vadd.f32 %v3512_v59, %v3511_v37  ;;  %v3617_v42 = vrot.slane %v3616_v3, 1 }
 0x2ab   : > { %v3514_v56 = vadd.f32 %v3513_v6, %v3444_v51  ;;  %v3618_v36 = vadd.f32 %v3617_v42, %v3616_v3 }
 0x2ad   : > { %3516 = vst.msk [vmem:[%s6147_s3] sm:$0x1] %vm3515_vm2, %v3514_v56  ;;  %v3619_v8 = vadd.f32 %v3618_v36, %v3517_v20 }
 0x2af   : > { %3620 = vst.msk [vmem:[%s6148_s4] sm:$0x1] %vm3515_vm2, %v3619_v8 }
 0x2b0 PF: > { %s15_s15 = sadd.s32 1, %s4285_s15  }
 0x2b1   : > { %p12_p5 = scmp.ge.s32.totalorder %s15_s15, 4  }
 0x2b3   :  { %14 = sbr.rel (!%p12_p5) target bundleno = 1 (0x1), region = 80 }

</bundles_post_ra>
